<compile_context>
chip_gen: v7x
topology: tpu7x:2x2x1
jax: 0.10.0
libtpu: 0.0.40
codegen_flags: <defaults>
</compile_context>

<pallas_src>
import functools

import jax
import jax.numpy as jnp
from jax.experimental import pallas as pl
from jax.experimental.pallas import tpu as pltpu

NEG_INF = -1e30  # Python float: becomes a literal, never a captured kernel constant.

CFG = dict(
    n_mels=8,
    d_model=32,
    n_heads=4,
    ffn=64,
    enc_layers=2,
    dec_layers=2,
    vocab=64,
    max_source_positions=16,   # encoder length after the stride-2 conv
    max_target_positions=16,
)


# ----------------------------------------------------------------------------
# In-kernel helpers (operate on VMEM-resident values / refs)
# ----------------------------------------------------------------------------
def _bf16(x):
    return x.astype(jnp.bfloat16)


def _layernorm(x, gb):
    """x: (M, D) f32, gb: (2, D) f32 stacked [gamma; beta].  eps matches torch."""
    mu = jnp.mean(x, axis=-1, keepdims=True)
    var = jnp.mean(jnp.square(x - mu), axis=-1, keepdims=True)
    return (x - mu) * jax.lax.rsqrt(var + 1e-5) * gb[0:1, :] + gb[1:2, :]


def _gelu(x):
    # TODO(synk): HF Whisper uses exact erf-GELU; tanh approximation used here for
    # guaranteed Mosaic lowering (difference is ~1e-3 relative).
    c = 0.7978845608028654  # sqrt(2/pi)
    return 0.5 * x * (1.0 + jnp.tanh(c * (x + 0.044715 * x * x * x)))


def _sdp(q, k, v, causal):
    """Single-head scaled-dot-product attention.  q:(Tq,Dh) k/v:(Tk,Dh) f32 -> (Tq,Dh) f32."""
    s = jax.lax.dot_general(_bf16(q), _bf16(k), (((1,), (1,)), ((), ())),
                            preferred_element_type=jnp.float32)   # q @ k^T, no relayout
    if causal:
        tq, tk = s.shape
        row = jax.lax.broadcasted_iota(jnp.int32, (tq, tk), 0)
        col = jax.lax.broadcasted_iota(jnp.int32, (tq, tk), 1)
        s = jnp.where(col <= row, s, NEG_INF)
    s = s - jnp.max(s, axis=-1, keepdims=True)
    p = jnp.exp(s)
    p = p * pl.reciprocal(jnp.sum(p, axis=-1, keepdims=True), approx=True)
    return jnp.dot(_bf16(p), _bf16(v), preferred_element_type=jnp.float32)


def _mha(x_q, x_kv, wq, bq, wk, wv, bv, wo, bo, n_heads, causal):
    """Multi-head attention with per-head weights pre-split at pack time.

    x_q: (Tq, D) f32 (post-LN), x_kv: (Tk, D) f32.
    wq/wk/wv: (H, D, Dh), wo: (H, Dh, D), bq/bv: (H, 1, Dh), bo: (1, D).
    Head split / merge is leading-axis indexing only (no lane slicing, no concat);
    each head is a plain 2-D MXU matmul.  Returns (Tq, D) f32.
    """
    Dh = x_q.shape[-1] // n_heads
    scale = Dh ** -0.5
    xqb = _bf16(x_q)
    xkb = _bf16(x_kv)
    out = None
    for h in range(n_heads):
        q = (jnp.dot(xqb, wq[h], preferred_element_type=jnp.float32) + bq[h]) * scale
        k = jnp.dot(xkb, wk[h], preferred_element_type=jnp.float32)     # k_proj: no bias
        v = jnp.dot(xkb, wv[h], preferred_element_type=jnp.float32) + bv[h]
        ctx = _sdp(q, k, v, causal)
        contrib = jnp.dot(_bf16(ctx), wo[h], preferred_element_type=jnp.float32)
        out = contrib if out is None else out + contrib
    return out + bo


def _ffn(x, fc1w, fc1b, fc2w, fc2b):
    f = _gelu(jnp.dot(_bf16(x), fc1w, preferred_element_type=jnp.float32) + fc1b)
    return jnp.dot(_bf16(f), fc2w, preferred_element_type=jnp.float32) + fc2b


# ----------------------------------------------------------------------------
# Fused stack kernels: grid = (batch, layer); residual stream stays in VMEM scratch
# ----------------------------------------------------------------------------
def _encoder_stack_kernel(h0_ref, pos_ref,
                          wq_ref, bq_ref, wk_ref, wv_ref, bv_ref, wo_ref, bo_ref,
                          ln1_ref, ln2_ref,
                          fc1w_ref, fc1b_ref, fc2w_ref, fc2b_ref,
                          encln_ref,
                          o_ref, h_acc, *, n_heads):
    layer = pl.program_id(1)

    @pl.when(layer == 0)
    def _init():
        h_acc[...] = h0_ref[0] + pos_ref[...]          # fold positional-embedding add

    h = h_acc[...]

    # --- self attention (pre-LN), mask-free in the encoder ---
    x = _layernorm(h, ln1_ref[0])
    h = h + _mha(x, x,
                 wq_ref.at[0], bq_ref.at[0], wk_ref.at[0], wv_ref.at[0], bv_ref.at[0],
                 wo_ref.at[0], bo_ref[0], n_heads, causal=False)

    # --- FFN (pre-LN) ---
    x = _layernorm(h, ln2_ref[0])
    h = h + _ffn(x, fc1w_ref[0], fc1b_ref[0], fc2w_ref[0], fc2b_ref[0])

    h_acc[...] = h

    @pl.when(layer == pl.num_programs(1) - 1)
    def _finalize():
        o_ref[0] = _layernorm(h, encln_ref[...])        # fold encoder final LayerNorm


def _decoder_stack_kernel(h0_ref, pos_ref, enc_ref,
                          swq_ref, sbq_ref, swk_ref, swv_ref, sbv_ref, swo_ref, sbo_ref,
                          cwq_ref, cbq_ref, cwk_ref, cwv_ref, cbv_ref, cwo_ref, cbo_ref,
                          ln1_ref, ln2_ref, ln3_ref,
                          fc1w_ref, fc1b_ref, fc2w_ref, fc2b_ref,
                          decln_ref, embT_ref,
                          o_ref, h_acc, *, n_heads):
    layer = pl.program_id(1)

    @pl.when(layer == 0)
    def _init():
        h_acc[...] = h0_ref[0] + pos_ref[...]

    h = h_acc[...]
    enc = enc_ref[0]

    # --- masked self attention (causal mask built in-kernel, nothing DMA'd) ---
    x = _layernorm(h, ln1_ref[0])
    h = h + _mha(x, x,
                 swq_ref.at[0], sbq_ref.at[0], swk_ref.at[0], swv_ref.at[0], sbv_ref.at[0],
                 swo_ref.at[0], sbo_ref[0], n_heads, causal=True)

    # --- cross attention (K/V from encoder output, no mask) ---
    x = _layernorm(h, ln2_ref[0])
    h = h + _mha(x, enc,
                 cwq_ref.at[0], cbq_ref.at[0], cwk_ref.at[0], cwv_ref.at[0], cbv_ref.at[0],
                 cwo_ref.at[0], cbo_ref[0], n_heads, causal=False)

    # --- FFN ---
    x = _layernorm(h, ln3_ref[0])
    h = h + _ffn(x, fc1w_ref[0], fc1b_ref[0], fc2w_ref[0], fc2b_ref[0])

    h_acc[...] = h

    @pl.when(layer == pl.num_programs(1) - 1)
    def _finalize():
        # fold final LayerNorm + tied LM head (pre-transposed (D, V) weight, no in-kernel .T)
        x = _layernorm(h, decln_ref[...])
        o_ref[0] = jnp.dot(_bf16(x), embT_ref[...], preferred_element_type=jnp.float32)


def _conv_gelu_kernel(x_ref, w_ref, b_ref, o_ref):
    """im2col conv as matmul + bias + GELU (Whisper conv stem)."""
    o_ref[...] = _gelu(jnp.dot(x_ref[...], w_ref[...],
                               preferred_element_type=jnp.float32) + b_ref[...])


# ----------------------------------------------------------------------------
# BlockSpec helpers
# ----------------------------------------------------------------------------
def _per_batch_spec(shape):
    n = len(shape)
    return pl.BlockSpec((1,) + tuple(shape[1:]),
                        lambda b, l, n=n: (b,) + (0,) * (n - 1))


def _per_layer_spec(shape):
    n = len(shape)
    return pl.BlockSpec((1,) + tuple(shape[1:]),
                        lambda b, l, n=n: (l,) + (0,) * (n - 1))


def _const_spec(shape):
    n = len(shape)
    return pl.BlockSpec(tuple(shape), lambda b, l, n=n: (0,) * n)


def _full_spec(shape):
    n = len(shape)
    return pl.BlockSpec(tuple(shape), lambda i, n=n: (0,) * n)


# ----------------------------------------------------------------------------
# pallas_call wrappers
# ----------------------------------------------------------------------------
_ENC_LAYER_KEYS = ("wq", "bq", "wk", "wv", "bv", "wo", "bo",
                   "ln1", "ln2", "fc1_w", "fc1_b", "fc2_w", "fc2_b")
_DEC_LAYER_KEYS = ("swq", "sbq", "swk", "swv", "sbv", "swo", "sbo",
                   "cwq", "cbq", "cwk", "cwv", "cbv", "cwo", "cbo",
                   "ln1", "ln2", "ln3", "fc1_w", "fc1_b", "fc2_w", "fc2_b")


def pallas_encoder_stack(h0, pos, stk, enc_ln, n_heads):
    """All encoder layers + final LayerNorm in one pallas_call, grid=(B, n_layers)."""
    B, Te, D = h0.shape
    n_layers = stk["wq"].shape[0]
    layer_args = [stk[k] for k in _ENC_LAYER_KEYS]
    inputs = [h0, pos] + layer_args + [enc_ln]
    in_specs = ([_per_batch_spec(h0.shape), _const_spec(pos.shape)]
                + [_per_layer_spec(a.shape) for a in layer_args]
                + [_const_spec(enc_ln.shape)])
    return pl.pallas_call(
        functools.partial(_encoder_stack_kernel, n_heads=n_heads),
        grid=(B, n_layers),
        in_specs=in_specs,
        out_specs=_per_batch_spec((B, Te, D)),
        out_shape=jax.ShapeDtypeStruct((B, Te, D), jnp.float32),
        scratch_shapes=[pltpu.VMEM((Te, D), jnp.float32)],
        compiler_params=pltpu.CompilerParams(
            dimension_semantics=("parallel", "arbitrary")),
    )(*inputs)


def pallas_decoder_stack(h0, pos, enc, stk, dec_ln, emb_T, n_heads):
    """All decoder layers + final LayerNorm + tied LM head in one pallas_call."""
    B, Td, D = h0.shape
    V = emb_T.shape[1]
    n_layers = stk["swq"].shape[0]
    layer_args = [stk[k] for k in _DEC_LAYER_KEYS]
    inputs = [h0, pos, enc] + layer_args + [dec_ln, emb_T]
    in_specs = ([_per_batch_spec(h0.shape), _const_spec(pos.shape), _per_batch_spec(enc.shape)]
                + [_per_layer_spec(a.shape) for a in layer_args]
                + [_const_spec(dec_ln.shape), _const_spec(emb_T.shape)])
    return pl.pallas_call(
        functools.partial(_decoder_stack_kernel, n_heads=n_heads),
        grid=(B, n_layers),
        in_specs=in_specs,
        out_specs=_per_batch_spec((B, Td, V)),
        out_shape=jax.ShapeDtypeStruct((B, Td, V), jnp.float32),
        scratch_shapes=[pltpu.VMEM((Td, D), jnp.float32)],
        compiler_params=pltpu.CompilerParams(
            dimension_semantics=("parallel", "arbitrary")),
    )(*inputs)


def whisper_conv1d_gelu(x_btc, w_mat, b, *, stride, padding, ksize):
    """F.gelu(Conv1d) with time-major (B, T, Cin) activations.

    w_mat: pre-packed (Cin*K, Cout) bf16 weight (PyTorch (Cout,Cin,K) flattened as
    ci*K+k, transposed once at pack time).  Returns (B, Tout, Cout) f32.
    """
    # TODO(synk): fold the im2col window gather into the Pallas kernel via an
    # overlapping-window index_map when scaling to real Whisper frame counts.
    B, T, Cin = x_btc.shape
    Cout = w_mat.shape[1]
    Tout = (T + 2 * padding - ksize) // stride + 1
    xp = jnp.pad(x_btc, ((0, 0), (padding, padding), (0, 0)))
    cols = [xp[:, k:k + stride * Tout:stride, :] for k in range(ksize)]
    patches = _bf16(jnp.stack(cols, axis=-1).reshape(B * Tout, Cin * ksize))  # bf16 patches
    y = pl.pallas_call(
        _conv_gelu_kernel,
        grid=(1,),
        in_specs=[_full_spec(patches.shape), _full_spec(w_mat.shape), _full_spec(b.shape)],
        out_specs=_full_spec((B * Tout, Cout)),
        out_shape=jax.ShapeDtypeStruct((B * Tout, Cout), jnp.float32),
    )(patches, w_mat, b)
    return y.reshape(B, Tout, Cout)


# ----------------------------------------------------------------------------
# Whisper model (tiny, deterministically-initialized synthetic weights)
# ----------------------------------------------------------------------------
def _make_param_fn(key):
    keys = iter(jax.random.split(key, 1024))

    def nrm(shape, scale=0.02):
        return scale * jax.random.normal(next(keys), shape, dtype=jnp.float32)

    return nrm


def _init_attn(nrm, D):
    return dict(
        q_w=nrm((D, D)), q_b=nrm((D,)),
        k_w=nrm((D, D)),                      # k_proj has no bias in Whisper
        v_w=nrm((D, D)), v_b=nrm((D,)),
        o_w=nrm((D, D)), o_b=nrm((D,)),
    )


def init_whisper_params(key, cfg):
    nrm = _make_param_fn(key)
    D, F, V = cfg["d_model"], cfg["ffn"], cfg["vocab"]
    p = dict(
        conv1_w=nrm((D, cfg["n_mels"], 3)), conv1_b=nrm((D,)),
        conv2_w=nrm((D, D, 3)), conv2_b=nrm((D,)),
        enc_pos=nrm((cfg["max_source_positions"], D)),
        dec_pos=nrm((cfg["max_target_positions"], D)),
        embed_tokens=nrm((V, D)),
        enc_ln_g=jnp.ones((D,), jnp.float32), enc_ln_b=jnp.zeros((D,), jnp.float32),
        dec_ln_g=jnp.ones((D,), jnp.float32), dec_ln_b=jnp.zeros((D,), jnp.float32),
        enc_layers=[], dec_layers=[],
    )
    for _ in range(cfg["enc_layers"]):
        p["enc_layers"].append(dict(
            attn=_init_attn(nrm, D),
            ln1_g=jnp.ones((D,)), ln1_b=jnp.zeros((D,)),
            ln2_g=jnp.ones((D,)), ln2_b=jnp.zeros((D,)),
            fc1_w=nrm((D, F)), fc1_b=nrm((F,)),
            fc2_w=nrm((F, D)), fc2_b=nrm((D,)),
        ))
    for _ in range(cfg["dec_layers"]):
        p["dec_layers"].append(dict(
            self_attn=_init_attn(nrm, D),
            cross_attn=_init_attn(nrm, D),
            ln1_g=jnp.ones((D,)), ln1_b=jnp.zeros((D,)),
            ln2_g=jnp.ones((D,)), ln2_b=jnp.zeros((D,)),
            ln3_g=jnp.ones((D,)), ln3_b=jnp.zeros((D,)),
            fc1_w=nrm((D, F)), fc1_b=nrm((F,)),
            fc2_w=nrm((F, D)), fc2_b=nrm((D,)),
        ))
    return p


def pack_params(p, cfg):
    """One-time (outside jit) weight re-layout: per-head splits on leading axes,
    per-layer stacking, conv im2col weights, pre-transposed (D,V) LM head, bf16 casts."""
    D, H = cfg["d_model"], cfg["n_heads"]
    Dh = D // H

    def bf(w):
        return jnp.asarray(w, jnp.bfloat16)

    def b_row(b):
        return jnp.asarray(b, jnp.float32).reshape(1, -1)

    def ln(g, b):
        return jnp.stack([jnp.asarray(g, jnp.float32), jnp.asarray(b, jnp.float32)])

    def w_in_heads(w):    # (D_in, D_out) -> (H, D_in, Dh): split the OUT dim per head
        return bf(jnp.transpose(jnp.reshape(w, (D, H, Dh)), (1, 0, 2)))

    def w_out_heads(w):   # (D_ctx, D_out) -> (H, Dh, D_out): split the ctx/IN dim per head
        return bf(jnp.reshape(w, (H, Dh, D)))

    def b_heads(b):       # (D,) -> (H, 1, Dh)
        return jnp.asarray(b, jnp.float32).reshape(H, 1, Dh)

    def pack_attn(a, prefix=""):
        return {prefix + "wq": w_in_heads(a["q_w"]), prefix + "bq": b_heads(a["q_b"]),
                prefix + "wk": w_in_heads(a["k_w"]),
                prefix + "wv": w_in_heads(a["v_w"]), prefix + "bv": b_heads(a["v_b"]),
                prefix + "wo": w_out_heads(a["o_w"]), prefix + "bo": b_row(a["o_b"])}

    def conv_w(w):
        Cout, Cin, K = w.shape
        return bf(w.reshape(Cout, Cin * K).T)   # (Cin*K, Cout), once

    def stack_layers(layer_dicts):
        return {k: jnp.stack([d[k] for d in layer_dicts]) for k in layer_dicts[0]}

    enc_layers = []
    for l in p["enc_layers"]:
        d = pack_attn(l["attn"])
        d.update(ln1=ln(l["ln1_g"], l["ln1_b"]), ln2=ln(l["ln2_g"], l["ln2_b"]),
                 fc1_w=bf(l["fc1_w"]), fc1_b=b_row(l["fc1_b"]),
                 fc2_w=bf(l["fc2_w"]), fc2_b=b_row(l["fc2_b"]))
        enc_layers.append(d)

    dec_layers = []
    for l in p["dec_layers"]:
        d = {}
        d.update(pack_attn(l["self_attn"], "s"))
        d.update(pack_attn(l["cross_attn"], "c"))
        d.update(ln1=ln(l["ln1_g"], l["ln1_b"]), ln2=ln(l["ln2_g"], l["ln2_b"]),
                 ln3=ln(l["ln3_g"], l["ln3_b"]),
                 fc1_w=bf(l["fc1_w"]), fc1_b=b_row(l["fc1_b"]),
                 fc2_w=bf(l["fc2_w"]), fc2_b=b_row(l["fc2_b"]))
        dec_layers.append(d)

    return dict(
        conv1_w=conv_w(p["conv1_w"]), conv1_b=b_row(p["conv1_b"]),
        conv2_w=conv_w(p["conv2_w"]), conv2_b=b_row(p["conv2_b"]),
        enc_pos=p["enc_pos"], dec_pos=p["dec_pos"],
        embed_tokens=p["embed_tokens"],            # f32 for the token gather
        emb_T=bf(p["embed_tokens"].T),             # (D, V) bf16, pre-transposed tied LM head
        enc_ln=ln(p["enc_ln_g"], p["enc_ln_b"]),
        dec_ln=ln(p["dec_ln_g"], p["dec_ln_b"]),
        enc=stack_layers(enc_layers),              # each value: (n_layers, ...) stacked
        dec=stack_layers(dec_layers),
    )


@jax.jit
def whisper_wrapper_forward(packed, input_features, decoder_input_ids):
    """Returns logits, matching WhisperForConditionalGeneration(...).logits."""
    cfg = CFG
    H = cfg["n_heads"]

    # ---------------- Encoder ----------------
    x = input_features.transpose(0, 2, 1)                    # NCW -> (B, T, n_mels), once
    x = whisper_conv1d_gelu(x, packed["conv1_w"], packed["conv1_b"],
                            stride=1, padding=1, ksize=3)
    x = whisper_conv1d_gelu(x, packed["conv2_w"], packed["conv2_b"],
                            stride=2, padding=1, ksize=3)     # (B, Te, D), time-major
    B, Te, _ = x.shape
    enc = pallas_encoder_stack(x, packed["enc_pos"][:Te], packed["enc"],
                               packed["enc_ln"], H)           # all layers + final LN, 1 call

    # ---------------- Decoder ----------------
    Td = decoder_input_ids.shape[1]
    # TODO(synk): token-embedding gather stays in plain JAX (not the hot path).
    tok = jnp.take(packed["embed_tokens"], decoder_input_ids, axis=0)   # (B, Td, D)
    logits = pallas_decoder_stack(tok, packed["dec_pos"][:Td], enc, packed["dec"],
                                  packed["dec_ln"], packed["emb_T"], H)  # layers + LN + LM head
    return logits


# ----------------------------------------------------------------------------
if __name__ == "__main__":
    key = jax.random.PRNGKey(0)
    k_param, k_feat, k_ids = jax.random.split(key, 3)

    params = init_whisper_params(k_param, CFG)
    packed = pack_params(params, CFG)        # one-time weight re-layout, outside jit

    B = 2
    T_frames = 2 * CFG["max_source_positions"]          # 32 mel frames -> Te = 16
    dec_len = 8
    input_features = jax.random.normal(
        k_feat, (B, CFG["n_mels"], T_frames), dtype=jnp.float32)
    decoder_input_ids = jax.random.randint(
        k_ids, (B, dec_len), 0, CFG["vocab"], dtype=jnp.int32)

    logits = whisper_wrapper_forward(packed, input_features, decoder_input_ids)
    logits = jax.block_until_ready(logits)

    assert logits.shape == (B, dec_len, CFG["vocab"]), logits.shape
    assert bool(jnp.all(jnp.isfinite(logits)))
    print("KERNEL_OK")
</pallas_src>

<mosaic_0001>
module attributes {stable_mosaic.version = 11 : i64} {
  func.func @_conv_gelu_kernel(%arg0: i32, %arg1: memref<64x24xbf16, #tpu.memory_space<vmem>>, %arg2: memref<24x32xbf16, #tpu.memory_space<vmem>>, %arg3: memref<1x32xf32, #tpu.memory_space<vmem>>, %arg4: memref<64x32xf32, #tpu.memory_space<vmem>>) attributes {dimension_semantics = [#tpu.dimension_semantics<arbitrary>], iteration_bounds = array<i64: 1>, scalar_prefetch = 0 : i64, scratch_operands = 0 : i64, tpu.core_type = #tpu.core_type<tc>, window_params = [{pipeline_mode = #tpu.pipeline_mode<synchronous>, transform_indices = @transform_0, window_bounds = array<i64: 64, 24>}, {pipeline_mode = #tpu.pipeline_mode<synchronous>, transform_indices = @transform_1, window_bounds = array<i64: 24, 32>}, {pipeline_mode = #tpu.pipeline_mode<synchronous>, transform_indices = @transform_2, window_bounds = array<i64: 1, 32>}, {pipeline_mode = #tpu.pipeline_mode<synchronous>, transform_indices = @transform_3, window_bounds = array<i64: 64, 32>}]} {
    %c0 = arith.constant 0 : index
    %c0_0 = arith.constant 0 : index
    %0 = vector.load %arg1[%c0, %c0_0] : memref<64x24xbf16, #tpu.memory_space<vmem>>, vector<64x24xbf16>
    %c0_1 = arith.constant 0 : index
    %c0_2 = arith.constant 0 : index
    %1 = vector.load %arg2[%c0_1, %c0_2] : memref<24x32xbf16, #tpu.memory_space<vmem>>, vector<24x32xbf16>
    %cst = arith.constant dense<0.000000e+00> : vector<64x32xf32>
    %2 = tpu.matmul %0, %1, %cst {dimension_numbers = #tpu.dot_dimension_numbers<[1], [0], [0], [1], [0, 0, 1, 1], [], []>} : vector<64x24xbf16>, vector<24x32xbf16>, vector<64x32xf32> -> vector<64x32xf32>
    %c0_3 = arith.constant 0 : index
    %c0_4 = arith.constant 0 : index
    %3 = vector.load %arg3[%c0_3, %c0_4] : memref<1x32xf32, #tpu.memory_space<vmem>>, vector<1x32xf32>
    %4 = vector.broadcast %3 : vector<1x32xf32> to vector<64x32xf32>
    %5 = arith.addf %2, %4 : vector<64x32xf32>
    %cst_5 = arith.constant 5.000000e-01 : f32
    %6 = vector.broadcast %cst_5 : f32 to vector<64x32xf32>
    %7 = arith.mulf %6, %5 : vector<64x32xf32>
    %cst_6 = arith.constant 4.471500e-02 : f32
    %8 = vector.broadcast %cst_6 : f32 to vector<64x32xf32>
    %9 = arith.mulf %8, %5 : vector<64x32xf32>
    %10 = arith.mulf %9, %5 : vector<64x32xf32>
    %11 = arith.mulf %10, %5 : vector<64x32xf32>
    %12 = arith.addf %5, %11 : vector<64x32xf32>
    %cst_7 = arith.constant 0.797884583 : f32
    %13 = vector.broadcast %cst_7 : f32 to vector<64x32xf32>
    %14 = arith.mulf %13, %12 : vector<64x32xf32>
    %15 = math.tanh %14 : vector<64x32xf32>
    %cst_8 = arith.constant 1.000000e+00 : f32
    %16 = vector.broadcast %cst_8 : f32 to vector<64x32xf32>
    %17 = arith.addf %16, %15 : vector<64x32xf32>
    %18 = arith.mulf %7, %17 : vector<64x32xf32>
    %c0_9 = arith.constant 0 : index
    %c0_10 = arith.constant 0 : index
    %19 = vector.load %arg4[%c0_9, %c0_10] : memref<64x32xf32, #tpu.memory_space<vmem>>, vector<64x32xf32>
    tpu.vector_store %arg4[%c0_9, %c0_10], %18 {strides = array<i32>} : memref<64x32xf32, #tpu.memory_space<vmem>>, vector<64x32xf32>,
    return
  }
  func.func @transform_0(%arg0: i32) -> (i32, i32) {
    %c0_i32 = arith.constant 0 : i32
    %c0_i32_0 = arith.constant 0 : i32
    %c0_i32_1 = arith.constant 0 : i32
    return %c0_i32, %c0_i32_0 : i32, i32
  }
  func.func @transform_1(%arg0: i32) -> (i32, i32) {
    %c0_i32 = arith.constant 0 : i32
    %c0_i32_0 = arith.constant 0 : i32
    %c0_i32_1 = arith.constant 0 : i32
    return %c0_i32, %c0_i32_0 : i32, i32
  }
  func.func @transform_2(%arg0: i32) -> (i32, i32) {
    %c0_i32 = arith.constant 0 : i32
    %c0_i32_0 = arith.constant 0 : i32
    %c0_i32_1 = arith.constant 0 : i32
    return %c0_i32, %c0_i32_0 : i32, i32
  }
  func.func @transform_3(%arg0: i32) -> (i32, i32) {
    %c0_i32 = arith.constant 0 : i32
    %c0_i32_0 = arith.constant 0 : i32
    %c0_i32_1 = arith.constant 0 : i32
    return %c0_i32, %c0_i32_0 : i32, i32
  }
}

module attributes {stable_mosaic.version = 11 : i64} {
  func.func @_conv_gelu_kernel(%arg0: i32, %arg1: memref<32x96xbf16, #tpu.memory_space<vmem>>, %arg2: memref<96x32xbf16, #tpu.memory_space<vmem>>, %arg3: memref<1x32xf32, #tpu.memory_space<vmem>>, %arg4: memref<32x32xf32, #tpu.memory_space<vmem>>) attributes {dimension_semantics = [#tpu.dimension_semantics<arbitrary>], iteration_bounds = array<i64: 1>, scalar_prefetch = 0 : i64, scratch_operands = 0 : i64, tpu.core_type = #tpu.core_type<tc>, window_params = [{pipeline_mode = #tpu.pipeline_mode<synchronous>, transform_indices = @transform_0, window_bounds = array<i64: 32, 96>}, {pipeline_mode = #tpu.pipeline_mode<synchronous>, transform_indices = @transform_1, window_bounds = array<i64: 96, 32>}, {pipeline_mode = #tpu.pipeline_mode<synchronous>, transform_indices = @transform_2, window_bounds = array<i64: 1, 32>}, {pipeline_mode = #tpu.pipeline_mode<synchronous>, transform_indices = @transform_3, window_bounds = array<i64: 32, 32>}]} {
    %c0 = arith.constant 0 : index
    %c0_0 = arith.constant 0 : index
    %0 = vector.load %arg1[%c0, %c0_0] : memref<32x96xbf16, #tpu.memory_space<vmem>>, vector<32x96xbf16>
    %c0_1 = arith.constant 0 : index
    %c0_2 = arith.constant 0 : index
    %1 = vector.load %arg2[%c0_1, %c0_2] : memref<96x32xbf16, #tpu.memory_space<vmem>>, vector<96x32xbf16>
    %cst = arith.constant dense<0.000000e+00> : vector<32x32xf32>
    %2 = tpu.matmul %0, %1, %cst {dimension_numbers = #tpu.dot_dimension_numbers<[1], [0], [0], [1], [0, 0, 1, 1], [], []>} : vector<32x96xbf16>, vector<96x32xbf16>, vector<32x32xf32> -> vector<32x32xf32>
    %c0_3 = arith.constant 0 : index
    %c0_4 = arith.constant 0 : index
    %3 = vector.load %arg3[%c0_3, %c0_4] : memref<1x32xf32, #tpu.memory_space<vmem>>, vector<1x32xf32>
    %4 = vector.broadcast %3 : vector<1x32xf32> to vector<32x32xf32>
    %5 = arith.addf %2, %4 : vector<32x32xf32>
    %cst_5 = arith.constant 5.000000e-01 : f32
    %6 = vector.broadcast %cst_5 : f32 to vector<32x32xf32>
    %7 = arith.mulf %6, %5 : vector<32x32xf32>
    %cst_6 = arith.constant 4.471500e-02 : f32
    %8 = vector.broadcast %cst_6 : f32 to vector<32x32xf32>
    %9 = arith.mulf %8, %5 : vector<32x32xf32>
    %10 = arith.mulf %9, %5 : vector<32x32xf32>
    %11 = arith.mulf %10, %5 : vector<32x32xf32>
    %12 = arith.addf %5, %11 : vector<32x32xf32>
    %cst_7 = arith.constant 0.797884583 : f32
    %13 = vector.broadcast %cst_7 : f32 to vector<32x32xf32>
    %14 = arith.mulf %13, %12 : vector<32x32xf32>
    %15 = math.tanh %14 : vector<32x32xf32>
    %cst_8 = arith.constant 1.000000e+00 : f32
    %16 = vector.broadcast %cst_8 : f32 to vector<32x32xf32>
    %17 = arith.addf %16, %15 : vector<32x32xf32>
    %18 = arith.mulf %7, %17 : vector<32x32xf32>
    %c0_9 = arith.constant 0 : index
    %c0_10 = arith.constant 0 : index
    %19 = vector.load %arg4[%c0_9, %c0_10] : memref<32x32xf32, #tpu.memory_space<vmem>>, vector<32x32xf32>
    tpu.vector_store %arg4[%c0_9, %c0_10], %18 {strides = array<i32>} : memref<32x32xf32, #tpu.memory_space<vmem>>, vector<32x32xf32>,
    return
  }
  func.func @transform_0(%arg0: i32) -> (i32, i32) {
    %c0_i32 = arith.constant 0 : i32
    %c0_i32_0 = arith.constant 0 : i32
    %c0_i32_1 = arith.constant 0 : i32
    return %c0_i32, %c0_i32_0 : i32, i32
  }
  func.func @transform_1(%arg0: i32) -> (i32, i32) {
    %c0_i32 = arith.constant 0 : i32
    %c0_i32_0 = arith.constant 0 : i32
    %c0_i32_1 = arith.constant 0 : i32
    return %c0_i32, %c0_i32_0 : i32, i32
  }
  func.func @transform_2(%arg0: i32) -> (i32, i32) {
    %c0_i32 = arith.constant 0 : i32
    %c0_i32_0 = arith.constant 0 : i32
    %c0_i32_1 = arith.constant 0 : i32
    return %c0_i32, %c0_i32_0 : i32, i32
  }
  func.func @transform_3(%arg0: i32) -> (i32, i32) {
    %c0_i32 = arith.constant 0 : i32
    %c0_i32_0 = arith.constant 0 : i32
    %c0_i32_1 = arith.constant 0 : i32
    return %c0_i32, %c0_i32_0 : i32, i32
  }
}

module attributes {stable_mosaic.version = 11 : i64} {
  func.func @_encoder_stack_kernel(%arg0: i32, %arg1: i32, %arg2: memref<1x16x32xf32, #tpu.memory_space<vmem>>, %arg3: memref<16x32xf32, #tpu.memory_space<vmem>>, %arg4: memref<1x4x32x8xbf16, #tpu.memory_space<vmem>>, %arg5: memref<1x4x1x8xf32, #tpu.memory_space<vmem>>, %arg6: memref<1x4x32x8xbf16, #tpu.memory_space<vmem>>, %arg7: memref<1x4x32x8xbf16, #tpu.memory_space<vmem>>, %arg8: memref<1x4x1x8xf32, #tpu.memory_space<vmem>>, %arg9: memref<1x4x8x32xbf16, #tpu.memory_space<vmem>>, %arg10: memref<1x1x32xf32, #tpu.memory_space<vmem>>, %arg11: memref<1x2x32xf32, #tpu.memory_space<vmem>>, %arg12: memref<1x2x32xf32, #tpu.memory_space<vmem>>, %arg13: memref<1x32x64xbf16, #tpu.memory_space<vmem>>, %arg14: memref<1x1x64xf32, #tpu.memory_space<vmem>>, %arg15: memref<1x64x32xbf16, #tpu.memory_space<vmem>>, %arg16: memref<1x1x32xf32, #tpu.memory_space<vmem>>, %arg17: memref<2x32xf32, #tpu.memory_space<vmem>>, %arg18: memref<1x16x32xf32, #tpu.memory_space<vmem>>, %arg19: memref<16x32xf32, #tpu.memory_space<vmem>>) attributes {dimension_semantics = [#tpu.dimension_semantics<parallel>, #tpu.dimension_semantics<arbitrary>], iteration_bounds = array<i64: 2, 2>, scalar_prefetch = 0 : i64, scratch_operands = 1 : i64, tpu.core_type = #tpu.core_type<tc>, window_params = [{transform_indices = @transform_0, window_bounds = array<i64: 1, 16, 32>}, {pipeline_mode = #tpu.pipeline_mode<synchronous>, transform_indices = @transform_1, window_bounds = array<i64: 16, 32>}, {transform_indices = @transform_2, window_bounds = array<i64: 1, 4, 32, 8>}, {transform_indices = @transform_3, window_bounds = array<i64: 1, 4, 1, 8>}, {transform_indices = @transform_4, window_bounds = array<i64: 1, 4, 32, 8>}, {transform_indices = @transform_5, window_bounds = array<i64: 1, 4, 32, 8>}, {transform_indices = @transform_6, window_bounds = array<i64: 1, 4, 1, 8>}, {transform_indices = @transform_7, window_bounds = array<i64: 1, 4, 8, 32>}, {transform_indices = @transform_8, window_bounds = array<i64: 1, 1, 32>}, {transform_indices = @transform_9, window_bounds = array<i64: 1, 2, 32>}, {transform_indices = @transform_10, window_bounds = array<i64: 1, 2, 32>}, {transform_indices = @transform_11, window_bounds = array<i64: 1, 32, 64>}, {transform_indices = @transform_12, window_bounds = array<i64: 1, 1, 64>}, {transform_indices = @transform_13, window_bounds = array<i64: 1, 64, 32>}, {transform_indices = @transform_14, window_bounds = array<i64: 1, 1, 32>}, {pipeline_mode = #tpu.pipeline_mode<synchronous>, transform_indices = @transform_15, window_bounds = array<i64: 2, 32>}, {transform_indices = @transform_16, window_bounds = array<i64: 1, 16, 32>}]} {
    %c0_i32 = arith.constant 0 : i32
    %0 = arith.cmpi eq, %arg1, %c0_i32 : i32
    %1 = arith.extui %0 : i1 to i32
    %c0_i32_0 = arith.constant 0 : i32
    %2 = arith.cmpi ne, %1, %c0_i32_0 : i32
    scf.if %2 {
      %c0_242 = arith.constant 0 : index
      %c0_243 = arith.constant 0 : index
      %c0_244 = arith.constant 0 : index
      %304 = vector.load %arg2[%c0_242, %c0_243, %c0_244] : memref<1x16x32xf32, #tpu.memory_space<vmem>>, vector<1x16x32xf32>
      %305 = vector.shape_cast %304 : vector<1x16x32xf32> to vector<16x32xf32>
      %c0_245 = arith.constant 0 : index
      %c0_246 = arith.constant 0 : index
      %306 = vector.load %arg3[%c0_245, %c0_246] : memref<16x32xf32, #tpu.memory_space<vmem>>, vector<16x32xf32>
      %307 = arith.addf %305, %306 : vector<16x32xf32>
      %c0_247 = arith.constant 0 : index
      %c0_248 = arith.constant 0 : index
      %308 = vector.load %arg19[%c0_247, %c0_248] : memref<16x32xf32, #tpu.memory_space<vmem>>, vector<16x32xf32>
      tpu.vector_store %arg19[%c0_247, %c0_248], %307 {strides = array<i32>} : memref<16x32xf32, #tpu.memory_space<vmem>>, vector<16x32xf32>,
    } else {
    }
    %c0 = arith.constant 0 : index
    %c0_1 = arith.constant 0 : index
    %3 = vector.load %arg19[%c0, %c0_1] : memref<16x32xf32, #tpu.memory_space<vmem>>, vector<16x32xf32>
    %c0_2 = arith.constant 0 : index
    %c0_3 = arith.constant 0 : index
    %c0_4 = arith.constant 0 : index
    %4 = vector.load %arg11[%c0_2, %c0_3, %c0_4] : memref<1x2x32xf32, #tpu.memory_space<vmem>>, vector<1x2x32xf32>
    %5 = vector.shape_cast %4 : vector<1x2x32xf32> to vector<2x32xf32>
    %cst = arith.constant dense<0.000000e+00> : vector<16xf32>
    %6 = vector.multi_reduction <add>, %3, %cst [1] : vector<16x32xf32> to vector<16xf32>
    %7 = vector.shape_cast %6 : vector<16xf32> to vector<16x1xf32>
    %cst_5 = arith.constant 3.200000e+01 : f32
    %8 = vector.broadcast %cst_5 : f32 to vector<16x1xf32>
    %9 = arith.divf %7, %8 : vector<16x1xf32>
    %10 = vector.broadcast %9 : vector<16x1xf32> to vector<16x32xf32>
    %11 = arith.subf %3, %10 : vector<16x32xf32>
    %12 = arith.mulf %11, %11 : vector<16x32xf32>
    %cst_6 = arith.constant dense<0.000000e+00> : vector<16xf32>
    %13 = vector.multi_reduction <add>, %12, %cst_6 [1] : vector<16x32xf32> to vector<16xf32>
    %14 = vector.shape_cast %13 : vector<16xf32> to vector<16x1xf32>
    %cst_7 = arith.constant 3.200000e+01 : f32
    %15 = vector.broadcast %cst_7 : f32 to vector<16x1xf32>
    %16 = arith.divf %14, %15 : vector<16x1xf32>
    %17 = vector.broadcast %9 : vector<16x1xf32> to vector<16x32xf32>
    %18 = arith.subf %3, %17 : vector<16x32xf32>
    %cst_8 = arith.constant 9.99999974E-6 : f32
    %19 = vector.broadcast %cst_8 : f32 to vector<16x1xf32>
    %20 = arith.addf %16, %19 : vector<16x1xf32>
    %21 = math.rsqrt %20 : vector<16x1xf32>
    %22 = vector.broadcast %21 : vector<16x1xf32> to vector<16x32xf32>
    %23 = arith.mulf %18, %22 : vector<16x32xf32>
    %24 = vector.extract_strided_slice %5 {offsets = [0, 0], sizes = [1, 32], strides = [1, 1]} : vector<2x32xf32> to vector<1x32xf32>
    %25 = vector.broadcast %24 : vector<1x32xf32> to vector<16x32xf32>
    %26 = arith.mulf %23, %25 : vector<16x32xf32>
    %27 = vector.extract_strided_slice %5 {offsets = [1, 0], sizes = [1, 32], strides = [1, 1]} : vector<2x32xf32> to vector<1x32xf32>
    %28 = vector.broadcast %27 : vector<1x32xf32> to vector<16x32xf32>
    %29 = arith.addf %26, %28 : vector<16x32xf32>
    %c0_9 = arith.constant 0 : index
    %c0_10 = arith.constant 0 : index
    %c0_11 = arith.constant 0 : index
    %30 = vector.load %arg10[%c0_9, %c0_10, %c0_11] : memref<1x1x32xf32, #tpu.memory_space<vmem>>, vector<1x1x32xf32>
    %31 = vector.shape_cast %30 : vector<1x1x32xf32> to vector<1x32xf32>
    %32 = arith.truncf %29 : vector<16x32xf32> to vector<16x32xbf16>
    %33 = arith.truncf %29 : vector<16x32xf32> to vector<16x32xbf16>
    %c0_i32_12 = arith.constant 0 : i32
    %c0_i32_13 = arith.constant 0 : i32
    %c0_i32_14 = arith.constant 0 : i32
    %c0_i32_15 = arith.constant 0 : i32
    %34 = tpu.memref_slice %arg4[%c0_i32_12, %c0_i32_13, %c0_i32_14, %c0_i32_15] : memref<1x4x32x8xbf16, #tpu.memory_space<vmem>> -> memref<1x4x32x8xbf16, #tpu.memory_space<vmem>>
    %35 = tpu.memref_squeeze %34 : memref<1x4x32x8xbf16, #tpu.memory_space<vmem>> -> memref<4x32x8xbf16, #tpu.memory_space<vmem>>
    %c0_16 = arith.constant 0 : index
    %c0_17 = arith.constant 0 : index
    %c0_18 = arith.constant 0 : index
    %36 = vector.load %35[%c0_16, %c0_17, %c0_18] : memref<4x32x8xbf16, #tpu.memory_space<vmem>>, vector<1x32x8xbf16>
    %37 = vector.shape_cast %36 : vector<1x32x8xbf16> to vector<32x8xbf16>
    %cst_19 = arith.constant dense<0.000000e+00> : vector<16x8xf32>
    %38 = tpu.matmul %32, %37, %cst_19 {dimension_numbers = #tpu.dot_dimension_numbers<[1], [0], [0], [1], [0, 0, 1, 1], [], []>} : vector<16x32xbf16>, vector<32x8xbf16>, vector<16x8xf32> -> vector<16x8xf32>
    %c0_i32_20 = arith.constant 0 : i32
    %c0_i32_21 = arith.constant 0 : i32
    %c0_i32_22 = arith.constant 0 : i32
    %c0_i32_23 = arith.constant 0 : i32
    %39 = tpu.memref_slice %arg5[%c0_i32_20, %c0_i32_21, %c0_i32_22, %c0_i32_23] : memref<1x4x1x8xf32, #tpu.memory_space<vmem>> -> memref<1x4x1x8xf32, #tpu.memory_space<vmem>>
    %40 = tpu.memref_squeeze %39 : memref<1x4x1x8xf32, #tpu.memory_space<vmem>> -> memref<4x1x8xf32, #tpu.memory_space<vmem>>
    %c0_24 = arith.constant 0 : index
    %c0_25 = arith.constant 0 : index
    %c0_26 = arith.constant 0 : index
    %41 = vector.load %40[%c0_24, %c0_25, %c0_26] : memref<4x1x8xf32, #tpu.memory_space<vmem>>, vector<1x1x8xf32>
    %42 = vector.shape_cast %41 : vector<1x1x8xf32> to vector<1x8xf32>
    %43 = vector.broadcast %42 : vector<1x8xf32> to vector<16x8xf32>
    %44 = arith.addf %38, %43 : vector<16x8xf32>
    %cst_27 = arith.constant 0.353553385 : f32
    %45 = vector.broadcast %cst_27 : f32 to vector<16x8xf32>
    %46 = arith.mulf %44, %45 : vector<16x8xf32>
    %c0_i32_28 = arith.constant 0 : i32
    %c0_i32_29 = arith.constant 0 : i32
    %c0_i32_30 = arith.constant 0 : i32
    %c0_i32_31 = arith.constant 0 : i32
    %47 = tpu.memref_slice %arg6[%c0_i32_28, %c0_i32_29, %c0_i32_30, %c0_i32_31] : memref<1x4x32x8xbf16, #tpu.memory_space<vmem>> -> memref<1x4x32x8xbf16, #tpu.memory_space<vmem>>
    %48 = tpu.memref_squeeze %47 : memref<1x4x32x8xbf16, #tpu.memory_space<vmem>> -> memref<4x32x8xbf16, #tpu.memory_space<vmem>>
    %c0_32 = arith.constant 0 : index
    %c0_33 = arith.constant 0 : index
    %c0_34 = arith.constant 0 : index
    %49 = vector.load %48[%c0_32, %c0_33, %c0_34] : memref<4x32x8xbf16, #tpu.memory_space<vmem>>, vector<1x32x8xbf16>
    %50 = vector.shape_cast %49 : vector<1x32x8xbf16> to vector<32x8xbf16>
    %cst_35 = arith.constant dense<0.000000e+00> : vector<16x8xf32>
    %51 = tpu.matmul %33, %50, %cst_35 {dimension_numbers = #tpu.dot_dimension_numbers<[1], [0], [0], [1], [0, 0, 1, 1], [], []>} : vector<16x32xbf16>, vector<32x8xbf16>, vector<16x8xf32> -> vector<16x8xf32>
    %c0_i32_36 = arith.constant 0 : i32
    %c0_i32_37 = arith.constant 0 : i32
    %c0_i32_38 = arith.constant 0 : i32
    %c0_i32_39 = arith.constant 0 : i32
    %52 = tpu.memref_slice %arg7[%c0_i32_36, %c0_i32_37, %c0_i32_38, %c0_i32_39] : memref<1x4x32x8xbf16, #tpu.memory_space<vmem>> -> memref<1x4x32x8xbf16, #tpu.memory_space<vmem>>
    %53 = tpu.memref_squeeze %52 : memref<1x4x32x8xbf16, #tpu.memory_space<vmem>> -> memref<4x32x8xbf16, #tpu.memory_space<vmem>>
    %c0_40 = arith.constant 0 : index
    %c0_41 = arith.constant 0 : index
    %c0_42 = arith.constant 0 : index
    %54 = vector.load %53[%c0_40, %c0_41, %c0_42] : memref<4x32x8xbf16, #tpu.memory_space<vmem>>, vector<1x32x8xbf16>
    %55 = vector.shape_cast %54 : vector<1x32x8xbf16> to vector<32x8xbf16>
    %cst_43 = arith.constant dense<0.000000e+00> : vector<16x8xf32>
    %56 = tpu.matmul %33, %55, %cst_43 {dimension_numbers = #tpu.dot_dimension_numbers<[1], [0], [0], [1], [0, 0, 1, 1], [], []>} : vector<16x32xbf16>, vector<32x8xbf16>, vector<16x8xf32> -> vector<16x8xf32>
    %c0_i32_44 = arith.constant 0 : i32
    %c0_i32_45 = arith.constant 0 : i32
    %c0_i32_46 = arith.constant 0 : i32
    %c0_i32_47 = arith.constant 0 : i32
    %57 = tpu.memref_slice %arg8[%c0_i32_44, %c0_i32_45, %c0_i32_46, %c0_i32_47] : memref<1x4x1x8xf32, #tpu.memory_space<vmem>> -> memref<1x4x1x8xf32, #tpu.memory_space<vmem>>
    %58 = tpu.memref_squeeze %57 : memref<1x4x1x8xf32, #tpu.memory_space<vmem>> -> memref<4x1x8xf32, #tpu.memory_space<vmem>>
    %c0_48 = arith.constant 0 : index
    %c0_49 = arith.constant 0 : index
    %c0_50 = arith.constant 0 : index
    %59 = vector.load %58[%c0_48, %c0_49, %c0_50] : memref<4x1x8xf32, #tpu.memory_space<vmem>>, vector<1x1x8xf32>
    %60 = vector.shape_cast %59 : vector<1x1x8xf32> to vector<1x8xf32>
    %61 = vector.broadcast %60 : vector<1x8xf32> to vector<16x8xf32>
    %62 = arith.addf %56, %61 : vector<16x8xf32>
    %63 = arith.truncf %46 : vector<16x8xf32> to vector<16x8xbf16>
    %64 = arith.truncf %51 : vector<16x8xf32> to vector<16x8xbf16>
    %cst_51 = arith.constant dense<0.000000e+00> : vector<16x16xf32>
    %65 = tpu.matmul %63, %64, %cst_51 {dimension_numbers = #tpu.dot_dimension_numbers<[1], [1], [0], [0], [0, 0, 1, 0], [], []>} : vector<16x8xbf16>, vector<16x8xbf16>, vector<16x16xf32> -> vector<16x16xf32>
    %cst_52 = arith.constant dense<0xFF800000> : vector<16xf32>
    %66 = vector.multi_reduction <maximumf>, %65, %cst_52 [1] : vector<16x16xf32> to vector<16xf32>
    %67 = vector.shape_cast %66 : vector<16xf32> to vector<16x1xf32>
    %68 = vector.broadcast %67 : vector<16x1xf32> to vector<16x16xf32>
    %69 = arith.subf %65, %68 : vector<16x16xf32>
    %70 = math.exp %69 : vector<16x16xf32>
    %cst_53 = arith.constant dense<0.000000e+00> : vector<16xf32>
    %71 = vector.multi_reduction <add>, %70, %cst_53 [1] : vector<16x16xf32> to vector<16xf32>
    %72 = vector.shape_cast %71 : vector<16xf32> to vector<16x1xf32>
    %73 = tpu.reciprocal %72 {approx = true} : vector<16x1xf32> -> vector<16x1xf32>
    %74 = vector.broadcast %73 : vector<16x1xf32> to vector<16x16xf32>
    %75 = arith.mulf %70, %74 : vector<16x16xf32>
    %76 = arith.truncf %75 : vector<16x16xf32> to vector<16x16xbf16>
    %77 = arith.truncf %62 : vector<16x8xf32> to vector<16x8xbf16>
    %cst_54 = arith.constant dense<0.000000e+00> : vector<16x8xf32>
    %78 = tpu.matmul %76, %77, %cst_54 {dimension_numbers = #tpu.dot_dimension_numbers<[1], [0], [0], [1], [0, 0, 1, 1], [], []>} : vector<16x16xbf16>, vector<16x8xbf16>, vector<16x8xf32> -> vector<16x8xf32>
    %79 = arith.truncf %78 : vector<16x8xf32> to vector<16x8xbf16>
    %c0_i32_55 = arith.constant 0 : i32
    %c0_i32_56 = arith.constant 0 : i32
    %c0_i32_57 = arith.constant 0 : i32
    %c0_i32_58 = arith.constant 0 : i32
    %80 = tpu.memref_slice %arg9[%c0_i32_55, %c0_i32_56, %c0_i32_57, %c0_i32_58] : memref<1x4x8x32xbf16, #tpu.memory_space<vmem>> -> memref<1x4x8x32xbf16, #tpu.memory_space<vmem>>
    %81 = tpu.memref_squeeze %80 : memref<1x4x8x32xbf16, #tpu.memory_space<vmem>> -> memref<4x8x32xbf16, #tpu.memory_space<vmem>>
    %c0_59 = arith.constant 0 : index
    %c0_60 = arith.constant 0 : index
    %c0_61 = arith.constant 0 : index
    %82 = vector.load %81[%c0_59, %c0_60, %c0_61] : memref<4x8x32xbf16, #tpu.memory_space<vmem>>, vector<1x8x32xbf16>
    %83 = vector.shape_cast %82 : vector<1x8x32xbf16> to vector<8x32xbf16>
    %cst_62 = arith.constant dense<0.000000e+00> : vector<16x32xf32>
    %84 = tpu.matmul %79, %83, %cst_62 {dimension_numbers = #tpu.dot_dimension_numbers<[1], [0], [0], [1], [0, 0, 1, 1], [], []>} : vector<16x8xbf16>, vector<8x32xbf16>, vector<16x32xf32> -> vector<16x32xf32>
    %c0_i32_63 = arith.constant 0 : i32
    %c0_i32_64 = arith.constant 0 : i32
    %c0_i32_65 = arith.constant 0 : i32
    %c0_i32_66 = arith.constant 0 : i32
    %85 = tpu.memref_slice %arg4[%c0_i32_63, %c0_i32_64, %c0_i32_65, %c0_i32_66] : memref<1x4x32x8xbf16, #tpu.memory_space<vmem>> -> memref<1x4x32x8xbf16, #tpu.memory_space<vmem>>
    %86 = tpu.memref_squeeze %85 : memref<1x4x32x8xbf16, #tpu.memory_space<vmem>> -> memref<4x32x8xbf16, #tpu.memory_space<vmem>>
    %c1 = arith.constant 1 : index
    %c0_67 = arith.constant 0 : index
    %c0_68 = arith.constant 0 : index
    %87 = vector.load %86[%c1, %c0_67, %c0_68] : memref<4x32x8xbf16, #tpu.memory_space<vmem>>, vector<1x32x8xbf16>
    %88 = vector.shape_cast %87 : vector<1x32x8xbf16> to vector<32x8xbf16>
    %cst_69 = arith.constant dense<0.000000e+00> : vector<16x8xf32>
    %89 = tpu.matmul %32, %88, %cst_69 {dimension_numbers = #tpu.dot_dimension_numbers<[1], [0], [0], [1], [0, 0, 1, 1], [], []>} : vector<16x32xbf16>, vector<32x8xbf16>, vector<16x8xf32> -> vector<16x8xf32>
    %c0_i32_70 = arith.constant 0 : i32
    %c0_i32_71 = arith.constant 0 : i32
    %c0_i32_72 = arith.constant 0 : i32
    %c0_i32_73 = arith.constant 0 : i32
    %90 = tpu.memref_slice %arg5[%c0_i32_70, %c0_i32_71, %c0_i32_72, %c0_i32_73] : memref<1x4x1x8xf32, #tpu.memory_space<vmem>> -> memref<1x4x1x8xf32, #tpu.memory_space<vmem>>
    %91 = tpu.memref_squeeze %90 : memref<1x4x1x8xf32, #tpu.memory_space<vmem>> -> memref<4x1x8xf32, #tpu.memory_space<vmem>>
    %c1_74 = arith.constant 1 : index
    %c0_75 = arith.constant 0 : index
    %c0_76 = arith.constant 0 : index
    %92 = vector.load %91[%c1_74, %c0_75, %c0_76] : memref<4x1x8xf32, #tpu.memory_space<vmem>>, vector<1x1x8xf32>
    %93 = vector.shape_cast %92 : vector<1x1x8xf32> to vector<1x8xf32>
    %94 = vector.broadcast %93 : vector<1x8xf32> to vector<16x8xf32>
    %95 = arith.addf %89, %94 : vector<16x8xf32>
    %cst_77 = arith.constant 0.353553385 : f32
    %96 = vector.broadcast %cst_77 : f32 to vector<16x8xf32>
    %97 = arith.mulf %95, %96 : vector<16x8xf32>
    %c0_i32_78 = arith.constant 0 : i32
    %c0_i32_79 = arith.constant 0 : i32
    %c0_i32_80 = arith.constant 0 : i32
    %c0_i32_81 = arith.constant 0 : i32
    %98 = tpu.memref_slice %arg6[%c0_i32_78, %c0_i32_79, %c0_i32_80, %c0_i32_81] : memref<1x4x32x8xbf16, #tpu.memory_space<vmem>> -> memref<1x4x32x8xbf16, #tpu.memory_space<vmem>>
    %99 = tpu.memref_squeeze %98 : memref<1x4x32x8xbf16, #tpu.memory_space<vmem>> -> memref<4x32x8xbf16, #tpu.memory_space<vmem>>
    %c1_82 = arith.constant 1 : index
    %c0_83 = arith.constant 0 : index
    %c0_84 = arith.constant 0 : index
    %100 = vector.load %99[%c1_82, %c0_83, %c0_84] : memref<4x32x8xbf16, #tpu.memory_space<vmem>>, vector<1x32x8xbf16>
    %101 = vector.shape_cast %100 : vector<1x32x8xbf16> to vector<32x8xbf16>
    %cst_85 = arith.constant dense<0.000000e+00> : vector<16x8xf32>
    %102 = tpu.matmul %33, %101, %cst_85 {dimension_numbers = #tpu.dot_dimension_numbers<[1], [0], [0], [1], [0, 0, 1, 1], [], []>} : vector<16x32xbf16>, vector<32x8xbf16>, vector<16x8xf32> -> vector<16x8xf32>
    %c0_i32_86 = arith.constant 0 : i32
    %c0_i32_87 = arith.constant 0 : i32
    %c0_i32_88 = arith.constant 0 : i32
    %c0_i32_89 = arith.constant 0 : i32
    %103 = tpu.memref_slice %arg7[%c0_i32_86, %c0_i32_87, %c0_i32_88, %c0_i32_89] : memref<1x4x32x8xbf16, #tpu.memory_space<vmem>> -> memref<1x4x32x8xbf16, #tpu.memory_space<vmem>>
    %104 = tpu.memref_squeeze %103 : memref<1x4x32x8xbf16, #tpu.memory_space<vmem>> -> memref<4x32x8xbf16, #tpu.memory_space<vmem>>
    %c1_90 = arith.constant 1 : index
    %c0_91 = arith.constant 0 : index
    %c0_92 = arith.constant 0 : index
    %105 = vector.load %104[%c1_90, %c0_91, %c0_92] : memref<4x32x8xbf16, #tpu.memory_space<vmem>>, vector<1x32x8xbf16>
    %106 = vector.shape_cast %105 : vector<1x32x8xbf16> to vector<32x8xbf16>
    %cst_93 = arith.constant dense<0.000000e+00> : vector<16x8xf32>
    %107 = tpu.matmul %33, %106, %cst_93 {dimension_numbers = #tpu.dot_dimension_numbers<[1], [0], [0], [1], [0, 0, 1, 1], [], []>} : vector<16x32xbf16>, vector<32x8xbf16>, vector<16x8xf32> -> vector<16x8xf32>
    %c0_i32_94 = arith.constant 0 : i32
    %c0_i32_95 = arith.constant 0 : i32
    %c0_i32_96 = arith.constant 0 : i32
    %c0_i32_97 = arith.constant 0 : i32
    %108 = tpu.memref_slice %arg8[%c0_i32_94, %c0_i32_95, %c0_i32_96, %c0_i32_97] : memref<1x4x1x8xf32, #tpu.memory_space<vmem>> -> memref<1x4x1x8xf32, #tpu.memory_space<vmem>>
    %109 = tpu.memref_squeeze %108 : memref<1x4x1x8xf32, #tpu.memory_space<vmem>> -> memref<4x1x8xf32, #tpu.memory_space<vmem>>
    %c1_98 = arith.constant 1 : index
    %c0_99 = arith.constant 0 : index
    %c0_100 = arith.constant 0 : index
    %110 = vector.load %109[%c1_98, %c0_99, %c0_100] : memref<4x1x8xf32, #tpu.memory_space<vmem>>, vector<1x1x8xf32>
    %111 = vector.shape_cast %110 : vector<1x1x8xf32> to vector<1x8xf32>
    %112 = vector.broadcast %111 : vector<1x8xf32> to vector<16x8xf32>
    %113 = arith.addf %107, %112 : vector<16x8xf32>
    %114 = arith.truncf %97 : vector<16x8xf32> to vector<16x8xbf16>
    %115 = arith.truncf %102 : vector<16x8xf32> to vector<16x8xbf16>
    %cst_101 = arith.constant dense<0.000000e+00> : vector<16x16xf32>
    %116 = tpu.matmul %114, %115, %cst_101 {dimension_numbers = #tpu.dot_dimension_numbers<[1], [1], [0], [0], [0, 0, 1, 0], [], []>} : vector<16x8xbf16>, vector<16x8xbf16>, vector<16x16xf32> -> vector<16x16xf32>
    %cst_102 = arith.constant dense<0xFF800000> : vector<16xf32>
    %117 = vector.multi_reduction <maximumf>, %116, %cst_102 [1] : vector<16x16xf32> to vector<16xf32>
    %118 = vector.shape_cast %117 : vector<16xf32> to vector<16x1xf32>
    %119 = vector.broadcast %118 : vector<16x1xf32> to vector<16x16xf32>
    %120 = arith.subf %116, %119 : vector<16x16xf32>
    %121 = math.exp %120 : vector<16x16xf32>
    %cst_103 = arith.constant dense<0.000000e+00> : vector<16xf32>
    %122 = vector.multi_reduction <add>, %121, %cst_103 [1] : vector<16x16xf32> to vector<16xf32>
    %123 = vector.shape_cast %122 : vector<16xf32> to vector<16x1xf32>
    %124 = tpu.reciprocal %123 {approx = true} : vector<16x1xf32> -> vector<16x1xf32>
    %125 = vector.broadcast %124 : vector<16x1xf32> to vector<16x16xf32>
    %126 = arith.mulf %121, %125 : vector<16x16xf32>
    %127 = arith.truncf %126 : vector<16x16xf32> to vector<16x16xbf16>
    %128 = arith.truncf %113 : vector<16x8xf32> to vector<16x8xbf16>
    %cst_104 = arith.constant dense<0.000000e+00> : vector<16x8xf32>
    %129 = tpu.matmul %127, %128, %cst_104 {dimension_numbers = #tpu.dot_dimension_numbers<[1], [0], [0], [1], [0, 0, 1, 1], [], []>} : vector<16x16xbf16>, vector<16x8xbf16>, vector<16x8xf32> -> vector<16x8xf32>
    %130 = arith.truncf %129 : vector<16x8xf32> to vector<16x8xbf16>
    %c0_i32_105 = arith.constant 0 : i32
    %c0_i32_106 = arith.constant 0 : i32
    %c0_i32_107 = arith.constant 0 : i32
    %c0_i32_108 = arith.constant 0 : i32
    %131 = tpu.memref_slice %arg9[%c0_i32_105, %c0_i32_106, %c0_i32_107, %c0_i32_108] : memref<1x4x8x32xbf16, #tpu.memory_space<vmem>> -> memref<1x4x8x32xbf16, #tpu.memory_space<vmem>>
    %132 = tpu.memref_squeeze %131 : memref<1x4x8x32xbf16, #tpu.memory_space<vmem>> -> memref<4x8x32xbf16, #tpu.memory_space<vmem>>
    %c1_109 = arith.constant 1 : index
    %c0_110 = arith.constant 0 : index
    %c0_111 = arith.constant 0 : index
    %133 = vector.load %132[%c1_109, %c0_110, %c0_111] : memref<4x8x32xbf16, #tpu.memory_space<vmem>>, vector<1x8x32xbf16>
    %134 = vector.shape_cast %133 : vector<1x8x32xbf16> to vector<8x32xbf16>
    %cst_112 = arith.constant dense<0.000000e+00> : vector<16x32xf32>
    %135 = tpu.matmul %130, %134, %cst_112 {dimension_numbers = #tpu.dot_dimension_numbers<[1], [0], [0], [1], [0, 0, 1, 1], [], []>} : vector<16x8xbf16>, vector<8x32xbf16>, vector<16x32xf32> -> vector<16x32xf32>
    %136 = arith.addf %84, %135 : vector<16x32xf32>
    %c0_i32_113 = arith.constant 0 : i32
    %c0_i32_114 = arith.constant 0 : i32
    %c0_i32_115 = arith.constant 0 : i32
    %c0_i32_116 = arith.constant 0 : i32
    %137 = tpu.memref_slice %arg4[%c0_i32_113, %c0_i32_114, %c0_i32_115, %c0_i32_116] : memref<1x4x32x8xbf16, #tpu.memory_space<vmem>> -> memref<1x4x32x8xbf16, #tpu.memory_space<vmem>>
    %138 = tpu.memref_squeeze %137 : memref<1x4x32x8xbf16, #tpu.memory_space<vmem>> -> memref<4x32x8xbf16, #tpu.memory_space<vmem>>
    %c2 = arith.constant 2 : index
    %c0_117 = arith.constant 0 : index
    %c0_118 = arith.constant 0 : index
    %139 = vector.load %138[%c2, %c0_117, %c0_118] : memref<4x32x8xbf16, #tpu.memory_space<vmem>>, vector<1x32x8xbf16>
    %140 = vector.shape_cast %139 : vector<1x32x8xbf16> to vector<32x8xbf16>
    %cst_119 = arith.constant dense<0.000000e+00> : vector<16x8xf32>
    %141 = tpu.matmul %32, %140, %cst_119 {dimension_numbers = #tpu.dot_dimension_numbers<[1], [0], [0], [1], [0, 0, 1, 1], [], []>} : vector<16x32xbf16>, vector<32x8xbf16>, vector<16x8xf32> -> vector<16x8xf32>
    %c0_i32_120 = arith.constant 0 : i32
    %c0_i32_121 = arith.constant 0 : i32
    %c0_i32_122 = arith.constant 0 : i32
    %c0_i32_123 = arith.constant 0 : i32
    %142 = tpu.memref_slice %arg5[%c0_i32_120, %c0_i32_121, %c0_i32_122, %c0_i32_123] : memref<1x4x1x8xf32, #tpu.memory_space<vmem>> -> memref<1x4x1x8xf32, #tpu.memory_space<vmem>>
    %143 = tpu.memref_squeeze %142 : memref<1x4x1x8xf32, #tpu.memory_space<vmem>> -> memref<4x1x8xf32, #tpu.memory_space<vmem>>
    %c2_124 = arith.constant 2 : index
    %c0_125 = arith.constant 0 : index
    %c0_126 = arith.constant 0 : index
    %144 = vector.load %143[%c2_124, %c0_125, %c0_126] : memref<4x1x8xf32, #tpu.memory_space<vmem>>, vector<1x1x8xf32>
    %145 = vector.shape_cast %144 : vector<1x1x8xf32> to vector<1x8xf32>
    %146 = vector.broadcast %145 : vector<1x8xf32> to vector<16x8xf32>
    %147 = arith.addf %141, %146 : vector<16x8xf32>
    %cst_127 = arith.constant 0.353553385 : f32
    %148 = vector.broadcast %cst_127 : f32 to vector<16x8xf32>
    %149 = arith.mulf %147, %148 : vector<16x8xf32>
    %c0_i32_128 = arith.constant 0 : i32
    %c0_i32_129 = arith.constant 0 : i32
    %c0_i32_130 = arith.constant 0 : i32
    %c0_i32_131 = arith.constant 0 : i32
    %150 = tpu.memref_slice %arg6[%c0_i32_128, %c0_i32_129, %c0_i32_130, %c0_i32_131] : memref<1x4x32x8xbf16, #tpu.memory_space<vmem>> -> memref<1x4x32x8xbf16, #tpu.memory_space<vmem>>
    %151 = tpu.memref_squeeze %150 : memref<1x4x32x8xbf16, #tpu.memory_space<vmem>> -> memref<4x32x8xbf16, #tpu.memory_space<vmem>>
    %c2_132 = arith.constant 2 : index
    %c0_133 = arith.constant 0 : index
    %c0_134 = arith.constant 0 : index
    %152 = vector.load %151[%c2_132, %c0_133, %c0_134] : memref<4x32x8xbf16, #tpu.memory_space<vmem>>, vector<1x32x8xbf16>
    %153 = vector.shape_cast %152 : vector<1x32x8xbf16> to vector<32x8xbf16>
    %cst_135 = arith.constant dense<0.000000e+00> : vector<16x8xf32>
    %154 = tpu.matmul %33, %153, %cst_135 {dimension_numbers = #tpu.dot_dimension_numbers<[1], [0], [0], [1], [0, 0, 1, 1], [], []>} : vector<16x32xbf16>, vector<32x8xbf16>, vector<16x8xf32> -> vector<16x8xf32>
    %c0_i32_136 = arith.constant 0 : i32
    %c0_i32_137 = arith.constant 0 : i32
    %c0_i32_138 = arith.constant 0 : i32
    %c0_i32_139 = arith.constant 0 : i32
    %155 = tpu.memref_slice %arg7[%c0_i32_136, %c0_i32_137, %c0_i32_138, %c0_i32_139] : memref<1x4x32x8xbf16, #tpu.memory_space<vmem>> -> memref<1x4x32x8xbf16, #tpu.memory_space<vmem>>
    %156 = tpu.memref_squeeze %155 : memref<1x4x32x8xbf16, #tpu.memory_space<vmem>> -> memref<4x32x8xbf16, #tpu.memory_space<vmem>>
    %c2_140 = arith.constant 2 : index
    %c0_141 = arith.constant 0 : index
    %c0_142 = arith.constant 0 : index
    %157 = vector.load %156[%c2_140, %c0_141, %c0_142] : memref<4x32x8xbf16, #tpu.memory_space<vmem>>, vector<1x32x8xbf16>
    %158 = vector.shape_cast %157 : vector<1x32x8xbf16> to vector<32x8xbf16>
    %cst_143 = arith.constant dense<0.000000e+00> : vector<16x8xf32>
    %159 = tpu.matmul %33, %158, %cst_143 {dimension_numbers = #tpu.dot_dimension_numbers<[1], [0], [0], [1], [0, 0, 1, 1], [], []>} : vector<16x32xbf16>, vector<32x8xbf16>, vector<16x8xf32> -> vector<16x8xf32>
    %c0_i32_144 = arith.constant 0 : i32
    %c0_i32_145 = arith.constant 0 : i32
    %c0_i32_146 = arith.constant 0 : i32
    %c0_i32_147 = arith.constant 0 : i32
    %160 = tpu.memref_slice %arg8[%c0_i32_144, %c0_i32_145, %c0_i32_146, %c0_i32_147] : memref<1x4x1x8xf32, #tpu.memory_space<vmem>> -> memref<1x4x1x8xf32, #tpu.memory_space<vmem>>
    %161 = tpu.memref_squeeze %160 : memref<1x4x1x8xf32, #tpu.memory_space<vmem>> -> memref<4x1x8xf32, #tpu.memory_space<vmem>>
    %c2_148 = arith.constant 2 : index
    %c0_149 = arith.constant 0 : index
    %c0_150 = arith.constant 0 : index
    %162 = vector.load %161[%c2_148, %c0_149, %c0_150] : memref<4x1x8xf32, #tpu.memory_space<vmem>>, vector<1x1x8xf32>
    %163 = vector.shape_cast %162 : vector<1x1x8xf32> to vector<1x8xf32>
    %164 = vector.broadcast %163 : vector<1x8xf32> to vector<16x8xf32>
    %165 = arith.addf %159, %164 : vector<16x8xf32>
    %166 = arith.truncf %149 : vector<16x8xf32> to vector<16x8xbf16>
    %167 = arith.truncf %154 : vector<16x8xf32> to vector<16x8xbf16>
    %cst_151 = arith.constant dense<0.000000e+00> : vector<16x16xf32>
    %168 = tpu.matmul %166, %167, %cst_151 {dimension_numbers = #tpu.dot_dimension_numbers<[1], [1], [0], [0], [0, 0, 1, 0], [], []>} : vector<16x8xbf16>, vector<16x8xbf16>, vector<16x16xf32> -> vector<16x16xf32>
    %cst_152 = arith.constant dense<0xFF800000> : vector<16xf32>
    %169 = vector.multi_reduction <maximumf>, %168, %cst_152 [1] : vector<16x16xf32> to vector<16xf32>
    %170 = vector.shape_cast %169 : vector<16xf32> to vector<16x1xf32>
    %171 = vector.broadcast %170 : vector<16x1xf32> to vector<16x16xf32>
    %172 = arith.subf %168, %171 : vector<16x16xf32>
    %173 = math.exp %172 : vector<16x16xf32>
    %cst_153 = arith.constant dense<0.000000e+00> : vector<16xf32>
    %174 = vector.multi_reduction <add>, %173, %cst_153 [1] : vector<16x16xf32> to vector<16xf32>
    %175 = vector.shape_cast %174 : vector<16xf32> to vector<16x1xf32>
    %176 = tpu.reciprocal %175 {approx = true} : vector<16x1xf32> -> vector<16x1xf32>
    %177 = vector.broadcast %176 : vector<16x1xf32> to vector<16x16xf32>
    %178 = arith.mulf %173, %177 : vector<16x16xf32>
    %179 = arith.truncf %178 : vector<16x16xf32> to vector<16x16xbf16>
    %180 = arith.truncf %165 : vector<16x8xf32> to vector<16x8xbf16>
    %cst_154 = arith.constant dense<0.000000e+00> : vector<16x8xf32>
    %181 = tpu.matmul %179, %180, %cst_154 {dimension_numbers = #tpu.dot_dimension_numbers<[1], [0], [0], [1], [0, 0, 1, 1], [], []>} : vector<16x16xbf16>, vector<16x8xbf16>, vector<16x8xf32> -> vector<16x8xf32>
    %182 = arith.truncf %181 : vector<16x8xf32> to vector<16x8xbf16>
    %c0_i32_155 = arith.constant 0 : i32
    %c0_i32_156 = arith.constant 0 : i32
    %c0_i32_157 = arith.constant 0 : i32
    %c0_i32_158 = arith.constant 0 : i32
    %183 = tpu.memref_slice %arg9[%c0_i32_155, %c0_i32_156, %c0_i32_157, %c0_i32_158] : memref<1x4x8x32xbf16, #tpu.memory_space<vmem>> -> memref<1x4x8x32xbf16, #tpu.memory_space<vmem>>
    %184 = tpu.memref_squeeze %183 : memref<1x4x8x32xbf16, #tpu.memory_space<vmem>> -> memref<4x8x32xbf16, #tpu.memory_space<vmem>>
    %c2_159 = arith.constant 2 : index
    %c0_160 = arith.constant 0 : index
    %c0_161 = arith.constant 0 : index
    %185 = vector.load %184[%c2_159, %c0_160, %c0_161] : memref<4x8x32xbf16, #tpu.memory_space<vmem>>, vector<1x8x32xbf16>
    %186 = vector.shape_cast %185 : vector<1x8x32xbf16> to vector<8x32xbf16>
    %cst_162 = arith.constant dense<0.000000e+00> : vector<16x32xf32>
    %187 = tpu.matmul %182, %186, %cst_162 {dimension_numbers = #tpu.dot_dimension_numbers<[1], [0], [0], [1], [0, 0, 1, 1], [], []>} : vector<16x8xbf16>, vector<8x32xbf16>, vector<16x32xf32> -> vector<16x32xf32>
    %188 = arith.addf %136, %187 : vector<16x32xf32>
    %c0_i32_163 = arith.constant 0 : i32
    %c0_i32_164 = arith.constant 0 : i32
    %c0_i32_165 = arith.constant 0 : i32
    %c0_i32_166 = arith.constant 0 : i32
    %189 = tpu.memref_slice %arg4[%c0_i32_163, %c0_i32_164, %c0_i32_165, %c0_i32_166] : memref<1x4x32x8xbf16, #tpu.memory_space<vmem>> -> memref<1x4x32x8xbf16, #tpu.memory_space<vmem>>
    %190 = tpu.memref_squeeze %189 : memref<1x4x32x8xbf16, #tpu.memory_space<vmem>> -> memref<4x32x8xbf16, #tpu.memory_space<vmem>>
    %c3 = arith.constant 3 : index
    %c0_167 = arith.constant 0 : index
    %c0_168 = arith.constant 0 : index
    %191 = vector.load %190[%c3, %c0_167, %c0_168] : memref<4x32x8xbf16, #tpu.memory_space<vmem>>, vector<1x32x8xbf16>
    %192 = vector.shape_cast %191 : vector<1x32x8xbf16> to vector<32x8xbf16>
    %cst_169 = arith.constant dense<0.000000e+00> : vector<16x8xf32>
    %193 = tpu.matmul %32, %192, %cst_169 {dimension_numbers = #tpu.dot_dimension_numbers<[1], [0], [0], [1], [0, 0, 1, 1], [], []>} : vector<16x32xbf16>, vector<32x8xbf16>, vector<16x8xf32> -> vector<16x8xf32>
    %c0_i32_170 = arith.constant 0 : i32
    %c0_i32_171 = arith.constant 0 : i32
    %c0_i32_172 = arith.constant 0 : i32
    %c0_i32_173 = arith.constant 0 : i32
    %194 = tpu.memref_slice %arg5[%c0_i32_170, %c0_i32_171, %c0_i32_172, %c0_i32_173] : memref<1x4x1x8xf32, #tpu.memory_space<vmem>> -> memref<1x4x1x8xf32, #tpu.memory_space<vmem>>
    %195 = tpu.memref_squeeze %194 : memref<1x4x1x8xf32, #tpu.memory_space<vmem>> -> memref<4x1x8xf32, #tpu.memory_space<vmem>>
    %c3_174 = arith.constant 3 : index
    %c0_175 = arith.constant 0 : index
    %c0_176 = arith.constant 0 : index
    %196 = vector.load %195[%c3_174, %c0_175, %c0_176] : memref<4x1x8xf32, #tpu.memory_space<vmem>>, vector<1x1x8xf32>
    %197 = vector.shape_cast %196 : vector<1x1x8xf32> to vector<1x8xf32>
    %198 = vector.broadcast %197 : vector<1x8xf32> to vector<16x8xf32>
    %199 = arith.addf %193, %198 : vector<16x8xf32>
    %cst_177 = arith.constant 0.353553385 : f32
    %200 = vector.broadcast %cst_177 : f32 to vector<16x8xf32>
    %201 = arith.mulf %199, %200 : vector<16x8xf32>
    %c0_i32_178 = arith.constant 0 : i32
    %c0_i32_179 = arith.constant 0 : i32
    %c0_i32_180 = arith.constant 0 : i32
    %c0_i32_181 = arith.constant 0 : i32
    %202 = tpu.memref_slice %arg6[%c0_i32_178, %c0_i32_179, %c0_i32_180, %c0_i32_181] : memref<1x4x32x8xbf16, #tpu.memory_space<vmem>> -> memref<1x4x32x8xbf16, #tpu.memory_space<vmem>>
    %203 = tpu.memref_squeeze %202 : memref<1x4x32x8xbf16, #tpu.memory_space<vmem>> -> memref<4x32x8xbf16, #tpu.memory_space<vmem>>
    %c3_182 = arith.constant 3 : index
    %c0_183 = arith.constant 0 : index
    %c0_184 = arith.constant 0 : index
    %204 = vector.load %203[%c3_182, %c0_183, %c0_184] : memref<4x32x8xbf16, #tpu.memory_space<vmem>>, vector<1x32x8xbf16>
    %205 = vector.shape_cast %204 : vector<1x32x8xbf16> to vector<32x8xbf16>
    %cst_185 = arith.constant dense<0.000000e+00> : vector<16x8xf32>
    %206 = tpu.matmul %33, %205, %cst_185 {dimension_numbers = #tpu.dot_dimension_numbers<[1], [0], [0], [1], [0, 0, 1, 1], [], []>} : vector<16x32xbf16>, vector<32x8xbf16>, vector<16x8xf32> -> vector<16x8xf32>
    %c0_i32_186 = arith.constant 0 : i32
    %c0_i32_187 = arith.constant 0 : i32
    %c0_i32_188 = arith.constant 0 : i32
    %c0_i32_189 = arith.constant 0 : i32
    %207 = tpu.memref_slice %arg7[%c0_i32_186, %c0_i32_187, %c0_i32_188, %c0_i32_189] : memref<1x4x32x8xbf16, #tpu.memory_space<vmem>> -> memref<1x4x32x8xbf16, #tpu.memory_space<vmem>>
    %208 = tpu.memref_squeeze %207 : memref<1x4x32x8xbf16, #tpu.memory_space<vmem>> -> memref<4x32x8xbf16, #tpu.memory_space<vmem>>
    %c3_190 = arith.constant 3 : index
    %c0_191 = arith.constant 0 : index
    %c0_192 = arith.constant 0 : index
    %209 = vector.load %208[%c3_190, %c0_191, %c0_192] : memref<4x32x8xbf16, #tpu.memory_space<vmem>>, vector<1x32x8xbf16>
    %210 = vector.shape_cast %209 : vector<1x32x8xbf16> to vector<32x8xbf16>
    %cst_193 = arith.constant dense<0.000000e+00> : vector<16x8xf32>
    %211 = tpu.matmul %33, %210, %cst_193 {dimension_numbers = #tpu.dot_dimension_numbers<[1], [0], [0], [1], [0, 0, 1, 1], [], []>} : vector<16x32xbf16>, vector<32x8xbf16>, vector<16x8xf32> -> vector<16x8xf32>
    %c0_i32_194 = arith.constant 0 : i32
    %c0_i32_195 = arith.constant 0 : i32
    %c0_i32_196 = arith.constant 0 : i32
    %c0_i32_197 = arith.constant 0 : i32
    %212 = tpu.memref_slice %arg8[%c0_i32_194, %c0_i32_195, %c0_i32_196, %c0_i32_197] : memref<1x4x1x8xf32, #tpu.memory_space<vmem>> -> memref<1x4x1x8xf32, #tpu.memory_space<vmem>>
    %213 = tpu.memref_squeeze %212 : memref<1x4x1x8xf32, #tpu.memory_space<vmem>> -> memref<4x1x8xf32, #tpu.memory_space<vmem>>
    %c3_198 = arith.constant 3 : index
    %c0_199 = arith.constant 0 : index
    %c0_200 = arith.constant 0 : index
    %214 = vector.load %213[%c3_198, %c0_199, %c0_200] : memref<4x1x8xf32, #tpu.memory_space<vmem>>, vector<1x1x8xf32>
    %215 = vector.shape_cast %214 : vector<1x1x8xf32> to vector<1x8xf32>
    %216 = vector.broadcast %215 : vector<1x8xf32> to vector<16x8xf32>
    %217 = arith.addf %211, %216 : vector<16x8xf32>
    %218 = arith.truncf %201 : vector<16x8xf32> to vector<16x8xbf16>
    %219 = arith.truncf %206 : vector<16x8xf32> to vector<16x8xbf16>
    %cst_201 = arith.constant dense<0.000000e+00> : vector<16x16xf32>
    %220 = tpu.matmul %218, %219, %cst_201 {dimension_numbers = #tpu.dot_dimension_numbers<[1], [1], [0], [0], [0, 0, 1, 0], [], []>} : vector<16x8xbf16>, vector<16x8xbf16>, vector<16x16xf32> -> vector<16x16xf32>
    %cst_202 = arith.constant dense<0xFF800000> : vector<16xf32>
    %221 = vector.multi_reduction <maximumf>, %220, %cst_202 [1] : vector<16x16xf32> to vector<16xf32>
    %222 = vector.shape_cast %221 : vector<16xf32> to vector<16x1xf32>
    %223 = vector.broadcast %222 : vector<16x1xf32> to vector<16x16xf32>
    %224 = arith.subf %220, %223 : vector<16x16xf32>
    %225 = math.exp %224 : vector<16x16xf32>
    %cst_203 = arith.constant dense<0.000000e+00> : vector<16xf32>
    %226 = vector.multi_reduction <add>, %225, %cst_203 [1] : vector<16x16xf32> to vector<16xf32>
    %227 = vector.shape_cast %226 : vector<16xf32> to vector<16x1xf32>
    %228 = tpu.reciprocal %227 {approx = true} : vector<16x1xf32> -> vector<16x1xf32>
    %229 = vector.broadcast %228 : vector<16x1xf32> to vector<16x16xf32>
    %230 = arith.mulf %225, %229 : vector<16x16xf32>
    %231 = arith.truncf %230 : vector<16x16xf32> to vector<16x16xbf16>
    %232 = arith.truncf %217 : vector<16x8xf32> to vector<16x8xbf16>
    %cst_204 = arith.constant dense<0.000000e+00> : vector<16x8xf32>
    %233 = tpu.matmul %231, %232, %cst_204 {dimension_numbers = #tpu.dot_dimension_numbers<[1], [0], [0], [1], [0, 0, 1, 1], [], []>} : vector<16x16xbf16>, vector<16x8xbf16>, vector<16x8xf32> -> vector<16x8xf32>
    %234 = arith.truncf %233 : vector<16x8xf32> to vector<16x8xbf16>
    %c0_i32_205 = arith.constant 0 : i32
    %c0_i32_206 = arith.constant 0 : i32
    %c0_i32_207 = arith.constant 0 : i32
    %c0_i32_208 = arith.constant 0 : i32
    %235 = tpu.memref_slice %arg9[%c0_i32_205, %c0_i32_206, %c0_i32_207, %c0_i32_208] : memref<1x4x8x32xbf16, #tpu.memory_space<vmem>> -> memref<1x4x8x32xbf16, #tpu.memory_space<vmem>>
    %236 = tpu.memref_squeeze %235 : memref<1x4x8x32xbf16, #tpu.memory_space<vmem>> -> memref<4x8x32xbf16, #tpu.memory_space<vmem>>
    %c3_209 = arith.constant 3 : index
    %c0_210 = arith.constant 0 : index
    %c0_211 = arith.constant 0 : index
    %237 = vector.load %236[%c3_209, %c0_210, %c0_211] : memref<4x8x32xbf16, #tpu.memory_space<vmem>>, vector<1x8x32xbf16>
    %238 = vector.shape_cast %237 : vector<1x8x32xbf16> to vector<8x32xbf16>
    %cst_212 = arith.constant dense<0.000000e+00> : vector<16x32xf32>
    %239 = tpu.matmul %234, %238, %cst_212 {dimension_numbers = #tpu.dot_dimension_numbers<[1], [0], [0], [1], [0, 0, 1, 1], [], []>} : vector<16x8xbf16>, vector<8x32xbf16>, vector<16x32xf32> -> vector<16x32xf32>
    %240 = arith.addf %188, %239 : vector<16x32xf32>
    %241 = vector.broadcast %31 : vector<1x32xf32> to vector<16x32xf32>
    %242 = arith.addf %240, %241 : vector<16x32xf32>
    %243 = arith.addf %3, %242 : vector<16x32xf32>
    %c0_213 = arith.constant 0 : index
    %c0_214 = arith.constant 0 : index
    %c0_215 = arith.constant 0 : index
    %244 = vector.load %arg12[%c0_213, %c0_214, %c0_215] : memref<1x2x32xf32, #tpu.memory_space<vmem>>, vector<1x2x32xf32>
    %245 = vector.shape_cast %244 : vector<1x2x32xf32> to vector<2x32xf32>
    %cst_216 = arith.constant dense<0.000000e+00> : vector<16xf32>
    %246 = vector.multi_reduction <add>, %243, %cst_216 [1] : vector<16x32xf32> to vector<16xf32>
    %247 = vector.shape_cast %246 : vector<16xf32> to vector<16x1xf32>
    %cst_217 = arith.constant 3.200000e+01 : f32
    %248 = vector.broadcast %cst_217 : f32 to vector<16x1xf32>
    %249 = arith.divf %247, %248 : vector<16x1xf32>
    %250 = vector.broadcast %249 : vector<16x1xf32> to vector<16x32xf32>
    %251 = arith.subf %243, %250 : vector<16x32xf32>
    %252 = arith.mulf %251, %251 : vector<16x32xf32>
    %cst_218 = arith.constant dense<0.000000e+00> : vector<16xf32>
    %253 = vector.multi_reduction <add>, %252, %cst_218 [1] : vector<16x32xf32> to vector<16xf32>
    %254 = vector.shape_cast %253 : vector<16xf32> to vector<16x1xf32>
    %cst_219 = arith.constant 3.200000e+01 : f32
    %255 = vector.broadcast %cst_219 : f32 to vector<16x1xf32>
    %256 = arith.divf %254, %255 : vector<16x1xf32>
    %257 = vector.broadcast %249 : vector<16x1xf32> to vector<16x32xf32>
    %258 = arith.subf %243, %257 : vector<16x32xf32>
    %cst_220 = arith.constant 9.99999974E-6 : f32
    %259 = vector.broadcast %cst_220 : f32 to vector<16x1xf32>
    %260 = arith.addf %256, %259 : vector<16x1xf32>
    %261 = math.rsqrt %260 : vector<16x1xf32>
    %262 = vector.broadcast %261 : vector<16x1xf32> to vector<16x32xf32>
    %263 = arith.mulf %258, %262 : vector<16x32xf32>
    %264 = vector.extract_strided_slice %245 {offsets = [0, 0], sizes = [1, 32], strides = [1, 1]} : vector<2x32xf32> to vector<1x32xf32>
    %265 = vector.broadcast %264 : vector<1x32xf32> to vector<16x32xf32>
    %266 = arith.mulf %263, %265 : vector<16x32xf32>
    %267 = vector.extract_strided_slice %245 {offsets = [1, 0], sizes = [1, 32], strides = [1, 1]} : vector<2x32xf32> to vector<1x32xf32>
    %268 = vector.broadcast %267 : vector<1x32xf32> to vector<16x32xf32>
    %269 = arith.addf %266, %268 : vector<16x32xf32>
    %c0_221 = arith.constant 0 : index
    %c0_222 = arith.constant 0 : index
    %c0_223 = arith.constant 0 : index
    %270 = vector.load %arg13[%c0_221, %c0_222, %c0_223] : memref<1x32x64xbf16, #tpu.memory_space<vmem>>, vector<1x32x64xbf16>
    %271 = vector.shape_cast %270 : vector<1x32x64xbf16> to vector<32x64xbf16>
    %c0_224 = arith.constant 0 : index
    %c0_225 = arith.constant 0 : index
    %c0_226 = arith.constant 0 : index
    %272 = vector.load %arg14[%c0_224, %c0_225, %c0_226] : memref<1x1x64xf32, #tpu.memory_space<vmem>>, vector<1x1x64xf32>
    %273 = vector.shape_cast %272 : vector<1x1x64xf32> to vector<1x64xf32>
    %c0_227 = arith.constant 0 : index
    %c0_228 = arith.constant 0 : index
    %c0_229 = arith.constant 0 : index
    %274 = vector.load %arg15[%c0_227, %c0_228, %c0_229] : memref<1x64x32xbf16, #tpu.memory_space<vmem>>, vector<1x64x32xbf16>
    %275 = vector.shape_cast %274 : vector<1x64x32xbf16> to vector<64x32xbf16>
    %c0_230 = arith.constant 0 : index
    %c0_231 = arith.constant 0 : index
    %c0_232 = arith.constant 0 : index
    %276 = vector.load %arg16[%c0_230, %c0_231, %c0_232] : memref<1x1x32xf32, #tpu.memory_space<vmem>>, vector<1x1x32xf32>
    %277 = vector.shape_cast %276 : vector<1x1x32xf32> to vector<1x32xf32>
    %278 = arith.truncf %269 : vector<16x32xf32> to vector<16x32xbf16>
    %cst_233 = arith.constant dense<0.000000e+00> : vector<16x64xf32>
    %279 = tpu.matmul %278, %271, %cst_233 {dimension_numbers = #tpu.dot_dimension_numbers<[1], [0], [0], [1], [0, 0, 1, 1], [], []>} : vector<16x32xbf16>, vector<32x64xbf16>, vector<16x64xf32> -> vector<16x64xf32>
    %280 = vector.broadcast %273 : vector<1x64xf32> to vector<16x64xf32>
    %281 = arith.addf %279, %280 : vector<16x64xf32>
    %cst_234 = arith.constant 5.000000e-01 : f32
    %282 = vector.broadcast %cst_234 : f32 to vector<16x64xf32>
    %283 = arith.mulf %282, %281 : vector<16x64xf32>
    %cst_235 = arith.constant 4.471500e-02 : f32
    %284 = vector.broadcast %cst_235 : f32 to vector<16x64xf32>
    %285 = arith.mulf %284, %281 : vector<16x64xf32>
    %286 = arith.mulf %285, %281 : vector<16x64xf32>
    %287 = arith.mulf %286, %281 : vector<16x64xf32>
    %288 = arith.addf %281, %287 : vector<16x64xf32>
    %cst_236 = arith.constant 0.797884583 : f32
    %289 = vector.broadcast %cst_236 : f32 to vector<16x64xf32>
    %290 = arith.mulf %289, %288 : vector<16x64xf32>
    %291 = math.tanh %290 : vector<16x64xf32>
    %cst_237 = arith.constant 1.000000e+00 : f32
    %292 = vector.broadcast %cst_237 : f32 to vector<16x64xf32>
    %293 = arith.addf %292, %291 : vector<16x64xf32>
    %294 = arith.mulf %283, %293 : vector<16x64xf32>
    %295 = arith.truncf %294 : vector<16x64xf32> to vector<16x64xbf16>
    %cst_238 = arith.constant dense<0.000000e+00> : vector<16x32xf32>
    %296 = tpu.matmul %295, %275, %cst_238 {dimension_numbers = #tpu.dot_dimension_numbers<[1], [0], [0], [1], [0, 0, 1, 1], [], []>} : vector<16x64xbf16>, vector<64x32xbf16>, vector<16x32xf32> -> vector<16x32xf32>
    %297 = vector.broadcast %277 : vector<1x32xf32> to vector<16x32xf32>
    %298 = arith.addf %296, %297 : vector<16x32xf32>
    %299 = arith.addf %243, %298 : vector<16x32xf32>
    %c0_239 = arith.constant 0 : index
    %c0_240 = arith.constant 0 : index
    %300 = vector.load %arg19[%c0_239, %c0_240] : memref<16x32xf32, #tpu.memory_space<vmem>>, vector<16x32xf32>
    tpu.vector_store %arg19[%c0_239, %c0_240], %299 {strides = array<i32>} : memref<16x32xf32, #tpu.memory_space<vmem>>, vector<16x32xf32>,
    %c1_i32 = arith.constant 1 : i32
    %301 = arith.cmpi eq, %arg1, %c1_i32 : i32
    %302 = arith.extui %301 : i1 to i32
    %c0_i32_241 = arith.constant 0 : i32
    %303 = arith.cmpi ne, %302, %c0_i32_241 : i32
    scf.if %303 {
      %c0_242 = arith.constant 0 : index
      %c0_243 = arith.constant 0 : index
      %304 = vector.load %arg17[%c0_242, %c0_243] : memref<2x32xf32, #tpu.memory_space<vmem>>, vector<2x32xf32>
      %cst_244 = arith.constant dense<0.000000e+00> : vector<16xf32>
      %305 = vector.multi_reduction <add>, %299, %cst_244 [1] : vector<16x32xf32> to vector<16xf32>
      %306 = vector.shape_cast %305 : vector<16xf32> to vector<16x1xf32>
      %cst_245 = arith.constant 3.200000e+01 : f32
      %307 = vector.broadcast %cst_245 : f32 to vector<16x1xf32>
      %308 = arith.divf %306, %307 : vector<16x1xf32>
      %309 = vector.broadcast %308 : vector<16x1xf32> to vector<16x32xf32>
      %310 = arith.subf %299, %309 : vector<16x32xf32>
      %311 = arith.mulf %310, %310 : vector<16x32xf32>
      %cst_246 = arith.constant dense<0.000000e+00> : vector<16xf32>
      %312 = vector.multi_reduction <add>, %311, %cst_246 [1] : vector<16x32xf32> to vector<16xf32>
      %313 = vector.shape_cast %312 : vector<16xf32> to vector<16x1xf32>
      %cst_247 = arith.constant 3.200000e+01 : f32
      %314 = vector.broadcast %cst_247 : f32 to vector<16x1xf32>
      %315 = arith.divf %313, %314 : vector<16x1xf32>
      %316 = vector.broadcast %308 : vector<16x1xf32> to vector<16x32xf32>
      %317 = arith.subf %299, %316 : vector<16x32xf32>
      %cst_248 = arith.constant 9.99999974E-6 : f32
      %318 = vector.broadcast %cst_248 : f32 to vector<16x1xf32>
      %319 = arith.addf %315, %318 : vector<16x1xf32>
      %320 = math.rsqrt %319 : vector<16x1xf32>
      %321 = vector.broadcast %320 : vector<16x1xf32> to vector<16x32xf32>
      %322 = arith.mulf %317, %321 : vector<16x32xf32>
      %323 = vector.extract_strided_slice %304 {offsets = [0, 0], sizes = [1, 32], strides = [1, 1]} : vector<2x32xf32> to vector<1x32xf32>
      %324 = vector.broadcast %323 : vector<1x32xf32> to vector<16x32xf32>
      %325 = arith.mulf %322, %324 : vector<16x32xf32>
      %326 = vector.extract_strided_slice %304 {offsets = [1, 0], sizes = [1, 32], strides = [1, 1]} : vector<2x32xf32> to vector<1x32xf32>
      %327 = vector.broadcast %326 : vector<1x32xf32> to vector<16x32xf32>
      %328 = arith.addf %325, %327 : vector<16x32xf32>
      %c0_249 = arith.constant 0 : index
      %c0_250 = arith.constant 0 : index
      %c0_251 = arith.constant 0 : index
      %329 = vector.load %arg18[%c0_249, %c0_250, %c0_251] : memref<1x16x32xf32, #tpu.memory_space<vmem>>, vector<1x16x32xf32>
      %330 = vector.shape_cast %329 : vector<1x16x32xf32> to vector<16x32xf32>
      %331 = vector.shape_cast %328 : vector<16x32xf32> to vector<1x16x32xf32>
      tpu.vector_store %arg18[%c0_249, %c0_250, %c0_251], %331 {strides = array<i32>} : memref<1x16x32xf32, #tpu.memory_space<vmem>>, vector<1x16x32xf32>,
    } else {
    }
    return
  }
  func.func @transform_0(%arg0: i32, %arg1: i32) -> (i32, i32, i32) {
    %c0_i32 = arith.constant 0 : i32
    %c0_i32_0 = arith.constant 0 : i32
    %c0_i32_1 = arith.constant 0 : i32
    return %arg0, %c0_i32, %c0_i32_0 : i32, i32, i32
  }
  func.func @transform_1(%arg0: i32, %arg1: i32) -> (i32, i32) {
    %c0_i32 = arith.constant 0 : i32
    %c0_i32_0 = arith.constant 0 : i32
    %c0_i32_1 = arith.constant 0 : i32
    return %c0_i32, %c0_i32_0 : i32, i32
  }
  func.func @transform_2(%arg0: i32, %arg1: i32) -> (i32, i32, i32, i32) {
    %c0_i32 = arith.constant 0 : i32
    %c0_i32_0 = arith.constant 0 : i32
    %c0_i32_1 = arith.constant 0 : i32
    %c0_i32_2 = arith.constant 0 : i32
    return %arg1, %c0_i32, %c0_i32_0, %c0_i32_1 : i32, i32, i32, i32
  }
  func.func @transform_3(%arg0: i32, %arg1: i32) -> (i32, i32, i32, i32) {
    %c0_i32 = arith.constant 0 : i32
    %c0_i32_0 = arith.constant 0 : i32
    %c0_i32_1 = arith.constant 0 : i32
    %c0_i32_2 = arith.constant 0 : i32
    return %arg1, %c0_i32, %c0_i32_0, %c0_i32_1 : i32, i32, i32, i32
  }
  func.func @transform_4(%arg0: i32, %arg1: i32) -> (i32, i32, i32, i32) {
    %c0_i32 = arith.constant 0 : i32
    %c0_i32_0 = arith.constant 0 : i32
    %c0_i32_1 = arith.constant 0 : i32
    %c0_i32_2 = arith.constant 0 : i32
    return %arg1, %c0_i32, %c0_i32_0, %c0_i32_1 : i32, i32, i32, i32
  }
  func.func @transform_5(%arg0: i32, %arg1: i32) -> (i32, i32, i32, i32) {
    %c0_i32 = arith.constant 0 : i32
    %c0_i32_0 = arith.constant 0 : i32
    %c0_i32_1 = arith.constant 0 : i32
    %c0_i32_2 = arith.constant 0 : i32
    return %arg1, %c0_i32, %c0_i32_0, %c0_i32_1 : i32, i32, i32, i32
  }
  func.func @transform_6(%arg0: i32, %arg1: i32) -> (i32, i32, i32, i32) {
    %c0_i32 = arith.constant 0 : i32
    %c0_i32_0 = arith.constant 0 : i32
    %c0_i32_1 = arith.constant 0 : i32
    %c0_i32_2 = arith.constant 0 : i32
    return %arg1, %c0_i32, %c0_i32_0, %c0_i32_1 : i32, i32, i32, i32
  }
  func.func @transform_7(%arg0: i32, %arg1: i32) -> (i32, i32, i32, i32) {
    %c0_i32 = arith.constant 0 : i32
    %c0_i32_0 = arith.constant 0 : i32
    %c0_i32_1 = arith.constant 0 : i32
    %c0_i32_2 = arith.constant 0 : i32
    return %arg1, %c0_i32, %c0_i32_0, %c0_i32_1 : i32, i32, i32, i32
  }
  func.func @transform_8(%arg0: i32, %arg1: i32) -> (i32, i32, i32) {
    %c0_i32 = arith.constant 0 : i32
    %c0_i32_0 = arith.constant 0 : i32
    %c0_i32_1 = arith.constant 0 : i32
    return %arg1, %c0_i32, %c0_i32_0 : i32, i32, i32
  }
  func.func @transform_9(%arg0: i32, %arg1: i32) -> (i32, i32, i32) {
    %c0_i32 = arith.constant 0 : i32
    %c0_i32_0 = arith.constant 0 : i32
    %c0_i32_1 = arith.constant 0 : i32
    return %arg1, %c0_i32, %c0_i32_0 : i32, i32, i32
  }
  func.func @transform_10(%arg0: i32, %arg1: i32) -> (i32, i32, i32) {
    %c0_i32 = arith.constant 0 : i32
    %c0_i32_0 = arith.constant 0 : i32
    %c0_i32_1 = arith.constant 0 : i32
    return %arg1, %c0_i32, %c0_i32_0 : i32, i32, i32
  }
  func.func @transform_11(%arg0: i32, %arg1: i32) -> (i32, i32, i32) {
    %c0_i32 = arith.constant 0 : i32
    %c0_i32_0 = arith.constant 0 : i32
    %c0_i32_1 = arith.constant 0 : i32
    return %arg1, %c0_i32, %c0_i32_0 : i32, i32, i32
  }
  func.func @transform_12(%arg0: i32, %arg1: i32) -> (i32, i32, i32) {
    %c0_i32 = arith.constant 0 : i32
    %c0_i32_0 = arith.constant 0 : i32
    %c0_i32_1 = arith.constant 0 : i32
    return %arg1, %c0_i32, %c0_i32_0 : i32, i32, i32
  }
  func.func @transform_13(%arg0: i32, %arg1: i32) -> (i32, i32, i32) {
    %c0_i32 = arith.constant 0 : i32
    %c0_i32_0 = arith.constant 0 : i32
    %c0_i32_1 = arith.constant 0 : i32
    return %arg1, %c0_i32, %c0_i32_0 : i32, i32, i32
  }
  func.func @transform_14(%arg0: i32, %arg1: i32) -> (i32, i32, i32) {
    %c0_i32 = arith.constant 0 : i32
    %c0_i32_0 = arith.constant 0 : i32
    %c0_i32_1 = arith.constant 0 : i32
    return %arg1, %c0_i32, %c0_i32_0 : i32, i32, i32
  }
  func.func @transform_15(%arg0: i32, %arg1: i32) -> (i32, i32) {
    %c0_i32 = arith.constant 0 : i32
    %c0_i32_0 = arith.constant 0 : i32
    %c0_i32_1 = arith.constant 0 : i32
    return %c0_i32, %c0_i32_0 : i32, i32
  }
  func.func @transform_16(%arg0: i32, %arg1: i32) -> (i32, i32, i32) {
    %c0_i32 = arith.constant 0 : i32
    %c0_i32_0 = arith.constant 0 : i32
    %c0_i32_1 = arith.constant 0 : i32
    return %arg0, %c0_i32, %c0_i32_0 : i32, i32, i32
  }
}

module attributes {stable_mosaic.version = 11 : i64} {
  func.func @_decoder_stack_kernel(%arg0: i32, %arg1: i32, %arg2: memref<1x8x32xf32, #tpu.memory_space<vmem>>, %arg3: memref<8x32xf32, #tpu.memory_space<vmem>>, %arg4: memref<1x16x32xf32, #tpu.memory_space<vmem>>, %arg5: memref<1x4x32x8xbf16, #tpu.memory_space<vmem>>, %arg6: memref<1x4x1x8xf32, #tpu.memory_space<vmem>>, %arg7: memref<1x4x32x8xbf16, #tpu.memory_space<vmem>>, %arg8: memref<1x4x32x8xbf16, #tpu.memory_space<vmem>>, %arg9: memref<1x4x1x8xf32, #tpu.memory_space<vmem>>, %arg10: memref<1x4x8x32xbf16, #tpu.memory_space<vmem>>, %arg11: memref<1x1x32xf32, #tpu.memory_space<vmem>>, %arg12: memref<1x4x32x8xbf16, #tpu.memory_space<vmem>>, %arg13: memref<1x4x1x8xf32, #tpu.memory_space<vmem>>, %arg14: memref<1x4x32x8xbf16, #tpu.memory_space<vmem>>, %arg15: memref<1x4x32x8xbf16, #tpu.memory_space<vmem>>, %arg16: memref<1x4x1x8xf32, #tpu.memory_space<vmem>>, %arg17: memref<1x4x8x32xbf16, #tpu.memory_space<vmem>>, %arg18: memref<1x1x32xf32, #tpu.memory_space<vmem>>, %arg19: memref<1x2x32xf32, #tpu.memory_space<vmem>>, %arg20: memref<1x2x32xf32, #tpu.memory_space<vmem>>, %arg21: memref<1x2x32xf32, #tpu.memory_space<vmem>>, %arg22: memref<1x32x64xbf16, #tpu.memory_space<vmem>>, %arg23: memref<1x1x64xf32, #tpu.memory_space<vmem>>, %arg24: memref<1x64x32xbf16, #tpu.memory_space<vmem>>, %arg25: memref<1x1x32xf32, #tpu.memory_space<vmem>>, %arg26: memref<2x32xf32, #tpu.memory_space<vmem>>, %arg27: memref<32x64xbf16, #tpu.memory_space<vmem>>, %arg28: memref<1x8x64xf32, #tpu.memory_space<vmem>>, %arg29: memref<8x32xf32, #tpu.memory_space<vmem>>) attributes {dimension_semantics = [#tpu.dimension_semantics<parallel>, #tpu.dimension_semantics<arbitrary>], iteration_bounds = array<i64: 2, 2>, scalar_prefetch = 0 : i64, scratch_operands = 1 : i64, tpu.core_type = #tpu.core_type<tc>, window_params = [{transform_indices = @transform_0, window_bounds = array<i64: 1, 8, 32>}, {pipeline_mode = #tpu.pipeline_mode<synchronous>, transform_indices = @transform_1, window_bounds = array<i64: 8, 32>}, {transform_indices = @transform_2, window_bounds = array<i64: 1, 16, 32>}, {transform_indices = @transform_3, window_bounds = array<i64: 1, 4, 32, 8>}, {transform_indices = @transform_4, window_bounds = array<i64: 1, 4, 1, 8>}, {transform_indices = @transform_5, window_bounds = array<i64: 1, 4, 32, 8>}, {transform_indices = @transform_6, window_bounds = array<i64: 1, 4, 32, 8>}, {transform_indices = @transform_7, window_bounds = array<i64: 1, 4, 1, 8>}, {transform_indices = @transform_8, window_bounds = array<i64: 1, 4, 8, 32>}, {transform_indices = @transform_9, window_bounds = array<i64: 1, 1, 32>}, {transform_indices = @transform_10, window_bounds = array<i64: 1, 4, 32, 8>}, {transform_indices = @transform_11, window_bounds = array<i64: 1, 4, 1, 8>}, {transform_indices = @transform_12, window_bounds = array<i64: 1, 4, 32, 8>}, {transform_indices = @transform_13, window_bounds = array<i64: 1, 4, 32, 8>}, {transform_indices = @transform_14, window_bounds = array<i64: 1, 4, 1, 8>}, {transform_indices = @transform_15, window_bounds = array<i64: 1, 4, 8, 32>}, {transform_indices = @transform_16, window_bounds = array<i64: 1, 1, 32>}, {transform_indices = @transform_17, window_bounds = array<i64: 1, 2, 32>}, {transform_indices = @transform_18, window_bounds = array<i64: 1, 2, 32>}, {transform_indices = @transform_19, window_bounds = array<i64: 1, 2, 32>}, {transform_indices = @transform_20, window_bounds = array<i64: 1, 32, 64>}, {transform_indices = @transform_21, window_bounds = array<i64: 1, 1, 64>}, {transform_indices = @transform_22, window_bounds = array<i64: 1, 64, 32>}, {transform_indices = @transform_23, window_bounds = array<i64: 1, 1, 32>}, {pipeline_mode = #tpu.pipeline_mode<synchronous>, transform_indices = @transform_24, window_bounds = array<i64: 2, 32>}, {pipeline_mode = #tpu.pipeline_mode<synchronous>, transform_indices = @transform_25, window_bounds = array<i64: 32, 64>}, {transform_indices = @transform_26, window_bounds = array<i64: 1, 8, 64>}]} {
    %c0_i32 = arith.constant 0 : i32
    %0 = arith.cmpi eq, %arg1, %c0_i32 : i32
    %1 = arith.extui %0 : i1 to i32
    %c0_i32_0 = arith.constant 0 : i32
    %2 = arith.cmpi ne, %1, %c0_i32_0 : i32
    scf.if %2 {
      %c0_464 = arith.constant 0 : index
      %c0_465 = arith.constant 0 : index
      %c0_466 = arith.constant 0 : index
      %566 = vector.load %arg2[%c0_464, %c0_465, %c0_466] : memref<1x8x32xf32, #tpu.memory_space<vmem>>, vector<1x8x32xf32>
      %567 = vector.shape_cast %566 : vector<1x8x32xf32> to vector<8x32xf32>
      %c0_467 = arith.constant 0 : index
      %c0_468 = arith.constant 0 : index
      %568 = vector.load %arg3[%c0_467, %c0_468] : memref<8x32xf32, #tpu.memory_space<vmem>>, vector<8x32xf32>
      %569 = arith.addf %567, %568 : vector<8x32xf32>
      %c0_469 = arith.constant 0 : index
      %c0_470 = arith.constant 0 : index
      %570 = vector.load %arg29[%c0_469, %c0_470] : memref<8x32xf32, #tpu.memory_space<vmem>>, vector<8x32xf32>
      tpu.vector_store %arg29[%c0_469, %c0_470], %569 {strides = array<i32>} : memref<8x32xf32, #tpu.memory_space<vmem>>, vector<8x32xf32>,
    } else {
    }
    %c0 = arith.constant 0 : index
    %c0_1 = arith.constant 0 : index
    %3 = vector.load %arg29[%c0, %c0_1] : memref<8x32xf32, #tpu.memory_space<vmem>>, vector<8x32xf32>
    %c0_2 = arith.constant 0 : index
    %c0_3 = arith.constant 0 : index
    %c0_4 = arith.constant 0 : index
    %4 = vector.load %arg4[%c0_2, %c0_3, %c0_4] : memref<1x16x32xf32, #tpu.memory_space<vmem>>, vector<1x16x32xf32>
    %5 = vector.shape_cast %4 : vector<1x16x32xf32> to vector<16x32xf32>
    %c0_5 = arith.constant 0 : index
    %c0_6 = arith.constant 0 : index
    %c0_7 = arith.constant 0 : index
    %6 = vector.load %arg19[%c0_5, %c0_6, %c0_7] : memref<1x2x32xf32, #tpu.memory_space<vmem>>, vector<1x2x32xf32>
    %7 = vector.shape_cast %6 : vector<1x2x32xf32> to vector<2x32xf32>
    %cst = arith.constant dense<0.000000e+00> : vector<8xf32>
    %8 = vector.multi_reduction <add>, %3, %cst [1] : vector<8x32xf32> to vector<8xf32>
    %9 = vector.shape_cast %8 : vector<8xf32> to vector<8x1xf32>
    %cst_8 = arith.constant 3.200000e+01 : f32
    %10 = vector.broadcast %cst_8 : f32 to vector<8x1xf32>
    %11 = arith.divf %9, %10 : vector<8x1xf32>
    %12 = vector.broadcast %11 : vector<8x1xf32> to vector<8x32xf32>
    %13 = arith.subf %3, %12 : vector<8x32xf32>
    %14 = arith.mulf %13, %13 : vector<8x32xf32>
    %cst_9 = arith.constant dense<0.000000e+00> : vector<8xf32>
    %15 = vector.multi_reduction <add>, %14, %cst_9 [1] : vector<8x32xf32> to vector<8xf32>
    %16 = vector.shape_cast %15 : vector<8xf32> to vector<8x1xf32>
    %cst_10 = arith.constant 3.200000e+01 : f32
    %17 = vector.broadcast %cst_10 : f32 to vector<8x1xf32>
    %18 = arith.divf %16, %17 : vector<8x1xf32>
    %19 = vector.broadcast %11 : vector<8x1xf32> to vector<8x32xf32>
    %20 = arith.subf %3, %19 : vector<8x32xf32>
    %cst_11 = arith.constant 9.99999974E-6 : f32
    %21 = vector.broadcast %cst_11 : f32 to vector<8x1xf32>
    %22 = arith.addf %18, %21 : vector<8x1xf32>
    %23 = math.rsqrt %22 : vector<8x1xf32>
    %24 = vector.broadcast %23 : vector<8x1xf32> to vector<8x32xf32>
    %25 = arith.mulf %20, %24 : vector<8x32xf32>
    %26 = vector.extract_strided_slice %7 {offsets = [0, 0], sizes = [1, 32], strides = [1, 1]} : vector<2x32xf32> to vector<1x32xf32>
    %27 = vector.broadcast %26 : vector<1x32xf32> to vector<8x32xf32>
    %28 = arith.mulf %25, %27 : vector<8x32xf32>
    %29 = vector.extract_strided_slice %7 {offsets = [1, 0], sizes = [1, 32], strides = [1, 1]} : vector<2x32xf32> to vector<1x32xf32>
    %30 = vector.broadcast %29 : vector<1x32xf32> to vector<8x32xf32>
    %31 = arith.addf %28, %30 : vector<8x32xf32>
    %c0_12 = arith.constant 0 : index
    %c0_13 = arith.constant 0 : index
    %c0_14 = arith.constant 0 : index
    %32 = vector.load %arg11[%c0_12, %c0_13, %c0_14] : memref<1x1x32xf32, #tpu.memory_space<vmem>>, vector<1x1x32xf32>
    %33 = vector.shape_cast %32 : vector<1x1x32xf32> to vector<1x32xf32>
    %34 = arith.truncf %31 : vector<8x32xf32> to vector<8x32xbf16>
    %35 = arith.truncf %31 : vector<8x32xf32> to vector<8x32xbf16>
    %c0_i32_15 = arith.constant 0 : i32
    %c0_i32_16 = arith.constant 0 : i32
    %c0_i32_17 = arith.constant 0 : i32
    %c0_i32_18 = arith.constant 0 : i32
    %36 = tpu.memref_slice %arg5[%c0_i32_15, %c0_i32_16, %c0_i32_17, %c0_i32_18] : memref<1x4x32x8xbf16, #tpu.memory_space<vmem>> -> memref<1x4x32x8xbf16, #tpu.memory_space<vmem>>
    %37 = tpu.memref_squeeze %36 : memref<1x4x32x8xbf16, #tpu.memory_space<vmem>> -> memref<4x32x8xbf16, #tpu.memory_space<vmem>>
    %c0_19 = arith.constant 0 : index
    %c0_20 = arith.constant 0 : index
    %c0_21 = arith.constant 0 : index
    %38 = vector.load %37[%c0_19, %c0_20, %c0_21] : memref<4x32x8xbf16, #tpu.memory_space<vmem>>, vector<1x32x8xbf16>
    %39 = vector.shape_cast %38 : vector<1x32x8xbf16> to vector<32x8xbf16>
    %cst_22 = arith.constant dense<0.000000e+00> : vector<8x8xf32>
    %40 = tpu.matmul %34, %39, %cst_22 {dimension_numbers = #tpu.dot_dimension_numbers<[1], [0], [0], [1], [0, 0, 1, 1], [], []>} : vector<8x32xbf16>, vector<32x8xbf16>, vector<8x8xf32> -> vector<8x8xf32>
    %c0_i32_23 = arith.constant 0 : i32
    %c0_i32_24 = arith.constant 0 : i32
    %c0_i32_25 = arith.constant 0 : i32
    %c0_i32_26 = arith.constant 0 : i32
    %41 = tpu.memref_slice %arg6[%c0_i32_23, %c0_i32_24, %c0_i32_25, %c0_i32_26] : memref<1x4x1x8xf32, #tpu.memory_space<vmem>> -> memref<1x4x1x8xf32, #tpu.memory_space<vmem>>
    %42 = tpu.memref_squeeze %41 : memref<1x4x1x8xf32, #tpu.memory_space<vmem>> -> memref<4x1x8xf32, #tpu.memory_space<vmem>>
    %c0_27 = arith.constant 0 : index
    %c0_28 = arith.constant 0 : index
    %c0_29 = arith.constant 0 : index
    %43 = vector.load %42[%c0_27, %c0_28, %c0_29] : memref<4x1x8xf32, #tpu.memory_space<vmem>>, vector<1x1x8xf32>
    %44 = vector.shape_cast %43 : vector<1x1x8xf32> to vector<1x8xf32>
    %45 = vector.broadcast %44 : vector<1x8xf32> to vector<8x8xf32>
    %46 = arith.addf %40, %45 : vector<8x8xf32>
    %cst_30 = arith.constant 0.353553385 : f32
    %47 = vector.broadcast %cst_30 : f32 to vector<8x8xf32>
    %48 = arith.mulf %46, %47 : vector<8x8xf32>
    %c0_i32_31 = arith.constant 0 : i32
    %c0_i32_32 = arith.constant 0 : i32
    %c0_i32_33 = arith.constant 0 : i32
    %c0_i32_34 = arith.constant 0 : i32
    %49 = tpu.memref_slice %arg7[%c0_i32_31, %c0_i32_32, %c0_i32_33, %c0_i32_34] : memref<1x4x32x8xbf16, #tpu.memory_space<vmem>> -> memref<1x4x32x8xbf16, #tpu.memory_space<vmem>>
    %50 = tpu.memref_squeeze %49 : memref<1x4x32x8xbf16, #tpu.memory_space<vmem>> -> memref<4x32x8xbf16, #tpu.memory_space<vmem>>
    %c0_35 = arith.constant 0 : index
    %c0_36 = arith.constant 0 : index
    %c0_37 = arith.constant 0 : index
    %51 = vector.load %50[%c0_35, %c0_36, %c0_37] : memref<4x32x8xbf16, #tpu.memory_space<vmem>>, vector<1x32x8xbf16>
    %52 = vector.shape_cast %51 : vector<1x32x8xbf16> to vector<32x8xbf16>
    %cst_38 = arith.constant dense<0.000000e+00> : vector<8x8xf32>
    %53 = tpu.matmul %35, %52, %cst_38 {dimension_numbers = #tpu.dot_dimension_numbers<[1], [0], [0], [1], [0, 0, 1, 1], [], []>} : vector<8x32xbf16>, vector<32x8xbf16>, vector<8x8xf32> -> vector<8x8xf32>
    %c0_i32_39 = arith.constant 0 : i32
    %c0_i32_40 = arith.constant 0 : i32
    %c0_i32_41 = arith.constant 0 : i32
    %c0_i32_42 = arith.constant 0 : i32
    %54 = tpu.memref_slice %arg8[%c0_i32_39, %c0_i32_40, %c0_i32_41, %c0_i32_42] : memref<1x4x32x8xbf16, #tpu.memory_space<vmem>> -> memref<1x4x32x8xbf16, #tpu.memory_space<vmem>>
    %55 = tpu.memref_squeeze %54 : memref<1x4x32x8xbf16, #tpu.memory_space<vmem>> -> memref<4x32x8xbf16, #tpu.memory_space<vmem>>
    %c0_43 = arith.constant 0 : index
    %c0_44 = arith.constant 0 : index
    %c0_45 = arith.constant 0 : index
    %56 = vector.load %55[%c0_43, %c0_44, %c0_45] : memref<4x32x8xbf16, #tpu.memory_space<vmem>>, vector<1x32x8xbf16>
    %57 = vector.shape_cast %56 : vector<1x32x8xbf16> to vector<32x8xbf16>
    %cst_46 = arith.constant dense<0.000000e+00> : vector<8x8xf32>
    %58 = tpu.matmul %35, %57, %cst_46 {dimension_numbers = #tpu.dot_dimension_numbers<[1], [0], [0], [1], [0, 0, 1, 1], [], []>} : vector<8x32xbf16>, vector<32x8xbf16>, vector<8x8xf32> -> vector<8x8xf32>
    %c0_i32_47 = arith.constant 0 : i32
    %c0_i32_48 = arith.constant 0 : i32
    %c0_i32_49 = arith.constant 0 : i32
    %c0_i32_50 = arith.constant 0 : i32
    %59 = tpu.memref_slice %arg9[%c0_i32_47, %c0_i32_48, %c0_i32_49, %c0_i32_50] : memref<1x4x1x8xf32, #tpu.memory_space<vmem>> -> memref<1x4x1x8xf32, #tpu.memory_space<vmem>>
    %60 = tpu.memref_squeeze %59 : memref<1x4x1x8xf32, #tpu.memory_space<vmem>> -> memref<4x1x8xf32, #tpu.memory_space<vmem>>
    %c0_51 = arith.constant 0 : index
    %c0_52 = arith.constant 0 : index
    %c0_53 = arith.constant 0 : index
    %61 = vector.load %60[%c0_51, %c0_52, %c0_53] : memref<4x1x8xf32, #tpu.memory_space<vmem>>, vector<1x1x8xf32>
    %62 = vector.shape_cast %61 : vector<1x1x8xf32> to vector<1x8xf32>
    %63 = vector.broadcast %62 : vector<1x8xf32> to vector<8x8xf32>
    %64 = arith.addf %58, %63 : vector<8x8xf32>
    %65 = arith.truncf %48 : vector<8x8xf32> to vector<8x8xbf16>
    %66 = arith.truncf %53 : vector<8x8xf32> to vector<8x8xbf16>
    %cst_54 = arith.constant dense<0.000000e+00> : vector<8x8xf32>
    %67 = tpu.matmul %65, %66, %cst_54 {dimension_numbers = #tpu.dot_dimension_numbers<[1], [1], [0], [0], [0, 0, 1, 0], [], []>} : vector<8x8xbf16>, vector<8x8xbf16>, vector<8x8xf32> -> vector<8x8xf32>
    %68 = tpu.iota {dimensions = array<i32: 0>} : vector<8x8xi32>
    %69 = tpu.iota {dimensions = array<i32: 1>} : vector<8x8xi32>
    %70 = arith.cmpi sle, %69, %68 : vector<8x8xi32>
    %cst_55 = arith.constant -1.000000e+30 : f32
    %71 = vector.broadcast %cst_55 : f32 to vector<8x8xf32>
    %72 = arith.select %70, %67, %71 : vector<8x8xi1>, vector<8x8xf32>
    %cst_56 = arith.constant dense<0xFF800000> : vector<8xf32>
    %73 = vector.multi_reduction <maximumf>, %72, %cst_56 [1] : vector<8x8xf32> to vector<8xf32>
    %74 = vector.shape_cast %73 : vector<8xf32> to vector<8x1xf32>
    %75 = vector.broadcast %74 : vector<8x1xf32> to vector<8x8xf32>
    %76 = arith.subf %72, %75 : vector<8x8xf32>
    %77 = math.exp %76 : vector<8x8xf32>
    %cst_57 = arith.constant dense<0.000000e+00> : vector<8xf32>
    %78 = vector.multi_reduction <add>, %77, %cst_57 [1] : vector<8x8xf32> to vector<8xf32>
    %79 = vector.shape_cast %78 : vector<8xf32> to vector<8x1xf32>
    %80 = tpu.reciprocal %79 {approx = true} : vector<8x1xf32> -> vector<8x1xf32>
    %81 = vector.broadcast %80 : vector<8x1xf32> to vector<8x8xf32>
    %82 = arith.mulf %77, %81 : vector<8x8xf32>
    %83 = arith.truncf %82 : vector<8x8xf32> to vector<8x8xbf16>
    %84 = arith.truncf %64 : vector<8x8xf32> to vector<8x8xbf16>
    %cst_58 = arith.constant dense<0.000000e+00> : vector<8x8xf32>
    %85 = tpu.matmul %83, %84, %cst_58 {dimension_numbers = #tpu.dot_dimension_numbers<[1], [0], [0], [1], [0, 0, 1, 1], [], []>} : vector<8x8xbf16>, vector<8x8xbf16>, vector<8x8xf32> -> vector<8x8xf32>
    %86 = arith.truncf %85 : vector<8x8xf32> to vector<8x8xbf16>
    %c0_i32_59 = arith.constant 0 : i32
    %c0_i32_60 = arith.constant 0 : i32
    %c0_i32_61 = arith.constant 0 : i32
    %c0_i32_62 = arith.constant 0 : i32
    %87 = tpu.memref_slice %arg10[%c0_i32_59, %c0_i32_60, %c0_i32_61, %c0_i32_62] : memref<1x4x8x32xbf16, #tpu.memory_space<vmem>> -> memref<1x4x8x32xbf16, #tpu.memory_space<vmem>>
    %88 = tpu.memref_squeeze %87 : memref<1x4x8x32xbf16, #tpu.memory_space<vmem>> -> memref<4x8x32xbf16, #tpu.memory_space<vmem>>
    %c0_63 = arith.constant 0 : index
    %c0_64 = arith.constant 0 : index
    %c0_65 = arith.constant 0 : index
    %89 = vector.load %88[%c0_63, %c0_64, %c0_65] : memref<4x8x32xbf16, #tpu.memory_space<vmem>>, vector<1x8x32xbf16>
    %90 = vector.shape_cast %89 : vector<1x8x32xbf16> to vector<8x32xbf16>
    %cst_66 = arith.constant dense<0.000000e+00> : vector<8x32xf32>
    %91 = tpu.matmul %86, %90, %cst_66 {dimension_numbers = #tpu.dot_dimension_numbers<[1], [0], [0], [1], [0, 0, 1, 1], [], []>} : vector<8x8xbf16>, vector<8x32xbf16>, vector<8x32xf32> -> vector<8x32xf32>
    %c0_i32_67 = arith.constant 0 : i32
    %c0_i32_68 = arith.constant 0 : i32
    %c0_i32_69 = arith.constant 0 : i32
    %c0_i32_70 = arith.constant 0 : i32
    %92 = tpu.memref_slice %arg5[%c0_i32_67, %c0_i32_68, %c0_i32_69, %c0_i32_70] : memref<1x4x32x8xbf16, #tpu.memory_space<vmem>> -> memref<1x4x32x8xbf16, #tpu.memory_space<vmem>>
    %93 = tpu.memref_squeeze %92 : memref<1x4x32x8xbf16, #tpu.memory_space<vmem>> -> memref<4x32x8xbf16, #tpu.memory_space<vmem>>
    %c1 = arith.constant 1 : index
    %c0_71 = arith.constant 0 : index
    %c0_72 = arith.constant 0 : index
    %94 = vector.load %93[%c1, %c0_71, %c0_72] : memref<4x32x8xbf16, #tpu.memory_space<vmem>>, vector<1x32x8xbf16>
    %95 = vector.shape_cast %94 : vector<1x32x8xbf16> to vector<32x8xbf16>
    %cst_73 = arith.constant dense<0.000000e+00> : vector<8x8xf32>
    %96 = tpu.matmul %34, %95, %cst_73 {dimension_numbers = #tpu.dot_dimension_numbers<[1], [0], [0], [1], [0, 0, 1, 1], [], []>} : vector<8x32xbf16>, vector<32x8xbf16>, vector<8x8xf32> -> vector<8x8xf32>
    %c0_i32_74 = arith.constant 0 : i32
    %c0_i32_75 = arith.constant 0 : i32
    %c0_i32_76 = arith.constant 0 : i32
    %c0_i32_77 = arith.constant 0 : i32
    %97 = tpu.memref_slice %arg6[%c0_i32_74, %c0_i32_75, %c0_i32_76, %c0_i32_77] : memref<1x4x1x8xf32, #tpu.memory_space<vmem>> -> memref<1x4x1x8xf32, #tpu.memory_space<vmem>>
    %98 = tpu.memref_squeeze %97 : memref<1x4x1x8xf32, #tpu.memory_space<vmem>> -> memref<4x1x8xf32, #tpu.memory_space<vmem>>
    %c1_78 = arith.constant 1 : index
    %c0_79 = arith.constant 0 : index
    %c0_80 = arith.constant 0 : index
    %99 = vector.load %98[%c1_78, %c0_79, %c0_80] : memref<4x1x8xf32, #tpu.memory_space<vmem>>, vector<1x1x8xf32>
    %100 = vector.shape_cast %99 : vector<1x1x8xf32> to vector<1x8xf32>
    %101 = vector.broadcast %100 : vector<1x8xf32> to vector<8x8xf32>
    %102 = arith.addf %96, %101 : vector<8x8xf32>
    %cst_81 = arith.constant 0.353553385 : f32
    %103 = vector.broadcast %cst_81 : f32 to vector<8x8xf32>
    %104 = arith.mulf %102, %103 : vector<8x8xf32>
    %c0_i32_82 = arith.constant 0 : i32
    %c0_i32_83 = arith.constant 0 : i32
    %c0_i32_84 = arith.constant 0 : i32
    %c0_i32_85 = arith.constant 0 : i32
    %105 = tpu.memref_slice %arg7[%c0_i32_82, %c0_i32_83, %c0_i32_84, %c0_i32_85] : memref<1x4x32x8xbf16, #tpu.memory_space<vmem>> -> memref<1x4x32x8xbf16, #tpu.memory_space<vmem>>
    %106 = tpu.memref_squeeze %105 : memref<1x4x32x8xbf16, #tpu.memory_space<vmem>> -> memref<4x32x8xbf16, #tpu.memory_space<vmem>>
    %c1_86 = arith.constant 1 : index
    %c0_87 = arith.constant 0 : index
    %c0_88 = arith.constant 0 : index
    %107 = vector.load %106[%c1_86, %c0_87, %c0_88] : memref<4x32x8xbf16, #tpu.memory_space<vmem>>, vector<1x32x8xbf16>
    %108 = vector.shape_cast %107 : vector<1x32x8xbf16> to vector<32x8xbf16>
    %cst_89 = arith.constant dense<0.000000e+00> : vector<8x8xf32>
    %109 = tpu.matmul %35, %108, %cst_89 {dimension_numbers = #tpu.dot_dimension_numbers<[1], [0], [0], [1], [0, 0, 1, 1], [], []>} : vector<8x32xbf16>, vector<32x8xbf16>, vector<8x8xf32> -> vector<8x8xf32>
    %c0_i32_90 = arith.constant 0 : i32
    %c0_i32_91 = arith.constant 0 : i32
    %c0_i32_92 = arith.constant 0 : i32
    %c0_i32_93 = arith.constant 0 : i32
    %110 = tpu.memref_slice %arg8[%c0_i32_90, %c0_i32_91, %c0_i32_92, %c0_i32_93] : memref<1x4x32x8xbf16, #tpu.memory_space<vmem>> -> memref<1x4x32x8xbf16, #tpu.memory_space<vmem>>
    %111 = tpu.memref_squeeze %110 : memref<1x4x32x8xbf16, #tpu.memory_space<vmem>> -> memref<4x32x8xbf16, #tpu.memory_space<vmem>>
    %c1_94 = arith.constant 1 : index
    %c0_95 = arith.constant 0 : index
    %c0_96 = arith.constant 0 : index
    %112 = vector.load %111[%c1_94, %c0_95, %c0_96] : memref<4x32x8xbf16, #tpu.memory_space<vmem>>, vector<1x32x8xbf16>
    %113 = vector.shape_cast %112 : vector<1x32x8xbf16> to vector<32x8xbf16>
    %cst_97 = arith.constant dense<0.000000e+00> : vector<8x8xf32>
    %114 = tpu.matmul %35, %113, %cst_97 {dimension_numbers = #tpu.dot_dimension_numbers<[1], [0], [0], [1], [0, 0, 1, 1], [], []>} : vector<8x32xbf16>, vector<32x8xbf16>, vector<8x8xf32> -> vector<8x8xf32>
    %c0_i32_98 = arith.constant 0 : i32
    %c0_i32_99 = arith.constant 0 : i32
    %c0_i32_100 = arith.constant 0 : i32
    %c0_i32_101 = arith.constant 0 : i32
    %115 = tpu.memref_slice %arg9[%c0_i32_98, %c0_i32_99, %c0_i32_100, %c0_i32_101] : memref<1x4x1x8xf32, #tpu.memory_space<vmem>> -> memref<1x4x1x8xf32, #tpu.memory_space<vmem>>
    %116 = tpu.memref_squeeze %115 : memref<1x4x1x8xf32, #tpu.memory_space<vmem>> -> memref<4x1x8xf32, #tpu.memory_space<vmem>>
    %c1_102 = arith.constant 1 : index
    %c0_103 = arith.constant 0 : index
    %c0_104 = arith.constant 0 : index
    %117 = vector.load %116[%c1_102, %c0_103, %c0_104] : memref<4x1x8xf32, #tpu.memory_space<vmem>>, vector<1x1x8xf32>
    %118 = vector.shape_cast %117 : vector<1x1x8xf32> to vector<1x8xf32>
    %119 = vector.broadcast %118 : vector<1x8xf32> to vector<8x8xf32>
    %120 = arith.addf %114, %119 : vector<8x8xf32>
    %121 = arith.truncf %104 : vector<8x8xf32> to vector<8x8xbf16>
    %122 = arith.truncf %109 : vector<8x8xf32> to vector<8x8xbf16>
    %cst_105 = arith.constant dense<0.000000e+00> : vector<8x8xf32>
    %123 = tpu.matmul %121, %122, %cst_105 {dimension_numbers = #tpu.dot_dimension_numbers<[1], [1], [0], [0], [0, 0, 1, 0], [], []>} : vector<8x8xbf16>, vector<8x8xbf16>, vector<8x8xf32> -> vector<8x8xf32>
    %124 = tpu.iota {dimensions = array<i32: 0>} : vector<8x8xi32>
    %125 = tpu.iota {dimensions = array<i32: 1>} : vector<8x8xi32>
    %126 = arith.cmpi sle, %125, %124 : vector<8x8xi32>
    %cst_106 = arith.constant -1.000000e+30 : f32
    %127 = vector.broadcast %cst_106 : f32 to vector<8x8xf32>
    %128 = arith.select %126, %123, %127 : vector<8x8xi1>, vector<8x8xf32>
    %cst_107 = arith.constant dense<0xFF800000> : vector<8xf32>
    %129 = vector.multi_reduction <maximumf>, %128, %cst_107 [1] : vector<8x8xf32> to vector<8xf32>
    %130 = vector.shape_cast %129 : vector<8xf32> to vector<8x1xf32>
    %131 = vector.broadcast %130 : vector<8x1xf32> to vector<8x8xf32>
    %132 = arith.subf %128, %131 : vector<8x8xf32>
    %133 = math.exp %132 : vector<8x8xf32>
    %cst_108 = arith.constant dense<0.000000e+00> : vector<8xf32>
    %134 = vector.multi_reduction <add>, %133, %cst_108 [1] : vector<8x8xf32> to vector<8xf32>
    %135 = vector.shape_cast %134 : vector<8xf32> to vector<8x1xf32>
    %136 = tpu.reciprocal %135 {approx = true} : vector<8x1xf32> -> vector<8x1xf32>
    %137 = vector.broadcast %136 : vector<8x1xf32> to vector<8x8xf32>
    %138 = arith.mulf %133, %137 : vector<8x8xf32>
    %139 = arith.truncf %138 : vector<8x8xf32> to vector<8x8xbf16>
    %140 = arith.truncf %120 : vector<8x8xf32> to vector<8x8xbf16>
    %cst_109 = arith.constant dense<0.000000e+00> : vector<8x8xf32>
    %141 = tpu.matmul %139, %140, %cst_109 {dimension_numbers = #tpu.dot_dimension_numbers<[1], [0], [0], [1], [0, 0, 1, 1], [], []>} : vector<8x8xbf16>, vector<8x8xbf16>, vector<8x8xf32> -> vector<8x8xf32>
    %142 = arith.truncf %141 : vector<8x8xf32> to vector<8x8xbf16>
    %c0_i32_110 = arith.constant 0 : i32
    %c0_i32_111 = arith.constant 0 : i32
    %c0_i32_112 = arith.constant 0 : i32
    %c0_i32_113 = arith.constant 0 : i32
    %143 = tpu.memref_slice %arg10[%c0_i32_110, %c0_i32_111, %c0_i32_112, %c0_i32_113] : memref<1x4x8x32xbf16, #tpu.memory_space<vmem>> -> memref<1x4x8x32xbf16, #tpu.memory_space<vmem>>
    %144 = tpu.memref_squeeze %143 : memref<1x4x8x32xbf16, #tpu.memory_space<vmem>> -> memref<4x8x32xbf16, #tpu.memory_space<vmem>>
    %c1_114 = arith.constant 1 : index
    %c0_115 = arith.constant 0 : index
    %c0_116 = arith.constant 0 : index
    %145 = vector.load %144[%c1_114, %c0_115, %c0_116] : memref<4x8x32xbf16, #tpu.memory_space<vmem>>, vector<1x8x32xbf16>
    %146 = vector.shape_cast %145 : vector<1x8x32xbf16> to vector<8x32xbf16>
    %cst_117 = arith.constant dense<0.000000e+00> : vector<8x32xf32>
    %147 = tpu.matmul %142, %146, %cst_117 {dimension_numbers = #tpu.dot_dimension_numbers<[1], [0], [0], [1], [0, 0, 1, 1], [], []>} : vector<8x8xbf16>, vector<8x32xbf16>, vector<8x32xf32> -> vector<8x32xf32>
    %148 = arith.addf %91, %147 : vector<8x32xf32>
    %c0_i32_118 = arith.constant 0 : i32
    %c0_i32_119 = arith.constant 0 : i32
    %c0_i32_120 = arith.constant 0 : i32
    %c0_i32_121 = arith.constant 0 : i32
    %149 = tpu.memref_slice %arg5[%c0_i32_118, %c0_i32_119, %c0_i32_120, %c0_i32_121] : memref<1x4x32x8xbf16, #tpu.memory_space<vmem>> -> memref<1x4x32x8xbf16, #tpu.memory_space<vmem>>
    %150 = tpu.memref_squeeze %149 : memref<1x4x32x8xbf16, #tpu.memory_space<vmem>> -> memref<4x32x8xbf16, #tpu.memory_space<vmem>>
    %c2 = arith.constant 2 : index
    %c0_122 = arith.constant 0 : index
    %c0_123 = arith.constant 0 : index
    %151 = vector.load %150[%c2, %c0_122, %c0_123] : memref<4x32x8xbf16, #tpu.memory_space<vmem>>, vector<1x32x8xbf16>
    %152 = vector.shape_cast %151 : vector<1x32x8xbf16> to vector<32x8xbf16>
    %cst_124 = arith.constant dense<0.000000e+00> : vector<8x8xf32>
    %153 = tpu.matmul %34, %152, %cst_124 {dimension_numbers = #tpu.dot_dimension_numbers<[1], [0], [0], [1], [0, 0, 1, 1], [], []>} : vector<8x32xbf16>, vector<32x8xbf16>, vector<8x8xf32> -> vector<8x8xf32>
    %c0_i32_125 = arith.constant 0 : i32
    %c0_i32_126 = arith.constant 0 : i32
    %c0_i32_127 = arith.constant 0 : i32
    %c0_i32_128 = arith.constant 0 : i32
    %154 = tpu.memref_slice %arg6[%c0_i32_125, %c0_i32_126, %c0_i32_127, %c0_i32_128] : memref<1x4x1x8xf32, #tpu.memory_space<vmem>> -> memref<1x4x1x8xf32, #tpu.memory_space<vmem>>
    %155 = tpu.memref_squeeze %154 : memref<1x4x1x8xf32, #tpu.memory_space<vmem>> -> memref<4x1x8xf32, #tpu.memory_space<vmem>>
    %c2_129 = arith.constant 2 : index
    %c0_130 = arith.constant 0 : index
    %c0_131 = arith.constant 0 : index
    %156 = vector.load %155[%c2_129, %c0_130, %c0_131] : memref<4x1x8xf32, #tpu.memory_space<vmem>>, vector<1x1x8xf32>
    %157 = vector.shape_cast %156 : vector<1x1x8xf32> to vector<1x8xf32>
    %158 = vector.broadcast %157 : vector<1x8xf32> to vector<8x8xf32>
    %159 = arith.addf %153, %158 : vector<8x8xf32>
    %cst_132 = arith.constant 0.353553385 : f32
    %160 = vector.broadcast %cst_132 : f32 to vector<8x8xf32>
    %161 = arith.mulf %159, %160 : vector<8x8xf32>
    %c0_i32_133 = arith.constant 0 : i32
    %c0_i32_134 = arith.constant 0 : i32
    %c0_i32_135 = arith.constant 0 : i32
    %c0_i32_136 = arith.constant 0 : i32
    %162 = tpu.memref_slice %arg7[%c0_i32_133, %c0_i32_134, %c0_i32_135, %c0_i32_136] : memref<1x4x32x8xbf16, #tpu.memory_space<vmem>> -> memref<1x4x32x8xbf16, #tpu.memory_space<vmem>>
    %163 = tpu.memref_squeeze %162 : memref<1x4x32x8xbf16, #tpu.memory_space<vmem>> -> memref<4x32x8xbf16, #tpu.memory_space<vmem>>
    %c2_137 = arith.constant 2 : index
    %c0_138 = arith.constant 0 : index
    %c0_139 = arith.constant 0 : index
    %164 = vector.load %163[%c2_137, %c0_138, %c0_139] : memref<4x32x8xbf16, #tpu.memory_space<vmem>>, vector<1x32x8xbf16>
    %165 = vector.shape_cast %164 : vector<1x32x8xbf16> to vector<32x8xbf16>
    %cst_140 = arith.constant dense<0.000000e+00> : vector<8x8xf32>
    %166 = tpu.matmul %35, %165, %cst_140 {dimension_numbers = #tpu.dot_dimension_numbers<[1], [0], [0], [1], [0, 0, 1, 1], [], []>} : vector<8x32xbf16>, vector<32x8xbf16>, vector<8x8xf32> -> vector<8x8xf32>
    %c0_i32_141 = arith.constant 0 : i32
    %c0_i32_142 = arith.constant 0 : i32
    %c0_i32_143 = arith.constant 0 : i32
    %c0_i32_144 = arith.constant 0 : i32
    %167 = tpu.memref_slice %arg8[%c0_i32_141, %c0_i32_142, %c0_i32_143, %c0_i32_144] : memref<1x4x32x8xbf16, #tpu.memory_space<vmem>> -> memref<1x4x32x8xbf16, #tpu.memory_space<vmem>>
    %168 = tpu.memref_squeeze %167 : memref<1x4x32x8xbf16, #tpu.memory_space<vmem>> -> memref<4x32x8xbf16, #tpu.memory_space<vmem>>
    %c2_145 = arith.constant 2 : index
    %c0_146 = arith.constant 0 : index
    %c0_147 = arith.constant 0 : index
    %169 = vector.load %168[%c2_145, %c0_146, %c0_147] : memref<4x32x8xbf16, #tpu.memory_space<vmem>>, vector<1x32x8xbf16>
    %170 = vector.shape_cast %169 : vector<1x32x8xbf16> to vector<32x8xbf16>
    %cst_148 = arith.constant dense<0.000000e+00> : vector<8x8xf32>
    %171 = tpu.matmul %35, %170, %cst_148 {dimension_numbers = #tpu.dot_dimension_numbers<[1], [0], [0], [1], [0, 0, 1, 1], [], []>} : vector<8x32xbf16>, vector<32x8xbf16>, vector<8x8xf32> -> vector<8x8xf32>
    %c0_i32_149 = arith.constant 0 : i32
    %c0_i32_150 = arith.constant 0 : i32
    %c0_i32_151 = arith.constant 0 : i32
    %c0_i32_152 = arith.constant 0 : i32
    %172 = tpu.memref_slice %arg9[%c0_i32_149, %c0_i32_150, %c0_i32_151, %c0_i32_152] : memref<1x4x1x8xf32, #tpu.memory_space<vmem>> -> memref<1x4x1x8xf32, #tpu.memory_space<vmem>>
    %173 = tpu.memref_squeeze %172 : memref<1x4x1x8xf32, #tpu.memory_space<vmem>> -> memref<4x1x8xf32, #tpu.memory_space<vmem>>
    %c2_153 = arith.constant 2 : index
    %c0_154 = arith.constant 0 : index
    %c0_155 = arith.constant 0 : index
    %174 = vector.load %173[%c2_153, %c0_154, %c0_155] : memref<4x1x8xf32, #tpu.memory_space<vmem>>, vector<1x1x8xf32>
    %175 = vector.shape_cast %174 : vector<1x1x8xf32> to vector<1x8xf32>
    %176 = vector.broadcast %175 : vector<1x8xf32> to vector<8x8xf32>
    %177 = arith.addf %171, %176 : vector<8x8xf32>
    %178 = arith.truncf %161 : vector<8x8xf32> to vector<8x8xbf16>
    %179 = arith.truncf %166 : vector<8x8xf32> to vector<8x8xbf16>
    %cst_156 = arith.constant dense<0.000000e+00> : vector<8x8xf32>
    %180 = tpu.matmul %178, %179, %cst_156 {dimension_numbers = #tpu.dot_dimension_numbers<[1], [1], [0], [0], [0, 0, 1, 0], [], []>} : vector<8x8xbf16>, vector<8x8xbf16>, vector<8x8xf32> -> vector<8x8xf32>
    %181 = tpu.iota {dimensions = array<i32: 0>} : vector<8x8xi32>
    %182 = tpu.iota {dimensions = array<i32: 1>} : vector<8x8xi32>
    %183 = arith.cmpi sle, %182, %181 : vector<8x8xi32>
    %cst_157 = arith.constant -1.000000e+30 : f32
    %184 = vector.broadcast %cst_157 : f32 to vector<8x8xf32>
    %185 = arith.select %183, %180, %184 : vector<8x8xi1>, vector<8x8xf32>
    %cst_158 = arith.constant dense<0xFF800000> : vector<8xf32>
    %186 = vector.multi_reduction <maximumf>, %185, %cst_158 [1] : vector<8x8xf32> to vector<8xf32>
    %187 = vector.shape_cast %186 : vector<8xf32> to vector<8x1xf32>
    %188 = vector.broadcast %187 : vector<8x1xf32> to vector<8x8xf32>
    %189 = arith.subf %185, %188 : vector<8x8xf32>
    %190 = math.exp %189 : vector<8x8xf32>
    %cst_159 = arith.constant dense<0.000000e+00> : vector<8xf32>
    %191 = vector.multi_reduction <add>, %190, %cst_159 [1] : vector<8x8xf32> to vector<8xf32>
    %192 = vector.shape_cast %191 : vector<8xf32> to vector<8x1xf32>
    %193 = tpu.reciprocal %192 {approx = true} : vector<8x1xf32> -> vector<8x1xf32>
    %194 = vector.broadcast %193 : vector<8x1xf32> to vector<8x8xf32>
    %195 = arith.mulf %190, %194 : vector<8x8xf32>
    %196 = arith.truncf %195 : vector<8x8xf32> to vector<8x8xbf16>
    %197 = arith.truncf %177 : vector<8x8xf32> to vector<8x8xbf16>
    %cst_160 = arith.constant dense<0.000000e+00> : vector<8x8xf32>
    %198 = tpu.matmul %196, %197, %cst_160 {dimension_numbers = #tpu.dot_dimension_numbers<[1], [0], [0], [1], [0, 0, 1, 1], [], []>} : vector<8x8xbf16>, vector<8x8xbf16>, vector<8x8xf32> -> vector<8x8xf32>
    %199 = arith.truncf %198 : vector<8x8xf32> to vector<8x8xbf16>
    %c0_i32_161 = arith.constant 0 : i32
    %c0_i32_162 = arith.constant 0 : i32
    %c0_i32_163 = arith.constant 0 : i32
    %c0_i32_164 = arith.constant 0 : i32
    %200 = tpu.memref_slice %arg10[%c0_i32_161, %c0_i32_162, %c0_i32_163, %c0_i32_164] : memref<1x4x8x32xbf16, #tpu.memory_space<vmem>> -> memref<1x4x8x32xbf16, #tpu.memory_space<vmem>>
    %201 = tpu.memref_squeeze %200 : memref<1x4x8x32xbf16, #tpu.memory_space<vmem>> -> memref<4x8x32xbf16, #tpu.memory_space<vmem>>
    %c2_165 = arith.constant 2 : index
    %c0_166 = arith.constant 0 : index
    %c0_167 = arith.constant 0 : index
    %202 = vector.load %201[%c2_165, %c0_166, %c0_167] : memref<4x8x32xbf16, #tpu.memory_space<vmem>>, vector<1x8x32xbf16>
    %203 = vector.shape_cast %202 : vector<1x8x32xbf16> to vector<8x32xbf16>
    %cst_168 = arith.constant dense<0.000000e+00> : vector<8x32xf32>
    %204 = tpu.matmul %199, %203, %cst_168 {dimension_numbers = #tpu.dot_dimension_numbers<[1], [0], [0], [1], [0, 0, 1, 1], [], []>} : vector<8x8xbf16>, vector<8x32xbf16>, vector<8x32xf32> -> vector<8x32xf32>
    %205 = arith.addf %148, %204 : vector<8x32xf32>
    %c0_i32_169 = arith.constant 0 : i32
    %c0_i32_170 = arith.constant 0 : i32
    %c0_i32_171 = arith.constant 0 : i32
    %c0_i32_172 = arith.constant 0 : i32
    %206 = tpu.memref_slice %arg5[%c0_i32_169, %c0_i32_170, %c0_i32_171, %c0_i32_172] : memref<1x4x32x8xbf16, #tpu.memory_space<vmem>> -> memref<1x4x32x8xbf16, #tpu.memory_space<vmem>>
    %207 = tpu.memref_squeeze %206 : memref<1x4x32x8xbf16, #tpu.memory_space<vmem>> -> memref<4x32x8xbf16, #tpu.memory_space<vmem>>
    %c3 = arith.constant 3 : index
    %c0_173 = arith.constant 0 : index
    %c0_174 = arith.constant 0 : index
    %208 = vector.load %207[%c3, %c0_173, %c0_174] : memref<4x32x8xbf16, #tpu.memory_space<vmem>>, vector<1x32x8xbf16>
    %209 = vector.shape_cast %208 : vector<1x32x8xbf16> to vector<32x8xbf16>
    %cst_175 = arith.constant dense<0.000000e+00> : vector<8x8xf32>
    %210 = tpu.matmul %34, %209, %cst_175 {dimension_numbers = #tpu.dot_dimension_numbers<[1], [0], [0], [1], [0, 0, 1, 1], [], []>} : vector<8x32xbf16>, vector<32x8xbf16>, vector<8x8xf32> -> vector<8x8xf32>
    %c0_i32_176 = arith.constant 0 : i32
    %c0_i32_177 = arith.constant 0 : i32
    %c0_i32_178 = arith.constant 0 : i32
    %c0_i32_179 = arith.constant 0 : i32
    %211 = tpu.memref_slice %arg6[%c0_i32_176, %c0_i32_177, %c0_i32_178, %c0_i32_179] : memref<1x4x1x8xf32, #tpu.memory_space<vmem>> -> memref<1x4x1x8xf32, #tpu.memory_space<vmem>>
    %212 = tpu.memref_squeeze %211 : memref<1x4x1x8xf32, #tpu.memory_space<vmem>> -> memref<4x1x8xf32, #tpu.memory_space<vmem>>
    %c3_180 = arith.constant 3 : index
    %c0_181 = arith.constant 0 : index
    %c0_182 = arith.constant 0 : index
    %213 = vector.load %212[%c3_180, %c0_181, %c0_182] : memref<4x1x8xf32, #tpu.memory_space<vmem>>, vector<1x1x8xf32>
    %214 = vector.shape_cast %213 : vector<1x1x8xf32> to vector<1x8xf32>
    %215 = vector.broadcast %214 : vector<1x8xf32> to vector<8x8xf32>
    %216 = arith.addf %210, %215 : vector<8x8xf32>
    %cst_183 = arith.constant 0.353553385 : f32
    %217 = vector.broadcast %cst_183 : f32 to vector<8x8xf32>
    %218 = arith.mulf %216, %217 : vector<8x8xf32>
    %c0_i32_184 = arith.constant 0 : i32
    %c0_i32_185 = arith.constant 0 : i32
    %c0_i32_186 = arith.constant 0 : i32
    %c0_i32_187 = arith.constant 0 : i32
    %219 = tpu.memref_slice %arg7[%c0_i32_184, %c0_i32_185, %c0_i32_186, %c0_i32_187] : memref<1x4x32x8xbf16, #tpu.memory_space<vmem>> -> memref<1x4x32x8xbf16, #tpu.memory_space<vmem>>
    %220 = tpu.memref_squeeze %219 : memref<1x4x32x8xbf16, #tpu.memory_space<vmem>> -> memref<4x32x8xbf16, #tpu.memory_space<vmem>>
    %c3_188 = arith.constant 3 : index
    %c0_189 = arith.constant 0 : index
    %c0_190 = arith.constant 0 : index
    %221 = vector.load %220[%c3_188, %c0_189, %c0_190] : memref<4x32x8xbf16, #tpu.memory_space<vmem>>, vector<1x32x8xbf16>
    %222 = vector.shape_cast %221 : vector<1x32x8xbf16> to vector<32x8xbf16>
    %cst_191 = arith.constant dense<0.000000e+00> : vector<8x8xf32>
    %223 = tpu.matmul %35, %222, %cst_191 {dimension_numbers = #tpu.dot_dimension_numbers<[1], [0], [0], [1], [0, 0, 1, 1], [], []>} : vector<8x32xbf16>, vector<32x8xbf16>, vector<8x8xf32> -> vector<8x8xf32>
    %c0_i32_192 = arith.constant 0 : i32
    %c0_i32_193 = arith.constant 0 : i32
    %c0_i32_194 = arith.constant 0 : i32
    %c0_i32_195 = arith.constant 0 : i32
    %224 = tpu.memref_slice %arg8[%c0_i32_192, %c0_i32_193, %c0_i32_194, %c0_i32_195] : memref<1x4x32x8xbf16, #tpu.memory_space<vmem>> -> memref<1x4x32x8xbf16, #tpu.memory_space<vmem>>
    %225 = tpu.memref_squeeze %224 : memref<1x4x32x8xbf16, #tpu.memory_space<vmem>> -> memref<4x32x8xbf16, #tpu.memory_space<vmem>>
    %c3_196 = arith.constant 3 : index
    %c0_197 = arith.constant 0 : index
    %c0_198 = arith.constant 0 : index
    %226 = vector.load %225[%c3_196, %c0_197, %c0_198] : memref<4x32x8xbf16, #tpu.memory_space<vmem>>, vector<1x32x8xbf16>
    %227 = vector.shape_cast %226 : vector<1x32x8xbf16> to vector<32x8xbf16>
    %cst_199 = arith.constant dense<0.000000e+00> : vector<8x8xf32>
    %228 = tpu.matmul %35, %227, %cst_199 {dimension_numbers = #tpu.dot_dimension_numbers<[1], [0], [0], [1], [0, 0, 1, 1], [], []>} : vector<8x32xbf16>, vector<32x8xbf16>, vector<8x8xf32> -> vector<8x8xf32>
    %c0_i32_200 = arith.constant 0 : i32
    %c0_i32_201 = arith.constant 0 : i32
    %c0_i32_202 = arith.constant 0 : i32
    %c0_i32_203 = arith.constant 0 : i32
    %229 = tpu.memref_slice %arg9[%c0_i32_200, %c0_i32_201, %c0_i32_202, %c0_i32_203] : memref<1x4x1x8xf32, #tpu.memory_space<vmem>> -> memref<1x4x1x8xf32, #tpu.memory_space<vmem>>
    %230 = tpu.memref_squeeze %229 : memref<1x4x1x8xf32, #tpu.memory_space<vmem>> -> memref<4x1x8xf32, #tpu.memory_space<vmem>>
    %c3_204 = arith.constant 3 : index
    %c0_205 = arith.constant 0 : index
    %c0_206 = arith.constant 0 : index
    %231 = vector.load %230[%c3_204, %c0_205, %c0_206] : memref<4x1x8xf32, #tpu.memory_space<vmem>>, vector<1x1x8xf32>
    %232 = vector.shape_cast %231 : vector<1x1x8xf32> to vector<1x8xf32>
    %233 = vector.broadcast %232 : vector<1x8xf32> to vector<8x8xf32>
    %234 = arith.addf %228, %233 : vector<8x8xf32>
    %235 = arith.truncf %218 : vector<8x8xf32> to vector<8x8xbf16>
    %236 = arith.truncf %223 : vector<8x8xf32> to vector<8x8xbf16>
    %cst_207 = arith.constant dense<0.000000e+00> : vector<8x8xf32>
    %237 = tpu.matmul %235, %236, %cst_207 {dimension_numbers = #tpu.dot_dimension_numbers<[1], [1], [0], [0], [0, 0, 1, 0], [], []>} : vector<8x8xbf16>, vector<8x8xbf16>, vector<8x8xf32> -> vector<8x8xf32>
    %238 = tpu.iota {dimensions = array<i32: 0>} : vector<8x8xi32>
    %239 = tpu.iota {dimensions = array<i32: 1>} : vector<8x8xi32>
    %240 = arith.cmpi sle, %239, %238 : vector<8x8xi32>
    %cst_208 = arith.constant -1.000000e+30 : f32
    %241 = vector.broadcast %cst_208 : f32 to vector<8x8xf32>
    %242 = arith.select %240, %237, %241 : vector<8x8xi1>, vector<8x8xf32>
    %cst_209 = arith.constant dense<0xFF800000> : vector<8xf32>
    %243 = vector.multi_reduction <maximumf>, %242, %cst_209 [1] : vector<8x8xf32> to vector<8xf32>
    %244 = vector.shape_cast %243 : vector<8xf32> to vector<8x1xf32>
    %245 = vector.broadcast %244 : vector<8x1xf32> to vector<8x8xf32>
    %246 = arith.subf %242, %245 : vector<8x8xf32>
    %247 = math.exp %246 : vector<8x8xf32>
    %cst_210 = arith.constant dense<0.000000e+00> : vector<8xf32>
    %248 = vector.multi_reduction <add>, %247, %cst_210 [1] : vector<8x8xf32> to vector<8xf32>
    %249 = vector.shape_cast %248 : vector<8xf32> to vector<8x1xf32>
    %250 = tpu.reciprocal %249 {approx = true} : vector<8x1xf32> -> vector<8x1xf32>
    %251 = vector.broadcast %250 : vector<8x1xf32> to vector<8x8xf32>
    %252 = arith.mulf %247, %251 : vector<8x8xf32>
    %253 = arith.truncf %252 : vector<8x8xf32> to vector<8x8xbf16>
    %254 = arith.truncf %234 : vector<8x8xf32> to vector<8x8xbf16>
    %cst_211 = arith.constant dense<0.000000e+00> : vector<8x8xf32>
    %255 = tpu.matmul %253, %254, %cst_211 {dimension_numbers = #tpu.dot_dimension_numbers<[1], [0], [0], [1], [0, 0, 1, 1], [], []>} : vector<8x8xbf16>, vector<8x8xbf16>, vector<8x8xf32> -> vector<8x8xf32>
    %256 = arith.truncf %255 : vector<8x8xf32> to vector<8x8xbf16>
    %c0_i32_212 = arith.constant 0 : i32
    %c0_i32_213 = arith.constant 0 : i32
    %c0_i32_214 = arith.constant 0 : i32
    %c0_i32_215 = arith.constant 0 : i32
    %257 = tpu.memref_slice %arg10[%c0_i32_212, %c0_i32_213, %c0_i32_214, %c0_i32_215] : memref<1x4x8x32xbf16, #tpu.memory_space<vmem>> -> memref<1x4x8x32xbf16, #tpu.memory_space<vmem>>
    %258 = tpu.memref_squeeze %257 : memref<1x4x8x32xbf16, #tpu.memory_space<vmem>> -> memref<4x8x32xbf16, #tpu.memory_space<vmem>>
    %c3_216 = arith.constant 3 : index
    %c0_217 = arith.constant 0 : index
    %c0_218 = arith.constant 0 : index
    %259 = vector.load %258[%c3_216, %c0_217, %c0_218] : memref<4x8x32xbf16, #tpu.memory_space<vmem>>, vector<1x8x32xbf16>
    %260 = vector.shape_cast %259 : vector<1x8x32xbf16> to vector<8x32xbf16>
    %cst_219 = arith.constant dense<0.000000e+00> : vector<8x32xf32>
    %261 = tpu.matmul %256, %260, %cst_219 {dimension_numbers = #tpu.dot_dimension_numbers<[1], [0], [0], [1], [0, 0, 1, 1], [], []>} : vector<8x8xbf16>, vector<8x32xbf16>, vector<8x32xf32> -> vector<8x32xf32>
    %262 = arith.addf %205, %261 : vector<8x32xf32>
    %263 = vector.broadcast %33 : vector<1x32xf32> to vector<8x32xf32>
    %264 = arith.addf %262, %263 : vector<8x32xf32>
    %265 = arith.addf %3, %264 : vector<8x32xf32>
    %c0_220 = arith.constant 0 : index
    %c0_221 = arith.constant 0 : index
    %c0_222 = arith.constant 0 : index
    %266 = vector.load %arg20[%c0_220, %c0_221, %c0_222] : memref<1x2x32xf32, #tpu.memory_space<vmem>>, vector<1x2x32xf32>
    %267 = vector.shape_cast %266 : vector<1x2x32xf32> to vector<2x32xf32>
    %cst_223 = arith.constant dense<0.000000e+00> : vector<8xf32>
    %268 = vector.multi_reduction <add>, %265, %cst_223 [1] : vector<8x32xf32> to vector<8xf32>
    %269 = vector.shape_cast %268 : vector<8xf32> to vector<8x1xf32>
    %cst_224 = arith.constant 3.200000e+01 : f32
    %270 = vector.broadcast %cst_224 : f32 to vector<8x1xf32>
    %271 = arith.divf %269, %270 : vector<8x1xf32>
    %272 = vector.broadcast %271 : vector<8x1xf32> to vector<8x32xf32>
    %273 = arith.subf %265, %272 : vector<8x32xf32>
    %274 = arith.mulf %273, %273 : vector<8x32xf32>
    %cst_225 = arith.constant dense<0.000000e+00> : vector<8xf32>
    %275 = vector.multi_reduction <add>, %274, %cst_225 [1] : vector<8x32xf32> to vector<8xf32>
    %276 = vector.shape_cast %275 : vector<8xf32> to vector<8x1xf32>
    %cst_226 = arith.constant 3.200000e+01 : f32
    %277 = vector.broadcast %cst_226 : f32 to vector<8x1xf32>
    %278 = arith.divf %276, %277 : vector<8x1xf32>
    %279 = vector.broadcast %271 : vector<8x1xf32> to vector<8x32xf32>
    %280 = arith.subf %265, %279 : vector<8x32xf32>
    %cst_227 = arith.constant 9.99999974E-6 : f32
    %281 = vector.broadcast %cst_227 : f32 to vector<8x1xf32>
    %282 = arith.addf %278, %281 : vector<8x1xf32>
    %283 = math.rsqrt %282 : vector<8x1xf32>
    %284 = vector.broadcast %283 : vector<8x1xf32> to vector<8x32xf32>
    %285 = arith.mulf %280, %284 : vector<8x32xf32>
    %286 = vector.extract_strided_slice %267 {offsets = [0, 0], sizes = [1, 32], strides = [1, 1]} : vector<2x32xf32> to vector<1x32xf32>
    %287 = vector.broadcast %286 : vector<1x32xf32> to vector<8x32xf32>
    %288 = arith.mulf %285, %287 : vector<8x32xf32>
    %289 = vector.extract_strided_slice %267 {offsets = [1, 0], sizes = [1, 32], strides = [1, 1]} : vector<2x32xf32> to vector<1x32xf32>
    %290 = vector.broadcast %289 : vector<1x32xf32> to vector<8x32xf32>
    %291 = arith.addf %288, %290 : vector<8x32xf32>
    %c0_228 = arith.constant 0 : index
    %c0_229 = arith.constant 0 : index
    %c0_230 = arith.constant 0 : index
    %292 = vector.load %arg18[%c0_228, %c0_229, %c0_230] : memref<1x1x32xf32, #tpu.memory_space<vmem>>, vector<1x1x32xf32>
    %293 = vector.shape_cast %292 : vector<1x1x32xf32> to vector<1x32xf32>
    %294 = arith.truncf %291 : vector<8x32xf32> to vector<8x32xbf16>
    %295 = arith.truncf %5 : vector<16x32xf32> to vector<16x32xbf16>
    %c0_i32_231 = arith.constant 0 : i32
    %c0_i32_232 = arith.constant 0 : i32
    %c0_i32_233 = arith.constant 0 : i32
    %c0_i32_234 = arith.constant 0 : i32
    %296 = tpu.memref_slice %arg12[%c0_i32_231, %c0_i32_232, %c0_i32_233, %c0_i32_234] : memref<1x4x32x8xbf16, #tpu.memory_space<vmem>> -> memref<1x4x32x8xbf16, #tpu.memory_space<vmem>>
    %297 = tpu.memref_squeeze %296 : memref<1x4x32x8xbf16, #tpu.memory_space<vmem>> -> memref<4x32x8xbf16, #tpu.memory_space<vmem>>
    %c0_235 = arith.constant 0 : index
    %c0_236 = arith.constant 0 : index
    %c0_237 = arith.constant 0 : index
    %298 = vector.load %297[%c0_235, %c0_236, %c0_237] : memref<4x32x8xbf16, #tpu.memory_space<vmem>>, vector<1x32x8xbf16>
    %299 = vector.shape_cast %298 : vector<1x32x8xbf16> to vector<32x8xbf16>
    %cst_238 = arith.constant dense<0.000000e+00> : vector<8x8xf32>
    %300 = tpu.matmul %294, %299, %cst_238 {dimension_numbers = #tpu.dot_dimension_numbers<[1], [0], [0], [1], [0, 0, 1, 1], [], []>} : vector<8x32xbf16>, vector<32x8xbf16>, vector<8x8xf32> -> vector<8x8xf32>
    %c0_i32_239 = arith.constant 0 : i32
    %c0_i32_240 = arith.constant 0 : i32
    %c0_i32_241 = arith.constant 0 : i32
    %c0_i32_242 = arith.constant 0 : i32
    %301 = tpu.memref_slice %arg13[%c0_i32_239, %c0_i32_240, %c0_i32_241, %c0_i32_242] : memref<1x4x1x8xf32, #tpu.memory_space<vmem>> -> memref<1x4x1x8xf32, #tpu.memory_space<vmem>>
    %302 = tpu.memref_squeeze %301 : memref<1x4x1x8xf32, #tpu.memory_space<vmem>> -> memref<4x1x8xf32, #tpu.memory_space<vmem>>
    %c0_243 = arith.constant 0 : index
    %c0_244 = arith.constant 0 : index
    %c0_245 = arith.constant 0 : index
    %303 = vector.load %302[%c0_243, %c0_244, %c0_245] : memref<4x1x8xf32, #tpu.memory_space<vmem>>, vector<1x1x8xf32>
    %304 = vector.shape_cast %303 : vector<1x1x8xf32> to vector<1x8xf32>
    %305 = vector.broadcast %304 : vector<1x8xf32> to vector<8x8xf32>
    %306 = arith.addf %300, %305 : vector<8x8xf32>
    %cst_246 = arith.constant 0.353553385 : f32
    %307 = vector.broadcast %cst_246 : f32 to vector<8x8xf32>
    %308 = arith.mulf %306, %307 : vector<8x8xf32>
    %c0_i32_247 = arith.constant 0 : i32
    %c0_i32_248 = arith.constant 0 : i32
    %c0_i32_249 = arith.constant 0 : i32
    %c0_i32_250 = arith.constant 0 : i32
    %309 = tpu.memref_slice %arg14[%c0_i32_247, %c0_i32_248, %c0_i32_249, %c0_i32_250] : memref<1x4x32x8xbf16, #tpu.memory_space<vmem>> -> memref<1x4x32x8xbf16, #tpu.memory_space<vmem>>
    %310 = tpu.memref_squeeze %309 : memref<1x4x32x8xbf16, #tpu.memory_space<vmem>> -> memref<4x32x8xbf16, #tpu.memory_space<vmem>>
    %c0_251 = arith.constant 0 : index
    %c0_252 = arith.constant 0 : index
    %c0_253 = arith.constant 0 : index
    %311 = vector.load %310[%c0_251, %c0_252, %c0_253] : memref<4x32x8xbf16, #tpu.memory_space<vmem>>, vector<1x32x8xbf16>
    %312 = vector.shape_cast %311 : vector<1x32x8xbf16> to vector<32x8xbf16>
    %cst_254 = arith.constant dense<0.000000e+00> : vector<16x8xf32>
    %313 = tpu.matmul %295, %312, %cst_254 {dimension_numbers = #tpu.dot_dimension_numbers<[1], [0], [0], [1], [0, 0, 1, 1], [], []>} : vector<16x32xbf16>, vector<32x8xbf16>, vector<16x8xf32> -> vector<16x8xf32>
    %c0_i32_255 = arith.constant 0 : i32
    %c0_i32_256 = arith.constant 0 : i32
    %c0_i32_257 = arith.constant 0 : i32
    %c0_i32_258 = arith.constant 0 : i32
    %314 = tpu.memref_slice %arg15[%c0_i32_255, %c0_i32_256, %c0_i32_257, %c0_i32_258] : memref<1x4x32x8xbf16, #tpu.memory_space<vmem>> -> memref<1x4x32x8xbf16, #tpu.memory_space<vmem>>
    %315 = tpu.memref_squeeze %314 : memref<1x4x32x8xbf16, #tpu.memory_space<vmem>> -> memref<4x32x8xbf16, #tpu.memory_space<vmem>>
    %c0_259 = arith.constant 0 : index
    %c0_260 = arith.constant 0 : index
    %c0_261 = arith.constant 0 : index
    %316 = vector.load %315[%c0_259, %c0_260, %c0_261] : memref<4x32x8xbf16, #tpu.memory_space<vmem>>, vector<1x32x8xbf16>
    %317 = vector.shape_cast %316 : vector<1x32x8xbf16> to vector<32x8xbf16>
    %cst_262 = arith.constant dense<0.000000e+00> : vector<16x8xf32>
    %318 = tpu.matmul %295, %317, %cst_262 {dimension_numbers = #tpu.dot_dimension_numbers<[1], [0], [0], [1], [0, 0, 1, 1], [], []>} : vector<16x32xbf16>, vector<32x8xbf16>, vector<16x8xf32> -> vector<16x8xf32>
    %c0_i32_263 = arith.constant 0 : i32
    %c0_i32_264 = arith.constant 0 : i32
    %c0_i32_265 = arith.constant 0 : i32
    %c0_i32_266 = arith.constant 0 : i32
    %319 = tpu.memref_slice %arg16[%c0_i32_263, %c0_i32_264, %c0_i32_265, %c0_i32_266] : memref<1x4x1x8xf32, #tpu.memory_space<vmem>> -> memref<1x4x1x8xf32, #tpu.memory_space<vmem>>
    %320 = tpu.memref_squeeze %319 : memref<1x4x1x8xf32, #tpu.memory_space<vmem>> -> memref<4x1x8xf32, #tpu.memory_space<vmem>>
    %c0_267 = arith.constant 0 : index
    %c0_268 = arith.constant 0 : index
    %c0_269 = arith.constant 0 : index
    %321 = vector.load %320[%c0_267, %c0_268, %c0_269] : memref<4x1x8xf32, #tpu.memory_space<vmem>>, vector<1x1x8xf32>
    %322 = vector.shape_cast %321 : vector<1x1x8xf32> to vector<1x8xf32>
    %323 = vector.broadcast %322 : vector<1x8xf32> to vector<16x8xf32>
    %324 = arith.addf %318, %323 : vector<16x8xf32>
    %325 = arith.truncf %308 : vector<8x8xf32> to vector<8x8xbf16>
    %326 = arith.truncf %313 : vector<16x8xf32> to vector<16x8xbf16>
    %cst_270 = arith.constant dense<0.000000e+00> : vector<8x16xf32>
    %327 = tpu.matmul %325, %326, %cst_270 {dimension_numbers = #tpu.dot_dimension_numbers<[1], [1], [0], [0], [0, 0, 1, 0], [], []>} : vector<8x8xbf16>, vector<16x8xbf16>, vector<8x16xf32> -> vector<8x16xf32>
    %cst_271 = arith.constant dense<0xFF800000> : vector<8xf32>
    %328 = vector.multi_reduction <maximumf>, %327, %cst_271 [1] : vector<8x16xf32> to vector<8xf32>
    %329 = vector.shape_cast %328 : vector<8xf32> to vector<8x1xf32>
    %330 = vector.broadcast %329 : vector<8x1xf32> to vector<8x16xf32>
    %331 = arith.subf %327, %330 : vector<8x16xf32>
    %332 = math.exp %331 : vector<8x16xf32>
    %cst_272 = arith.constant dense<0.000000e+00> : vector<8xf32>
    %333 = vector.multi_reduction <add>, %332, %cst_272 [1] : vector<8x16xf32> to vector<8xf32>
    %334 = vector.shape_cast %333 : vector<8xf32> to vector<8x1xf32>
    %335 = tpu.reciprocal %334 {approx = true} : vector<8x1xf32> -> vector<8x1xf32>
    %336 = vector.broadcast %335 : vector<8x1xf32> to vector<8x16xf32>
    %337 = arith.mulf %332, %336 : vector<8x16xf32>
    %338 = arith.truncf %337 : vector<8x16xf32> to vector<8x16xbf16>
    %339 = arith.truncf %324 : vector<16x8xf32> to vector<16x8xbf16>
    %cst_273 = arith.constant dense<0.000000e+00> : vector<8x8xf32>
    %340 = tpu.matmul %338, %339, %cst_273 {dimension_numbers = #tpu.dot_dimension_numbers<[1], [0], [0], [1], [0, 0, 1, 1], [], []>} : vector<8x16xbf16>, vector<16x8xbf16>, vector<8x8xf32> -> vector<8x8xf32>
    %341 = arith.truncf %340 : vector<8x8xf32> to vector<8x8xbf16>
    %c0_i32_274 = arith.constant 0 : i32
    %c0_i32_275 = arith.constant 0 : i32
    %c0_i32_276 = arith.constant 0 : i32
    %c0_i32_277 = arith.constant 0 : i32
    %342 = tpu.memref_slice %arg17[%c0_i32_274, %c0_i32_275, %c0_i32_276, %c0_i32_277] : memref<1x4x8x32xbf16, #tpu.memory_space<vmem>> -> memref<1x4x8x32xbf16, #tpu.memory_space<vmem>>
    %343 = tpu.memref_squeeze %342 : memref<1x4x8x32xbf16, #tpu.memory_space<vmem>> -> memref<4x8x32xbf16, #tpu.memory_space<vmem>>
    %c0_278 = arith.constant 0 : index
    %c0_279 = arith.constant 0 : index
    %c0_280 = arith.constant 0 : index
    %344 = vector.load %343[%c0_278, %c0_279, %c0_280] : memref<4x8x32xbf16, #tpu.memory_space<vmem>>, vector<1x8x32xbf16>
    %345 = vector.shape_cast %344 : vector<1x8x32xbf16> to vector<8x32xbf16>
    %cst_281 = arith.constant dense<0.000000e+00> : vector<8x32xf32>
    %346 = tpu.matmul %341, %345, %cst_281 {dimension_numbers = #tpu.dot_dimension_numbers<[1], [0], [0], [1], [0, 0, 1, 1], [], []>} : vector<8x8xbf16>, vector<8x32xbf16>, vector<8x32xf32> -> vector<8x32xf32>
    %c0_i32_282 = arith.constant 0 : i32
    %c0_i32_283 = arith.constant 0 : i32
    %c0_i32_284 = arith.constant 0 : i32
    %c0_i32_285 = arith.constant 0 : i32
    %347 = tpu.memref_slice %arg12[%c0_i32_282, %c0_i32_283, %c0_i32_284, %c0_i32_285] : memref<1x4x32x8xbf16, #tpu.memory_space<vmem>> -> memref<1x4x32x8xbf16, #tpu.memory_space<vmem>>
    %348 = tpu.memref_squeeze %347 : memref<1x4x32x8xbf16, #tpu.memory_space<vmem>> -> memref<4x32x8xbf16, #tpu.memory_space<vmem>>
    %c1_286 = arith.constant 1 : index
    %c0_287 = arith.constant 0 : index
    %c0_288 = arith.constant 0 : index
    %349 = vector.load %348[%c1_286, %c0_287, %c0_288] : memref<4x32x8xbf16, #tpu.memory_space<vmem>>, vector<1x32x8xbf16>
    %350 = vector.shape_cast %349 : vector<1x32x8xbf16> to vector<32x8xbf16>
    %cst_289 = arith.constant dense<0.000000e+00> : vector<8x8xf32>
    %351 = tpu.matmul %294, %350, %cst_289 {dimension_numbers = #tpu.dot_dimension_numbers<[1], [0], [0], [1], [0, 0, 1, 1], [], []>} : vector<8x32xbf16>, vector<32x8xbf16>, vector<8x8xf32> -> vector<8x8xf32>
    %c0_i32_290 = arith.constant 0 : i32
    %c0_i32_291 = arith.constant 0 : i32
    %c0_i32_292 = arith.constant 0 : i32
    %c0_i32_293 = arith.constant 0 : i32
    %352 = tpu.memref_slice %arg13[%c0_i32_290, %c0_i32_291, %c0_i32_292, %c0_i32_293] : memref<1x4x1x8xf32, #tpu.memory_space<vmem>> -> memref<1x4x1x8xf32, #tpu.memory_space<vmem>>
    %353 = tpu.memref_squeeze %352 : memref<1x4x1x8xf32, #tpu.memory_space<vmem>> -> memref<4x1x8xf32, #tpu.memory_space<vmem>>
    %c1_294 = arith.constant 1 : index
    %c0_295 = arith.constant 0 : index
    %c0_296 = arith.constant 0 : index
    %354 = vector.load %353[%c1_294, %c0_295, %c0_296] : memref<4x1x8xf32, #tpu.memory_space<vmem>>, vector<1x1x8xf32>
    %355 = vector.shape_cast %354 : vector<1x1x8xf32> to vector<1x8xf32>
    %356 = vector.broadcast %355 : vector<1x8xf32> to vector<8x8xf32>
    %357 = arith.addf %351, %356 : vector<8x8xf32>
    %cst_297 = arith.constant 0.353553385 : f32
    %358 = vector.broadcast %cst_297 : f32 to vector<8x8xf32>
    %359 = arith.mulf %357, %358 : vector<8x8xf32>
    %c0_i32_298 = arith.constant 0 : i32
    %c0_i32_299 = arith.constant 0 : i32
    %c0_i32_300 = arith.constant 0 : i32
    %c0_i32_301 = arith.constant 0 : i32
    %360 = tpu.memref_slice %arg14[%c0_i32_298, %c0_i32_299, %c0_i32_300, %c0_i32_301] : memref<1x4x32x8xbf16, #tpu.memory_space<vmem>> -> memref<1x4x32x8xbf16, #tpu.memory_space<vmem>>
    %361 = tpu.memref_squeeze %360 : memref<1x4x32x8xbf16, #tpu.memory_space<vmem>> -> memref<4x32x8xbf16, #tpu.memory_space<vmem>>
    %c1_302 = arith.constant 1 : index
    %c0_303 = arith.constant 0 : index
    %c0_304 = arith.constant 0 : index
    %362 = vector.load %361[%c1_302, %c0_303, %c0_304] : memref<4x32x8xbf16, #tpu.memory_space<vmem>>, vector<1x32x8xbf16>
    %363 = vector.shape_cast %362 : vector<1x32x8xbf16> to vector<32x8xbf16>
    %cst_305 = arith.constant dense<0.000000e+00> : vector<16x8xf32>
    %364 = tpu.matmul %295, %363, %cst_305 {dimension_numbers = #tpu.dot_dimension_numbers<[1], [0], [0], [1], [0, 0, 1, 1], [], []>} : vector<16x32xbf16>, vector<32x8xbf16>, vector<16x8xf32> -> vector<16x8xf32>
    %c0_i32_306 = arith.constant 0 : i32
    %c0_i32_307 = arith.constant 0 : i32
    %c0_i32_308 = arith.constant 0 : i32
    %c0_i32_309 = arith.constant 0 : i32
    %365 = tpu.memref_slice %arg15[%c0_i32_306, %c0_i32_307, %c0_i32_308, %c0_i32_309] : memref<1x4x32x8xbf16, #tpu.memory_space<vmem>> -> memref<1x4x32x8xbf16, #tpu.memory_space<vmem>>
    %366 = tpu.memref_squeeze %365 : memref<1x4x32x8xbf16, #tpu.memory_space<vmem>> -> memref<4x32x8xbf16, #tpu.memory_space<vmem>>
    %c1_310 = arith.constant 1 : index
    %c0_311 = arith.constant 0 : index
    %c0_312 = arith.constant 0 : index
    %367 = vector.load %366[%c1_310, %c0_311, %c0_312] : memref<4x32x8xbf16, #tpu.memory_space<vmem>>, vector<1x32x8xbf16>
    %368 = vector.shape_cast %367 : vector<1x32x8xbf16> to vector<32x8xbf16>
    %cst_313 = arith.constant dense<0.000000e+00> : vector<16x8xf32>
    %369 = tpu.matmul %295, %368, %cst_313 {dimension_numbers = #tpu.dot_dimension_numbers<[1], [0], [0], [1], [0, 0, 1, 1], [], []>} : vector<16x32xbf16>, vector<32x8xbf16>, vector<16x8xf32> -> vector<16x8xf32>
    %c0_i32_314 = arith.constant 0 : i32
    %c0_i32_315 = arith.constant 0 : i32
    %c0_i32_316 = arith.constant 0 : i32
    %c0_i32_317 = arith.constant 0 : i32
    %370 = tpu.memref_slice %arg16[%c0_i32_314, %c0_i32_315, %c0_i32_316, %c0_i32_317] : memref<1x4x1x8xf32, #tpu.memory_space<vmem>> -> memref<1x4x1x8xf32, #tpu.memory_space<vmem>>
    %371 = tpu.memref_squeeze %370 : memref<1x4x1x8xf32, #tpu.memory_space<vmem>> -> memref<4x1x8xf32, #tpu.memory_space<vmem>>
    %c1_318 = arith.constant 1 : index
    %c0_319 = arith.constant 0 : index
    %c0_320 = arith.constant 0 : index
    %372 = vector.load %371[%c1_318, %c0_319, %c0_320] : memref<4x1x8xf32, #tpu.memory_space<vmem>>, vector<1x1x8xf32>
    %373 = vector.shape_cast %372 : vector<1x1x8xf32> to vector<1x8xf32>
    %374 = vector.broadcast %373 : vector<1x8xf32> to vector<16x8xf32>
    %375 = arith.addf %369, %374 : vector<16x8xf32>
    %376 = arith.truncf %359 : vector<8x8xf32> to vector<8x8xbf16>
    %377 = arith.truncf %364 : vector<16x8xf32> to vector<16x8xbf16>
    %cst_321 = arith.constant dense<0.000000e+00> : vector<8x16xf32>
    %378 = tpu.matmul %376, %377, %cst_321 {dimension_numbers = #tpu.dot_dimension_numbers<[1], [1], [0], [0], [0, 0, 1, 0], [], []>} : vector<8x8xbf16>, vector<16x8xbf16>, vector<8x16xf32> -> vector<8x16xf32>
    %cst_322 = arith.constant dense<0xFF800000> : vector<8xf32>
    %379 = vector.multi_reduction <maximumf>, %378, %cst_322 [1] : vector<8x16xf32> to vector<8xf32>
    %380 = vector.shape_cast %379 : vector<8xf32> to vector<8x1xf32>
    %381 = vector.broadcast %380 : vector<8x1xf32> to vector<8x16xf32>
    %382 = arith.subf %378, %381 : vector<8x16xf32>
    %383 = math.exp %382 : vector<8x16xf32>
    %cst_323 = arith.constant dense<0.000000e+00> : vector<8xf32>
    %384 = vector.multi_reduction <add>, %383, %cst_323 [1] : vector<8x16xf32> to vector<8xf32>
    %385 = vector.shape_cast %384 : vector<8xf32> to vector<8x1xf32>
    %386 = tpu.reciprocal %385 {approx = true} : vector<8x1xf32> -> vector<8x1xf32>
    %387 = vector.broadcast %386 : vector<8x1xf32> to vector<8x16xf32>
    %388 = arith.mulf %383, %387 : vector<8x16xf32>
    %389 = arith.truncf %388 : vector<8x16xf32> to vector<8x16xbf16>
    %390 = arith.truncf %375 : vector<16x8xf32> to vector<16x8xbf16>
    %cst_324 = arith.constant dense<0.000000e+00> : vector<8x8xf32>
    %391 = tpu.matmul %389, %390, %cst_324 {dimension_numbers = #tpu.dot_dimension_numbers<[1], [0], [0], [1], [0, 0, 1, 1], [], []>} : vector<8x16xbf16>, vector<16x8xbf16>, vector<8x8xf32> -> vector<8x8xf32>
    %392 = arith.truncf %391 : vector<8x8xf32> to vector<8x8xbf16>
    %c0_i32_325 = arith.constant 0 : i32
    %c0_i32_326 = arith.constant 0 : i32
    %c0_i32_327 = arith.constant 0 : i32
    %c0_i32_328 = arith.constant 0 : i32
    %393 = tpu.memref_slice %arg17[%c0_i32_325, %c0_i32_326, %c0_i32_327, %c0_i32_328] : memref<1x4x8x32xbf16, #tpu.memory_space<vmem>> -> memref<1x4x8x32xbf16, #tpu.memory_space<vmem>>
    %394 = tpu.memref_squeeze %393 : memref<1x4x8x32xbf16, #tpu.memory_space<vmem>> -> memref<4x8x32xbf16, #tpu.memory_space<vmem>>
    %c1_329 = arith.constant 1 : index
    %c0_330 = arith.constant 0 : index
    %c0_331 = arith.constant 0 : index
    %395 = vector.load %394[%c1_329, %c0_330, %c0_331] : memref<4x8x32xbf16, #tpu.memory_space<vmem>>, vector<1x8x32xbf16>
    %396 = vector.shape_cast %395 : vector<1x8x32xbf16> to vector<8x32xbf16>
    %cst_332 = arith.constant dense<0.000000e+00> : vector<8x32xf32>
    %397 = tpu.matmul %392, %396, %cst_332 {dimension_numbers = #tpu.dot_dimension_numbers<[1], [0], [0], [1], [0, 0, 1, 1], [], []>} : vector<8x8xbf16>, vector<8x32xbf16>, vector<8x32xf32> -> vector<8x32xf32>
    %398 = arith.addf %346, %397 : vector<8x32xf32>
    %c0_i32_333 = arith.constant 0 : i32
    %c0_i32_334 = arith.constant 0 : i32
    %c0_i32_335 = arith.constant 0 : i32
    %c0_i32_336 = arith.constant 0 : i32
    %399 = tpu.memref_slice %arg12[%c0_i32_333, %c0_i32_334, %c0_i32_335, %c0_i32_336] : memref<1x4x32x8xbf16, #tpu.memory_space<vmem>> -> memref<1x4x32x8xbf16, #tpu.memory_space<vmem>>
    %400 = tpu.memref_squeeze %399 : memref<1x4x32x8xbf16, #tpu.memory_space<vmem>> -> memref<4x32x8xbf16, #tpu.memory_space<vmem>>
    %c2_337 = arith.constant 2 : index
    %c0_338 = arith.constant 0 : index
    %c0_339 = arith.constant 0 : index
    %401 = vector.load %400[%c2_337, %c0_338, %c0_339] : memref<4x32x8xbf16, #tpu.memory_space<vmem>>, vector<1x32x8xbf16>
    %402 = vector.shape_cast %401 : vector<1x32x8xbf16> to vector<32x8xbf16>
    %cst_340 = arith.constant dense<0.000000e+00> : vector<8x8xf32>
    %403 = tpu.matmul %294, %402, %cst_340 {dimension_numbers = #tpu.dot_dimension_numbers<[1], [0], [0], [1], [0, 0, 1, 1], [], []>} : vector<8x32xbf16>, vector<32x8xbf16>, vector<8x8xf32> -> vector<8x8xf32>
    %c0_i32_341 = arith.constant 0 : i32
    %c0_i32_342 = arith.constant 0 : i32
    %c0_i32_343 = arith.constant 0 : i32
    %c0_i32_344 = arith.constant 0 : i32
    %404 = tpu.memref_slice %arg13[%c0_i32_341, %c0_i32_342, %c0_i32_343, %c0_i32_344] : memref<1x4x1x8xf32, #tpu.memory_space<vmem>> -> memref<1x4x1x8xf32, #tpu.memory_space<vmem>>
    %405 = tpu.memref_squeeze %404 : memref<1x4x1x8xf32, #tpu.memory_space<vmem>> -> memref<4x1x8xf32, #tpu.memory_space<vmem>>
    %c2_345 = arith.constant 2 : index
    %c0_346 = arith.constant 0 : index
    %c0_347 = arith.constant 0 : index
    %406 = vector.load %405[%c2_345, %c0_346, %c0_347] : memref<4x1x8xf32, #tpu.memory_space<vmem>>, vector<1x1x8xf32>
    %407 = vector.shape_cast %406 : vector<1x1x8xf32> to vector<1x8xf32>
    %408 = vector.broadcast %407 : vector<1x8xf32> to vector<8x8xf32>
    %409 = arith.addf %403, %408 : vector<8x8xf32>
    %cst_348 = arith.constant 0.353553385 : f32
    %410 = vector.broadcast %cst_348 : f32 to vector<8x8xf32>
    %411 = arith.mulf %409, %410 : vector<8x8xf32>
    %c0_i32_349 = arith.constant 0 : i32
    %c0_i32_350 = arith.constant 0 : i32
    %c0_i32_351 = arith.constant 0 : i32
    %c0_i32_352 = arith.constant 0 : i32
    %412 = tpu.memref_slice %arg14[%c0_i32_349, %c0_i32_350, %c0_i32_351, %c0_i32_352] : memref<1x4x32x8xbf16, #tpu.memory_space<vmem>> -> memref<1x4x32x8xbf16, #tpu.memory_space<vmem>>
    %413 = tpu.memref_squeeze %412 : memref<1x4x32x8xbf16, #tpu.memory_space<vmem>> -> memref<4x32x8xbf16, #tpu.memory_space<vmem>>
    %c2_353 = arith.constant 2 : index
    %c0_354 = arith.constant 0 : index
    %c0_355 = arith.constant 0 : index
    %414 = vector.load %413[%c2_353, %c0_354, %c0_355] : memref<4x32x8xbf16, #tpu.memory_space<vmem>>, vector<1x32x8xbf16>
    %415 = vector.shape_cast %414 : vector<1x32x8xbf16> to vector<32x8xbf16>
    %cst_356 = arith.constant dense<0.000000e+00> : vector<16x8xf32>
    %416 = tpu.matmul %295, %415, %cst_356 {dimension_numbers = #tpu.dot_dimension_numbers<[1], [0], [0], [1], [0, 0, 1, 1], [], []>} : vector<16x32xbf16>, vector<32x8xbf16>, vector<16x8xf32> -> vector<16x8xf32>
    %c0_i32_357 = arith.constant 0 : i32
    %c0_i32_358 = arith.constant 0 : i32
    %c0_i32_359 = arith.constant 0 : i32
    %c0_i32_360 = arith.constant 0 : i32
    %417 = tpu.memref_slice %arg15[%c0_i32_357, %c0_i32_358, %c0_i32_359, %c0_i32_360] : memref<1x4x32x8xbf16, #tpu.memory_space<vmem>> -> memref<1x4x32x8xbf16, #tpu.memory_space<vmem>>
    %418 = tpu.memref_squeeze %417 : memref<1x4x32x8xbf16, #tpu.memory_space<vmem>> -> memref<4x32x8xbf16, #tpu.memory_space<vmem>>
    %c2_361 = arith.constant 2 : index
    %c0_362 = arith.constant 0 : index
    %c0_363 = arith.constant 0 : index
    %419 = vector.load %418[%c2_361, %c0_362, %c0_363] : memref<4x32x8xbf16, #tpu.memory_space<vmem>>, vector<1x32x8xbf16>
    %420 = vector.shape_cast %419 : vector<1x32x8xbf16> to vector<32x8xbf16>
    %cst_364 = arith.constant dense<0.000000e+00> : vector<16x8xf32>
    %421 = tpu.matmul %295, %420, %cst_364 {dimension_numbers = #tpu.dot_dimension_numbers<[1], [0], [0], [1], [0, 0, 1, 1], [], []>} : vector<16x32xbf16>, vector<32x8xbf16>, vector<16x8xf32> -> vector<16x8xf32>
    %c0_i32_365 = arith.constant 0 : i32
    %c0_i32_366 = arith.constant 0 : i32
    %c0_i32_367 = arith.constant 0 : i32
    %c0_i32_368 = arith.constant 0 : i32
    %422 = tpu.memref_slice %arg16[%c0_i32_365, %c0_i32_366, %c0_i32_367, %c0_i32_368] : memref<1x4x1x8xf32, #tpu.memory_space<vmem>> -> memref<1x4x1x8xf32, #tpu.memory_space<vmem>>
    %423 = tpu.memref_squeeze %422 : memref<1x4x1x8xf32, #tpu.memory_space<vmem>> -> memref<4x1x8xf32, #tpu.memory_space<vmem>>
    %c2_369 = arith.constant 2 : index
    %c0_370 = arith.constant 0 : index
    %c0_371 = arith.constant 0 : index
    %424 = vector.load %423[%c2_369, %c0_370, %c0_371] : memref<4x1x8xf32, #tpu.memory_space<vmem>>, vector<1x1x8xf32>
    %425 = vector.shape_cast %424 : vector<1x1x8xf32> to vector<1x8xf32>
    %426 = vector.broadcast %425 : vector<1x8xf32> to vector<16x8xf32>
    %427 = arith.addf %421, %426 : vector<16x8xf32>
    %428 = arith.truncf %411 : vector<8x8xf32> to vector<8x8xbf16>
    %429 = arith.truncf %416 : vector<16x8xf32> to vector<16x8xbf16>
    %cst_372 = arith.constant dense<0.000000e+00> : vector<8x16xf32>
    %430 = tpu.matmul %428, %429, %cst_372 {dimension_numbers = #tpu.dot_dimension_numbers<[1], [1], [0], [0], [0, 0, 1, 0], [], []>} : vector<8x8xbf16>, vector<16x8xbf16>, vector<8x16xf32> -> vector<8x16xf32>
    %cst_373 = arith.constant dense<0xFF800000> : vector<8xf32>
    %431 = vector.multi_reduction <maximumf>, %430, %cst_373 [1] : vector<8x16xf32> to vector<8xf32>
    %432 = vector.shape_cast %431 : vector<8xf32> to vector<8x1xf32>
    %433 = vector.broadcast %432 : vector<8x1xf32> to vector<8x16xf32>
    %434 = arith.subf %430, %433 : vector<8x16xf32>
    %435 = math.exp %434 : vector<8x16xf32>
    %cst_374 = arith.constant dense<0.000000e+00> : vector<8xf32>
    %436 = vector.multi_reduction <add>, %435, %cst_374 [1] : vector<8x16xf32> to vector<8xf32>
    %437 = vector.shape_cast %436 : vector<8xf32> to vector<8x1xf32>
    %438 = tpu.reciprocal %437 {approx = true} : vector<8x1xf32> -> vector<8x1xf32>
    %439 = vector.broadcast %438 : vector<8x1xf32> to vector<8x16xf32>
    %440 = arith.mulf %435, %439 : vector<8x16xf32>
    %441 = arith.truncf %440 : vector<8x16xf32> to vector<8x16xbf16>
    %442 = arith.truncf %427 : vector<16x8xf32> to vector<16x8xbf16>
    %cst_375 = arith.constant dense<0.000000e+00> : vector<8x8xf32>
    %443 = tpu.matmul %441, %442, %cst_375 {dimension_numbers = #tpu.dot_dimension_numbers<[1], [0], [0], [1], [0, 0, 1, 1], [], []>} : vector<8x16xbf16>, vector<16x8xbf16>, vector<8x8xf32> -> vector<8x8xf32>
    %444 = arith.truncf %443 : vector<8x8xf32> to vector<8x8xbf16>
    %c0_i32_376 = arith.constant 0 : i32
    %c0_i32_377 = arith.constant 0 : i32
    %c0_i32_378 = arith.constant 0 : i32
    %c0_i32_379 = arith.constant 0 : i32
    %445 = tpu.memref_slice %arg17[%c0_i32_376, %c0_i32_377, %c0_i32_378, %c0_i32_379] : memref<1x4x8x32xbf16, #tpu.memory_space<vmem>> -> memref<1x4x8x32xbf16, #tpu.memory_space<vmem>>
    %446 = tpu.memref_squeeze %445 : memref<1x4x8x32xbf16, #tpu.memory_space<vmem>> -> memref<4x8x32xbf16, #tpu.memory_space<vmem>>
    %c2_380 = arith.constant 2 : index
    %c0_381 = arith.constant 0 : index
    %c0_382 = arith.constant 0 : index
    %447 = vector.load %446[%c2_380, %c0_381, %c0_382] : memref<4x8x32xbf16, #tpu.memory_space<vmem>>, vector<1x8x32xbf16>
    %448 = vector.shape_cast %447 : vector<1x8x32xbf16> to vector<8x32xbf16>
    %cst_383 = arith.constant dense<0.000000e+00> : vector<8x32xf32>
    %449 = tpu.matmul %444, %448, %cst_383 {dimension_numbers = #tpu.dot_dimension_numbers<[1], [0], [0], [1], [0, 0, 1, 1], [], []>} : vector<8x8xbf16>, vector<8x32xbf16>, vector<8x32xf32> -> vector<8x32xf32>
    %450 = arith.addf %398, %449 : vector<8x32xf32>
    %c0_i32_384 = arith.constant 0 : i32
    %c0_i32_385 = arith.constant 0 : i32
    %c0_i32_386 = arith.constant 0 : i32
    %c0_i32_387 = arith.constant 0 : i32
    %451 = tpu.memref_slice %arg12[%c0_i32_384, %c0_i32_385, %c0_i32_386, %c0_i32_387] : memref<1x4x32x8xbf16, #tpu.memory_space<vmem>> -> memref<1x4x32x8xbf16, #tpu.memory_space<vmem>>
    %452 = tpu.memref_squeeze %451 : memref<1x4x32x8xbf16, #tpu.memory_space<vmem>> -> memref<4x32x8xbf16, #tpu.memory_space<vmem>>
    %c3_388 = arith.constant 3 : index
    %c0_389 = arith.constant 0 : index
    %c0_390 = arith.constant 0 : index
    %453 = vector.load %452[%c3_388, %c0_389, %c0_390] : memref<4x32x8xbf16, #tpu.memory_space<vmem>>, vector<1x32x8xbf16>
    %454 = vector.shape_cast %453 : vector<1x32x8xbf16> to vector<32x8xbf16>
    %cst_391 = arith.constant dense<0.000000e+00> : vector<8x8xf32>
    %455 = tpu.matmul %294, %454, %cst_391 {dimension_numbers = #tpu.dot_dimension_numbers<[1], [0], [0], [1], [0, 0, 1, 1], [], []>} : vector<8x32xbf16>, vector<32x8xbf16>, vector<8x8xf32> -> vector<8x8xf32>
    %c0_i32_392 = arith.constant 0 : i32
    %c0_i32_393 = arith.constant 0 : i32
    %c0_i32_394 = arith.constant 0 : i32
    %c0_i32_395 = arith.constant 0 : i32
    %456 = tpu.memref_slice %arg13[%c0_i32_392, %c0_i32_393, %c0_i32_394, %c0_i32_395] : memref<1x4x1x8xf32, #tpu.memory_space<vmem>> -> memref<1x4x1x8xf32, #tpu.memory_space<vmem>>
    %457 = tpu.memref_squeeze %456 : memref<1x4x1x8xf32, #tpu.memory_space<vmem>> -> memref<4x1x8xf32, #tpu.memory_space<vmem>>
    %c3_396 = arith.constant 3 : index
    %c0_397 = arith.constant 0 : index
    %c0_398 = arith.constant 0 : index
    %458 = vector.load %457[%c3_396, %c0_397, %c0_398] : memref<4x1x8xf32, #tpu.memory_space<vmem>>, vector<1x1x8xf32>
    %459 = vector.shape_cast %458 : vector<1x1x8xf32> to vector<1x8xf32>
    %460 = vector.broadcast %459 : vector<1x8xf32> to vector<8x8xf32>
    %461 = arith.addf %455, %460 : vector<8x8xf32>
    %cst_399 = arith.constant 0.353553385 : f32
    %462 = vector.broadcast %cst_399 : f32 to vector<8x8xf32>
    %463 = arith.mulf %461, %462 : vector<8x8xf32>
    %c0_i32_400 = arith.constant 0 : i32
    %c0_i32_401 = arith.constant 0 : i32
    %c0_i32_402 = arith.constant 0 : i32
    %c0_i32_403 = arith.constant 0 : i32
    %464 = tpu.memref_slice %arg14[%c0_i32_400, %c0_i32_401, %c0_i32_402, %c0_i32_403] : memref<1x4x32x8xbf16, #tpu.memory_space<vmem>> -> memref<1x4x32x8xbf16, #tpu.memory_space<vmem>>
    %465 = tpu.memref_squeeze %464 : memref<1x4x32x8xbf16, #tpu.memory_space<vmem>> -> memref<4x32x8xbf16, #tpu.memory_space<vmem>>
    %c3_404 = arith.constant 3 : index
    %c0_405 = arith.constant 0 : index
    %c0_406 = arith.constant 0 : index
    %466 = vector.load %465[%c3_404, %c0_405, %c0_406] : memref<4x32x8xbf16, #tpu.memory_space<vmem>>, vector<1x32x8xbf16>
    %467 = vector.shape_cast %466 : vector<1x32x8xbf16> to vector<32x8xbf16>
    %cst_407 = arith.constant dense<0.000000e+00> : vector<16x8xf32>
    %468 = tpu.matmul %295, %467, %cst_407 {dimension_numbers = #tpu.dot_dimension_numbers<[1], [0], [0], [1], [0, 0, 1, 1], [], []>} : vector<16x32xbf16>, vector<32x8xbf16>, vector<16x8xf32> -> vector<16x8xf32>
    %c0_i32_408 = arith.constant 0 : i32
    %c0_i32_409 = arith.constant 0 : i32
    %c0_i32_410 = arith.constant 0 : i32
    %c0_i32_411 = arith.constant 0 : i32
    %469 = tpu.memref_slice %arg15[%c0_i32_408, %c0_i32_409, %c0_i32_410, %c0_i32_411] : memref<1x4x32x8xbf16, #tpu.memory_space<vmem>> -> memref<1x4x32x8xbf16, #tpu.memory_space<vmem>>
    %470 = tpu.memref_squeeze %469 : memref<1x4x32x8xbf16, #tpu.memory_space<vmem>> -> memref<4x32x8xbf16, #tpu.memory_space<vmem>>
    %c3_412 = arith.constant 3 : index
    %c0_413 = arith.constant 0 : index
    %c0_414 = arith.constant 0 : index
    %471 = vector.load %470[%c3_412, %c0_413, %c0_414] : memref<4x32x8xbf16, #tpu.memory_space<vmem>>, vector<1x32x8xbf16>
    %472 = vector.shape_cast %471 : vector<1x32x8xbf16> to vector<32x8xbf16>
    %cst_415 = arith.constant dense<0.000000e+00> : vector<16x8xf32>
    %473 = tpu.matmul %295, %472, %cst_415 {dimension_numbers = #tpu.dot_dimension_numbers<[1], [0], [0], [1], [0, 0, 1, 1], [], []>} : vector<16x32xbf16>, vector<32x8xbf16>, vector<16x8xf32> -> vector<16x8xf32>
    %c0_i32_416 = arith.constant 0 : i32
    %c0_i32_417 = arith.constant 0 : i32
    %c0_i32_418 = arith.constant 0 : i32
    %c0_i32_419 = arith.constant 0 : i32
    %474 = tpu.memref_slice %arg16[%c0_i32_416, %c0_i32_417, %c0_i32_418, %c0_i32_419] : memref<1x4x1x8xf32, #tpu.memory_space<vmem>> -> memref<1x4x1x8xf32, #tpu.memory_space<vmem>>
    %475 = tpu.memref_squeeze %474 : memref<1x4x1x8xf32, #tpu.memory_space<vmem>> -> memref<4x1x8xf32, #tpu.memory_space<vmem>>
    %c3_420 = arith.constant 3 : index
    %c0_421 = arith.constant 0 : index
    %c0_422 = arith.constant 0 : index
    %476 = vector.load %475[%c3_420, %c0_421, %c0_422] : memref<4x1x8xf32, #tpu.memory_space<vmem>>, vector<1x1x8xf32>
    %477 = vector.shape_cast %476 : vector<1x1x8xf32> to vector<1x8xf32>
    %478 = vector.broadcast %477 : vector<1x8xf32> to vector<16x8xf32>
    %479 = arith.addf %473, %478 : vector<16x8xf32>
    %480 = arith.truncf %463 : vector<8x8xf32> to vector<8x8xbf16>
    %481 = arith.truncf %468 : vector<16x8xf32> to vector<16x8xbf16>
    %cst_423 = arith.constant dense<0.000000e+00> : vector<8x16xf32>
    %482 = tpu.matmul %480, %481, %cst_423 {dimension_numbers = #tpu.dot_dimension_numbers<[1], [1], [0], [0], [0, 0, 1, 0], [], []>} : vector<8x8xbf16>, vector<16x8xbf16>, vector<8x16xf32> -> vector<8x16xf32>
    %cst_424 = arith.constant dense<0xFF800000> : vector<8xf32>
    %483 = vector.multi_reduction <maximumf>, %482, %cst_424 [1] : vector<8x16xf32> to vector<8xf32>
    %484 = vector.shape_cast %483 : vector<8xf32> to vector<8x1xf32>
    %485 = vector.broadcast %484 : vector<8x1xf32> to vector<8x16xf32>
    %486 = arith.subf %482, %485 : vector<8x16xf32>
    %487 = math.exp %486 : vector<8x16xf32>
    %cst_425 = arith.constant dense<0.000000e+00> : vector<8xf32>
    %488 = vector.multi_reduction <add>, %487, %cst_425 [1] : vector<8x16xf32> to vector<8xf32>
    %489 = vector.shape_cast %488 : vector<8xf32> to vector<8x1xf32>
    %490 = tpu.reciprocal %489 {approx = true} : vector<8x1xf32> -> vector<8x1xf32>
    %491 = vector.broadcast %490 : vector<8x1xf32> to vector<8x16xf32>
    %492 = arith.mulf %487, %491 : vector<8x16xf32>
    %493 = arith.truncf %492 : vector<8x16xf32> to vector<8x16xbf16>
    %494 = arith.truncf %479 : vector<16x8xf32> to vector<16x8xbf16>
    %cst_426 = arith.constant dense<0.000000e+00> : vector<8x8xf32>
    %495 = tpu.matmul %493, %494, %cst_426 {dimension_numbers = #tpu.dot_dimension_numbers<[1], [0], [0], [1], [0, 0, 1, 1], [], []>} : vector<8x16xbf16>, vector<16x8xbf16>, vector<8x8xf32> -> vector<8x8xf32>
    %496 = arith.truncf %495 : vector<8x8xf32> to vector<8x8xbf16>
    %c0_i32_427 = arith.constant 0 : i32
    %c0_i32_428 = arith.constant 0 : i32
    %c0_i32_429 = arith.constant 0 : i32
    %c0_i32_430 = arith.constant 0 : i32
    %497 = tpu.memref_slice %arg17[%c0_i32_427, %c0_i32_428, %c0_i32_429, %c0_i32_430] : memref<1x4x8x32xbf16, #tpu.memory_space<vmem>> -> memref<1x4x8x32xbf16, #tpu.memory_space<vmem>>
    %498 = tpu.memref_squeeze %497 : memref<1x4x8x32xbf16, #tpu.memory_space<vmem>> -> memref<4x8x32xbf16, #tpu.memory_space<vmem>>
    %c3_431 = arith.constant 3 : index
    %c0_432 = arith.constant 0 : index
    %c0_433 = arith.constant 0 : index
    %499 = vector.load %498[%c3_431, %c0_432, %c0_433] : memref<4x8x32xbf16, #tpu.memory_space<vmem>>, vector<1x8x32xbf16>
    %500 = vector.shape_cast %499 : vector<1x8x32xbf16> to vector<8x32xbf16>
    %cst_434 = arith.constant dense<0.000000e+00> : vector<8x32xf32>
    %501 = tpu.matmul %496, %500, %cst_434 {dimension_numbers = #tpu.dot_dimension_numbers<[1], [0], [0], [1], [0, 0, 1, 1], [], []>} : vector<8x8xbf16>, vector<8x32xbf16>, vector<8x32xf32> -> vector<8x32xf32>
    %502 = arith.addf %450, %501 : vector<8x32xf32>
    %503 = vector.broadcast %293 : vector<1x32xf32> to vector<8x32xf32>
    %504 = arith.addf %502, %503 : vector<8x32xf32>
    %505 = arith.addf %265, %504 : vector<8x32xf32>
    %c0_435 = arith.constant 0 : index
    %c0_436 = arith.constant 0 : index
    %c0_437 = arith.constant 0 : index
    %506 = vector.load %arg21[%c0_435, %c0_436, %c0_437] : memref<1x2x32xf32, #tpu.memory_space<vmem>>, vector<1x2x32xf32>
    %507 = vector.shape_cast %506 : vector<1x2x32xf32> to vector<2x32xf32>
    %cst_438 = arith.constant dense<0.000000e+00> : vector<8xf32>
    %508 = vector.multi_reduction <add>, %505, %cst_438 [1] : vector<8x32xf32> to vector<8xf32>
    %509 = vector.shape_cast %508 : vector<8xf32> to vector<8x1xf32>
    %cst_439 = arith.constant 3.200000e+01 : f32
    %510 = vector.broadcast %cst_439 : f32 to vector<8x1xf32>
    %511 = arith.divf %509, %510 : vector<8x1xf32>
    %512 = vector.broadcast %511 : vector<8x1xf32> to vector<8x32xf32>
    %513 = arith.subf %505, %512 : vector<8x32xf32>
    %514 = arith.mulf %513, %513 : vector<8x32xf32>
    %cst_440 = arith.constant dense<0.000000e+00> : vector<8xf32>
    %515 = vector.multi_reduction <add>, %514, %cst_440 [1] : vector<8x32xf32> to vector<8xf32>
    %516 = vector.shape_cast %515 : vector<8xf32> to vector<8x1xf32>
    %cst_441 = arith.constant 3.200000e+01 : f32
    %517 = vector.broadcast %cst_441 : f32 to vector<8x1xf32>
    %518 = arith.divf %516, %517 : vector<8x1xf32>
    %519 = vector.broadcast %511 : vector<8x1xf32> to vector<8x32xf32>
    %520 = arith.subf %505, %519 : vector<8x32xf32>
    %cst_442 = arith.constant 9.99999974E-6 : f32
    %521 = vector.broadcast %cst_442 : f32 to vector<8x1xf32>
    %522 = arith.addf %518, %521 : vector<8x1xf32>
    %523 = math.rsqrt %522 : vector<8x1xf32>
    %524 = vector.broadcast %523 : vector<8x1xf32> to vector<8x32xf32>
    %525 = arith.mulf %520, %524 : vector<8x32xf32>
    %526 = vector.extract_strided_slice %507 {offsets = [0, 0], sizes = [1, 32], strides = [1, 1]} : vector<2x32xf32> to vector<1x32xf32>
    %527 = vector.broadcast %526 : vector<1x32xf32> to vector<8x32xf32>
    %528 = arith.mulf %525, %527 : vector<8x32xf32>
    %529 = vector.extract_strided_slice %507 {offsets = [1, 0], sizes = [1, 32], strides = [1, 1]} : vector<2x32xf32> to vector<1x32xf32>
    %530 = vector.broadcast %529 : vector<1x32xf32> to vector<8x32xf32>
    %531 = arith.addf %528, %530 : vector<8x32xf32>
    %c0_443 = arith.constant 0 : index
    %c0_444 = arith.constant 0 : index
    %c0_445 = arith.constant 0 : index
    %532 = vector.load %arg22[%c0_443, %c0_444, %c0_445] : memref<1x32x64xbf16, #tpu.memory_space<vmem>>, vector<1x32x64xbf16>
    %533 = vector.shape_cast %532 : vector<1x32x64xbf16> to vector<32x64xbf16>
    %c0_446 = arith.constant 0 : index
    %c0_447 = arith.constant 0 : index
    %c0_448 = arith.constant 0 : index
    %534 = vector.load %arg23[%c0_446, %c0_447, %c0_448] : memref<1x1x64xf32, #tpu.memory_space<vmem>>, vector<1x1x64xf32>
    %535 = vector.shape_cast %534 : vector<1x1x64xf32> to vector<1x64xf32>
    %c0_449 = arith.constant 0 : index
    %c0_450 = arith.constant 0 : index
    %c0_451 = arith.constant 0 : index
    %536 = vector.load %arg24[%c0_449, %c0_450, %c0_451] : memref<1x64x32xbf16, #tpu.memory_space<vmem>>, vector<1x64x32xbf16>
    %537 = vector.shape_cast %536 : vector<1x64x32xbf16> to vector<64x32xbf16>
    %c0_452 = arith.constant 0 : index
    %c0_453 = arith.constant 0 : index
    %c0_454 = arith.constant 0 : index
    %538 = vector.load %arg25[%c0_452, %c0_453, %c0_454] : memref<1x1x32xf32, #tpu.memory_space<vmem>>, vector<1x1x32xf32>
    %539 = vector.shape_cast %538 : vector<1x1x32xf32> to vector<1x32xf32>
    %540 = arith.truncf %531 : vector<8x32xf32> to vector<8x32xbf16>
    %cst_455 = arith.constant dense<0.000000e+00> : vector<8x64xf32>
    %541 = tpu.matmul %540, %533, %cst_455 {dimension_numbers = #tpu.dot_dimension_numbers<[1], [0], [0], [1], [0, 0, 1, 1], [], []>} : vector<8x32xbf16>, vector<32x64xbf16>, vector<8x64xf32> -> vector<8x64xf32>
    %542 = vector.broadcast %535 : vector<1x64xf32> to vector<8x64xf32>
    %543 = arith.addf %541, %542 : vector<8x64xf32>
    %cst_456 = arith.constant 5.000000e-01 : f32
    %544 = vector.broadcast %cst_456 : f32 to vector<8x64xf32>
    %545 = arith.mulf %544, %543 : vector<8x64xf32>
    %cst_457 = arith.constant 4.471500e-02 : f32
    %546 = vector.broadcast %cst_457 : f32 to vector<8x64xf32>
    %547 = arith.mulf %546, %543 : vector<8x64xf32>
    %548 = arith.mulf %547, %543 : vector<8x64xf32>
    %549 = arith.mulf %548, %543 : vector<8x64xf32>
    %550 = arith.addf %543, %549 : vector<8x64xf32>
    %cst_458 = arith.constant 0.797884583 : f32
    %551 = vector.broadcast %cst_458 : f32 to vector<8x64xf32>
    %552 = arith.mulf %551, %550 : vector<8x64xf32>
    %553 = math.tanh %552 : vector<8x64xf32>
    %cst_459 = arith.constant 1.000000e+00 : f32
    %554 = vector.broadcast %cst_459 : f32 to vector<8x64xf32>
    %555 = arith.addf %554, %553 : vector<8x64xf32>
    %556 = arith.mulf %545, %555 : vector<8x64xf32>
    %557 = arith.truncf %556 : vector<8x64xf32> to vector<8x64xbf16>
    %cst_460 = arith.constant dense<0.000000e+00> : vector<8x32xf32>
    %558 = tpu.matmul %557, %537, %cst_460 {dimension_numbers = #tpu.dot_dimension_numbers<[1], [0], [0], [1], [0, 0, 1, 1], [], []>} : vector<8x64xbf16>, vector<64x32xbf16>, vector<8x32xf32> -> vector<8x32xf32>
    %559 = vector.broadcast %539 : vector<1x32xf32> to vector<8x32xf32>
    %560 = arith.addf %558, %559 : vector<8x32xf32>
    %561 = arith.addf %505, %560 : vector<8x32xf32>
    %c0_461 = arith.constant 0 : index
    %c0_462 = arith.constant 0 : index
    %562 = vector.load %arg29[%c0_461, %c0_462] : memref<8x32xf32, #tpu.memory_space<vmem>>, vector<8x32xf32>
    tpu.vector_store %arg29[%c0_461, %c0_462], %561 {strides = array<i32>} : memref<8x32xf32, #tpu.memory_space<vmem>>, vector<8x32xf32>,
    %c1_i32 = arith.constant 1 : i32
    %563 = arith.cmpi eq, %arg1, %c1_i32 : i32
    %564 = arith.extui %563 : i1 to i32
    %c0_i32_463 = arith.constant 0 : i32
    %565 = arith.cmpi ne, %564, %c0_i32_463 : i32
    scf.if %565 {
      %c0_464 = arith.constant 0 : index
      %c0_465 = arith.constant 0 : index
      %566 = vector.load %arg26[%c0_464, %c0_465] : memref<2x32xf32, #tpu.memory_space<vmem>>, vector<2x32xf32>
      %cst_466 = arith.constant dense<0.000000e+00> : vector<8xf32>
      %567 = vector.multi_reduction <add>, %561, %cst_466 [1] : vector<8x32xf32> to vector<8xf32>
      %568 = vector.shape_cast %567 : vector<8xf32> to vector<8x1xf32>
      %cst_467 = arith.constant 3.200000e+01 : f32
      %569 = vector.broadcast %cst_467 : f32 to vector<8x1xf32>
      %570 = arith.divf %568, %569 : vector<8x1xf32>
      %571 = vector.broadcast %570 : vector<8x1xf32> to vector<8x32xf32>
      %572 = arith.subf %561, %571 : vector<8x32xf32>
      %573 = arith.mulf %572, %572 : vector<8x32xf32>
      %cst_468 = arith.constant dense<0.000000e+00> : vector<8xf32>
      %574 = vector.multi_reduction <add>, %573, %cst_468 [1] : vector<8x32xf32> to vector<8xf32>
      %575 = vector.shape_cast %574 : vector<8xf32> to vector<8x1xf32>
      %cst_469 = arith.constant 3.200000e+01 : f32
      %576 = vector.broadcast %cst_469 : f32 to vector<8x1xf32>
      %577 = arith.divf %575, %576 : vector<8x1xf32>
      %578 = vector.broadcast %570 : vector<8x1xf32> to vector<8x32xf32>
      %579 = arith.subf %561, %578 : vector<8x32xf32>
      %cst_470 = arith.constant 9.99999974E-6 : f32
      %580 = vector.broadcast %cst_470 : f32 to vector<8x1xf32>
      %581 = arith.addf %577, %580 : vector<8x1xf32>
      %582 = math.rsqrt %581 : vector<8x1xf32>
      %583 = vector.broadcast %582 : vector<8x1xf32> to vector<8x32xf32>
      %584 = arith.mulf %579, %583 : vector<8x32xf32>
      %585 = vector.extract_strided_slice %566 {offsets = [0, 0], sizes = [1, 32], strides = [1, 1]} : vector<2x32xf32> to vector<1x32xf32>
      %586 = vector.broadcast %585 : vector<1x32xf32> to vector<8x32xf32>
      %587 = arith.mulf %584, %586 : vector<8x32xf32>
      %588 = vector.extract_strided_slice %566 {offsets = [1, 0], sizes = [1, 32], strides = [1, 1]} : vector<2x32xf32> to vector<1x32xf32>
      %589 = vector.broadcast %588 : vector<1x32xf32> to vector<8x32xf32>
      %590 = arith.addf %587, %589 : vector<8x32xf32>
      %591 = arith.truncf %590 : vector<8x32xf32> to vector<8x32xbf16>
      %c0_471 = arith.constant 0 : index
      %c0_472 = arith.constant 0 : index
      %592 = vector.load %arg27[%c0_471, %c0_472] : memref<32x64xbf16, #tpu.memory_space<vmem>>, vector<32x64xbf16>
      %cst_473 = arith.constant dense<0.000000e+00> : vector<8x64xf32>
      %593 = tpu.matmul %591, %592, %cst_473 {dimension_numbers = #tpu.dot_dimension_numbers<[1], [0], [0], [1], [0, 0, 1, 1], [], []>} : vector<8x32xbf16>, vector<32x64xbf16>, vector<8x64xf32> -> vector<8x64xf32>
      %c0_474 = arith.constant 0 : index
      %c0_475 = arith.constant 0 : index
      %c0_476 = arith.constant 0 : index
      %594 = vector.load %arg28[%c0_474, %c0_475, %c0_476] : memref<1x8x64xf32, #tpu.memory_space<vmem>>, vector<1x8x64xf32>
      %595 = vector.shape_cast %594 : vector<1x8x64xf32> to vector<8x64xf32>
      %596 = vector.shape_cast %593 : vector<8x64xf32> to vector<1x8x64xf32>
      tpu.vector_store %arg28[%c0_474, %c0_475, %c0_476], %596 {strides = array<i32>} : memref<1x8x64xf32, #tpu.memory_space<vmem>>, vector<1x8x64xf32>,
    } else {
    }
    return
  }
  func.func @transform_0(%arg0: i32, %arg1: i32) -> (i32, i32, i32) {
    %c0_i32 = arith.constant 0 : i32
    %c0_i32_0 = arith.constant 0 : i32
    %c0_i32_1 = arith.constant 0 : i32
    return %arg0, %c0_i32, %c0_i32_0 : i32, i32, i32
  }
  func.func @transform_1(%arg0: i32, %arg1: i32) -> (i32, i32) {
    %c0_i32 = arith.constant 0 : i32
    %c0_i32_0 = arith.constant 0 : i32
    %c0_i32_1 = arith.constant 0 : i32
    return %c0_i32, %c0_i32_0 : i32, i32
  }
  func.func @transform_2(%arg0: i32, %arg1: i32) -> (i32, i32, i32) {
    %c0_i32 = arith.constant 0 : i32
    %c0_i32_0 = arith.constant 0 : i32
    %c0_i32_1 = arith.constant 0 : i32
    return %arg0, %c0_i32, %c0_i32_0 : i32, i32, i32
  }
  func.func @transform_3(%arg0: i32, %arg1: i32) -> (i32, i32, i32, i32) {
    %c0_i32 = arith.constant 0 : i32
    %c0_i32_0 = arith.constant 0 : i32
    %c0_i32_1 = arith.constant 0 : i32
    %c0_i32_2 = arith.constant 0 : i32
    return %arg1, %c0_i32, %c0_i32_0, %c0_i32_1 : i32, i32, i32, i32
  }
  func.func @transform_4(%arg0: i32, %arg1: i32) -> (i32, i32, i32, i32) {
    %c0_i32 = arith.constant 0 : i32
    %c0_i32_0 = arith.constant 0 : i32
    %c0_i32_1 = arith.constant 0 : i32
    %c0_i32_2 = arith.constant 0 : i32
    return %arg1, %c0_i32, %c0_i32_0, %c0_i32_1 : i32, i32, i32, i32
  }
  func.func @transform_5(%arg0: i32, %arg1: i32) -> (i32, i32, i32, i32) {
    %c0_i32 = arith.constant 0 : i32
    %c0_i32_0 = arith.constant 0 : i32
    %c0_i32_1 = arith.constant 0 : i32
    %c0_i32_2 = arith.constant 0 : i32
    return %arg1, %c0_i32, %c0_i32_0, %c0_i32_1 : i32, i32, i32, i32
  }
  func.func @transform_6(%arg0: i32, %arg1: i32) -> (i32, i32, i32, i32) {
    %c0_i32 = arith.constant 0 : i32
    %c0_i32_0 = arith.constant 0 : i32
    %c0_i32_1 = arith.constant 0 : i32
    %c0_i32_2 = arith.constant 0 : i32
    return %arg1, %c0_i32, %c0_i32_0, %c0_i32_1 : i32, i32, i32, i32
  }
  func.func @transform_7(%arg0: i32, %arg1: i32) -> (i32, i32, i32, i32) {
    %c0_i32 = arith.constant 0 : i32
    %c0_i32_0 = arith.constant 0 : i32
    %c0_i32_1 = arith.constant 0 : i32
    %c0_i32_2 = arith.constant 0 : i32
    return %arg1, %c0_i32, %c0_i32_0, %c0_i32_1 : i32, i32, i32, i32
  }
  func.func @transform_8(%arg0: i32, %arg1: i32) -> (i32, i32, i32, i32) {
    %c0_i32 = arith.constant 0 : i32
    %c0_i32_0 = arith.constant 0 : i32
    %c0_i32_1 = arith.constant 0 : i32
    %c0_i32_2 = arith.constant 0 : i32
    return %arg1, %c0_i32, %c0_i32_0, %c0_i32_1 : i32, i32, i32, i32
  }
  func.func @transform_9(%arg0: i32, %arg1: i32) -> (i32, i32, i32) {
    %c0_i32 = arith.constant 0 : i32
    %c0_i32_0 = arith.constant 0 : i32
    %c0_i32_1 = arith.constant 0 : i32
    return %arg1, %c0_i32, %c0_i32_0 : i32, i32, i32
  }
  func.func @transform_10(%arg0: i32, %arg1: i32) -> (i32, i32, i32, i32) {
    %c0_i32 = arith.constant 0 : i32
    %c0_i32_0 = arith.constant 0 : i32
    %c0_i32_1 = arith.constant 0 : i32
    %c0_i32_2 = arith.constant 0 : i32
    return %arg1, %c0_i32, %c0_i32_0, %c0_i32_1 : i32, i32, i32, i32
  }
  func.func @transform_11(%arg0: i32, %arg1: i32) -> (i32, i32, i32, i32) {
    %c0_i32 = arith.constant 0 : i32
    %c0_i32_0 = arith.constant 0 : i32
    %c0_i32_1 = arith.constant 0 : i32
    %c0_i32_2 = arith.constant 0 : i32
    return %arg1, %c0_i32, %c0_i32_0, %c0_i32_1 : i32, i32, i32, i32
  }
  func.func @transform_12(%arg0: i32, %arg1: i32) -> (i32, i32, i32, i32) {
    %c0_i32 = arith.constant 0 : i32
    %c0_i32_0 = arith.constant 0 : i32
    %c0_i32_1 = arith.constant 0 : i32
    %c0_i32_2 = arith.constant 0 : i32
    return %arg1, %c0_i32, %c0_i32_0, %c0_i32_1 : i32, i32, i32, i32
  }
  func.func @transform_13(%arg0: i32, %arg1: i32) -> (i32, i32, i32, i32) {
    %c0_i32 = arith.constant 0 : i32
    %c0_i32_0 = arith.constant 0 : i32
    %c0_i32_1 = arith.constant 0 : i32
    %c0_i32_2 = arith.constant 0 : i32
    return %arg1, %c0_i32, %c0_i32_0, %c0_i32_1 : i32, i32, i32, i32
  }
  func.func @transform_14(%arg0: i32, %arg1: i32) -> (i32, i32, i32, i32) {
    %c0_i32 = arith.constant 0 : i32
    %c0_i32_0 = arith.constant 0 : i32
    %c0_i32_1 = arith.constant 0 : i32
    %c0_i32_2 = arith.constant 0 : i32
    return %arg1, %c0_i32, %c0_i32_0, %c0_i32_1 : i32, i32, i32, i32
  }
  func.func @transform_15(%arg0: i32, %arg1: i32) -> (i32, i32, i32, i32) {
    %c0_i32 = arith.constant 0 : i32
    %c0_i32_0 = arith.constant 0 : i32
    %c0_i32_1 = arith.constant 0 : i32
    %c0_i32_2 = arith.constant 0 : i32
    return %arg1, %c0_i32, %c0_i32_0, %c0_i32_1 : i32, i32, i32, i32
  }
  func.func @transform_16(%arg0: i32, %arg1: i32) -> (i32, i32, i32) {
    %c0_i32 = arith.constant 0 : i32
    %c0_i32_0 = arith.constant 0 : i32
    %c0_i32_1 = arith.constant 0 : i32
    return %arg1, %c0_i32, %c0_i32_0 : i32, i32, i32
  }
  func.func @transform_17(%arg0: i32, %arg1: i32) -> (i32, i32, i32) {
    %c0_i32 = arith.constant 0 : i32
    %c0_i32_0 = arith.constant 0 : i32
    %c0_i32_1 = arith.constant 0 : i32
    return %arg1, %c0_i32, %c0_i32_0 : i32, i32, i32
  }
  func.func @transform_18(%arg0: i32, %arg1: i32) -> (i32, i32, i32) {
    %c0_i32 = arith.constant 0 : i32
    %c0_i32_0 = arith.constant 0 : i32
    %c0_i32_1 = arith.constant 0 : i32
    return %arg1, %c0_i32, %c0_i32_0 : i32, i32, i32
  }
  func.func @transform_19(%arg0: i32, %arg1: i32) -> (i32, i32, i32) {
    %c0_i32 = arith.constant 0 : i32
    %c0_i32_0 = arith.constant 0 : i32
    %c0_i32_1 = arith.constant 0 : i32
    return %arg1, %c0_i32, %c0_i32_0 : i32, i32, i32
  }
  func.func @transform_20(%arg0: i32, %arg1: i32) -> (i32, i32, i32) {
    %c0_i32 = arith.constant 0 : i32
    %c0_i32_0 = arith.constant 0 : i32
    %c0_i32_1 = arith.constant 0 : i32
    return %arg1, %c0_i32, %c0_i32_0 : i32, i32, i32
  }
  func.func @transform_21(%arg0: i32, %arg1: i32) -> (i32, i32, i32) {
    %c0_i32 = arith.constant 0 : i32
    %c0_i32_0 = arith.constant 0 : i32
    %c0_i32_1 = arith.constant 0 : i32
    return %arg1, %c0_i32, %c0_i32_0 : i32, i32, i32
  }
  func.func @transform_22(%arg0: i32, %arg1: i32) -> (i32, i32, i32) {
    %c0_i32 = arith.constant 0 : i32
    %c0_i32_0 = arith.constant 0 : i32
    %c0_i32_1 = arith.constant 0 : i32
    return %arg1, %c0_i32, %c0_i32_0 : i32, i32, i32
  }
  func.func @transform_23(%arg0: i32, %arg1: i32) -> (i32, i32, i32) {
    %c0_i32 = arith.constant 0 : i32
    %c0_i32_0 = arith.constant 0 : i32
    %c0_i32_1 = arith.constant 0 : i32
    return %arg1, %c0_i32, %c0_i32_0 : i32, i32, i32
  }
  func.func @transform_24(%arg0: i32, %arg1: i32) -> (i32, i32) {
    %c0_i32 = arith.constant 0 : i32
    %c0_i32_0 = arith.constant 0 : i32
    %c0_i32_1 = arith.constant 0 : i32
    return %c0_i32, %c0_i32_0 : i32, i32
  }
  func.func @transform_25(%arg0: i32, %arg1: i32) -> (i32, i32) {
    %c0_i32 = arith.constant 0 : i32
    %c0_i32_0 = arith.constant 0 : i32
    %c0_i32_1 = arith.constant 0 : i32
    return %c0_i32, %c0_i32_0 : i32, i32
  }
  func.func @transform_26(%arg0: i32, %arg1: i32) -> (i32, i32, i32) {
    %c0_i32 = arith.constant 0 : i32
    %c0_i32_0 = arith.constant 0 : i32
    %c0_i32_1 = arith.constant 0 : i32
    return %arg0, %c0_i32, %c0_i32_0 : i32, i32, i32
  }
}

</mosaic_0001>

<bundles_post_ra>
// kernel: whisper_wrapper_forward.4
= control target key start
LH: loop header
LB: loop body
LE: loop exit
PB: predicated region body
PF: predicated region fallthrough
CT: control target
= control target key end

     0   :  { %vm75_vm0 = vcmask 1043456   ;;  %vm62_vm1 = vcmask 195584   ;;  %vm216_vm2 = vcmask 261120   ;;  %s415_s1 = inlined_call_operand.vmem [shape: bf16[24,32], index: 1, kind: input, shape index: {}]   ;;  %s416_s0 = inlined_call_operand.vmem [shape: bf16[64,24], index: 0, kind: input, shape index: {}]   ;;  %s417_s2 = inlined_call_operand.vmem [shape: f32[1,32], index: 2, kind: input, shape index: {}]   ;;  %s418_s3 = inlined_call_operand.vmem [shape: f32[64,32], index: 3, kind: output, shape index: {}]  }
   0x1   :  { %v264_v0 = vld [vmem:[%s415_s1] sm:$0xff]   ;;  %v265_v1 = vld [vmem:[%s415_s1 + $0x8] ss:$0 sps:$4 sm:$0xff]   ;;  %v267_v3 = vld [vmem:[%s416_s0 + $0x10] sm:$0xff]  }
   0x2   :  { %246 = vmatprep.subr.bf16.mxu0 %v264_v0  ;;  %258 = vmatprep.subr.bf16.mxu1 %v264_v0  ;;  %v266_v2 = vld [vmem:[%s416_s0] sm:$0xff]   ;;  %v77_v4 = vsel %vm75_vm0, %v265_v1, 0  ;;  %v268_v5 = vld [vmem:[%s416_s0 + $0x8] sm:$0xff]   ;;  %v269_v6 = vld [vmem:[%s416_s0 + $0x18] sm:$0xff]  }
   0x3   :  { %247 = vmatpush3.bf16.msra.mxu0 %v264_v0  ;;  %260 = vmatpush3.bf16.msra.mxu1 %v264_v0  ;;  %v229_v7 = vld [vmem:[%s417_s2] ss:$0 sm:$0xff] }
   0x4   :  { %262 = vmatprep.subr.msk.bf16.mxu0 %vm75_vm0, %v265_v1  ;;  %263 = vmatprep.subr.msk.bf16.mxu1 %vm75_vm0, %v265_v1 }
   0x5   :  { %250 = vmatprep.mubr.msk.bf16.mxu0 %vm62_vm1, %v266_v2  ;;  %254 = vmatprep.mubr.msk.bf16.mxu1 %vm62_vm1, %v267_v3 }
   0x7   :  { %249 = vmatpush3.bf16.msra.mxu0 %v77_v4  ;;  %261 = vmatpush3.bf16.msra.mxu1 %v77_v4 }
   0xa   :  { %251 = vmatmul.mubr.msk.bf16.vlgmr.msra.gmra.mrb[0].mxu0 %vm62_vm1, %v268_v5  ;;  %255 = vmatmul.mubr.msk.bf16.vlgmr.msra.gmra.mrb[0].mxu1 %vm62_vm1, %v269_v6 }
  0xdd   :  { %v252_v8 = vpop.f32.mrb[0].mxu0  ;;  %v256_v9 = vpop.f32.mrb[0].mxu1 }
  0xde   :  { %v327_v10 = vadd.f32 %v252_v8, %v229_v7  ;;  %v329_v11 = vadd.f32 %v256_v9, %v229_v7  ;;  %v113_v12 = vpop.f32.mrb[1].mxu0  ;;  %v129_v13 = vpop.f32.mrb[1].mxu1 }
  0xdf   :  { %v331_v14 = vadd.f32 %v229_v7, %v113_v12  ;;  %v333_v15 = vadd.f32 %v229_v7, %v129_v13  ;;  %v253_v16 = vpop.f32.mrb[2].mxu0  ;;  %v257_v17 = vpop.f32.mrb[2].mxu1 }
  0xe0   :  { %v154_v18 = vmul.f32 0.044715, %v327_v10  ;;  %v158_v19 = vmul.f32 0.044715, %v329_v11  ;;  %v341_v24 = vadd.f32 %v253_v16, %v229_v7  ;;  %v343_v25 = vadd.f32 %v257_v17, %v229_v7  ;;  %v116_v26 = vpop.f32.mrb[3].mxu0  ;;  %v132_v27 = vpop.f32.mrb[3].mxu1 }
  0xe1   :  { %v152_v20 = vmul.f32 0.044715, %v331_v14  ;;  %v156_v21 = vmul.f32 0.044715, %v333_v15  ;;  %v347_v30 = vadd.f32 %v229_v7, %v116_v26  ;;  %v358_v40 = vadd.f32 %v229_v7, %v132_v27 }
  0xe2   :  { %v162_v22 = vmul.f32 %v154_v18, %v327_v10  ;;  %v166_v23 = vmul.f32 %v158_v19, %v329_v11  ;;  %v155_v33 = vmul.f32 0.044715, %v341_v24  ;;  %v159_v36 = vmul.f32 0.044715, %v343_v25 }
  0xe3   :  { %v160_v28 = vmul.f32 %v152_v20, %v331_v14  ;;  %v164_v29 = vmul.f32 %v156_v21, %v333_v15  ;;  %v153_v44 = vmul.f32 0.044715, %v347_v30  ;;  %v157_v53 = vmul.f32 0.044715, %v358_v40 }
  0xe4   :  { %v170_v31 = vmul.f32 %v162_v22, %v327_v10  ;;  %v174_v32 = vmul.f32 %v166_v23, %v329_v11  ;;  %v163_v39 = vmul.f32 %v155_v33, %v341_v24  ;;  %v167_v43 = vmul.f32 %v159_v36, %v343_v25 }
  0xe5   :  { %v168_v34 = vmul.f32 %v160_v28, %v331_v14  ;;  %v172_v35 = vmul.f32 %v164_v29, %v333_v15  ;;  %v161_v51 = vmul.f32 %v153_v44, %v347_v30  ;;  %v165_v57 = vmul.f32 %v157_v53, %v358_v40 }
  0xe6   :  { %v178_v37 = vadd.f32 %v170_v31, %v327_v10  ;;  %v182_v38 = vadd.f32 %v174_v32, %v329_v11  ;;  %v171_v47 = vmul.f32 %v163_v39, %v341_v24  ;;  %v175_v50 = vmul.f32 %v167_v43, %v343_v25 }
  0xe7   :  { %v176_v41 = vadd.f32 %v168_v34, %v331_v14  ;;  %v180_v42 = vadd.f32 %v172_v35, %v333_v15  ;;  %v169_v55 = vmul.f32 %v161_v51, %v347_v30  ;;  %v173_v60 = vmul.f32 %v165_v57, %v358_v40 }
  0xe8   :  { %v186_v45 = vmul.f32 0.7978846, %v178_v37  ;;  %v190_v46 = vmul.f32 0.7978846, %v182_v38  ;;  %v179_v52 = vadd.f32 %v171_v47, %v341_v24  ;;  %v183_v54 = vadd.f32 %v175_v50, %v343_v25 }
  0xe9   :  { %v184_v48 = vmul.f32 0.7978846, %v176_v41  ;;  %v188_v49 = vmul.f32 0.7978846, %v180_v42  ;;  %v177_v59 = vadd.f32 %v169_v55, %v347_v30  ;;  %v181_v62 = vadd.f32 %v173_v60, %v358_v40 }
  0xea   :  { %270 = vtanh.f32 %v186_v45  ;;  %v187_v56 = vmul.f32 0.7978846, %v179_v52  ;;  %v191_v58 = vmul.f32 0.7978846, %v183_v54  ;;  %v146_v2 = vmul.f32 0.5, %v327_v10 }
  0xeb   :  { %272 = vtanh.f32 %v190_v46  ;;  %v185_v61 = vmul.f32 0.7978846, %v177_v59  ;;  %v189_v63 = vmul.f32 0.7978846, %v181_v62  ;;  %v150_v5 = vmul.f32 0.5, %v329_v11 }
  0xec   :  { %274 = vtanh.f32 %v184_v48  ;;  %v144_v9 = vmul.f32 0.5, %v331_v14  ;;  %v148_v17 = vmul.f32 0.5, %v333_v15  ;;  %v147_v11 = vmul.f32 0.5, %v341_v24 }
  0xed   :  { %276 = vtanh.f32 %v188_v49  ;;  %v151_v21 = vmul.f32 0.5, %v343_v25  ;;  %v145_v26 = vmul.f32 0.5, %v347_v30  ;;  %v149_v29 = vmul.f32 0.5, %v358_v40 }
  0xee   :  { %278 = vtanh.f32 %v187_v56 }
  0xef   :  { %280 = vtanh.f32 %v191_v58 }
  0xf0   :  { %282 = vtanh.f32 %v185_v61 }
  0xf1   :  { %284 = vtanh.f32 %v189_v63 }
  0xf4   :  { %v271_v0 = vpop.eup %270 }
  0xf5   :  { %v273_v1 = vpop.eup %272  ;;  %v202_v3 = vadd.f32 1.0, %v271_v0 }
  0xf6   :  { %v275_v4 = vpop.eup %274  ;;  %v206_v6 = vadd.f32 1.0, %v273_v1 }
  0xf7   :  { %v277_v7 = vpop.eup %276  ;;  %v210_v8 = vmul.f32 %v202_v3, %v146_v2  ;;  %v200_v12 = vadd.f32 1.0, %v275_v4 }
  0xf8   :  { %v279_v13 = vpop.eup %278  ;;  %v214_v16 = vmul.f32 %v206_v6, %v150_v5  ;;  %v204_v18 = vadd.f32 1.0, %v277_v7 }
  0xf9   :  { %v281_v19 = vpop.eup %280  ;;  %219 = vst.msk [vmem:[%s418_s3 + $0x10] sm:$0xff] %vm216_vm2, %v210_v8  ;;  %v208_v10 = vmul.f32 %v200_v12, %v144_v9  ;;  %v203_v20 = vadd.f32 1.0, %v279_v13 }
  0xfa   :  { %223 = vst.msk [vmem:[%s418_s3 + $0x30] sm:$0xff] %vm216_vm2, %v214_v16  ;;  %v212_v14 = vmul.f32 %v204_v18, %v148_v17  ;;  %v207_v15 = vadd.f32 1.0, %v281_v19  ;;  %v283_v22 = vpop.eup %282 }
  0xfb   :  { %217 = vst.msk [vmem:[%s418_s3] sm:$0xff] %vm216_vm2, %v208_v10  ;;  %v211_v23 = vmul.f32 %v203_v20, %v147_v11  ;;  %v201_v27 = vadd.f32 1.0, %v283_v22  ;;  %v285_v25 = vpop.eup %284 }
  0xfc   :  { %221 = vst.msk [vmem:[%s418_s3 + $0x20] sm:$0xff] %vm216_vm2, %v212_v14  ;;  %v215_v24 = vmul.f32 %v207_v15, %v151_v21  ;;  %v205_v31 = vadd.f32 1.0, %v285_v25 }
  0xfd   :  { %220 = vst.msk [vmem:[%s418_s3 + $0x18] sm:$0xff] %vm216_vm2, %v211_v23  ;;  %v209_v28 = vmul.f32 %v201_v27, %v145_v26 }
  0xfe   :  { %224 = vst.msk [vmem:[%s418_s3 + $0x38] sm:$0xff] %vm216_vm2, %v215_v24  ;;  %v213_v30 = vmul.f32 %v205_v31, %v149_v29 }
  0xff   :  { %218 = vst.msk [vmem:[%s418_s3 + $0x8] sm:$0xff] %vm216_vm2, %v209_v28 }
 0x100   :  { %222 = vst.msk [vmem:[%s418_s3 + $0x28] sm:$0xff] %vm216_vm2, %v213_v30 }

// kernel: whisper_wrapper_forward.5
= control target key start
LH: loop header
LB: loop body
LE: loop exit
PB: predicated region body
PF: predicated region fallthrough
CT: control target
= control target key end

     0   :  { %vm84_vm0 = vcmask 785408   ;;  %vm176_vm1 = vcmask 261120   ;;  %s297_s1 = inlined_call_operand.vmem [shape: bf16[96,32], index: 1, kind: input, shape index: {}]   ;;  %s298_s0 = inlined_call_operand.vmem [shape: bf16[32,96], index: 0, kind: input, shape index: {}]   ;;  %s299_s2 = inlined_call_operand.vmem [shape: f32[1,32], index: 2, kind: input, shape index: {}]   ;;  %s300_s3 = inlined_call_operand.vmem [shape: f32[32,32], index: 3, kind: output, shape index: {}]  }
   0x1   :  { %v220_v0 = vld [vmem:[%s297_s1] sm:$0xff]   ;;  %v221_v1 = vld [vmem:[%s297_s1 + $0x8] sm:$0xff]   ;;  %v222_v2 = vld [vmem:[%s297_s1 + $0x10] sm:$0xff]  }
   0x2   :  { %204 = vmatprep.subr.bf16.mxu0 %v220_v0  ;;  %v226_v3 = vld [vmem:[%s298_s0] sm:$0xff]   ;;  %v223_v4 = vld [vmem:[%s297_s1 + $0x18] sm:$0xff]   ;;  %v225_v6 = vld [vmem:[%s297_s1 + $0x28] sm:$0xff]  }
   0x3   :  { %205 = vmatpush3.bf16.msra.mxu0 %v220_v0  ;;  %216 = vmatprep.mubr.msk.bf16.mxu0 %vm84_vm0, %v226_v3  ;;  %v224_v5 = vld [vmem:[%s297_s1 + $0x20] sm:$0xff]   ;;  %v227_v7 = vld [vmem:[%s298_s0 + $0x8] sm:$0xff]  }
   0x4   :  { %206 = vmatprep.subr.bf16.mxu0 %v221_v1  ;;  %v185_v8 = vld [vmem:[%s299_s2] ss:$0 sm:$0xff] }
   0x7   :  { %207 = vmatpush3.bf16.msra.mxu0 %v221_v1 }
   0x8   :  { %208 = vmatprep.subr.bf16.mxu0 %v222_v2 }
   0xb   :  { %209 = vmatpush3.bf16.msra.mxu0 %v222_v2 }
   0xc   :  { %210 = vmatprep.subr.bf16.mxu0 %v223_v4 }
   0xf   :  { %211 = vmatpush3.bf16.msra.mxu0 %v223_v4 }
  0x10   :  { %212 = vmatprep.subr.bf16.mxu0 %v224_v5 }
  0x13   :  { %213 = vmatpush3.bf16.msra.mxu0 %v224_v5 }
  0x14   :  { %214 = vmatprep.subr.bf16.mxu0 %v225_v6 }
  0x17   :  { %215 = vmatpush3.bf16.msra.mxu0 %v225_v6 }
  0x1a   :  { %217 = vmatmul.mubr.msk.bf16.vlgmr.msra.gmra.mrb[0].mxu0 %vm84_vm0, %v227_v7 }
  0xed   :  { %v218_v9 = vpop.f32.mrb[0].mxu0 }
  0xee   :  { %v134_v10 = vadd.f32 %v218_v9, %v185_v8  ;;  %v125_v11 = vpop.f32.mrb[1].mxu0 }
  0xef   :  { %v126_v12 = vadd.f32 %v185_v8, %v125_v11  ;;  %v219_v13 = vpop.f32.mrb[2].mxu0 }
  0xf0   :  { %v146_v14 = vmul.f32 0.044715, %v134_v10  ;;  %v137_v15 = vadd.f32 %v219_v13, %v185_v8  ;;  %v128_v16 = vpop.f32.mrb[3].mxu0  ;;  %v142_v39 = vmul.f32 0.5, %v134_v10 }
  0xf1   :  { %v144_v17 = vmul.f32 0.044715, %v126_v12  ;;  %v129_v18 = vadd.f32 %v185_v8, %v128_v16  ;;  %v140_v42 = vmul.f32 0.5, %v126_v12 }
  0xf2   :  { %v150_v19 = vmul.f32 %v146_v14, %v134_v10  ;;  %v147_v20 = vmul.f32 0.044715, %v137_v15  ;;  %v143_v46 = vmul.f32 0.5, %v137_v15 }
  0xf3   :  { %v148_v21 = vmul.f32 %v144_v17, %v126_v12  ;;  %v145_v22 = vmul.f32 0.044715, %v129_v18  ;;  %v141_v49 = vmul.f32 0.5, %v129_v18 }
  0xf4   :  { %v154_v23 = vmul.f32 %v150_v19, %v134_v10  ;;  %v151_v24 = vmul.f32 %v147_v20, %v137_v15 }
  0xf5   :  { %v152_v25 = vmul.f32 %v148_v21, %v126_v12  ;;  %v149_v26 = vmul.f32 %v145_v22, %v129_v18 }
  0xf6   :  { %v158_v27 = vadd.f32 %v154_v23, %v134_v10  ;;  %v155_v28 = vmul.f32 %v151_v24, %v137_v15 }
  0xf7   :  { %v156_v29 = vadd.f32 %v152_v25, %v126_v12  ;;  %v153_v30 = vmul.f32 %v149_v26, %v129_v18 }
  0xf8   :  { %v162_v31 = vmul.f32 0.7978846, %v158_v27  ;;  %v159_v32 = vadd.f32 %v155_v28, %v137_v15 }
  0xf9   :  { %v160_v33 = vmul.f32 0.7978846, %v156_v29  ;;  %v157_v34 = vadd.f32 %v153_v30, %v129_v18 }
  0xfa   :  { %228 = vtanh.f32 %v162_v31  ;;  %v163_v35 = vmul.f32 0.7978846, %v159_v32 }
  0xfb   :  { %230 = vtanh.f32 %v160_v33  ;;  %v161_v36 = vmul.f32 0.7978846, %v157_v34 }
  0xfc   :  { %232 = vtanh.f32 %v163_v35 }
  0xfd   :  { %234 = vtanh.f32 %v161_v36 }
 0x104   :  { %v229_v37 = vpop.eup %228 }
 0x105   :  { %v231_v38 = vpop.eup %230  ;;  %v170_v40 = vadd.f32 1.0, %v229_v37 }
 0x106   :  { %v233_v41 = vpop.eup %232  ;;  %v168_v43 = vadd.f32 1.0, %v231_v38 }
 0x107   :  { %v235_v44 = vpop.eup %234  ;;  %v174_v45 = vmul.f32 %v170_v40, %v142_v39  ;;  %v171_v47 = vadd.f32 1.0, %v233_v41 }
 0x108   :  { %v172_v48 = vmul.f32 %v168_v43, %v140_v42  ;;  %v169_v50 = vadd.f32 1.0, %v235_v44 }
 0x109   :  { %179 = vst.msk [vmem:[%s300_s3 + $0x10] sm:$0xff] %vm176_vm1, %v174_v45  ;;  %v175_v51 = vmul.f32 %v171_v47, %v143_v46 }
 0x10a   :  { %177 = vst.msk [vmem:[%s300_s3] sm:$0xff] %vm176_vm1, %v172_v48  ;;  %v173_v52 = vmul.f32 %v169_v50, %v141_v49 }
 0x10b   :  { %180 = vst.msk [vmem:[%s300_s3 + $0x18] sm:$0xff] %vm176_vm1, %v175_v51 }
 0x10c   :  { %178 = vst.msk [vmem:[%s300_s3 + $0x8] sm:$0xff] %vm176_vm1, %v173_v52 }

// kernel: whisper_wrapper_forward.6
= control target key start
LH: loop header
LB: loop body
LE: loop exit
PB: predicated region body
PF: predicated region fallthrough
CT: control target
= control target key end

     0   :  { %s3399_s21 = smov 0   ;;  %s3401_s22 = smov 0   ;;  %s3796_s0 = inlined_call_operand.vmem [shape: f32[2,16,32], index: 0, kind: input, shape index: {}]   ;;  %s3797_s1 = inlined_call_operand.vmem [shape: f32[16,32], index: 1, kind: input, shape index: {}]   ;;  %s3798_s2 = inlined_call_operand.vmem [shape: bf16[2,4,32,8], index: 2, kind: input, shape index: {}]   ;;  %s3799_s3 = inlined_call_operand.vmem [shape: f32[2,4,1,8], index: 3, kind: input, shape index: {}]   ;;  %s3800_s4 = inlined_call_operand.vmem [shape: bf16[2,4,32,8], index: 4, kind: input, shape index: {}]   ;;  %s3801_s5 = inlined_call_operand.vmem [shape: bf16[2,4,32,8], index: 5, kind: input, shape index: {}]   ;;  %s3802_s6 = inlined_call_operand.vmem [shape: f32[2,4,1,8], index: 6, kind: input, shape index: {}]   ;;  %s3803_s7 = inlined_call_operand.vmem [shape: bf16[2,4,8,32], index: 7, kind: input, shape index: {}]   ;;  %s3804_s8 = inlined_call_operand.vmem [shape: f32[2,1,32], index: 8, kind: input, shape index: {}]   ;;  %s3805_s9 = inlined_call_operand.vmem [shape: f32[2,2,32], index: 9, kind: input, shape index: {}]   ;;  %s3806_s10 = inlined_call_operand.vmem [shape: f32[2,2,32], index: 10, kind: input, shape index: {}]   ;;  %s3807_s11 = inlined_call_operand.vmem [shape: bf16[2,32,64], index: 11, kind: input, shape index: {}]   ;;  %s3808_s12 = inlined_call_operand.vmem [shape: f32[2,1,64], index: 12, kind: input, shape index: {}]   ;;  %s3809_s13 = inlined_call_operand.vmem [shape: bf16[2,64,32], index: 13, kind: input, shape index: {}]   ;;  %s3810_s14 = inlined_call_operand.vmem [shape: f32[2,1,32], index: 14, kind: input, shape index: {}]   ;;  %s3811_s15 = inlined_call_operand.vmem [shape: f32[2,32], index: 15, kind: input, shape index: {}]   ;;  %s3812_s16 = inlined_call_operand.vmem [shape: f32[2,16,32], index: 16, kind: output, shape index: {}]  }
   0x1   :  { %3820 = sst [smem:[#allocation11_spill]] %s3796_s0  ;;  %s3403_s23 = smov 0  }
   0x2   :  { %3821 = sst [smem:[#allocation12_spill]] %s3797_s1  ;;  %s3405_s24 = smov 0  }
   0x3   :  { %3822 = sst [smem:[#allocation13_spill]] %s3798_s2  ;;  %s3407_s25 = smov 0  }
   0x4   :  { %3823 = sst [smem:[#allocation14_spill]] %s3799_s3 }
   0x5   :  { %3824 = sst [smem:[#allocation15_spill]] %s3800_s4 }
   0x6   :  { %3825 = sst [smem:[#allocation16_spill]] %s3801_s5 }
   0x7   :  { %3826 = sst [smem:[#allocation17_spill]] %s3802_s6 }
   0x8   :  { %3827 = sst [smem:[#allocation18_spill]] %s3803_s7 }
   0x9   :  { %3828 = sst [smem:[#allocation19_spill]] %s3805_s9 }
   0xa   :  { %3829 = sst [smem:[#allocation20_spill]] %s3806_s10 }
   0xb   :  { %3830 = sst [smem:[#allocation21_spill]] %s3811_s15 }
   0xc   :  { %3831 = sst [smem:[#allocation22_spill]] %s3812_s16 }
   0xd LB: > { %3832 = sst [smem:[#allocation3_spill]] %s3294_s21  ;;  %s35_s26 = sadd.s32 1, %s3302_s23  ;;  %s3310_s25 = sphi %s3407_s25, %s26_s25   ;;  %s3306_s24 = sphi %s3405_s24, %s3861_s24   ;;  %s3302_s23 = sphi %s3403_s23, %s3860_s23   ;;  %s3298_s22 = sphi %s3401_s22, %s3859_s22   ;;  %s3294_s21 = sphi %s3399_s21, %s3858_s21  }
   0xe   : > { %3833 = sst [smem:[#allocation4_spill]] %s3302_s23  ;;  %s38_s27 = sadd.s32 1, %s3306_s24 }
   0xf   : > { %3834 = sst [smem:[#allocation5_spill]] %s3306_s24  ;;  %p36_p0 = scmp.ge.s32.totalorder %s35_s26, 2 }
  0x10   : > { %3835 = sst [smem:[#allocation6_spill]] %s3310_s25  ;;  %p2749_p1 = scmp.ge.s32.totalorder %s3310_s25, 1 }
  0x11   : > { %p594_p2 = scmp.lt.s32.totalorder %s3310_s25, 5  ;;  %s3863_s26 = smov (%p36_p0, %s35_s26), 0 }
  0x12   : > { %3836 = sst [smem:[#allocation7_spill]] %s3863_s26  ;;  %s3865_s27 = smov (!%p36_p0, %s38_s27), %s3306_s24 }
  0x13   : > { %p595_p3 = pnand %p2749_p1, %p594_p2  ;;  %p40_p4 = scmp.ge.s32.totalorder %s3865_s27, 2 }
  0x15   : > { %s3867_s27 = smov (%p40_p4, %s3865_s27), 0  ;;  %598 = sbr.rel (%p595_p3) target bundleno = 5383 (0x1507), region = 84 }
  0x16   : > { %3837 = sst [smem:[#allocation8_spill]] %s3867_s27 }
  0x1c   : > { %p699_p5 = scmp.lt.s32.totalorder %s3298_s22, 1  ;;  %p704_p6 = scmp.lt.s32.totalorder %s3294_s21, 1 }
  0x1d   : > { %s3838_s17 = sld [smem:[#allocation11_spill]]  ;;  %s3839_s2 = sld [smem:[#allocation13_spill]] }
  0x1e   : > { %s3869_s22 = smov (!%p699_p5, %s3298_s22), 1  ;;  %s3841_s3 = sld [smem:[#allocation14_spill]] }
  0x1f   : > { %s3433_s28 = scalar_select %p704_p6, %s3294_s21, 1 }
  0x20   : > { %s2886_s29 = sshll.u32 %s3869_s22, 4  ;;  %s3843_s4 = sld [smem:[#allocation15_spill]] }
  0x21   : > { %s2887_s19 = sshll.u32 %s3433_s28, 6  ;;  %s2754_s24 = sshll.u32 %s3433_s28, 2 }
  0x22   : > { %s3844_s5 = sld [smem:[#allocation16_spill]]  ;;  %s3845_s6 = sld [smem:[#allocation17_spill]] }
  0x23   : > { %s703_s18 = scalar_lea.vmem %s3838_s17, %s2886_s29  ;;  %s3442_s26 = scalar_lea.vmem %s3839_s2, %s2887_s19 }
  0x24   : > { %3840 = sst [smem:[#allocation9_spill]] %s3442_s26  ;;  %s3448_s15 = scalar_lea.vmem %s3841_s3, %s2754_s24 }
  0x25   : > { %3842 = sst [smem:[#allocation10_spill]] %s3448_s15  ;;  %s2890_s26 = sshll.u32 %s3433_s28, 4 }
  0x26   : > { %s3453_s30 = scalar_lea.vmem %s3843_s4, %s2887_s19  ;;  %s3846_s7 = sld [smem:[#allocation18_spill]] }
  0x27   : > { %s2762_s22 = sshll.u32 %s3433_s28, 1  ;;  %s3847_s9 = sld [smem:[#allocation19_spill]] }
  0x28   : > { %s3458_s21 = scalar_lea.vmem %s3844_s5, %s2887_s19  ;;  %s3463_s2 = scalar_lea.vmem %s3845_s6, %s2754_s24 }
  0x29   : > { %s3848_s10 = sld [smem:[#allocation20_spill]]  ;;  %s3489_s16 = scalar_lea.vmem %s3807_s11, %s2890_s26 }
  0x2a   : > { %s750_s15 = scalar_lea.vmem %s3808_s12, %s3433_s28  ;;  %s2892_s25 = sshll.u32 %s3433_s28, 5 }
  0x2b   : > { %s758_s4 = scalar_lea.vmem %s3810_s14, %s3433_s28  ;;  %s3503_s17 = scalar_lea.vmem %s3809_s13, %s2892_s25 }
  0x2c   : > { %s3473_s1 = scalar_lea.vmem %s3846_s7, %s2890_s26  ;;  %s3850_s26 = sld [smem:[#allocation3_spill]] }
  0x2d   : > { %s3479_s19 = scalar_lea.vmem %s3847_s9, %s2762_s22 }
  0x2f   : > { %s3484_s24 = scalar_lea.vmem %s3848_s10, %s2762_s22  ;;  %s3849_s10 = sld [smem:[#allocation22_spill]] }
  0x32   : > { %p2770_p7 = scmp.ne.s32.totalorder %s3850_s26, 0 }
  0x33   : > { %v769_v0 = vld [vmem:[%s703_s18] sm:$0xff] (!%p2770_p7)  ;;  %s3851_s3 = sld [smem:[#allocation12_spill]] (!%p2770_p7)  ;;  %vm775_vm0 = vcmask (!%p2770_p7), 261120   ;;  %v770_v2 = vld [vmem:[%s703_s18 + $0x8] sm:$0xff] (!%p2770_p7) }
  0x34   : > { %768 = sbr.rel (%p2770_p7) target bundleno = 61 (0x3d), region = 88 }
  0x35   : > { %s3508_s5 = scalar_lea.vmem %s3849_s10, %s2886_s29 }
  0x39   : > { %v771_v1 = vld [vmem:[%s3851_s3] sm:$0xff] (!%p2770_p7)  ;;  %v772_v4 = vld [vmem:[%s3851_s3 + $0x8] sm:$0xff] (!%p2770_p7) }
  0x3a   : > { %v773_v3 = vadd.f32 (!%p2770_p7), %v771_v1, %v769_v0  ;;  %v774_v5 = vadd.f32 (!%p2770_p7), %v772_v4, %v770_v2 }
  0x3c   : > { %776 = vst.msk [vmem:[#allocation2] sm:$0xff] %vm775_vm0, %v773_v3  ;;  %777 = vst.msk [vmem:[#allocation2 + $0x8] sm:$0xff] %vm775_vm0, %v774_v5 }
  0x3d PF: > { %vm781_vm1 = vcmask 261120   ;;  %s3852_s9 = sld [smem:[#allocation9_spill]]  ;;  %v3193_v21 = vld [vmem:[%s3453_s30] sm:$0xff]   ;;  %v3312_v22 = vmov 0.0   ;;  %v3195_v24 = vld [vmem:[%s3453_s30 + $0x8] sm:$0xff]   ;;  %vm3313_vm2 = vmmov 0   ;;  %v809_v28 = vlaneseq  ;;  %s3854_s29 = scalar_lea.vmem %s3804_s8, %s3433_s28 }
  0x3e   : > { %2962 = vmatprep.subr.bf16.mxu0 %v3312_v22  ;;  %2970 = vmatprep.subr.bf16.mxu1 %v3312_v22  ;;  %v780_v34 = vld [vmem:[%s3479_s19] sm:$0x3]  ;;  %s3853_s10 = sld [smem:[#allocation10_spill]]  ;;  %v3197_v48 = vld [vmem:[%s3458_s21 + $0x8] sm:$0xff]   ;;  %vm1015_vm3 = vcmask 64512   ;;  %vm1063_vm4 = vcmask 130048  }
  0x3f   : > { %2971 = vmatpush3.bf16.msra.mxu1 %v3193_v21  ;;  %2966 = vmatprep.mubr.msk.bf16.mxu0 %vm3313_vm2, %v3312_v22  ;;  %v810_v32 = vshrl.u32 %v809_v28, 7  ;;  %v3196_v46 = vld [vmem:[%s3458_s21] sm:$0xff]   ;;  %vm1449_vm5 = vcmask 1043456   ;;  %vm2438_vm6 = vcmask 523264   ;;  %s3855_s19 = sld [smem:[#allocation3_spill]] }
  0x40   : > { %2972 = vmatprep.subr.bf16.mxu1 %v3312_v22  ;;  %2974 = vmatprep.mubr.msk.bf16.mxu1 %vm3313_vm2, %v3312_v22  ;;  %v2778_v1 = vld [vmem:[%s3463_s2] ss:$0 sm:$0xff] }
  0x41   : > { %v3535_v33 = vsub.s32 0, %v810_v32  ;;  %v3539_v37 = vsub.s32 1, %v810_v32 }
  0x43   : > { %v778_v6 = vld [vmem:[#allocation2] sm:$0xff]  ;;  %v779_v7 = vld [vmem:[#allocation2 + $0x8] sm:$0xff]  ;;  %2973 = vmatpush3.bf16.msra.mxu1 %v3195_v24  ;;  %v812_v36 = vrot.slane %v780_v34, %v3535_v33  ;;  %v818_v40 = vrot.slane %v780_v34, %v3539_v37  ;;  %v3198_v5 = vld [vmem:[%s3852_s9 + $0x10] sm:$0xff]  }
  0x44   : > { %v782_v8 = vsel %vm781_vm1, %v778_v6, 0.0  ;;  %v785_v9 = vsel %vm781_vm1, %v779_v7, 0.0  ;;  %v3192_v20 = vld [vmem:[%s3852_s9] sm:$0xff]   ;;  %v3194_v23 = vld [vmem:[%s3852_s9 + $0x8] sm:$0xff]   ;;  %2986 = vmatprep.subr.bf16.mxu1 %v3312_v22 }
  0x45   : > { %783 = vadd.xlane.f32.xlu0 %v782_v8  ;;  %2963 = vmatpush3.bf16.msra.mxu0 %v3192_v20  ;;  %v2771_v49 = vld [vmem:[%s3853_s10] ss:$0 sm:$0xff]  ;;  %p2883_p8 = scmp.ne.s32.totalorder %s3855_s19, 1 }
  0x46   : > { %2964 = vmatprep.subr.bf16.mxu0 %v3312_v22 }
  0x49   : > { %786 = vadd.xlane.f32.xlu0 %v785_v9  ;;  %2965 = vmatpush3.bf16.msra.mxu0 %v3194_v23 }
  0x4a   : > { %2978 = vmatprep.subr.bf16.mxu0 %v3312_v22 }
  0xd2   : > { %v784_v10 = vpop.xlane.xlu0 %783 }
  0xd3   : > { %v789_v11 = vmul.f32 0.03125, %v784_v10  ;;  %v3199_v10 = vld [vmem:[%s3852_s9 + $0x18] sm:$0xff]  }
  0xd5   : > { %v791_v12 = vsub.f32 %v778_v6, %v789_v11  ;;  %v3200_v11 = vld [vmem:[%s3458_s21 + $0x10] sm:$0xff]  }
  0xd6   : > { %v787_v13 = vpop.xlane.xlu0 %786 }
  0xd7   : > { %v790_v14 = vmul.f32 0.03125, %v787_v13  ;;  %v793_v15 = vmul.f32 %v791_v12, %v791_v12 }
  0xd9   : > { %v792_v16 = vsub.f32 %v779_v7, %v790_v14  ;;  %v795_v17 = vsel %vm781_vm1, %v793_v15, 0.0 }
  0xda   : > { %796 = vadd.xlane.f32.xlu1 %v795_v17 }
  0xdb   : > { %v794_v18 = vmul.f32 %v792_v16, %v792_v16 }
  0xdd   : > { %v798_v19 = vsel %vm781_vm1, %v794_v18, 0.0 }
  0xde   : > { %799 = vadd.xlane.f32.xlu1 %v798_v19  ;;  %v2789_v19 = vld [vmem:[%s3853_s10 + $0x1] ss:$0 sm:$0xff] }
 0x167   : > { %v797_v25 = vpop.xlane.xlu1 %796 }
 0x168   : > { %v801_v26 = vmul.f32 0.03125, %v797_v25 }
 0x16a   : > { %v803_v27 = vadd.f32 1e-05, %v801_v26 }
 0x16b   : > { %v800_v29 = vpop.xlane.xlu1 %799 }
 0x16c   : > { %3222 = vrsqrt.f32 %v803_v27  ;;  %v802_v30 = vmul.f32 0.03125, %v800_v29 }
 0x16e   : > { %v804_v31 = vadd.f32 1e-05, %v802_v30  ;;  %v2805_v30 = vld [vmem:[%s3463_s2 + $0x1] ss:$0 sm:$0xff] }
 0x170   : > { %3224 = vrsqrt.f32 %v804_v31 }
 0x176   : > { %v3223_v35 = vpop.eup %3222 }
 0x177   : > { %v807_v38 = vmul.f32 %v3223_v35, %v791_v12  ;;  %v3201_v12 = vld [vmem:[%s3458_s21 + $0x18] sm:$0xff]  }
 0x179   : > { %v813_v41 = vmul.f32 %v812_v36, %v807_v38 }
 0x17a   : > { %v3225_v39 = vpop.eup %3224 }
 0x17b   : > { %v808_v42 = vmul.f32 %v3225_v39, %v792_v16  ;;  %v819_v44 = vadd.f32 %v818_v40, %v813_v41 }
 0x17d   : > { %v814_v43 = vmul.f32 %v812_v36, %v808_v42 }
 0x17f   : > { %v820_v45 = vadd.f32 %v818_v40, %v814_v43 }
 0x181   : > { %v3543_v47 = vpack.c.bf16 %v820_v45, %v819_v44 }
 0x183   : > { %2967 = vmatmul.mubr.msk.bf16.vlgmr.msra.gmra.mrb[0].mxu0 %vm781_vm1, %v3543_v47  ;;  %2975 = vmatmul.mubr.msk.bf16.vlgmr.msra.gmra.mrb[0].mxu1 %vm781_vm1, %v3543_v47 }
 0x184   : > { %2979 = vmatpush3.bf16.msra.mxu0 %v3196_v46  ;;  %2982 = vmatprep.mubr.msk.bf16.mxu0 %vm3313_vm2, %v3312_v22 }
 0x185   : > { %2980 = vmatprep.subr.bf16.mxu0 %v3312_v22  ;;  %2988 = vmatprep.mubr.msk.bf16.mxu1 %vm3313_vm2, %v3312_v22 }
 0x188   : > { %2981 = vmatpush3.bf16.msra.mxu0 %v3197_v48 }
 0x189   : > { %2992 = vmatprep.subr.bf16.mxu0 %v3312_v22 }
 0x18b   : > { %2983 = vmatmul.mubr.msk.bf16.vlgmr.msra.gmra.mrb[4].mxu0 %vm781_vm1, %v3543_v47 }
 0x18c   : > { %2994 = vmatprep.mubr.msk.bf16.mxu0 %vm3313_vm2, %v3312_v22 }
 0x256   : > { %v883_v50 = vpop.f32.mrb[0].mxu0  ;;  %v942_v51 = vpop.f32.mrb[0].mxu1 }
 0x257   : > { %v884_v52 = vadd.f32 %v2771_v49, %v883_v50  ;;  %v2968_v53 = vpop.f32.mrb[1].mxu0  ;;  %v2976_v54 = vpop.f32.mrb[1].mxu1 }
 0x258   : > { %v886_v55 = vpop.f32.mrb[2].mxu0  ;;  %v945_v56 = vpop.f32.mrb[2].mxu1 }
 0x259   : > { %v887_v57 = vadd.f32 %v2771_v49, %v886_v55  ;;  %v1014_v58 = vpack.c.bf16 %v945_v56, %v942_v51  ;;  %v2969_v59 = vpop.f32.mrb[3].mxu0  ;;  %v2977_v60 = vpop.f32.mrb[3].mxu1  ;;  %v890_v61 = vmul.f32 0.35355338, %v884_v52 }
 0x25a   : > { %v3203_v59 = vld [vmem:[%s3453_s30 + $0x18] sm:$0xff]  }
 0x25b   : > { %v891_v62 = vmul.f32 0.35355338, %v887_v57  ;;  %v1020_v63 = vsel %vm1015_vm3, %v1014_v58, 0  ;;  %v3202_v57 = vld [vmem:[%s3453_s30 + $0x10] sm:$0xff]  }
 0x25c   : > { %2987 = vmatpush3.bf16.xpose.msra.mxu1 %v1020_v63 }
 0x25d   : > { %v1013_v0 = vpack.c.bf16 %v891_v62, %v890_v61  ;;  %2998 = vmatprep.subr.bf16.mxu1 %v3312_v22 }
 0x25e   : > { %v1006_v2 = vpop.f32.mrb[4].mxu0 }
 0x25f   : > { %v2984_v3 = vpop.f32.mrb[5].mxu0  ;;  %v1007_v6 = vadd.f32 %v2778_v1, %v1006_v2 }
 0x260   : > { %v1009_v4 = vpop.f32.mrb[6].mxu0 }
 0x261   : > { %v1010_v7 = vadd.f32 %v2778_v1, %v1009_v4  ;;  %v2985_v8 = vpop.f32.mrb[7].mxu0 }
 0x263   : > { %v1087_v9 = vpack.c.bf16 %v1010_v7, %v1007_v6  ;;  %2989 = vmatmul.mubr.msk.bf16.vlgmr.msra.gmra.mrb[4].mxu1 %vm1015_vm3, %v1013_v0 }
 0x264   : > { %2999 = vmatpush3.bf16.msra.mxu1 %v3198_v5  ;;  %3002 = vmatprep.mubr.msk.bf16.mxu1 %vm3313_vm2, %v3312_v22 }
 0x265   : > { %2993 = vmatpush3.bf16.msra.mxu0 %v1087_v9  ;;  %3000 = vmatprep.subr.bf16.mxu1 %v3312_v22 }
 0x266   : > { %3006 = vmatprep.subr.bf16.mxu0 %v3312_v22 }
 0x268   : > { %3001 = vmatpush3.bf16.msra.mxu1 %v3199_v10 }
 0x269   : > { %3014 = vmatprep.subr.bf16.mxu1 %v3312_v22 }
 0x26b   : > { %3003 = vmatmul.mubr.msk.bf16.vlgmr.msra.gmra.mrb[8].mxu1 %vm781_vm1, %v3543_v47 }
 0x26c   : > { %3015 = vmatpush3.bf16.msra.mxu1 %v3200_v11  ;;  %3018 = vmatprep.mubr.msk.bf16.mxu1 %vm3313_vm2, %v3312_v22 }
 0x26d   : > { %3016 = vmatprep.subr.bf16.mxu1 %v3312_v22 }
 0x270   : > { %3017 = vmatpush3.bf16.msra.mxu1 %v3201_v12 }
 0x271   : > { %3028 = vmatprep.subr.bf16.mxu1 %v3312_v22 }
 0x273   : > { %3019 = vmatmul.mubr.msk.bf16.vlgmr.msra.gmra.mrb[12].mxu1 %vm781_vm1, %v3543_v47 }
 0x274   : > { %3030 = vmatprep.mubr.msk.bf16.mxu1 %vm3313_vm2, %v3312_v22 }
 0x336   : > { %v1056_v13 = vpop.f32.mrb[4].mxu1 }
 0x337   : > { %v2990_v14 = vpop.f32.mrb[5].mxu1  ;;  %v1064_v15 = vsel %vm1063_vm4, %v1056_v13, -inf }
 0x338   : > { %1065 = vmax.xlane.f32.xlu0 %v1064_v15  ;;  %v1059_v16 = vpop.f32.mrb[6].mxu1 }
 0x339   : > { %v2991_v17 = vpop.f32.mrb[7].mxu1  ;;  %v1067_v18 = vsel %vm1063_vm4, %v1059_v16, -inf }
 0x33a   : > { %1068 = vmax.xlane.f32.xlu1 %v1067_v18 }
 0x33e   : > { %v1193_v20 = vpop.f32.mrb[8].mxu1 }
 0x33f   : > { %v1194_v21 = vadd.f32 %v2789_v19, %v1193_v20  ;;  %v3004_v23 = vpop.f32.mrb[9].mxu1 }
 0x340   : > { %v1196_v24 = vpop.f32.mrb[10].mxu1 }
 0x341   : > { %v1197_v25 = vadd.f32 %v2789_v19, %v1196_v24  ;;  %v3005_v26 = vpop.f32.mrb[11].mxu1  ;;  %v1200_v27 = vmul.f32 0.35355338, %v1194_v21  ;;  %v2811_v24 = vld [vmem:[%s3473_s1 + $0x4] sm:$0xf] }
 0x343   : > { %v1201_v28 = vmul.f32 0.35355338, %v1197_v25  ;;  %v1451_v25 = vsel %vm1449_vm5, %v2811_v24, 0 }
 0x345   : > { %v1326_v29 = vpack.c.bf16 %v1201_v28, %v1200_v27 }
 0x346   : > { %v1319_v31 = vpop.f32.mrb[12].mxu1 }
 0x347   : > { %v3020_v32 = vpop.f32.mrb[13].mxu1  ;;  %v1320_v35 = vadd.f32 %v2805_v30, %v1319_v31 }
 0x348   : > { %v1322_v34 = vpop.f32.mrb[14].mxu1 }
 0x349   : > { %v1323_v36 = vadd.f32 %v2805_v30, %v1322_v34  ;;  %v3021_v38 = vpop.f32.mrb[15].mxu1  ;;  %v1133_v30 = vld [vmem:[%s3473_s1] sm:$0xf] }
 0x34a   : > { %v3205_v38 = vld [vmem:[%s3453_s30 + $0x28] sm:$0xff]  }
 0x34b   : > { %v1398_v39 = vpack.c.bf16 %v1323_v36, %v1320_v35  ;;  %v1498_v35 = vsel %vm1449_vm5, %v1133_v30, 0  ;;  %v3204_v36 = vld [vmem:[%s3453_s30 + $0x20] sm:$0xff]  }
 0x34d   : > { %3029 = vmatpush3.bf16.msra.mxu1 %v1398_v39 }
 0x34e   : > { %3040 = vmatprep.subr.bf16.mxu1 %v3312_v22 }
 0x3c5   : > { %v1066_v40 = vpop.xlane.xlu0 %1065 }
 0x3c6   : > { %v1070_v41 = vsub.f32 %v1056_v13, %v1066_v40 }
 0x3c7   : > { %v1069_v42 = vpop.xlane.xlu1 %1068 }
 0x3c8   : > { %v1072_v43 = vmul.f32 1.442695, %v1070_v41  ;;  %v1071_v44 = vsub.f32 %v1059_v16, %v1069_v42  ;;  %v3206_v42 = vld [vmem:[%s3852_s9 + $0x20] sm:$0xff]  }
 0x3ca   : > { %3226 = vpow2.f32 %v1072_v43  ;;  %v1074_v45 = vmul.f32 1.442695, %v1071_v44 }
 0x3cc   : > { %3228 = vpow2.f32 %v1074_v45  ;;  %v3207_v45 = vld [vmem:[%s3852_s9 + $0x28] sm:$0xff]  }
 0x3d4   : > { %v3227_v46 = vpop.eup %3226 }
 0x3d5   : > { %v1076_v48 = vsel %vm1063_vm4, %v3227_v46, 0.0 }
 0x3d6   : > { %v3229_v49 = vpop.eup %3228  ;;  %1077 = vadd.xlane.f32.xlu0 %v1076_v48 }
 0x3d7   : > { %v1079_v50 = vsel %vm1063_vm4, %v3229_v49, 0.0 }
 0x3d8   : > { %1080 = vadd.xlane.f32.xlu1 %v1079_v50  ;;  %v3208_v50 = vld [vmem:[%s3458_s21 + $0x20] sm:$0xff]  }
 0x463   : > { %v1078_v51 = vpop.xlane.xlu0 %1077 }
 0x464   : > { %3230 = vrcp.f32 %v1078_v51 }
 0x465   : > { %v1081_v52 = vpop.xlane.xlu1 %1080 }
 0x466   : > { %3232 = vrcp.f32 %v1081_v52  ;;  %v3209_v52 = vld [vmem:[%s3458_s21 + $0x28] sm:$0xff]  }
 0x46e   : > { %v3231_v53 = vpop.eup %3230 }
 0x46f   : > { %v1084_v55 = vmul.f32 %v3231_v53, %v3227_v46 }
 0x470   : > { %v3233_v54 = vpop.eup %3232 }
 0x471   : > { %v1085_v56 = vmul.f32 %v3233_v54, %v3229_v49 }
 0x473   : > { %v1086_v58 = vpack.c.bf16 %v1085_v56, %v1084_v55 }
 0x475   : > { %2995 = vmatmul.mubr.msk.bf16.vlgmr.msra.gmra.mrb[8].mxu0 %vm1063_vm4, %v1086_v58 }
 0x476   : > { %3007 = vmatpush3.bf16.msra.mxu0 %v3202_v57  ;;  %3010 = vmatprep.mubr.msk.bf16.mxu0 %vm3313_vm2, %v3312_v22 }
 0x477   : > { %3008 = vmatprep.subr.bf16.mxu0 %v3312_v22 }
 0x47a   : > { %3009 = vmatpush3.bf16.msra.mxu0 %v3203_v59 }
 0x47b   : > { %3022 = vmatprep.subr.bf16.mxu0 %v3312_v22 }
 0x47d   : > { %3011 = vmatmul.mubr.msk.bf16.vlgmr.msra.gmra.mrb[12].mxu0 %vm781_vm1, %v3543_v47 }
 0x47e   : > { %3024 = vmatprep.mubr.msk.bf16.mxu0 %vm3313_vm2, %v3312_v22 }
 0x548   : > { %v1125_v60 = vpop.f32.mrb[8].mxu0 }
 0x549   : > { %v2996_v61 = vpop.f32.mrb[9].mxu0 }
 0x54a   : > { %v1128_v62 = vpop.f32.mrb[10].mxu0 }
 0x54b   : > { %v1132_v63 = vpack.c.bf16 %v1128_v62, %v1125_v60  ;;  %v2997_v0 = vpop.f32.mrb[11].mxu0 }
 0x550   : > { %v1253_v1 = vpop.f32.mrb[12].mxu0 }
 0x551   : > { %v3012_v2 = vpop.f32.mrb[13].mxu0 }
 0x552   : > { %v1256_v3 = vpop.f32.mrb[14].mxu0 }
 0x553   : > { %v1327_v4 = vpack.c.bf16 %v1256_v3, %v1253_v1  ;;  %v3013_v5 = vpop.f32.mrb[15].mxu0  ;;  %v2819_v1 = vld [vmem:[%s3853_s10 + $0x2] ss:$0 sm:$0xff] }
 0x555   : > { %v1332_v6 = vsel %vm1015_vm3, %v1327_v4, 0 }
 0x556   : > { %3023 = vmatpush3.bf16.xpose.msra.mxu0 %v1332_v6 }
 0x557   : > { %3034 = vmatprep.subr.bf16.mxu0 %v3312_v22 }
 0x55d   : > { %3025 = vmatmul.mubr.msk.bf16.vlgmr.msra.gmra.mrb[16].mxu0 %vm1015_vm3, %v1326_v29 }
 0x55e   : > { %3036 = vmatprep.mubr.msk.bf16.mxu0 %vm3313_vm2, %v3312_v22  ;;  %3035 = vmatpush3.bf16.msra.mxu0 %v1451_v25 }
 0x55f   : > { %3046 = vmatprep.subr.bf16.mxu0 %v3312_v22 }
 0x630   : > { %v1368_v7 = vpop.f32.mrb[16].mxu0 }
 0x631   : > { %v3026_v8 = vpop.f32.mrb[17].mxu0  ;;  %v1375_v9 = vsel %vm1063_vm4, %v1368_v7, -inf }
 0x632   : > { %1376 = vmax.xlane.f32.xlu0 %v1375_v9  ;;  %v1371_v10 = vpop.f32.mrb[18].mxu0 }
 0x633   : > { %v3027_v11 = vpop.f32.mrb[19].mxu0  ;;  %v1378_v12 = vsel %vm1063_vm4, %v1371_v10, -inf }
 0x634   : > { %1379 = vmax.xlane.f32.xlu1 %v1378_v12  ;;  %v2835_v11 = vld [vmem:[%s3463_s2 + $0x2] ss:$0 sm:$0xff] }
 0x6bf   : > { %v1377_v13 = vpop.xlane.xlu0 %1376 }
 0x6c0   : > { %v1381_v14 = vsub.f32 %v1368_v7, %v1377_v13 }
 0x6c1   : > { %v1380_v15 = vpop.xlane.xlu1 %1379 }
 0x6c2   : > { %v1383_v16 = vmul.f32 1.442695, %v1381_v14  ;;  %v1382_v17 = vsub.f32 %v1371_v10, %v1380_v15 }
 0x6c4   : > { %3234 = vpow2.f32 %v1383_v16  ;;  %v1385_v18 = vmul.f32 1.442695, %v1382_v17 }
 0x6c6   : > { %3236 = vpow2.f32 %v1385_v18 }
 0x6ce   : > { %v3235_v19 = vpop.eup %3234 }
 0x6cf   : > { %v1387_v20 = vsel %vm1063_vm4, %v3235_v19, 0.0 }
 0x6d0   : > { %v3237_v21 = vpop.eup %3236  ;;  %1388 = vadd.xlane.f32.xlu0 %v1387_v20 }
 0x6d1   : > { %v1390_v23 = vsel %vm1063_vm4, %v3237_v21, 0.0 }
 0x6d2   : > { %1391 = vadd.xlane.f32.xlu1 %v1390_v23 }
 0x75d   : > { %v1389_v26 = vpop.xlane.xlu0 %1388 }
 0x75e   : > { %3238 = vrcp.f32 %v1389_v26 }
 0x75f   : > { %v1392_v27 = vpop.xlane.xlu1 %1391 }
 0x760   : > { %3240 = vrcp.f32 %v1392_v27 }
 0x768   : > { %v3239_v28 = vpop.eup %3238 }
 0x769   : > { %v1395_v31 = vmul.f32 %v3239_v28, %v3235_v19 }
 0x76a   : > { %v3241_v29 = vpop.eup %3240 }
 0x76b   : > { %v1396_v32 = vmul.f32 %v3241_v29, %v3237_v21 }
 0x76d   : > { %v1397_v34 = vpack.c.bf16 %v1396_v32, %v1395_v31 }
 0x76f   : > { %3031 = vmatmul.mubr.msk.bf16.vlgmr.msra.gmra.mrb[16].mxu1 %vm1063_vm4, %v1397_v34 }
 0x770   : > { %3041 = vmatpush3.bf16.msra.mxu1 %v1498_v35  ;;  %3042 = vmatprep.mubr.msk.bf16.mxu1 %vm3313_vm2, %v3312_v22 }
 0x771   : > { %3054 = vmatprep.subr.bf16.mxu1 %v3312_v22 }
 0x777   : > { %3043 = vmatmul.mubr.msk.bf16.vlgmr.msra.gmra.mrb[20].mxu1 %vm1015_vm3, %v1132_v63 }
 0x778   : > { %3055 = vmatpush3.bf16.msra.mxu1 %v3204_v36  ;;  %3058 = vmatprep.mubr.msk.bf16.mxu1 %vm3313_vm2, %v3312_v22 }
 0x779   : > { %3056 = vmatprep.subr.bf16.mxu1 %v3312_v22 }
 0x77c   : > { %3057 = vmatpush3.bf16.msra.mxu1 %v3205_v38  ;;  %v2841_v38 = vld [vmem:[%s3473_s1 + $0x8] sm:$0xf] }
 0x77d   : > { %3070 = vmatprep.subr.bf16.mxu1 %v3312_v22 }
 0x77f   : > { %3059 = vmatmul.mubr.msk.bf16.vlgmr.msra.gmra.mrb[24].mxu1 %vm781_vm1, %v3543_v47 }
 0x780   : > { %3072 = vmatprep.mubr.msk.bf16.mxu1 %vm3313_vm2, %v3312_v22 }
 0x842   : > { %v1436_v39 = vpop.f32.mrb[16].mxu1 }
 0x843   : > { %v3032_v40 = vpop.f32.mrb[17].mxu1 }
 0x844   : > { %v1439_v41 = vpop.f32.mrb[18].mxu1 }
 0x845   : > { %v1443_v43 = vpack.c.bf16 %v1439_v41, %v1436_v39  ;;  %v3033_v44 = vpop.f32.mrb[19].mxu1  ;;  %v1857_v39 = vsel %vm1449_vm5, %v2841_v38, 0 }
 0x847   : > { %3037 = vmatmul.mubr.msk.bf16.vlgmr.msra.gmra.mrb[20].mxu0 %vm1015_vm3, %v1443_v43 }
 0x848   : > { %3047 = vmatpush3.bf16.msra.mxu0 %v3206_v42  ;;  %3050 = vmatprep.mubr.msk.bf16.mxu0 %vm3313_vm2, %v3312_v22 }
 0x849   : > { %3048 = vmatprep.subr.bf16.mxu0 %v3312_v22 }
 0x84a   : > { %v1534_v46 = vpop.f32.mrb[20].mxu1 }
 0x84b   : > { %v3044_v48 = vpop.f32.mrb[21].mxu1 }
 0x84c   : > { %v1537_v49 = vpop.f32.mrb[22].mxu1  ;;  %3049 = vmatpush3.bf16.msra.mxu0 %v3207_v45 }
 0x84d   : > { %v3045_v51 = vpop.f32.mrb[23].mxu1  ;;  %3062 = vmatprep.subr.bf16.mxu0 %v3312_v22 }
 0x84e   : > { %v3213_v51 = vld [vmem:[%s3458_s21 + $0x38] sm:$0xff]  }
 0x84f   : > { %3051 = vmatmul.mubr.msk.bf16.vlgmr.msra.gmra.mrb[24].mxu0 %vm781_vm1, %v3543_v47 }
 0x850   : > { %3063 = vmatpush3.bf16.msra.mxu0 %v3208_v50  ;;  %3066 = vmatprep.mubr.msk.bf16.mxu0 %vm3313_vm2, %v3312_v22  ;;  %v3212_v50 = vld [vmem:[%s3458_s21 + $0x30] sm:$0xff]  }
 0x851   : > { %3064 = vmatprep.subr.bf16.mxu0 %v3312_v22 }
 0x852   : > { %v1660_v53 = vpop.f32.mrb[24].mxu1 }
 0x853   : > { %v3060_v54 = vpop.f32.mrb[25].mxu1 }
 0x854   : > { %v1663_v55 = vpop.f32.mrb[26].mxu1  ;;  %3065 = vmatpush3.bf16.msra.mxu0 %v3209_v52 }
 0x855   : > { %v1734_v56 = vpack.c.bf16 %v1663_v55, %v1660_v53  ;;  %v3061_v57 = vpop.f32.mrb[27].mxu1  ;;  %3076 = vmatprep.subr.bf16.mxu0 %v3312_v22  ;;  %v3214_v55 = vld [vmem:[%s3453_s30 + $0x30] sm:$0xff]  }
 0x857   : > { %v1739_v58 = vsel %vm1015_vm3, %v1734_v56, 0  ;;  %3067 = vmatmul.mubr.msk.bf16.vlgmr.msra.gmra.mrb[28].mxu0 %vm781_vm1, %v3543_v47 }
 0x858   : > { %3071 = vmatpush3.bf16.xpose.msra.mxu1 %v1739_v58  ;;  %3078 = vmatprep.mubr.msk.bf16.mxu0 %vm3313_vm2, %v3312_v22  ;;  %v2848_v58 = vld [vmem:[%s3853_s10 + $0x3] ss:$0 sm:$0xff] }
 0x859   : > { %3082 = vmatprep.subr.bf16.mxu1 %v3312_v22 }
 0x91a   : > { %v1487_v59 = vpop.f32.mrb[20].mxu0 }
 0x91b   : > { %v3652_v60 = vadd.f32 %v1534_v46, %v1487_v59  ;;  %v3038_v61 = vpop.f32.mrb[21].mxu0  ;;  %v3210_v46 = vld [vmem:[%s3852_s9 + $0x30] sm:$0xff]   ;;  %v3215_v59 = vld [vmem:[%s3453_s30 + $0x38] sm:$0xff]  }
 0x91c   : > { %v1490_v62 = vpop.f32.mrb[22].mxu0 }
 0x91d   : > { %v3654_v63 = vadd.f32 %v1537_v49, %v1490_v62  ;;  %v3039_v0 = vpop.f32.mrb[23].mxu0  ;;  %v3211_v49 = vld [vmem:[%s3852_s9 + $0x38] sm:$0xff]  }
 0x922   : > { %v1600_v2 = vpop.f32.mrb[24].mxu0 }
 0x923   : > { %v1601_v3 = vadd.f32 %v2819_v1, %v1600_v2  ;;  %v3052_v4 = vpop.f32.mrb[25].mxu0 }
 0x924   : > { %v1603_v5 = vpop.f32.mrb[26].mxu0 }
 0x925   : > { %v1604_v6 = vadd.f32 %v2819_v1, %v1603_v5  ;;  %v3053_v7 = vpop.f32.mrb[27].mxu0  ;;  %v1607_v8 = vmul.f32 0.35355338, %v1601_v3 }
 0x926   : > { %v2864_v7 = vld [vmem:[%s3463_s2 + $0x3] ss:$0 sm:$0xff] }
 0x927   : > { %v1608_v9 = vmul.f32 0.35355338, %v1604_v6 }
 0x929   : > { %v1733_v10 = vpack.c.bf16 %v1608_v9, %v1607_v8 }
 0x92a   : > { %v1726_v12 = vpop.f32.mrb[28].mxu0 }
 0x92b   : > { %v3068_v13 = vpop.f32.mrb[29].mxu0  ;;  %3073 = vmatmul.mubr.msk.bf16.vlgmr.msra.gmra.mrb[28].mxu1 %vm1015_vm3, %v1733_v10  ;;  %v1727_v15 = vadd.f32 %v2835_v11, %v1726_v12 }
 0x92c   : > { %v1729_v14 = vpop.f32.mrb[30].mxu0  ;;  %3084 = vmatprep.mubr.msk.bf16.mxu1 %vm3313_vm2, %v3312_v22  ;;  %3083 = vmatpush3.bf16.msra.mxu1 %v1857_v39 }
 0x92d   : > { %v1730_v16 = vadd.f32 %v2835_v11, %v1729_v14  ;;  %v3069_v17 = vpop.f32.mrb[31].mxu0  ;;  %3096 = vmatprep.subr.bf16.mxu1 %v3312_v22 }
 0x92f   : > { %v1805_v18 = vpack.c.bf16 %v1730_v16, %v1727_v15 }
 0x931   : > { %3077 = vmatpush3.bf16.msra.mxu0 %v1805_v18 }
 0x932   : > { %3088 = vmatprep.subr.bf16.mxu0 %v3312_v22 }
 0x9fe   : > { %v1775_v19 = vpop.f32.mrb[28].mxu1 }
 0x9ff   : > { %v3074_v20 = vpop.f32.mrb[29].mxu1  ;;  %v1782_v21 = vsel %vm1063_vm4, %v1775_v19, -inf }
 0xa00   : > { %1783 = vmax.xlane.f32.xlu0 %v1782_v21  ;;  %v1778_v23 = vpop.f32.mrb[30].mxu1 }
 0xa01   : > { %v3075_v24 = vpop.f32.mrb[31].mxu1  ;;  %v1785_v25 = vsel %vm1063_vm4, %v1778_v23, -inf }
 0xa02   : > { %1786 = vmax.xlane.f32.xlu1 %v1785_v25 }
 0xa8d   : > { %v1784_v26 = vpop.xlane.xlu0 %1783 }
 0xa8e   : > { %v1788_v27 = vsub.f32 %v1775_v19, %v1784_v26 }
 0xa8f   : > { %v1787_v28 = vpop.xlane.xlu1 %1786 }
 0xa90   : > { %v1790_v29 = vmul.f32 1.442695, %v1788_v27  ;;  %v1789_v30 = vsub.f32 %v1778_v23, %v1787_v28 }
 0xa92   : > { %3242 = vpow2.f32 %v1790_v29  ;;  %v1792_v31 = vmul.f32 1.442695, %v1789_v30 }
 0xa94   : > { %3244 = vpow2.f32 %v1792_v31 }
 0xa9c   : > { %v3243_v32 = vpop.eup %3242 }
 0xa9d   : > { %v1794_v34 = vsel %vm1063_vm4, %v3243_v32, 0.0 }
 0xa9e   : > { %v3245_v35 = vpop.eup %3244  ;;  %1795 = vadd.xlane.f32.xlu0 %v1794_v34 }
 0xa9f   : > { %v1797_v36 = vsel %vm1063_vm4, %v3245_v35, 0.0 }
 0xaa0   : > { %1798 = vadd.xlane.f32.xlu1 %v1797_v36 }
 0xb2b   : > { %v1796_v40 = vpop.xlane.xlu0 %1795 }
 0xb2c   : > { %3246 = vrcp.f32 %v1796_v40 }
 0xb2d   : > { %v1799_v41 = vpop.xlane.xlu1 %1798 }
 0xb2e   : > { %3248 = vrcp.f32 %v1799_v41 }
 0xb36   : > { %v3247_v42 = vpop.eup %3246 }
 0xb37   : > { %v1802_v44 = vmul.f32 %v3247_v42, %v3243_v32 }
 0xb38   : > { %v3249_v43 = vpop.eup %3248 }
 0xb39   : > { %v1803_v45 = vmul.f32 %v3249_v43, %v3245_v35  ;;  %v2870_v43 = vld [vmem:[%s3473_s1 + $0xc] sm:$0xf] }
 0xb3b   : > { %v1804_v48 = vpack.c.bf16 %v1803_v45, %v1802_v44  ;;  %v2218_v44 = vsel %vm1449_vm5, %v2870_v43, 0  ;;  %v3220_v43 = vld [vmem:[%s3503_s17 + $0x10] sm:$0xff]  }
 0xb3d   : > { %3079 = vmatmul.mubr.msk.bf16.vlgmr.msra.gmra.mrb[32].mxu0 %vm1063_vm4, %v1804_v48 }
 0xb3e   : > { %3089 = vmatpush3.bf16.msra.mxu0 %v3210_v46  ;;  %3092 = vmatprep.mubr.msk.bf16.mxu0 %vm3313_vm2, %v3312_v22 }
 0xb3f   : > { %3090 = vmatprep.subr.bf16.mxu0 %v3312_v22 }
 0xb42   : > { %3091 = vmatpush3.bf16.msra.mxu0 %v3211_v49 }
 0xb43   : > { %3104 = vmatprep.subr.bf16.mxu0 %v3312_v22 }
 0xb45   : > { %3093 = vmatmul.mubr.msk.bf16.vlgmr.msra.gmra.mrb[36].mxu0 %vm781_vm1, %v3543_v47 }
 0xb46   : > { %3105 = vmatpush3.bf16.msra.mxu0 %v3212_v50  ;;  %3108 = vmatprep.mubr.msk.bf16.mxu0 %vm3313_vm2, %v3312_v22 }
 0xb47   : > { %3106 = vmatprep.subr.bf16.mxu0 %v3312_v22 }
 0xb4a   : > { %3107 = vmatpush3.bf16.msra.mxu0 %v3213_v51 }
 0xb4b   : > { %3118 = vmatprep.subr.bf16.mxu0 %v3312_v22 }
 0xb4d   : > { %3109 = vmatmul.mubr.msk.bf16.vlgmr.msra.gmra.mrb[40].mxu0 %vm781_vm1, %v3543_v47 }
 0xb4e   : > { %3120 = vmatprep.mubr.msk.bf16.mxu0 %vm3313_vm2, %v3312_v22 }
 0xc10   : > { %v1843_v52 = vpop.f32.mrb[32].mxu0 }
 0xc11   : > { %v3080_v53 = vpop.f32.mrb[33].mxu0 }
 0xc12   : > { %v1846_v54 = vpop.f32.mrb[34].mxu0 }
 0xc13   : > { %v1850_v56 = vpack.c.bf16 %v1846_v54, %v1843_v52  ;;  %v3081_v57 = vpop.f32.mrb[35].mxu0 }
 0xc15   : > { %3085 = vmatmul.mubr.msk.bf16.vlgmr.msra.gmra.mrb[32].mxu1 %vm1015_vm3, %v1850_v56 }
 0xc16   : > { %3097 = vmatpush3.bf16.msra.mxu1 %v3214_v55  ;;  %3100 = vmatprep.mubr.msk.bf16.mxu1 %vm3313_vm2, %v3312_v22 }
 0xc17   : > { %3098 = vmatprep.subr.bf16.mxu1 %v3312_v22 }
 0xc18   : > { %v1961_v61 = vpop.f32.mrb[36].mxu0 }
 0xc19   : > { %v1962_v62 = vadd.f32 %v2848_v58, %v1961_v61  ;;  %v3094_v0 = vpop.f32.mrb[37].mxu0 }
 0xc1a   : > { %v1964_v1 = vpop.f32.mrb[38].mxu0  ;;  %3099 = vmatpush3.bf16.msra.mxu1 %v3215_v59 }
 0xc1b   : > { %v1965_v2 = vadd.f32 %v2848_v58, %v1964_v1  ;;  %v3095_v3 = vpop.f32.mrb[39].mxu0  ;;  %3112 = vmatprep.subr.bf16.mxu1 %v3312_v22  ;;  %v1968_v4 = vmul.f32 0.35355338, %v1962_v62  ;;  %v2872_v58 = vld [vmem:[%s3854_s29] ss:$0 sm:$0xff] }
 0xc1d   : > { %v1969_v5 = vmul.f32 0.35355338, %v1965_v2  ;;  %3101 = vmatmul.mubr.msk.bf16.vlgmr.msra.gmra.mrb[36].mxu1 %vm781_vm1, %v3543_v47 }
 0xc1e   : > { %3114 = vmatprep.mubr.msk.bf16.mxu1 %vm3313_vm2, %v3312_v22 }
 0xc1f   : > { %v2094_v6 = vpack.c.bf16 %v1969_v5, %v1968_v4  ;;  %v3266_v4 = vld [vmem:[#allocation2] sm:$0xff] }
 0xc20   : > { %v2087_v8 = vpop.f32.mrb[40].mxu0 }
 0xc21   : > { %v3110_v9 = vpop.f32.mrb[41].mxu0  ;;  %v2088_v11 = vadd.f32 %v2864_v7, %v2087_v8 }
 0xc22   : > { %v2090_v10 = vpop.f32.mrb[42].mxu0 }
 0xc23   : > { %v2091_v12 = vadd.f32 %v2864_v7, %v2090_v10  ;;  %v3111_v13 = vpop.f32.mrb[43].mxu0  ;;  %v3267_v7 = vld [vmem:[#allocation2 + $0x8] sm:$0xff] }
 0xc25   : > { %v2166_v14 = vpack.c.bf16 %v2091_v12, %v2088_v11 }
 0xc27   : > { %3119 = vmatpush3.bf16.msra.mxu0 %v2166_v14 }
 0xc28   : > { %3130 = vmatprep.subr.bf16.mxu0 %v3312_v22 }
 0xce8   : > { %v1893_v15 = vpop.f32.mrb[32].mxu1 }
 0xce9   : > { %v1900_v16 = vadd.f32 %v1893_v15, %v3652_v60  ;;  %v3086_v17 = vpop.f32.mrb[33].mxu1 }
 0xcea   : > { %v1896_v47 = vpop.f32.mrb[34].mxu1 }
 0xceb   : > { %v1901_v18 = vadd.f32 %v1896_v47, %v3654_v63  ;;  %v3087_v19 = vpop.f32.mrb[35].mxu1 }
 0xcf0   : > { %v2021_v20 = vpop.f32.mrb[36].mxu1 }
 0xcf1   : > { %v3102_v21 = vpop.f32.mrb[37].mxu1 }
 0xcf2   : > { %v2024_v23 = vpop.f32.mrb[38].mxu1  ;;  %v3217_v21 = vld [vmem:[%s3489_s16 + $0x8] sm:$0xff]  }
 0xcf3   : > { %v2095_v24 = vpack.c.bf16 %v2024_v23, %v2021_v20  ;;  %v3103_v25 = vpop.f32.mrb[39].mxu1  ;;  %v3216_v20 = vld [vmem:[%s3489_s16] sm:$0xff]   ;;  %s3856_s16 = sld [smem:[#allocation21_spill]] (!%p2883_p8) }
 0xcf5   : > { %v2100_v26 = vsel %vm1015_vm3, %v2095_v24, 0 }
 0xcf6   : > { %3113 = vmatpush3.bf16.xpose.msra.mxu1 %v2100_v26 }
 0xcf7   : > { %3124 = vmatprep.subr.bf16.mxu1 %v3312_v22 }
 0xcfd   : > { %3115 = vmatmul.mubr.msk.bf16.vlgmr.msra.gmra.mrb[40].mxu1 %vm1015_vm3, %v2094_v6 }
 0xcfe   : > { %3126 = vmatprep.mubr.msk.bf16.mxu1 %vm3313_vm2, %v3312_v22  ;;  %3125 = vmatpush3.bf16.msra.mxu1 %v2218_v44  ;;  %v3221_v44 = vld [vmem:[%s3503_s17 + $0x18] sm:$0xff]  }
 0xcff   : > { %3138 = vmatprep.subr.bf16.mxu1 %v3312_v22 }
 0xdd0   : > { %v2136_v60 = vpop.f32.mrb[40].mxu1 }
 0xdd1   : > { %v3116_v27 = vpop.f32.mrb[41].mxu1  ;;  %v2143_v63 = vsel %vm1063_vm4, %v2136_v60, -inf }
 0xdd2   : > { %2144 = vmax.xlane.f32.xlu0 %v2143_v63  ;;  %v2139_v28 = vpop.f32.mrb[42].mxu1  ;;  %v2273_v63 = vld [vmem:[%s3484_s24] sm:$0x3] }
 0xdd3   : > { %v3117_v29 = vpop.f32.mrb[43].mxu1  ;;  %v2146_v30 = vsel %vm1063_vm4, %v2139_v28, -inf }
 0xdd4   : > { %2147 = vmax.xlane.f32.xlu1 %v2146_v30 }
 0xe5f   : > { %v2145_v31 = vpop.xlane.xlu0 %2144 }
 0xe60   : > { %v2149_v32 = vsub.f32 %v2136_v60, %v2145_v31 }
 0xe61   : > { %v2148_v34 = vpop.xlane.xlu1 %2147 }
 0xe62   : > { %v2151_v35 = vmul.f32 1.442695, %v2149_v32  ;;  %v2150_v36 = vsub.f32 %v2139_v28, %v2148_v34  ;;  %v2303_v28 = vrot.slane %v2273_v63, %v3535_v33 }
 0xe64   : > { %3250 = vpow2.f32 %v2151_v35  ;;  %v2153_v38 = vmul.f32 1.442695, %v2150_v36  ;;  %v2309_v35 = vrot.slane %v2273_v63, %v3539_v37 }
 0xe66   : > { %3252 = vpow2.f32 %v2153_v38 }
 0xe6e   : > { %v3251_v39 = vpop.eup %3250 }
 0xe6f   : > { %v2155_v40 = vsel %vm1063_vm4, %v3251_v39, 0.0 }
 0xe70   : > { %v3253_v41 = vpop.eup %3252  ;;  %2156 = vadd.xlane.f32.xlu0 %v2155_v40 }
 0xe71   : > { %v2158_v42 = vsel %vm1063_vm4, %v3253_v41, 0.0 }
 0xe72   : > { %2159 = vadd.xlane.f32.xlu1 %v2158_v42  ;;  %v3219_v42 = vld [vmem:[%s3503_s17 + $0x8] sm:$0xff]  }
 0xefd   : > { %v2157_v45 = vpop.xlane.xlu0 %2156 }
 0xefe   : > { %3254 = vrcp.f32 %v2157_v45  ;;  %v2873_v45 = vld [vmem:[%s750_s15] ss:$0 sm:$0xff] }
 0xeff   : > { %v2160_v46 = vpop.xlane.xlu1 %2159 }
 0xf00   : > { %3256 = vrcp.f32 %v2160_v46 }
 0xf08   : > { %v3255_v48 = vpop.eup %3254 }
 0xf09   : > { %v2163_v50 = vmul.f32 %v3255_v48, %v3251_v39 }
 0xf0a   : > { %v3257_v49 = vpop.eup %3256 }
 0xf0b   : > { %v2164_v51 = vmul.f32 %v3257_v49, %v3253_v41  ;;  %v3218_v41 = vld [vmem:[%s3503_s17] sm:$0xff]  }
 0xf0d   : > { %v2165_v52 = vpack.c.bf16 %v2164_v51, %v2163_v50 }
 0xf0f   : > { %3121 = vmatmul.mubr.msk.bf16.vlgmr.msra.gmra.mrb[44].mxu0 %vm1063_vm4, %v2165_v52 }
 0xf10   : > { %3134 = vmatprep.mubr.msk.bf16.mxu0 %vm3313_vm2, %v3312_v22  ;;  %3131 = vmatpush3.bf16.msra.mxu0 %v3216_v20 }
 0xf11   : > { %3132 = vmatprep.subr.bf16.mxu0 %v3312_v22 }
 0xf14   : > { %3133 = vmatpush3.bf16.msra.mxu0 %v3217_v21 }
 0xfe2   : > { %v2204_v53 = vpop.f32.mrb[44].mxu0 }
 0xfe3   : > { %v3122_v54 = vpop.f32.mrb[45].mxu0 }
 0xfe4   : > { %v2207_v55 = vpop.f32.mrb[46].mxu0 }
 0xfe5   : > { %v2211_v56 = vpack.c.bf16 %v2207_v55, %v2204_v53  ;;  %v3123_v57 = vpop.f32.mrb[47].mxu0 }
 0xfe7   : > { %3127 = vmatmul.mubr.msk.bf16.vlgmr.msra.gmra.mrb[44].mxu1 %vm1015_vm3, %v2211_v56 }
 0xfe8   : > { %3146 = vmatprep.mubr.msk.bf16.mxu1 %vm3313_vm2, %v3312_v22  ;;  %3139 = vmatpush3.bf16.msra.mxu1 %v3218_v41 }
 0xfe9   : > { %3140 = vmatprep.subr.bf16.mxu1 %v3312_v22 }
 0xfec   : > { %3141 = vmatpush3.bf16.msra.mxu1 %v3219_v42 }
 0xfed   : > { %3142 = vmatprep.subr.bf16.mxu1 %v3312_v22 }
 0xff0   : > { %3143 = vmatpush3.bf16.msra.mxu1 %v3220_v43 }
 0xff1   : > { %3144 = vmatprep.subr.bf16.mxu1 %v3312_v22 }
 0xff4   : > { %3145 = vmatpush3.bf16.msra.mxu1 %v3221_v44 }
0x10ba   : > { %v2254_v59 = vpop.f32.mrb[44].mxu1 }
0x10bb   : > { %v2261_v61 = vadd.f32 %v2254_v59, %v1900_v16  ;;  %v3128_v62 = vpop.f32.mrb[45].mxu1 }
0x10bc   : > { %v2257_v0 = vpop.f32.mrb[46].mxu1 }
0x10bd   : > { %v2269_v1 = vadd.f32 %v2872_v58, %v2261_v61  ;;  %v2262_v2 = vadd.f32 %v2257_v0, %v1901_v18  ;;  %v3129_v3 = vpop.f32.mrb[47].mxu1 }
0x10bf   : > { %v3727_v5 = vadd.f32 %v3266_v4, %v2269_v1  ;;  %v2270_v6 = vadd.f32 %v2872_v58, %v2262_v2 }
0x10c1   : > { %v3729_v8 = vadd.f32 %v3267_v7, %v2270_v6  ;;  %v2274_v9 = vsel %vm781_vm1, %v3727_v5, 0.0 }
0x10c2   : > { %2275 = vadd.xlane.f32.xlu0 %v2274_v9 }
0x10c3   : > { %v2277_v10 = vsel %vm781_vm1, %v3729_v8, 0.0 }
0x10c4   : > { %2278 = vadd.xlane.f32.xlu1 %v2277_v10 }
0x114f   : > { %v2276_v11 = vpop.xlane.xlu0 %2275 }
0x1150   : > { %v2280_v12 = vmul.f32 0.03125, %v2276_v11  ;;  %v2877_v11 = vld [vmem:[%s758_s4] ss:$0 sm:$0xff] }
0x1151   : > { %v2279_v13 = vpop.xlane.xlu1 %2278 }
0x1152   : > { %v2282_v14 = vsub.f32 %v3727_v5, %v2280_v12  ;;  %v2281_v15 = vmul.f32 0.03125, %v2279_v13 }
0x1154   : > { %v2283_v16 = vsub.f32 %v3729_v8, %v2281_v15  ;;  %v2284_v17 = vmul.f32 %v2282_v14, %v2282_v14 }
0x1156   : > { %v2286_v47 = vsel %vm781_vm1, %v2284_v17, 0.0  ;;  %v2285_v18 = vmul.f32 %v2283_v16, %v2283_v16 }
0x1157   : > { %2287 = vadd.xlane.f32.xlu0 %v2286_v47 }
0x1158   : > { %v2289_v19 = vsel %vm781_vm1, %v2285_v18, 0.0 }
0x1159   : > { %2290 = vadd.xlane.f32.xlu1 %v2289_v19 }
0x11e4   : > { %v2288_v23 = vpop.xlane.xlu0 %2287 }
0x11e5   : > { %v2292_v24 = vmul.f32 0.03125, %v2288_v23 }
0x11e6   : > { %v2291_v25 = vpop.xlane.xlu1 %2290 }
0x11e7   : > { %v2294_v26 = vadd.f32 1e-05, %v2292_v24  ;;  %v2293_v60 = vmul.f32 0.03125, %v2291_v25 }
0x11e9   : > { %3258 = vrsqrt.f32 %v2294_v26  ;;  %v2295_v27 = vadd.f32 1e-05, %v2293_v60 }
0x11eb   : > { %3260 = vrsqrt.f32 %v2295_v27 }
0x11f3   : > { %v3259_v29 = vpop.eup %3258 }
0x11f4   : > { %v2298_v30 = vmul.f32 %v3259_v29, %v2282_v14 }
0x11f5   : > { %v3261_v31 = vpop.eup %3260 }
0x11f6   : > { %v2304_v32 = vmul.f32 %v2303_v28, %v2298_v30  ;;  %v2299_v34 = vmul.f32 %v3261_v31, %v2283_v16 }
0x11f8   : > { %v2305_v36 = vmul.f32 %v2303_v28, %v2299_v34  ;;  %v2310_v38 = vadd.f32 %v2309_v35, %v2304_v32 }
0x11fa   : > { %v2311_v39 = vadd.f32 %v2309_v35, %v2305_v36  ;;  %v2491_v35 = vld [vmem:[%s3856_s16] sm:$0x3] (!%p2883_p8) }
0x11fb   : > { %v2521_v36 = vrot.slane (!%p2883_p8), %v2491_v35, %v3535_v33 }
0x11fc   : > { %v2326_v40 = vpack.c.bf16 %v2311_v39, %v2310_v38 }
0x11fe   : > { %3135 = vmatmul.mubr.msk.bf16.vlgmr.msra.gmra.mrb[48].mxu0 %vm781_vm1, %v2326_v40  ;;  %v2527_v40 = vrot.slane (!%p2883_p8), %v2491_v35, %v3539_v37 }
0x12d1   : > { %v2382_v46 = vpop.f32.mrb[48].mxu0 }
0x12d2   : > { %v2383_v48 = vadd.f32 %v2873_v45, %v2382_v46  ;;  %v3136_v49 = vpop.f32.mrb[49].mxu0 }
0x12d3   : > { %v2385_v50 = vpop.f32.mrb[50].mxu0 }
0x12d4   : > { %v2391_v51 = vmul.f32 0.044715, %v2383_v48  ;;  %v2386_v52 = vadd.f32 %v2873_v45, %v2385_v50  ;;  %v3137_v53 = vpop.f32.mrb[51].mxu0  ;;  %v2389_v3 = vmul.f32 0.5, %v2383_v48 }
0x12d6   : > { %v2393_v54 = vmul.f32 %v2391_v51, %v2383_v48  ;;  %v2392_v55 = vmul.f32 0.044715, %v2386_v52  ;;  %v2390_v4 = vmul.f32 0.5, %v2386_v52 }
0x12d8   : > { %v2395_v56 = vmul.f32 %v2393_v54, %v2383_v48  ;;  %v2394_v57 = vmul.f32 %v2392_v55, %v2386_v52 }
0x12da   : > { %v2397_v58 = vadd.f32 %v2395_v56, %v2383_v48  ;;  %v2396_v59 = vmul.f32 %v2394_v57, %v2386_v52 }
0x12dc   : > { %v2399_v22 = vmul.f32 0.7978846, %v2397_v58  ;;  %v2398_v61 = vadd.f32 %v2396_v59, %v2386_v52 }
0x12de   : > { %3262 = vtanh.f32 %v2399_v22  ;;  %v2400_v62 = vmul.f32 0.7978846, %v2398_v61 }
0x12e0   : > { %3264 = vtanh.f32 %v2400_v62 }
0x12e8   : > { %v3263_v0 = vpop.eup %3262 }
0x12e9   : > { %v2403_v1 = vadd.f32 1.0, %v3263_v0 }
0x12ea   : > { %v3265_v2 = vpop.eup %3264 }
0x12eb   : > { %v2404_v6 = vadd.f32 1.0, %v3265_v2  ;;  %v2405_v7 = vmul.f32 %v2403_v1, %v2389_v3 }
0x12ed   : > { %v2406_v9 = vmul.f32 %v2404_v6, %v2390_v4 }
0x12ef   : > { %v2407_v10 = vpack.c.bf16 %v2406_v9, %v2405_v7 }
0x12f1   : > { %3147 = vmatmul.mubr.msk.bf16.vlgmr.msra.gmra.mrb[48].mxu1 %vm2438_vm6, %v2407_v10 }
0x13c4   : > { %v2476_v12 = vpop.f32.mrb[48].mxu1 }
0x13c5   : > { %v2477_v13 = vadd.f32 %v2877_v11, %v2476_v12  ;;  %v3148_v14 = vpop.f32.mrb[49].mxu1  ;;  %2490 = sbr.rel (%p2883_p8) target bundleno = 5383 (0x1507), region = 92 }
0x13c6   : > { %v2479_v15 = vpop.f32.mrb[50].mxu1 }
0x13c7   : > { %v2483_v16 = vadd.f32 %v2477_v13, %v3727_v5  ;;  %v2480_v17 = vadd.f32 %v2877_v11, %v2479_v15  ;;  %v3149_v47 = vpop.f32.mrb[51].mxu1 }
0x13c9   : > { %2485 = vst.msk [vmem:[#allocation2] sm:$0xff] %vm781_vm1, %v2483_v16  ;;  %v2484_v18 = vadd.f32 %v2480_v17, %v3729_v8  ;;  %v2492_v19 = vsel (!%p2883_p8), %vm781_vm1, %v2483_v16, 0.0 }
0x13ca   : > { %2493 = vadd.xlane.f32.xlu0 (!%p2883_p8), %v2492_v19 }
0x13cb   : > { %2486 = vst.msk [vmem:[#allocation2 + $0x8] sm:$0xff] %vm781_vm1, %v2484_v18  ;;  %v2495_v20 = vsel (!%p2883_p8), %vm781_vm1, %v2484_v18, 0.0 }
0x13ce   : > { %2496 = vadd.xlane.f32.xlu0 %v2495_v20 }
0x1457   : > { %v2494_v21 = vpop.xlane.xlu0 %2493 }
0x1458   : > { %v2498_v23 = vmul.f32 0.03125, %v2494_v21 }
0x145a   : > { %v2500_v5 = vsub.f32 %v2483_v16, %v2498_v23 }
0x145b   : > { %v2497_v24 = vpop.xlane.xlu0 %2496 }
0x145c   : > { %v2499_v25 = vmul.f32 0.03125, %v2497_v24  ;;  %v2502_v26 = vmul.f32 %v2500_v5, %v2500_v5 }
0x145e   : > { %v2501_v60 = vsub.f32 %v2484_v18, %v2499_v25  ;;  %v2504_v8 = vsel %vm781_vm1, %v2502_v26, 0.0 }
0x145f   : > { %2505 = vadd.xlane.f32.xlu1 %v2504_v8 }
0x1460   : > { %v2503_v27 = vmul.f32 %v2501_v60, %v2501_v60 }
0x1462   : > { %v2507_v63 = vsel %vm781_vm1, %v2503_v27, 0.0 }
0x1463   : > { %2508 = vadd.xlane.f32.xlu1 %v2507_v63 }
0x14ec   : > { %v2506_v28 = vpop.xlane.xlu1 %2505 }
0x14ed   : > { %v2510_v29 = vmul.f32 0.03125, %v2506_v28 }
0x14ef   : > { %v2512_v30 = vadd.f32 1e-05, %v2510_v29 }
0x14f0   : > { %v2509_v31 = vpop.xlane.xlu1 %2508 }
0x14f1   : > { %3268 = vrsqrt.f32 %v2512_v30  ;;  %v2511_v32 = vmul.f32 0.03125, %v2509_v31 }
0x14f3   : > { %v2513_v34 = vadd.f32 1e-05, %v2511_v32 }
0x14f5   : > { %3270 = vrsqrt.f32 %v2513_v34 }
0x14fb   : > { %v3269_v38 = vpop.eup %3268 }
0x14fc   : > { %v2516_v39 = vmul.f32 %v3269_v38, %v2500_v5 }
0x14fe   : > { %v2522_v41 = vmul.f32 %v2521_v36, %v2516_v39 }
0x14ff   : > { %v3271_v42 = vpop.eup %3270 }
0x1500   : > { %v2528_v43 = vadd.f32 %v2527_v40, %v2522_v41  ;;  %v2517_v44 = vmul.f32 %v3271_v42, %v2501_v60 }
0x1502   : > { %2530 = vst.msk [vmem:[%s3508_s5] sm:$0xff] %vm781_vm1, %v2528_v43  ;;  %v2523_v45 = vmul.f32 %v2521_v36, %v2517_v44 }
0x1504   : > { %v2529_v46 = vadd.f32 %v2527_v40, %v2523_v45 }
0x1506   : > { %2531 = vst.msk [vmem:[%s3508_s5 + $0x8] sm:$0xff] %vm781_vm1, %v2529_v46 }
0x1507 PF: > { %s3857_s15 = sld [smem:[#allocation6_spill]]  ;;  %s3858_s21 = sld [smem:[#allocation4_spill]] }
0x1508   : > { %s3859_s22 = sld [smem:[#allocation5_spill]]  ;;  %s3860_s23 = sld [smem:[#allocation7_spill]] }
0x1509   : > { %s3861_s24 = sld [smem:[#allocation8_spill]] }
0x150d   : > { %s26_s25 = sadd.s32 1, %s3857_s15  }
0x150e   : > { %p23_p9 = scmp.ge.s32.totalorder %s26_s25, 6  }
0x1510   :  { %25 = sbr.rel (!%p23_p9) target bundleno = 13 (0xd), region = 179 }

// kernel: whisper_wrapper_forward.7
= control target key start
LH: loop header
LB: loop body
LE: loop exit
PB: predicated region body
PF: predicated region fallthrough
CT: control target
= control target key end

     0   :  { %s6569_s0 = inlined_call_operand.vmem [shape: f32[2,8,32], index: 0, kind: input, shape index: {}]   ;;  %s6570_s1 = inlined_call_operand.vmem [shape: f32[8,32], index: 1, kind: input, shape index: {}]   ;;  %s6571_s2 = inlined_call_operand.vmem [shape: f32[2,16,32], index: 2, kind: input, shape index: {}]   ;;  %s6572_s3 = inlined_call_operand.vmem [shape: bf16[2,4,32,8], index: 3, kind: input, shape index: {}]   ;;  %s6573_s4 = inlined_call_operand.vmem [shape: f32[2,4,1,8], index: 4, kind: input, shape index: {}]   ;;  %s6574_s5 = inlined_call_operand.vmem [shape: bf16[2,4,32,8], index: 5, kind: input, shape index: {}]   ;;  %s6575_s6 = inlined_call_operand.vmem [shape: bf16[2,4,32,8], index: 6, kind: input, shape index: {}]   ;;  %s6576_s7 = inlined_call_operand.vmem [shape: f32[2,4,1,8], index: 7, kind: input, shape index: {}]   ;;  %s6577_s8 = inlined_call_operand.vmem [shape: bf16[2,4,8,32], index: 8, kind: input, shape index: {}]   ;;  %s6578_s9 = inlined_call_operand.vmem [shape: f32[2,1,32], index: 9, kind: input, shape index: {}]   ;;  %s6579_s10 = inlined_call_operand.vmem [shape: bf16[2,4,32,8], index: 10, kind: input, shape index: {}]   ;;  %s6580_s11 = inlined_call_operand.vmem [shape: f32[2,4,1,8], index: 11, kind: input, shape index: {}]   ;;  %s6581_s12 = inlined_call_operand.vmem [shape: bf16[2,4,32,8], index: 12, kind: input, shape index: {}]   ;;  %s6582_s13 = inlined_call_operand.vmem [shape: bf16[2,4,32,8], index: 13, kind: input, shape index: {}]   ;;  %s6583_s14 = inlined_call_operand.vmem [shape: f32[2,4,1,8], index: 14, kind: input, shape index: {}]   ;;  %s6584_s15 = inlined_call_operand.vmem [shape: bf16[2,4,8,32], index: 15, kind: input, shape index: {}]   ;;  %s6585_s16 = inlined_call_operand.vmem [shape: f32[2,1,32], index: 16, kind: input, shape index: {}]   ;;  %s6586_s17 = inlined_call_operand.vmem [shape: f32[2,2,32], index: 17, kind: input, shape index: {}]   ;;  %s6587_s18 = inlined_call_operand.vmem [shape: f32[2,2,32], index: 18, kind: input, shape index: {}]   ;;  %s6588_s19 = inlined_call_operand.vmem [shape: f32[2,2,32], index: 19, kind: input, shape index: {}]   ;;  %s6589_s20 = inlined_call_operand.vmem [shape: bf16[2,32,64], index: 20, kind: input, shape index: {}]   ;;  %s6590_s21 = inlined_call_operand.vmem [shape: f32[2,1,64], index: 21, kind: input, shape index: {}]   ;;  %s6591_s22 = inlined_call_operand.vmem [shape: bf16[2,64,32], index: 22, kind: input, shape index: {}]   ;;  %s6592_s23 = inlined_call_operand.vmem [shape: f32[2,1,32], index: 23, kind: input, shape index: {}]   ;;  %s6593_s24 = inlined_call_operand.vmem [shape: f32[2,32], index: 24, kind: input, shape index: {}]   ;;  %s6594_s25 = inlined_call_operand.vmem [shape: bf16[32,64], index: 25, kind: input, shape index: {}]   ;;  %s6595_s26 = inlined_call_operand.hbm [shape: f32[2,8,64], index: 26, kind: output, shape index: {}]  }
   0x1   :  { %6620 = sst [smem:[#allocation28_spill]] %s6569_s0 }
   0x2   :  { %6621 = sst [smem:[#allocation29_spill]] %s6570_s1 }
   0x3   :  { %6622 = sst [smem:[#allocation30_spill]] %s6571_s2 }
   0x4   :  { %6623 = sst [smem:[#allocation31_spill]] %s6572_s3 }
   0x5   :  { %6624 = sst [smem:[#allocation32_spill]] %s6573_s4 }
   0x6   :  { %6625 = sst [smem:[#allocation33_spill]] %s6574_s5 }
   0x7   :  { %6626 = sst [smem:[#allocation34_spill]] %s6575_s6 }
   0x8   :  { %6627 = sst [smem:[#allocation35_spill]] %s6576_s7 }
   0x9   :  { %6628 = sst [smem:[#allocation36_spill]] %s6577_s8 }
   0xa   :  { %6629 = sst [smem:[#allocation37_spill]] %s6578_s9 }
   0xb   :  { %6630 = sst [smem:[#allocation38_spill]] %s6579_s10 }
   0xc   :  { %6631 = sst [smem:[#allocation39_spill]] %s6580_s11 }
   0xd   :  { %6632 = sst [smem:[#allocation40_spill]] %s6581_s12 }
   0xe   :  { %6633 = sst [smem:[#allocation41_spill]] %s6582_s13 }
   0xf   :  { %6634 = sst [smem:[#allocation42_spill]] %s6583_s14 }
  0x10   :  { %6635 = sst [smem:[#allocation43_spill]] %s6584_s15 }
  0x11   :  { %6636 = sst [smem:[#allocation44_spill]] %s6585_s16 }
  0x12   :  { %6637 = sst [smem:[#allocation45_spill]] %s6590_s21 }
  0x13   :  { %6638 = sst [smem:[#allocation46_spill]] %s6591_s22 }
  0x14   :  { %6639 = sst [smem:[#allocation47_spill]] %s6592_s23 }
  0x15   :  { %6640 = sst [smem:[#allocation48_spill]] %s6593_s24 }
  0x16   :  { %6641 = sst [smem:[#allocation49_spill]] %s6594_s25 }
  0x17   :  { %6642 = sst [smem:[#allocation50_spill]] %s6595_s26 }
  0x18   :  { %31 = vsyncpa [#allocation4], 0 }
  0x19   :  { %33 = vsyncpa [#allocation4 + $0x1], 0  ;;  %s5824_s27 = smov 0   ;;  %s5826_s3 = smov 0  }
  0x1a   :  { %s5828_s7 = smov 0   ;;  %s5830_s28 = smov 0  }
  0x1b   :  { %s5832_s8 = smov 0   ;;  %s5834_s4 = smov 0  }
  0x1c   :  { %s5836_s29 = smov 0   ;;  %s5838_s0 = smov 0  }
  0x1d LB: > { %6643 = sst [smem:[#allocation6_spill]] %s5654_s27  ;;  %s4650_s9 = sadd.s32 4294967295, %s5682_s0   ;;  %s5682_s0 = sphi %s5838_s0, %s39_s0   ;;  %s5678_s29 = sphi %s5836_s29, %s6724_s29   ;;  %s5674_s4 = sphi %s5834_s4, %s6723_s4   ;;  %s5670_s8 = sphi %s5832_s8, %s6722_s8   ;;  %s5666_s28 = sphi %s5830_s28, %s6721_s28   ;;  %s5662_s7 = sphi %s5828_s7, %s6720_s7   ;;  %s5658_s3 = sphi %s5826_s3, %s6719_s3   ;;  %s5654_s27 = sphi %s5824_s27, %s6718_s27  }
  0x1e   : > { %6644 = sst [smem:[#allocation7_spill]] %s5658_s3  ;;  %s4651_s30 = sadd.s32 4294967294, %s5682_s0  }
  0x1f   : > { %6645 = sst [smem:[#allocation8_spill]] %s5662_s7  ;;  %s48_s2 = sadd.s32 1, %s5674_s4 }
  0x20   : > { %6646 = sst [smem:[#allocation9_spill]] %s5666_s28  ;;  %p49_p0 = scmp.ge.s32.totalorder %s48_s2, 2 }
  0x21   : > { %6647 = sst [smem:[#allocation10_spill]] %s5670_s8  ;;  %s51_s5 = sadd.s32 1, %s5678_s29 }
  0x22   : > { %6648 = sst [smem:[#allocation11_spill]] %s5674_s4  ;;  %p729_p1 = scmp.ne.s32.totalorder %s5662_s7, %s5658_s3 }
  0x23   : > { %6649 = sst [smem:[#allocation12_spill]] %s5678_s29  ;;  %p730_p2 = scmp.eq.s32.totalorder %s4650_s9, 3 }
  0x24   : > { %6650 = sst [smem:[#allocation13_spill]] %s5682_s0  ;;  %s6726_s2 = smov (%p49_p0, %s48_s2), 0 }
  0x25   : > { %6651 = sst [smem:[#allocation14_spill]] %s6726_s2  ;;  %s6728_s5 = smov (!%p49_p0, %s51_s5), %s5678_s29 }
  0x26   : > { %p5873_p3 = por %p730_p2, %p729_p1  ;;  %p735_p4 = scmp.ne.s32.totalorder %s5658_s3, %s5654_s27 }
  0x27   : > { %p53_p5 = scmp.ge.s32.totalorder %s6728_s5, 2  ;;  %p736_p6 = scmp.eq.s32.totalorder %s4651_s30, 3 }
  0x28   : > { %s6652_s10 = scalar_select %p5873_p3, 1, 0 }
  0x29   : > { %p4654_p7 = scmp.ge.s32.totalorder %s5682_s0, 1  ;;  %p931_p8 = scmp.lt.s32.totalorder %s5682_s0, 5 }
  0x2a   : > { %6653 = sst [smem:[#allocation15_spill]] %s6652_s10  ;;  %s6730_s5 = smov (%p53_p5, %s6728_s5), 0 }
  0x2b   : > { %6654 = sst [smem:[#allocation16_spill]] %s6730_s5  ;;  %p5883_p9 = por %p736_p6, %p735_p4 }
  0x2c   : > { %p932_p10 = pnand %p4654_p7, %p931_p8  ;;  %s716_s1 = ssub.s32 %s5678_s29, %s6730_s5 }
  0x2d   : > { %s6655_s6 = scalar_select %p5883_p9, 1, 0 }
  0x2e   : > { %s719_s9 = sadd.s32 1, %s5662_s7  ;;  %p717_p11 = scmp.eq.s32.totalorder %s716_s1, 0 }
  0x2f   : > { %6656 = sst [smem:[#allocation17_spill]] %s6655_s6  ;;  %935 = sbr.rel (%p932_p10) target bundleno = 9825 (0x2661), region = 124 }
  0x30   : > { %s5891_s2 = scalar_select %p717_p11, %s5662_s7, %s719_s9  }
  0x32   : > { %6657 = sst [smem:[#allocation18_spill]] %s5891_s2 }
  0x36   : > { %s6607_s30 = sand.u32 1, %s5658_s3   ;;  %p1095_p12 = scmp.lt.s32.totalorder %s5670_s8, 1 }
  0x37   : > { %s5897_s4 = sshll.u32 %s6607_s30, 3  ;;  %p1104_p13 = scmp.lt.s32.totalorder %s5666_s28, 1 }
  0x38   : > { %s1096_s6 = scalar_select %p1095_p12, %s5670_s8, 1 }
  0x39   : > { %s5902_s27 = scalar_select %p1104_p13, %s5666_s28, 1 }
  0x3a   : > { %s4656_s1 = sshll.u32 %s1096_s6, 3  ;;  %s4909_s9 = sshll.u32 %s1096_s6, 4 }
  0x3b   : > { %s6658_s2 = sld [smem:[#allocation28_spill]]  ;;  %s6660_s10 = sld [smem:[#allocation30_spill]] }
  0x3c   : > { %s4910_s3 = sshll.u32 %s5902_s27, 6  ;;  %s4661_s8 = sshll.u32 %s5902_s27, 2 }
  0x3d   : > { %s6662_s28 = sld [smem:[#allocation31_spill]]  ;;  %s6664_s21 = sld [smem:[#allocation32_spill]] }
  0x3e   : > { %s6670_s25 = sld [smem:[#allocation35_spill]]  ;;  %s6671_s6 = sld [smem:[#allocation36_spill]] }
  0x3f   : > { %s6675_s11 = sld [smem:[#allocation39_spill]]  ;;  %s6676_s12 = sld [smem:[#allocation40_spill]] }
  0x40   : > { %s6677_s13 = sld [smem:[#allocation41_spill]]  ;;  %s6678_s14 = sld [smem:[#allocation42_spill]] }
  0x41   : > { %s5907_s7 = scalar_lea.vmem %s6658_s2, %s4656_s1  ;;  %s5912_s30 = scalar_lea.vmem %s6660_s10, %s4909_s9 }
  0x42   : > { %6659 = sst [smem:[#allocation19_spill]] %s5907_s7  ;;  %s6666_s1 = sld [smem:[#allocation33_spill]] }
  0x43   : > { %6661 = sst [smem:[#allocation20_spill]] %s5912_s30  ;;  %s5919_s23 = scalar_lea.vmem %s6662_s28, %s4910_s3 }
  0x44   : > { %6663 = sst [smem:[#allocation21_spill]] %s5919_s23  ;;  %s5924_s29 = scalar_lea.vmem %s6664_s21, %s4661_s8 }
  0x45   : > { %6665 = sst [smem:[#allocation22_spill]] %s5924_s29  ;;  %s6668_s9 = sld [smem:[#allocation34_spill]] }
  0x46   : > { %s5939_s28 = scalar_lea.vmem %s6670_s25, %s4661_s8  ;;  %s4913_s23 = sshll.u32 %s5902_s27, 4 }
  0x47   : > { %s5945_s29 = scalar_lea.vmem %s6671_s6, %s4913_s23  ;;  %s5959_s25 = scalar_lea.vmem %s6675_s11, %s4661_s8 }
  0x48   : > { %s5929_s26 = scalar_lea.vmem %s6666_s1, %s4910_s3  ;;  %6672 = sst [smem:[#allocation25_spill]] %s5945_s29 }
  0x49   : > { %6667 = sst [smem:[#allocation23_spill]] %s5929_s26  ;;  %s5964_s6 = scalar_lea.vmem %s6676_s12, %s4910_s3 }
  0x4a   : > { %s5969_s5 = scalar_lea.vmem %s6677_s13, %s4910_s3  ;;  %s5974_s10 = scalar_lea.vmem %s6678_s14, %s4661_s8 }
  0x4b   : > { %s5934_s30 = scalar_lea.vmem %s6668_s9, %s4910_s3  ;;  %s6674_s9 = sld [smem:[#allocation38_spill]] }
  0x4c   : > { %6669 = sst [smem:[#allocation24_spill]] %s5934_s30  ;;  %s6680_s15 = sld [smem:[#allocation43_spill]] }
  0x4d   : > { %6679 = sst [smem:[#allocation26_spill]] %s5974_s10  ;;  %s5986_s21 = sshll.u32 %s5902_s27, 1 }
  0x4e   : > { %s6003_s26 = scalar_lea.vmem %s6589_s20, %s4913_s23  ;;  %s6685_s0 = sld [smem:[#allocation47_spill]] }
  0x4f   : > { %s1094_s7 = scalar_lea.vmem [#allocation3], %s5897_s4  ;;  %s6686_s12 = sld [smem:[#allocation9_spill]] }
  0x51   : > { %s5954_s30 = scalar_lea.vmem %s6674_s9, %s4910_s3  ;;  %s4919_s3 = sshll.u32 %s5902_s27, 5 }
  0x52   : > { %s5979_s24 = scalar_lea.vmem %s6680_s15, %s4913_s23  ;;  %s6683_s15 = sld [smem:[#allocation45_spill]] }
  0x53   : > { %6681 = sst [smem:[#allocation27_spill]] %s5979_s24  ;;  %s6684_s24 = sld [smem:[#allocation46_spill]] }
  0x54   : > { %s1193_s9 = scalar_lea.vmem %s6685_s0, %s5902_s27 }
  0x55   : > { %p4686_p0 = scmp.ne.s32.totalorder %s6686_s12, 0 }
  0x56   : > { %s6687_s13 = sld [smem:[#allocation19_spill]] (!%p4686_p0)  ;;  %s6688_s14 = sld [smem:[#allocation29_spill]] (!%p4686_p0)  ;;  %vm1202_vm0 = vcmask (!%p4686_p0), 261120  }
  0x57   : > { %1198 = sbr.rel (%p4686_p0) target bundleno = 97 (0x61), region = 128 }
  0x58   : > { %s1185_s29 = scalar_lea.vmem %s6683_s15, %s5902_s27 }
  0x59   : > { %s6013_s10 = scalar_lea.vmem %s6684_s24, %s4919_s3 }
  0x5c   : > { %v1199_v0 = vld [vmem:[%s6687_s13] sm:$0xff] (!%p4686_p0) }
  0x5d   : > { %v1200_v1 = vld [vmem:[%s6688_s14] sm:$0xff] (!%p4686_p0) }
  0x5e   : > { %v1201_v2 = vadd.f32 %v1200_v1, %v1199_v0 }
  0x60   : > { %1203 = vst.msk [vmem:[#allocation2] sm:$0xff] %vm1202_vm0, %v1201_v2 }
  0x61 PF: > { %s6689_s15 = sld [smem:[#allocation21_spill]]  ;;  %s6690_s16 = sld [smem:[#allocation23_spill]]  ;;  %vm1208_vm1 = vcmask 261120   ;;  %v5684_v12 = vmov 0.0   ;;  %vm5685_vm2 = vmmov 0   ;;  %v1223_v17 = vlaneseq }
  0x62   : > { %5051 = vmatprep.subr.bf16.mxu0 %v5684_v12  ;;  %5059 = vmatprep.subr.bf16.mxu1 %v5684_v12  ;;  %s6691_s12 = sld [smem:[#allocation24_spill]]  ;;  %s6692_s2 = scalar_lea.vmem %s6586_s17, %s5986_s21  ;;  %vm1423_vm3 = vcmask 64512   ;;  %v4694_v45 = vld [vmem:[%s5939_s28] ss:$0 sm:$0xff]  ;;  %vm1492_vm4 = vcmask 1043456   ;;  %vm2895_vm6 = vcmask 130048  }
  0x63   : > { %5055 = vmatprep.mubr.msk.bf16.mxu0 %vm5685_vm2, %v5684_v12  ;;  %5063 = vmatprep.mubr.msk.bf16.mxu1 %vm5685_vm2, %v5684_v12  ;;  %v6046_v19 = vshrl.u32 %v1223_v17, 7  ;;  %v1207_v21 = vld [vmem:[%s6692_s2] sm:$0x3]  ;;  %s6693_s0 = sld [smem:[#allocation22_spill]]  ;;  %v6105_v58 = vand.u32 127, %v1223_v17  ;;  %s6694_s3 = sld [smem:[#allocation25_spill]] }
  0x64   : > { %s6695_s1 = sld [smem:[#allocation37_spill]]  ;;  %s6697_s23 = sld [smem:[#allocation20_spill]]  ;;  %vm4179_vm7 = vcmask 523264  }
  0x65   : > { %v6049_v20 = vsub.s32 0, %v6046_v19  ;;  %v6057_v22 = vsub.s32 1, %v6046_v19  ;;  %vm1474_vm5 = vcmp.le.s32.totalorder %v6105_v58, %v6046_v19  ;;  %s6703_s2 = scalar_lea.vmem %s6588_s19, %s5986_s21 }
  0x67   : > { %v6025_v3 = vld [vmem:[#allocation2] sm:$0xff]  ;;  %v5492_v13 = vld [vmem:[%s6689_s15 + $0x8] sm:$0xff]   ;;  %v1226_v23 = vrot.slane %v1207_v21, %v6049_v20  ;;  %v1231_v25 = vrot.slane %v1207_v21, %v6057_v22  ;;  %v5496_v47 = vld [vmem:[%s6689_s15 + $0x10] sm:$0xff]  }
  0x68   : > { %v1209_v4 = vsel %vm1208_vm1, %v6025_v3, 0.0  ;;  %v5490_v10 = vld [vmem:[%s6689_s15] sm:$0xff]   ;;  %v5493_v14 = vld [vmem:[%s6690_s16 + $0x8] sm:$0xff]   ;;  %v5497_v54 = vld [vmem:[%s6689_s15 + $0x18] sm:$0xff]  }
  0x69   : > { %1210 = vadd.xlane.f32.xlu0 %v1209_v4  ;;  %v5491_v11 = vld [vmem:[%s6690_s16] sm:$0xff]   ;;  %5052 = vmatpush3.bf16.msra.mxu0 %v5490_v10  ;;  %v5495_v31 = vld [vmem:[%s6691_s12 + $0x8] sm:$0xff]   ;;  %v5498_v56 = vld [vmem:[%s6691_s12 + $0x10] sm:$0xff]  }
  0x6a   : > { %5060 = vmatpush3.bf16.msra.mxu1 %v5491_v11  ;;  %5053 = vmatprep.subr.bf16.mxu0 %v5684_v12  ;;  %v5494_v29 = vld [vmem:[%s6691_s12] sm:$0xff]   ;;  %v5499_v57 = vld [vmem:[%s6691_s12 + $0x18] sm:$0xff]   ;;  %s6696_s13 = scalar_lea.vmem %s6695_s1, %s5902_s27 }
  0x6b   : > { %5061 = vmatprep.subr.bf16.mxu1 %v5684_v12  ;;  %v4687_v32 = vld [vmem:[%s6693_s0] ss:$0 sm:$0xff] }
  0x6d   : > { %5054 = vmatpush3.bf16.msra.mxu0 %v5492_v13 }
  0x6e   : > { %5062 = vmatpush3.bf16.msra.mxu1 %v5493_v14  ;;  %5067 = vmatprep.subr.bf16.mxu0 %v5684_v12 }
  0x6f   : > { %5075 = vmatprep.subr.bf16.mxu1 %v5684_v12 }
  0xf6   : > { %v1211_v5 = vpop.xlane.xlu0 %1210 }
  0xf7   : > { %v1213_v6 = vmul.f32 0.03125, %v1211_v5 }
  0xf9   : > { %v1214_v7 = vsub.f32 %v6025_v3, %v1213_v6  ;;  %v4721_v6 = vld [vmem:[%s5939_s28 + $0x1] ss:$0 sm:$0xff] }
  0xfb   : > { %v1215_v8 = vmul.f32 %v1214_v7, %v1214_v7 }
  0xfd   : > { %v1216_v9 = vsel %vm1208_vm1, %v1215_v8, 0.0 }
  0xfe   : > { %1217 = vadd.xlane.f32.xlu0 %v1216_v9 }
 0x18b   : > { %v1218_v15 = vpop.xlane.xlu0 %1217 }
 0x18c   : > { %v1219_v16 = vmul.f32 0.03125, %v1218_v15 }
 0x18e   : > { %v1220_v18 = vadd.f32 1e-05, %v1219_v16 }
 0x190   : > { %5544 = vrsqrt.f32 %v1220_v18 }
 0x19a   : > { %v5545_v24 = vpop.eup %5544 }
 0x19b   : > { %v1222_v26 = vmul.f32 %v5545_v24, %v1214_v7 }
 0x19d   : > { %v1227_v27 = vmul.f32 %v1226_v23, %v1222_v26  ;;  %v5500_v26 = vld [vmem:[%s6690_s16 + $0x10] sm:$0xff]  }
 0x19f   : > { %v1232_v28 = vadd.f32 %v1231_v25, %v1227_v27 }
 0x1a1   : > { %v6062_v30 = vpack.c.bf16 %v1232_v28, %v1232_v28  ;;  %v5501_v28 = vld [vmem:[%s6690_s16 + $0x18] sm:$0xff]  }
 0x1a3   : > { %5056 = vmatmul.mubr.msk.bf16.vlgmr.msra.gmra.mrb[0].mxu0 %vm1208_vm1, %v6062_v30  ;;  %5064 = vmatmul.mubr.msk.bf16.vlgmr.msra.gmra.mrb[0].mxu1 %vm1208_vm1, %v6062_v30 }
 0x1a4   : > { %5068 = vmatpush3.bf16.msra.mxu0 %v5494_v29  ;;  %5071 = vmatprep.mubr.msk.bf16.mxu0 %vm5685_vm2, %v5684_v12 }
 0x1a5   : > { %5069 = vmatprep.subr.bf16.mxu0 %v5684_v12  ;;  %5077 = vmatprep.mubr.msk.bf16.mxu1 %vm5685_vm2, %v5684_v12 }
 0x1a8   : > { %5070 = vmatpush3.bf16.msra.mxu0 %v5495_v31 }
 0x1a9   : > { %5081 = vmatprep.subr.bf16.mxu0 %v5684_v12 }
 0x1ab   : > { %5072 = vmatmul.mubr.msk.bf16.vlgmr.msra.gmra.mrb[4].mxu0 %vm1208_vm1, %v6062_v30 }
 0x1ac   : > { %5083 = vmatprep.mubr.msk.bf16.mxu0 %vm5685_vm2, %v5684_v12 }
 0x276   : > { %v1295_v33 = vpop.f32.mrb[0].mxu0  ;;  %v1352_v34 = vpop.f32.mrb[0].mxu1 }
 0x277   : > { %v1296_v35 = vadd.f32 %v4687_v32, %v1295_v33  ;;  %v1422_v36 = vpack.c.bf16 %v1352_v34, %v1352_v34  ;;  %v5057_v37 = vpop.f32.mrb[1].mxu0  ;;  %v5065_v38 = vpop.f32.mrb[1].mxu1  ;;  %v4705_v34 = vld [vmem:[%s6693_s0 + $0x1] ss:$0 sm:$0xff] }
 0x278   : > { %v1298_v39 = vpop.f32.mrb[2].mxu0  ;;  %v1355_v40 = vpop.f32.mrb[2].mxu1 }
 0x279   : > { %v1428_v41 = vsel %vm1423_vm3, %v1422_v36, 0  ;;  %v5058_v42 = vpop.f32.mrb[3].mxu0  ;;  %v5066_v43 = vpop.f32.mrb[3].mxu1  ;;  %v1301_v44 = vmul.f32 0.35355338, %v1296_v35 }
 0x27a   : > { %5076 = vmatpush3.bf16.xpose.msra.mxu1 %v1428_v41 }
 0x27b   : > { %5087 = vmatprep.subr.bf16.mxu1 %v5684_v12  ;;  %v1421_v48 = vpack.c.bf16 %v1301_v44, %v1301_v44 }
 0x27e   : > { %v1415_v46 = vpop.f32.mrb[4].mxu0 }
 0x27f   : > { %v1416_v49 = vadd.f32 %v4694_v45, %v1415_v46  ;;  %v5073_v50 = vpop.f32.mrb[5].mxu0 }
 0x280   : > { %v1418_v51 = vpop.f32.mrb[6].mxu0 }
 0x281   : > { %v1488_v52 = vpack.c.bf16 %v1416_v49, %v1416_v49  ;;  %v5074_v53 = vpop.f32.mrb[7].mxu0  ;;  %5078 = vmatmul.mubr.msk.bf16.vlgmr.msra.gmra.mrb[4].mxu1 %vm1423_vm3, %v1421_v48 }
 0x282   : > { %5088 = vmatpush3.bf16.msra.mxu1 %v5496_v47  ;;  %5091 = vmatprep.mubr.msk.bf16.mxu1 %vm5685_vm2, %v5684_v12 }
 0x283   : > { %v1494_v55 = vsel %vm1492_vm4, %v1488_v52, 0  ;;  %5089 = vmatprep.subr.bf16.mxu1 %v5684_v12 }
 0x284   : > { %5082 = vmatpush3.bf16.msra.mxu0 %v1494_v55  ;;  %v4727_v55 = vld [vmem:[%s6694_s3 + $0x4] sm:$0xf] }
 0x285   : > { %5095 = vmatprep.subr.bf16.mxu0 %v5684_v12 }
 0x286   : > { %5090 = vmatpush3.bf16.msra.mxu1 %v5497_v54 }
 0x287   : > { %5103 = vmatprep.subr.bf16.mxu1 %v5684_v12 }
 0x289   : > { %5092 = vmatmul.mubr.msk.bf16.vlgmr.msra.gmra.mrb[8].mxu1 %vm1208_vm1, %v6062_v30 }
 0x28a   : > { %5104 = vmatpush3.bf16.msra.mxu1 %v5498_v56  ;;  %5107 = vmatprep.mubr.msk.bf16.mxu1 %vm5685_vm2, %v5684_v12  ;;  %v1841_v56 = vsel %vm1492_vm4, %v4727_v55, 0 }
 0x28b   : > { %5105 = vmatprep.subr.bf16.mxu1 %v5684_v12 }
 0x28e   : > { %5106 = vmatpush3.bf16.msra.mxu1 %v5499_v57 }
 0x28f   : > { %5117 = vmatprep.subr.bf16.mxu1 %v5684_v12 }
 0x291   : > { %5108 = vmatmul.mubr.msk.bf16.vlgmr.msra.gmra.mrb[12].mxu1 %vm1208_vm1, %v6062_v30 }
 0x292   : > { %5119 = vmatprep.mubr.msk.bf16.mxu1 %vm5685_vm2, %v5684_v12 }
 0x354   : > { %v1464_v59 = vpop.f32.mrb[4].mxu1 }
 0x355   : > { %v1475_v60 = vsel %vm1474_vm5, %v1464_v59, -1e+30  ;;  %v5079_v61 = vpop.f32.mrb[5].mxu1 }
 0x356   : > { %v1467_v62 = vpop.f32.mrb[6].mxu1  ;;  %v1476_v63 = vsel %vm1423_vm3, %v1475_v60, -inf }
 0x357   : > { %1477 = vmax.xlane.f32.xlu1 %v1476_v63  ;;  %v5080_v0 = vpop.f32.mrb[7].mxu1 }
 0x358   : > { %v5502_v0 = vld [vmem:[%s6690_s16 + $0x20] sm:$0xff]  }
 0x35c   : > { %v1597_v1 = vpop.f32.mrb[8].mxu1 }
 0x35d   : > { %v5093_v2 = vpop.f32.mrb[9].mxu1  ;;  %v1598_v36 = vadd.f32 %v4705_v34, %v1597_v1 }
 0x35e   : > { %v1600_v4 = vpop.f32.mrb[10].mxu1  ;;  %v5503_v2 = vld [vmem:[%s6690_s16 + $0x28] sm:$0xff]  }
 0x35f   : > { %v5094_v5 = vpop.f32.mrb[11].mxu1  ;;  %v1603_v42 = vmul.f32 0.35355338, %v1598_v36 }
 0x360   : > { %v5504_v5 = vld [vmem:[%s6689_s15 + $0x20] sm:$0xff]  }
 0x361   : > { %v1726_v43 = vpack.c.bf16 %v1603_v42, %v1603_v42 }
 0x364   : > { %v1720_v7 = vpop.f32.mrb[12].mxu1 }
 0x365   : > { %v1721_v8 = vadd.f32 %v4721_v6, %v1720_v7  ;;  %v5109_v9 = vpop.f32.mrb[13].mxu1 }
 0x366   : > { %v1723_v10 = vpop.f32.mrb[14].mxu1 }
 0x367   : > { %v1787_v11 = vpack.c.bf16 %v1721_v8, %v1721_v8  ;;  %v5110_v13 = vpop.f32.mrb[15].mxu1  ;;  %v5505_v10 = vld [vmem:[%s6689_s15 + $0x28] sm:$0xff]  }
 0x368   : > { %v5506_v13 = vld [vmem:[%s6691_s12 + $0x20] sm:$0xff]  }
 0x369   : > { %v1792_v14 = vsel %vm1492_vm4, %v1787_v11, 0 }
 0x36a   : > { %5118 = vmatpush3.bf16.msra.mxu1 %v1792_v14 }
 0x36b   : > { %5129 = vmatprep.subr.bf16.mxu1 %v5684_v12 }
 0x3e4   : > { %v1478_v15 = vpop.xlane.xlu1 %1477 }
 0x3e5   : > { %v1479_v16 = vsub.f32 %v1475_v60, %v1478_v15  ;;  %v1537_v60 = vld [vmem:[%s6694_s3] sm:$0xf] }
 0x3e6   : > { %v1887_v63 = vsel %vm1492_vm4, %v1537_v60, 0 }
 0x3e7   : > { %v1480_v17 = vmul.f32 1.442695, %v1479_v16 }
 0x3e9   : > { %5546 = vpow2.f32 %v1480_v17  ;;  %v5507_v17 = vld [vmem:[%s6691_s12 + $0x28] sm:$0xff]  }
 0x3f3   : > { %v5547_v18 = vpop.eup %5546 }
 0x3f4   : > { %v1482_v21 = vsel %vm1423_vm3, %v5547_v18, 0.0 }
 0x3f5   : > { %1483 = vadd.xlane.f32.xlu1 %v1482_v21 }
 0x482   : > { %v1484_v23 = vpop.xlane.xlu1 %1483 }
 0x483   : > { %5548 = vrcp.f32 %v1484_v23 }
 0x48d   : > { %v5549_v24 = vpop.eup %5548 }
 0x48e   : > { %v1486_v25 = vmul.f32 %v5549_v24, %v5547_v18 }
 0x490   : > { %v1487_v27 = vpack.c.bf16 %v1486_v25, %v1486_v25 }
 0x492   : > { %5084 = vmatmul.mubr.msk.bf16.vlgmr.msra.gmra.mrb[8].mxu0 %vm1423_vm3, %v1487_v27 }
 0x493   : > { %5096 = vmatpush3.bf16.msra.mxu0 %v5500_v26  ;;  %5099 = vmatprep.mubr.msk.bf16.mxu0 %vm5685_vm2, %v5684_v12 }
 0x494   : > { %5097 = vmatprep.subr.bf16.mxu0 %v5684_v12 }
 0x497   : > { %5098 = vmatpush3.bf16.msra.mxu0 %v5501_v28 }
 0x498   : > { %5111 = vmatprep.subr.bf16.mxu0 %v5684_v12 }
 0x49a   : > { %5100 = vmatmul.mubr.msk.bf16.vlgmr.msra.gmra.mrb[12].mxu0 %vm1208_vm1, %v6062_v30 }
 0x49b   : > { %5113 = vmatprep.mubr.msk.bf16.mxu0 %vm5685_vm2, %v5684_v12 }
 0x565   : > { %v1530_v29 = vpop.f32.mrb[8].mxu0 }
 0x566   : > { %v5085_v31 = vpop.f32.mrb[9].mxu0  ;;  %v1536_v1 = vpack.c.bf16 %v1530_v29, %v1530_v29 }
 0x567   : > { %v1533_v32 = vpop.f32.mrb[10].mxu0 }
 0x568   : > { %v5086_v33 = vpop.f32.mrb[11].mxu0 }
 0x569   : > { %v4735_v33 = vld [vmem:[%s6693_s0 + $0x2] ss:$0 sm:$0xff] }
 0x56d   : > { %v1655_v35 = vpop.f32.mrb[12].mxu0 }
 0x56e   : > { %v1727_v37 = vpack.c.bf16 %v1655_v35, %v1655_v35  ;;  %v5101_v38 = vpop.f32.mrb[13].mxu0 }
 0x56f   : > { %v1658_v39 = vpop.f32.mrb[14].mxu0 }
 0x570   : > { %v1732_v40 = vsel %vm1423_vm3, %v1727_v37, 0  ;;  %v5102_v41 = vpop.f32.mrb[15].mxu0 }
 0x571   : > { %5112 = vmatpush3.bf16.xpose.msra.mxu0 %v1732_v40  ;;  %v4751_v41 = vld [vmem:[%s5939_s28 + $0x2] ss:$0 sm:$0xff] }
 0x572   : > { %5123 = vmatprep.subr.bf16.mxu0 %v5684_v12 }
 0x578   : > { %5114 = vmatmul.mubr.msk.bf16.vlgmr.msra.gmra.mrb[16].mxu0 %vm1423_vm3, %v1726_v43 }
 0x579   : > { %5125 = vmatprep.mubr.msk.bf16.mxu0 %vm5685_vm2, %v5684_v12  ;;  %5124 = vmatpush3.bf16.msra.mxu0 %v1841_v56 }
 0x57a   : > { %5135 = vmatprep.subr.bf16.mxu0 %v5684_v12 }
 0x64b   : > { %v1768_v44 = vpop.f32.mrb[16].mxu0 }
 0x64c   : > { %v1774_v45 = vsel %vm1474_vm5, %v1768_v44, -1e+30  ;;  %v5115_v46 = vpop.f32.mrb[17].mxu0 }
 0x64d   : > { %v1771_v47 = vpop.f32.mrb[18].mxu0  ;;  %v1775_v48 = vsel %vm1423_vm3, %v1774_v45, -inf }
 0x64e   : > { %1776 = vmax.xlane.f32.xlu0 %v1775_v48  ;;  %v5116_v49 = vpop.f32.mrb[19].mxu0 }
 0x6db   : > { %v1777_v50 = vpop.xlane.xlu0 %1776 }
 0x6dc   : > { %v1778_v51 = vsub.f32 %v1774_v45, %v1777_v50 }
 0x6de   : > { %v1779_v52 = vmul.f32 1.442695, %v1778_v51 }
 0x6e0   : > { %5550 = vpow2.f32 %v1779_v52 }
 0x6ea   : > { %v5551_v53 = vpop.eup %5550 }
 0x6eb   : > { %v1781_v54 = vsel %vm1423_vm3, %v5551_v53, 0.0 }
 0x6ec   : > { %1782 = vadd.xlane.f32.xlu1 %v1781_v54 }
 0x779   : > { %v1783_v57 = vpop.xlane.xlu1 %1782 }
 0x77a   : > { %5552 = vrcp.f32 %v1783_v57 }
 0x784   : > { %v5553_v59 = vpop.eup %5552 }
 0x785   : > { %v1785_v61 = vmul.f32 %v5553_v59, %v5551_v53 }
 0x787   : > { %v1786_v62 = vpack.c.bf16 %v1785_v61, %v1785_v61  ;;  %v4757_v61 = vld [vmem:[%s6694_s3 + $0x8] sm:$0xf] }
 0x789   : > { %5120 = vmatmul.mubr.msk.bf16.vlgmr.msra.gmra.mrb[16].mxu1 %vm1423_vm3, %v1786_v62  ;;  %v2232_v62 = vsel %vm1492_vm4, %v4757_v61, 0 }
 0x78a   : > { %5130 = vmatpush3.bf16.msra.mxu1 %v1887_v63  ;;  %5131 = vmatprep.mubr.msk.bf16.mxu1 %vm5685_vm2, %v5684_v12 }
 0x78b   : > { %5143 = vmatprep.subr.bf16.mxu1 %v5684_v12 }
 0x791   : > { %5132 = vmatmul.mubr.msk.bf16.vlgmr.msra.gmra.mrb[20].mxu1 %vm1423_vm3, %v1536_v1 }
 0x792   : > { %5144 = vmatpush3.bf16.msra.mxu1 %v5502_v0  ;;  %5147 = vmatprep.mubr.msk.bf16.mxu1 %vm5685_vm2, %v5684_v12 }
 0x793   : > { %5145 = vmatprep.subr.bf16.mxu1 %v5684_v12 }
 0x796   : > { %5146 = vmatpush3.bf16.msra.mxu1 %v5503_v2  ;;  %v5508_v2 = vld [vmem:[%s6689_s15 + $0x30] sm:$0xff]  }
 0x797   : > { %5159 = vmatprep.subr.bf16.mxu1 %v5684_v12 }
 0x799   : > { %5148 = vmatmul.mubr.msk.bf16.vlgmr.msra.gmra.mrb[24].mxu1 %vm1208_vm1, %v6062_v30 }
 0x79a   : > { %5161 = vmatprep.mubr.msk.bf16.mxu1 %vm5685_vm2, %v5684_v12 }
 0x85c   : > { %v1828_v4 = vpop.f32.mrb[16].mxu1 }
 0x85d   : > { %v1834_v6 = vpack.c.bf16 %v1828_v4, %v1828_v4  ;;  %v5121_v7 = vpop.f32.mrb[17].mxu1 }
 0x85e   : > { %v1831_v8 = vpop.f32.mrb[18].mxu1  ;;  %v5511_v7 = vld [vmem:[%s6691_s12 + $0x38] sm:$0xff]  }
 0x85f   : > { %v5122_v9 = vpop.f32.mrb[19].mxu1  ;;  %5126 = vmatmul.mubr.msk.bf16.vlgmr.msra.gmra.mrb[20].mxu0 %vm1423_vm3, %v1834_v6  ;;  %v5510_v6 = vld [vmem:[%s6691_s12 + $0x30] sm:$0xff]   ;;  %s6700_s12 = sld [smem:[#allocation27_spill]] }
 0x860   : > { %5136 = vmatpush3.bf16.msra.mxu0 %v5504_v5  ;;  %5139 = vmatprep.mubr.msk.bf16.mxu0 %vm5685_vm2, %v5684_v12  ;;  %v5509_v5 = vld [vmem:[%s6689_s15 + $0x38] sm:$0xff]   ;;  %v5512_v9 = vld [vmem:[%s6690_s16 + $0x30] sm:$0xff]   ;;  %s6698_s15 = scalar_lea.vmem %s6587_s18, %s5986_s21 }
 0x861   : > { %5137 = vmatprep.subr.bf16.mxu0 %v5684_v12 }
 0x864   : > { %v1923_v11 = vpop.f32.mrb[20].mxu1  ;;  %5138 = vmatpush3.bf16.msra.mxu0 %v5505_v10 }
 0x865   : > { %v5133_v14 = vpop.f32.mrb[21].mxu1  ;;  %5151 = vmatprep.subr.bf16.mxu0 %v5684_v12 }
 0x866   : > { %v1926_v15 = vpop.f32.mrb[22].mxu1 }
 0x867   : > { %v5134_v16 = vpop.f32.mrb[23].mxu1  ;;  %5140 = vmatmul.mubr.msk.bf16.vlgmr.msra.gmra.mrb[24].mxu0 %vm1208_vm1, %v6062_v30  ;;  %v5513_v15 = vld [vmem:[%s6690_s16 + $0x38] sm:$0xff]   ;;  %s6699_s16 = sld [smem:[#allocation26_spill]] }
 0x868   : > { %5152 = vmatpush3.bf16.msra.mxu0 %v5506_v13  ;;  %5155 = vmatprep.mubr.msk.bf16.mxu0 %vm5685_vm2, %v5684_v12 }
 0x869   : > { %5153 = vmatprep.subr.bf16.mxu0 %v5684_v12 }
 0x86c   : > { %v2046_v18 = vpop.f32.mrb[24].mxu1  ;;  %5154 = vmatpush3.bf16.msra.mxu0 %v5507_v17 }
 0x86d   : > { %v2118_v21 = vpack.c.bf16 %v2046_v18, %v2046_v18  ;;  %v5149_v23 = vpop.f32.mrb[25].mxu1  ;;  %5165 = vmatprep.subr.bf16.mxu0 %v5684_v12 }
 0x86e   : > { %v2049_v24 = vpop.f32.mrb[26].mxu1  ;;  %v4780_v23 = vld [vmem:[%s5939_s28 + $0x3] ss:$0 sm:$0xff]  ;;  %s6706_s28 = sld [smem:[#allocation9_spill]] }
 0x86f   : > { %v2123_v25 = vsel %vm1423_vm3, %v2118_v21, 0  ;;  %v5150_v26 = vpop.f32.mrb[27].mxu1  ;;  %5156 = vmatmul.mubr.msk.bf16.vlgmr.msra.gmra.mrb[28].mxu0 %vm1208_vm1, %v6062_v30 }
 0x870   : > { %5160 = vmatpush3.bf16.xpose.msra.mxu1 %v2123_v25  ;;  %5167 = vmatprep.mubr.msk.bf16.mxu0 %vm5685_vm2, %v5684_v12 }
 0x871   : > { %5171 = vmatprep.subr.bf16.mxu1 %v5684_v12 }
 0x874   : > { %p4901_p1 = scmp.ne.s32.totalorder %s6706_s28, 1 }
 0x875   : > { %s6707_s8 = sld [smem:[#allocation49_spill]] (!%p4901_p1)  ;;  %vm5687_vm8 = vmmov (!%p4901_p1), 0  }
 0x87b   : > { %s6708_s1 = smov (!%p4901_p1), %s6707_s8 }
 0x932   : > { %v1877_v27 = vpop.f32.mrb[20].mxu0 }
 0x933   : > { %v6180_v28 = vadd.f32 %v1923_v11, %v1877_v27  ;;  %v5127_v29 = vpop.f32.mrb[21].mxu0 }
 0x934   : > { %v1880_v31 = vpop.f32.mrb[22].mxu0 }
 0x935   : > { %v5128_v32 = vpop.f32.mrb[23].mxu0 }
 0x93a   : > { %v1988_v34 = vpop.f32.mrb[24].mxu0 }
 0x93b   : > { %v1989_v35 = vadd.f32 %v4735_v33, %v1988_v34  ;;  %v5141_v36 = vpop.f32.mrb[25].mxu0 }
 0x93c   : > { %v1991_v37 = vpop.f32.mrb[26].mxu0 }
 0x93d   : > { %v1994_v38 = vmul.f32 0.35355338, %v1989_v35  ;;  %v5142_v39 = vpop.f32.mrb[27].mxu0  ;;  %v4764_v37 = vld [vmem:[%s6693_s0 + $0x3] ss:$0 sm:$0xff] }
 0x93f   : > { %v2117_v40 = vpack.c.bf16 %v1994_v38, %v1994_v38 }
 0x941   : > { %5162 = vmatmul.mubr.msk.bf16.vlgmr.msra.gmra.mrb[28].mxu1 %vm1423_vm3, %v2117_v40 }
 0x942   : > { %v2111_v42 = vpop.f32.mrb[28].mxu0  ;;  %5173 = vmatprep.mubr.msk.bf16.mxu1 %vm5685_vm2, %v5684_v12  ;;  %5172 = vmatpush3.bf16.msra.mxu1 %v2232_v62 }
 0x943   : > { %v2112_v43 = vadd.f32 %v4751_v41, %v2111_v42  ;;  %v5157_v44 = vpop.f32.mrb[29].mxu0  ;;  %5185 = vmatprep.subr.bf16.mxu1 %v5684_v12 }
 0x944   : > { %v2114_v45 = vpop.f32.mrb[30].mxu0 }
 0x945   : > { %v2178_v46 = vpack.c.bf16 %v2112_v43, %v2112_v43  ;;  %v5158_v47 = vpop.f32.mrb[31].mxu0 }
 0x947   : > { %v2183_v48 = vsel %vm1492_vm4, %v2178_v46, 0 }
 0x948   : > { %5166 = vmatpush3.bf16.msra.mxu0 %v2183_v48 }
 0x949   : > { %5177 = vmatprep.subr.bf16.mxu0 %v5684_v12 }
 0xa14   : > { %v2159_v49 = vpop.f32.mrb[28].mxu1 }
 0xa15   : > { %v2165_v50 = vsel %vm1474_vm5, %v2159_v49, -1e+30  ;;  %v5163_v51 = vpop.f32.mrb[29].mxu1 }
 0xa16   : > { %v2162_v52 = vpop.f32.mrb[30].mxu1  ;;  %v2166_v53 = vsel %vm1423_vm3, %v2165_v50, -inf }
 0xa17   : > { %2167 = vmax.xlane.f32.xlu0 %v2166_v53  ;;  %v5164_v54 = vpop.f32.mrb[31].mxu1 }
 0xaa4   : > { %v2168_v55 = vpop.xlane.xlu0 %2167 }
 0xaa5   : > { %v2169_v56 = vsub.f32 %v2165_v50, %v2168_v55 }
 0xaa7   : > { %v2170_v57 = vmul.f32 1.442695, %v2169_v56 }
 0xaa9   : > { %5554 = vpow2.f32 %v2170_v57  ;;  %v4786_v57 = vld [vmem:[%s6694_s3 + $0xc] sm:$0xf] }
 0xab3   : > { %v5555_v59 = vpop.eup %5554 }
 0xab4   : > { %v2172_v60 = vsel %vm1423_vm3, %v5555_v59, 0.0 }
 0xab5   : > { %2173 = vadd.xlane.f32.xlu1 %v2172_v60 }
 0xb42   : > { %v2174_v63 = vpop.xlane.xlu1 %2173 }
 0xb43   : > { %5556 = vrcp.f32 %v2174_v63 }
 0xb4d   : > { %v5557_v0 = vpop.eup %5556 }
 0xb4e   : > { %v2176_v1 = vmul.f32 %v5557_v0, %v5555_v59  ;;  %v2578_v59 = vsel %vm1492_vm4, %v4786_v57, 0 }
 0xb50   : > { %v2177_v4 = vpack.c.bf16 %v2176_v1, %v2176_v1 }
 0xb52   : > { %5168 = vmatmul.mubr.msk.bf16.vlgmr.msra.gmra.mrb[32].mxu0 %vm1423_vm3, %v2177_v4  ;;  %v4788_v4 = vld [vmem:[%s6696_s13] ss:$0 sm:$0xff] }
 0xb53   : > { %5178 = vmatpush3.bf16.msra.mxu0 %v5508_v2  ;;  %5181 = vmatprep.mubr.msk.bf16.mxu0 %vm5685_vm2, %v5684_v12 }
 0xb54   : > { %5179 = vmatprep.subr.bf16.mxu0 %v5684_v12 }
 0xb57   : > { %5180 = vmatpush3.bf16.msra.mxu0 %v5509_v5 }
 0xb58   : > { %5193 = vmatprep.subr.bf16.mxu0 %v5684_v12 }
 0xb5a   : > { %5182 = vmatmul.mubr.msk.bf16.vlgmr.msra.gmra.mrb[36].mxu0 %vm1208_vm1, %v6062_v30 }
 0xb5b   : > { %5194 = vmatpush3.bf16.msra.mxu0 %v5510_v6  ;;  %5197 = vmatprep.mubr.msk.bf16.mxu0 %vm5685_vm2, %v5684_v12 }
 0xb5c   : > { %5195 = vmatprep.subr.bf16.mxu0 %v5684_v12 }
 0xb5f   : > { %5196 = vmatpush3.bf16.msra.mxu0 %v5511_v7 }
 0xb60   : > { %5207 = vmatprep.subr.bf16.mxu0 %v5684_v12 }
 0xb62   : > { %5198 = vmatmul.mubr.msk.bf16.vlgmr.msra.gmra.mrb[40].mxu0 %vm1208_vm1, %v6062_v30 }
 0xb63   : > { %5209 = vmatprep.mubr.msk.bf16.mxu0 %vm5685_vm2, %v5684_v12 }
 0xc25   : > { %v2219_v8 = vpop.f32.mrb[32].mxu0 }
 0xc26   : > { %v2225_v10 = vpack.c.bf16 %v2219_v8, %v2219_v8  ;;  %v5169_v11 = vpop.f32.mrb[33].mxu0 }
 0xc27   : > { %v2222_v13 = vpop.f32.mrb[34].mxu0 }
 0xc28   : > { %v5170_v14 = vpop.f32.mrb[35].mxu0  ;;  %5174 = vmatmul.mubr.msk.bf16.vlgmr.msra.gmra.mrb[32].mxu1 %vm1423_vm3, %v2225_v10 }
 0xc29   : > { %5186 = vmatpush3.bf16.msra.mxu1 %v5512_v9  ;;  %5189 = vmatprep.mubr.msk.bf16.mxu1 %vm5685_vm2, %v5684_v12 }
 0xc2a   : > { %5187 = vmatprep.subr.bf16.mxu1 %v5684_v12 }
 0xc2d   : > { %v2334_v16 = vpop.f32.mrb[36].mxu0  ;;  %5188 = vmatpush3.bf16.msra.mxu1 %v5513_v15 }
 0xc2e   : > { %v5183_v17 = vpop.f32.mrb[37].mxu0  ;;  %5201 = vmatprep.subr.bf16.mxu1 %v5684_v12  ;;  %v2335_v39 = vadd.f32 %v4764_v37, %v2334_v16 }
 0xc2f   : > { %v2337_v18 = vpop.f32.mrb[38].mxu0 }
 0xc30   : > { %v5184_v21 = vpop.f32.mrb[39].mxu0  ;;  %5190 = vmatmul.mubr.msk.bf16.vlgmr.msra.gmra.mrb[36].mxu1 %vm1208_vm1, %v6062_v30  ;;  %v2340_v45 = vmul.f32 0.35355338, %v2335_v39 }
 0xc31   : > { %5203 = vmatprep.mubr.msk.bf16.mxu1 %vm5685_vm2, %v5684_v12  ;;  %v5514_v21 = vld [vmem:[%s5964_s6] sm:$0xff]  }
 0xc32   : > { %v2463_v46 = vpack.c.bf16 %v2340_v45, %v2340_v45 }
 0xc35   : > { %v2457_v24 = vpop.f32.mrb[40].mxu0 }
 0xc36   : > { %v2458_v25 = vadd.f32 %v4780_v23, %v2457_v24  ;;  %v5199_v26 = vpop.f32.mrb[41].mxu0  ;;  %v1205_v23 = vld [vmem:[%s6697_s23] sm:$0xff]  ;;  %v1206_v24 = vld [vmem:[%s6697_s23 + $0x8] sm:$0xff] }
 0xc37   : > { %v2460_v27 = vpop.f32.mrb[42].mxu0  ;;  %v5516_v26 = vld [vmem:[%s5954_s30] sm:$0xff]  }
 0xc38   : > { %v2524_v29 = vpack.c.bf16 %v2458_v25, %v2458_v25  ;;  %v5200_v31 = vpop.f32.mrb[43].mxu0  ;;  %v6268_v25 = vpack.c.bf16 %v1206_v24, %v1205_v23  ;;  %v5517_v27 = vld [vmem:[%s5954_s30 + $0x8] sm:$0xff]   ;;  %v5523_v24 = vld [vmem:[%s5964_s6 + $0x18] sm:$0xff]  }
 0xc3a   : > { %v2529_v32 = vsel %vm1492_vm4, %v2524_v29, 0 }
 0xc3b   : > { %5208 = vmatpush3.bf16.msra.mxu0 %v2529_v32 }
 0xc3c   : > { %5219 = vmatprep.subr.bf16.mxu0 %v5684_v12 }
 0xcfb   : > { %v2268_v33 = vpop.f32.mrb[32].mxu1 }
 0xcfc   : > { %v2274_v34 = vadd.f32 %v2268_v33, %v6180_v28  ;;  %v5175_v30 = vpop.f32.mrb[33].mxu1  ;;  %v2629_v33 = vld [vmem:[%s6698_s15] sm:$0x3]  ;;  %s6709_s15 = sld [smem:[#allocation48_spill]] (!%p4901_p1) }
 0xcfd   : > { %v2271_v35 = vpop.f32.mrb[34].mxu1 }
 0xcfe   : > { %v5176_v36 = vpop.f32.mrb[35].mxu1 }
 0xcff   : > { %v2651_v36 = vrot.slane %v2629_v33, %v6057_v22 }
 0xd03   : > { %v2392_v38 = vpop.f32.mrb[36].mxu1 }
 0xd04   : > { %v2464_v40 = vpack.c.bf16 %v2392_v38, %v2392_v38  ;;  %v5191_v41 = vpop.f32.mrb[37].mxu1 }
 0xd05   : > { %v2395_v42 = vpop.f32.mrb[38].mxu1 }
 0xd06   : > { %v2469_v43 = vsel %vm1423_vm3, %v2464_v40, 0  ;;  %v5192_v44 = vpop.f32.mrb[39].mxu1 }
 0xd07   : > { %5202 = vmatpush3.bf16.xpose.msra.mxu1 %v2469_v43 }
 0xd08   : > { %5213 = vmatprep.subr.bf16.mxu1 %v5684_v12 }
 0xd0e   : > { %5204 = vmatmul.mubr.msk.bf16.vlgmr.msra.gmra.mrb[40].mxu1 %vm1423_vm3, %v2463_v46  ;;  %v4789_v46 = vld [vmem:[%s5959_s25] ss:$0 sm:$0xff] }
 0xd0f   : > { %5215 = vmatprep.mubr.msk.bf16.mxu1 %vm5685_vm2, %v5684_v12  ;;  %5214 = vmatpush3.bf16.msra.mxu1 %v2578_v59 }
 0xd10   : > { %5227 = vmatprep.subr.bf16.mxu1 %v5684_v12 }
 0xde1   : > { %v2505_v28 = vpop.f32.mrb[40].mxu1 }
 0xde2   : > { %v2511_v47 = vsel %vm1474_vm5, %v2505_v28, -1e+30  ;;  %v5205_v48 = vpop.f32.mrb[41].mxu1 }
 0xde3   : > { %v2508_v49 = vpop.f32.mrb[42].mxu1  ;;  %v2512_v50 = vsel %vm1423_vm3, %v2511_v47, -inf }
 0xde4   : > { %2513 = vmax.xlane.f32.xlu0 %v2512_v50  ;;  %v5206_v51 = vpop.f32.mrb[43].mxu1 }
 0xe71   : > { %v2514_v52 = vpop.xlane.xlu0 %2513 }
 0xe72   : > { %v2515_v53 = vsub.f32 %v2511_v47, %v2514_v52  ;;  %v5518_v52 = vld [vmem:[%s5954_s30 + $0x10] sm:$0xff]  }
 0xe74   : > { %v2516_v54 = vmul.f32 1.442695, %v2515_v53 }
 0xe76   : > { %5558 = vpow2.f32 %v2516_v54  ;;  %v5519_v54 = vld [vmem:[%s5954_s30 + $0x18] sm:$0xff]  }
 0xe80   : > { %v5559_v55 = vpop.eup %5558 }
 0xe81   : > { %v2518_v56 = vsel %vm1423_vm3, %v5559_v55, 0.0 }
 0xe82   : > { %2519 = vadd.xlane.f32.xlu1 %v2518_v56  ;;  %v5521_v56 = vld [vmem:[%s5969_s5 + $0x8] sm:$0xff]  }
 0xf0f   : > { %v2520_v19 = vpop.xlane.xlu1 %2519 }
 0xf10   : > { %5560 = vrcp.f32 %v2520_v19 }
 0xf1a   : > { %v5561_v58 = vpop.eup %5560 }
 0xf1b   : > { %v2522_v60 = vmul.f32 %v5561_v58, %v5559_v55  ;;  %v5520_v55 = vld [vmem:[%s5969_s5] sm:$0xff]  }
 0xf1d   : > { %v2523_v61 = vpack.c.bf16 %v2522_v60, %v2522_v60 }
 0xf1f   : > { %5210 = vmatmul.mubr.msk.bf16.vlgmr.msra.gmra.mrb[44].mxu0 %vm1423_vm3, %v2523_v61 }
 0xf20   : > { %5223 = vmatprep.mubr.msk.bf16.mxu0 %vm5685_vm2, %v5684_v12  ;;  %5220 = vmatpush3.bf16.msra.mxu0 %v5516_v26 }
 0xf21   : > { %5221 = vmatprep.subr.bf16.mxu0 %v5684_v12 }
 0xf24   : > { %5222 = vmatpush3.bf16.msra.mxu0 %v5517_v27 }
 0xf25   : > { %5235 = vmatprep.subr.bf16.mxu0 %v5684_v12 }
 0xff2   : > { %v2565_v62 = vpop.f32.mrb[44].mxu0 }
 0xff3   : > { %v2571_v63 = vpack.c.bf16 %v2565_v62, %v2565_v62  ;;  %v5211_v0 = vpop.f32.mrb[45].mxu0 }
 0xff4   : > { %v2568_v1 = vpop.f32.mrb[46].mxu0 }
 0xff5   : > { %v5212_v2 = vpop.f32.mrb[47].mxu0  ;;  %5216 = vmatmul.mubr.msk.bf16.vlgmr.msra.gmra.mrb[44].mxu1 %vm1423_vm3, %v2571_v63 }
 0xff6   : > { %5231 = vmatprep.mubr.msk.bf16.mxu1 %vm5685_vm2, %v5684_v12  ;;  %5228 = vmatpush3.bf16.msra.mxu1 %v5514_v21 }
 0xff7   : > { %5229 = vmatprep.subr.bf16.mxu1 %v5684_v12 }
0x10c8   : > { %v2614_v5 = vpop.f32.mrb[44].mxu1 }
0x10c9   : > { %v2620_v6 = vadd.f32 %v2614_v5, %v2274_v34  ;;  %v5217_v7 = vpop.f32.mrb[45].mxu1  ;;  %v2646_v34 = vrot.slane %v2629_v33, %v6049_v20 }
0x10ca   : > { %v2617_v8 = vpop.f32.mrb[46].mxu1 }
0x10cb   : > { %v2627_v9 = vadd.f32 %v4788_v4, %v2620_v6  ;;  %v5218_v10 = vpop.f32.mrb[47].mxu1 }
0x10cd   : > { %v6257_v11 = vadd.f32 %v2627_v9, %v6025_v3  ;;  %v5515_v3 = vld [vmem:[%s5964_s6 + $0x8] sm:$0xff]   ;;  %v4796_v9 = vld [vmem:[%s6699_s16] ss:$0 sm:$0xff] }
0x10ce   : > { %5230 = vmatpush3.bf16.msra.mxu1 %v5515_v3  ;;  %v5522_v3 = vld [vmem:[%s5964_s6 + $0x10] sm:$0xff]  }
0x10cf   : > { %v2630_v13 = vsel %vm1208_vm1, %v6257_v11, 0.0  ;;  %5243 = vmatprep.subr.bf16.mxu1 %v5684_v12 }
0x10d0   : > { %2631 = vadd.xlane.f32.xlu0 %v2630_v13 }
0x10d1   : > { %5232 = vmatmul.mubr.msk.bf16.vlgmr.msra.gmra.mrb[48].mxu1 %vm1208_vm1, %v6268_v25 }
0x10d2   : > { %5245 = vmatprep.mubr.msk.bf16.mxu1 %vm5685_vm2, %v5684_v12 }
0x115d   : > { %v2632_v14 = vpop.xlane.xlu0 %2631 }
0x115e   : > { %v2633_v15 = vmul.f32 0.03125, %v2632_v14 }
0x1160   : > { %v2634_v16 = vsub.f32 %v6257_v11, %v2633_v15 }
0x1162   : > { %v2635_v17 = vmul.f32 %v2634_v16, %v2634_v16 }
0x1164   : > { %v2636_v18 = vsel %vm1208_vm1, %v2635_v17, 0.0 }
0x1165   : > { %2637 = vadd.xlane.f32.xlu1 %v2636_v18 }
0x11a4   : > { %v2776_v40 = vpop.f32.mrb[48].mxu1 }
0x11a5   : > { %v5233_v41 = vpop.f32.mrb[49].mxu1 }
0x11a6   : > { %v2779_v42 = vpop.f32.mrb[50].mxu1 }
0x11a7   : > { %v2848_v43 = vpack.c.bf16 %v2779_v42, %v2776_v40  ;;  %v5234_v44 = vpop.f32.mrb[51].mxu1  ;;  %v5524_v42 = vld [vmem:[%s5969_s5 + $0x10] sm:$0xff]  }
0x11a9   : > { %v2853_v45 = vsel %vm1423_vm3, %v2848_v43, 0  ;;  %v5525_v43 = vld [vmem:[%s5969_s5 + $0x18] sm:$0xff]  }
0x11aa   : > { %5244 = vmatpush3.bf16.xpose.msra.mxu1 %v2853_v45 }
0x11ab   : > { %5255 = vmatprep.subr.bf16.mxu1 %v5684_v12 }
0x11f2   : > { %v2638_v29 = vpop.xlane.xlu1 %2637 }
0x11f3   : > { %v2639_v31 = vmul.f32 0.03125, %v2638_v29 }
0x11f5   : > { %v2640_v32 = vadd.f32 1e-05, %v2639_v31 }
0x11f7   : > { %5562 = vrsqrt.f32 %v2640_v32  ;;  %v4807_v32 = vld [vmem:[%s5959_s25 + $0x1] ss:$0 sm:$0xff] }
0x1201   : > { %v5563_v30 = vpop.eup %5562 }
0x1202   : > { %v2642_v35 = vmul.f32 %v5563_v30, %v2634_v16 }
0x1204   : > { %v2647_v37 = vmul.f32 %v2646_v34, %v2642_v35 }
0x1206   : > { %v2652_v38 = vadd.f32 %v2651_v36, %v2647_v37 }
0x1208   : > { %v6286_v39 = vpack.c.bf16 %v2652_v38, %v2652_v38 }
0x120a   : > { %5224 = vmatmul.mubr.msk.bf16.vlgmr.msra.gmra.mrb[48].mxu0 %vm1208_vm1, %v6286_v39 }
0x120b   : > { %5239 = vmatprep.mubr.msk.bf16.mxu0 %vm5685_vm2, %v5684_v12  ;;  %5236 = vmatpush3.bf16.msra.mxu0 %v5520_v55  ;;  %v4823_v55 = vld [vmem:[%s6699_s16 + $0x1] ss:$0 sm:$0xff] }
0x120c   : > { %5237 = vmatprep.subr.bf16.mxu0 %v5684_v12 }
0x120f   : > { %5238 = vmatpush3.bf16.msra.mxu0 %v5521_v56 }
0x1210   : > { %5249 = vmatprep.subr.bf16.mxu0 %v5684_v12 }
0x1212   : > { %5240 = vmatmul.mubr.msk.bf16.vlgmr.msra.gmra.mrb[52].mxu0 %vm1208_vm1, %v6268_v25 }
0x1213   : > { %5251 = vmatprep.mubr.msk.bf16.mxu0 %vm5685_vm2, %v5684_v12 }
0x12dd   : > { %v2716_v28 = vpop.f32.mrb[48].mxu0 }
0x12de   : > { %v2717_v47 = vadd.f32 %v4789_v46, %v2716_v28  ;;  %v5225_v48 = vpop.f32.mrb[49].mxu0 }
0x12df   : > { %v2719_v49 = vpop.f32.mrb[50].mxu0 }
0x12e0   : > { %v2722_v50 = vmul.f32 0.35355338, %v2717_v47  ;;  %v5226_v51 = vpop.f32.mrb[51].mxu0 }
0x12e2   : > { %v2847_v53 = vpack.c.bf16 %v2722_v50, %v2722_v50 }
0x12e4   : > { %5246 = vmatmul.mubr.msk.bf16.vlgmr.msra.gmra.mrb[52].mxu1 %vm1423_vm3, %v2847_v53 }
0x12e5   : > { %5256 = vmatpush3.bf16.msra.mxu1 %v5518_v52  ;;  %5259 = vmatprep.mubr.msk.bf16.mxu1 %vm5685_vm2, %v5684_v12  ;;  %v2840_v1 = vpop.f32.mrb[52].mxu0 }
0x12e6   : > { %5257 = vmatprep.subr.bf16.mxu1 %v5684_v12  ;;  %v5241_v2 = vpop.f32.mrb[53].mxu0  ;;  %v2841_v10 = vadd.f32 %v4796_v9, %v2840_v1 }
0x12e7   : > { %v2843_v13 = vpop.f32.mrb[54].mxu0 }
0x12e8   : > { %v5242_v14 = vpop.f32.mrb[55].mxu0  ;;  %v2844_v15 = vadd.f32 %v4796_v9, %v2843_v13  ;;  %v5528_v9 = vld [vmem:[%s5954_s30 + $0x20] sm:$0xff]  }
0x12e9   : > { %5258 = vmatpush3.bf16.msra.mxu1 %v5519_v54 }
0x12ea   : > { %5271 = vmatprep.subr.bf16.mxu1 %v5684_v12  ;;  %v2908_v16 = vpack.c.bf16 %v2844_v15, %v2841_v10 }
0x12ec   : > { %5260 = vmatmul.mubr.msk.bf16.vlgmr.msra.gmra.mrb[56].mxu1 %vm1208_vm1, %v6286_v39  ;;  %5250 = vmatpush3.bf16.msra.mxu0 %v2908_v16  ;;  %v5529_v16 = vld [vmem:[%s5954_s30 + $0x28] sm:$0xff]  }
0x12ed   : > { %5275 = vmatprep.mubr.msk.bf16.mxu1 %vm5685_vm2, %v5684_v12  ;;  %5263 = vmatprep.subr.bf16.mxu0 %v5684_v12 }
0x12ee   : > { %5272 = vmatpush3.bf16.msra.mxu1 %v5524_v42 }
0x12ef   : > { %5273 = vmatprep.subr.bf16.mxu1 %v5684_v12 }
0x12f2   : > { %5274 = vmatpush3.bf16.msra.mxu1 %v5525_v43 }
0x12f3   : > { %5285 = vmatprep.subr.bf16.mxu1 %v5684_v12 }
0x12f5   : > { %5276 = vmatmul.mubr.msk.bf16.vlgmr.msra.gmra.mrb[60].mxu1 %vm1208_vm1, %v6268_v25 }
0x12f6   : > { %5287 = vmatprep.mubr.msk.bf16.mxu1 %vm5685_vm2, %v5684_v12 }
0x13b7   : > { %v2889_v57 = vpop.f32.mrb[52].mxu1 }
0x13b8   : > { %v5247_v59 = vpop.f32.mrb[53].mxu1  ;;  %v2896_v19 = vsel %vm2895_vm6, %v2889_v57, -inf }
0x13b9   : > { %2897 = vmax.xlane.f32.xlu0 %v2896_v19  ;;  %v2892_v58 = vpop.f32.mrb[54].mxu1 }
0x13ba   : > { %v5248_v60 = vpop.f32.mrb[55].mxu1 }
0x13bb   : > { %v4829_v60 = vld [vmem:[%s6700_s12 + $0x4] sm:$0xf] }
0x13bf   : > { %v3013_v61 = vpop.f32.mrb[56].mxu1 }
0x13c0   : > { %v5261_v62 = vpop.f32.mrb[57].mxu1  ;;  %v3014_v35 = vadd.f32 %v4807_v32, %v3013_v61  ;;  %v3255_v61 = vsel %vm1492_vm4, %v4829_v60, 0 }
0x13c1   : > { %v3016_v63 = vpop.f32.mrb[58].mxu1 }
0x13c2   : > { %v5262_v0 = vpop.f32.mrb[59].mxu1  ;;  %v3019_v40 = vmul.f32 0.35355338, %v3014_v35 }
0x13c3   : > { %v2953_v0 = vld [vmem:[%s6700_s12] sm:$0xf] }
0x13c4   : > { %v3144_v41 = vpack.c.bf16 %v3019_v40, %v3019_v40 }
0x13c8   : > { %v3137_v48 = vpop.f32.mrb[60].mxu1 }
0x13c9   : > { %v5277_v49 = vpop.f32.mrb[61].mxu1  ;;  %v3138_v56 = vadd.f32 %v4823_v55, %v3137_v48 }
0x1446   : > { %v2898_v4 = vpop.xlane.xlu0 %2897 }
0x1447   : > { %v2899_v5 = vsub.f32 %v2889_v57, %v2898_v4  ;;  %v3140_v57 = vpop.f32.mrb[62].mxu1  ;;  %v3301_v4 = vsel %vm1492_vm4, %v2953_v0, 0 }
0x1448   : > { %v5278_v59 = vpop.f32.mrb[63].mxu1  ;;  %v3141_v19 = vadd.f32 %v4823_v55, %v3140_v57 }
0x1449   : > { %v2900_v6 = vmul.f32 1.442695, %v2899_v5  ;;  %v5526_v5 = vld [vmem:[%s5964_s6 + $0x20] sm:$0xff]  }
0x144a   : > { %v3204_v58 = vpack.c.bf16 %v3141_v19, %v3138_v56  ;;  %v4853_v59 = vld [vmem:[%s6699_s16 + $0x2] ss:$0 sm:$0xff] }
0x144b   : > { %5564 = vpow2.f32 %v2900_v6 }
0x144c   : > { %5286 = vmatpush3.bf16.msra.mxu1 %v3204_v58 }
0x144d   : > { %5297 = vmatprep.subr.bf16.mxu1 %v5684_v12 }
0x1455   : > { %v5565_v7 = vpop.eup %5564 }
0x1456   : > { %v2902_v8 = vsel %vm2895_vm6, %v5565_v7, 0.0 }
0x1457   : > { %2903 = vadd.xlane.f32.xlu1 %v2902_v8 }
0x14e4   : > { %v2904_v17 = vpop.xlane.xlu1 %2903 }
0x14e5   : > { %5566 = vrcp.f32 %v2904_v17 }
0x14ef   : > { %v5567_v18 = vpop.eup %5566 }
0x14f0   : > { %v2906_v21 = vmul.f32 %v5567_v18, %v5565_v7  ;;  %v5527_v7 = vld [vmem:[%s5964_s6 + $0x28] sm:$0xff]  }
0x14f2   : > { %v2907_v23 = vpack.c.bf16 %v2906_v21, %v2906_v21 }
0x14f4   : > { %5252 = vmatmul.mubr.msk.bf16.vlgmr.msra.gmra.mrb[56].mxu0 %vm2895_vm6, %v2907_v23 }
0x14f5   : > { %5264 = vmatpush3.bf16.msra.mxu0 %v5522_v3  ;;  %5267 = vmatprep.mubr.msk.bf16.mxu0 %vm5685_vm2, %v5684_v12 }
0x14f6   : > { %5265 = vmatprep.subr.bf16.mxu0 %v5684_v12 }
0x14f9   : > { %5266 = vmatpush3.bf16.msra.mxu0 %v5523_v24 }
0x14fa   : > { %5279 = vmatprep.subr.bf16.mxu0 %v5684_v12 }
0x14fc   : > { %5268 = vmatmul.mubr.msk.bf16.vlgmr.msra.gmra.mrb[60].mxu0 %vm1208_vm1, %v6268_v25 }
0x14fd   : > { %5281 = vmatprep.mubr.msk.bf16.mxu0 %vm5685_vm2, %v5684_v12 }
0x15c7   : > { %v6329_v26 = vpop.f32.mrb[56].mxu0 }
0x15c8   : > { %v5253_v27 = vpop.f32.mrb[57].mxu0  ;;  %v2952_v6 = vpack.c.bf16 %v6329_v26, %v6329_v26 }
0x15c9   : > { %v2949_v29 = vpop.f32.mrb[58].mxu0 }
0x15ca   : > { %v5254_v31 = vpop.f32.mrb[59].mxu0 }
0x15cf   : > { %v3071_v33 = vpop.f32.mrb[60].mxu0 }
0x15d0   : > { %v5269_v34 = vpop.f32.mrb[61].mxu0 }
0x15d1   : > { %v3074_v30 = vpop.f32.mrb[62].mxu0 }
0x15d2   : > { %v3145_v36 = vpack.c.bf16 %v3074_v30, %v3071_v33  ;;  %v5270_v37 = vpop.f32.mrb[63].mxu0 }
0x15d4   : > { %v3150_v38 = vsel %vm1423_vm3, %v3145_v36, 0  ;;  %v4837_v36 = vld [vmem:[%s5959_s25 + $0x2] ss:$0 sm:$0xff] }
0x15d5   : > { %5280 = vmatpush3.bf16.xpose.msra.mxu0 %v3150_v38 }
0x15d6   : > { %5291 = vmatprep.subr.bf16.mxu0 %v5684_v12 }
0x15dc   : > { %5282 = vmatmul.mubr.msk.bf16.vlgmr.msra.gmra.mrb[64].mxu0 %vm1423_vm3, %v3144_v41 }
0x15dd   : > { %5293 = vmatprep.mubr.msk.bf16.mxu0 %vm5685_vm2, %v5684_v12  ;;  %5292 = vmatpush3.bf16.msra.mxu0 %v3255_v61 }
0x15de   : > { %5303 = vmatprep.subr.bf16.mxu0 %v5684_v12 }
0x16af   : > { %v3186_v44 = vpop.f32.mrb[64].mxu0 }
0x16b0   : > { %v5283_v45 = vpop.f32.mrb[65].mxu0  ;;  %v3192_v46 = vsel %vm2895_vm6, %v3186_v44, -inf }
0x16b1   : > { %3193 = vmax.xlane.f32.xlu0 %v3192_v46  ;;  %v3189_v28 = vpop.f32.mrb[66].mxu0  ;;  %v5530_v45 = vld [vmem:[%s5969_s5 + $0x20] sm:$0xff]   ;;  %v5531_v46 = vld [vmem:[%s5969_s5 + $0x28] sm:$0xff]  }
0x16b2   : > { %v5284_v47 = vpop.f32.mrb[67].mxu0 }
0x173e   : > { %v3194_v50 = vpop.xlane.xlu0 %3193 }
0x173f   : > { %v3195_v51 = vsub.f32 %v3186_v44, %v3194_v50 }
0x1741   : > { %v3196_v52 = vmul.f32 1.442695, %v3195_v51 }
0x1743   : > { %5568 = vpow2.f32 %v3196_v52 }
0x174d   : > { %v5569_v53 = vpop.eup %5568 }
0x174e   : > { %v3198_v54 = vsel %vm2895_vm6, %v5569_v53, 0.0 }
0x174f   : > { %3199 = vadd.xlane.f32.xlu1 %v3198_v54 }
0x17dc   : > { %v3200_v62 = vpop.xlane.xlu1 %3199 }
0x17dd   : > { %5570 = vrcp.f32 %v3200_v62 }
0x17e7   : > { %v5571_v63 = vpop.eup %5570 }
0x17e8   : > { %v3202_v1 = vmul.f32 %v5571_v63, %v5569_v53  ;;  %v4859_v63 = vld [vmem:[%s6700_s12 + $0x8] sm:$0xf] }
0x17e9   : > { %v3644_v0 = vsel %vm1492_vm4, %v4859_v63, 0 }
0x17ea   : > { %v3203_v2 = vpack.c.bf16 %v3202_v1, %v3202_v1 }
0x17ec   : > { %5288 = vmatmul.mubr.msk.bf16.vlgmr.msra.gmra.mrb[64].mxu1 %vm2895_vm6, %v3203_v2 }
0x17ed   : > { %5298 = vmatpush3.bf16.msra.mxu1 %v3301_v4  ;;  %5299 = vmatprep.mubr.msk.bf16.mxu1 %vm5685_vm2, %v5684_v12 }
0x17ee   : > { %5311 = vmatprep.subr.bf16.mxu1 %v5684_v12 }
0x17f4   : > { %5300 = vmatmul.mubr.msk.bf16.vlgmr.msra.gmra.mrb[68].mxu1 %vm1423_vm3, %v2952_v6 }
0x17f5   : > { %5312 = vmatpush3.bf16.msra.mxu1 %v5526_v5  ;;  %5315 = vmatprep.mubr.msk.bf16.mxu1 %vm5685_vm2, %v5684_v12  ;;  %v5532_v5 = vld [vmem:[%s5954_s30 + $0x30] sm:$0xff]  }
0x17f6   : > { %5313 = vmatprep.subr.bf16.mxu1 %v5684_v12 }
0x17f9   : > { %5314 = vmatpush3.bf16.msra.mxu1 %v5527_v7  ;;  %v5533_v7 = vld [vmem:[%s5954_s30 + $0x38] sm:$0xff]  }
0x17fa   : > { %5327 = vmatprep.subr.bf16.mxu1 %v5684_v12 }
0x17fc   : > { %5316 = vmatmul.mubr.msk.bf16.vlgmr.msra.gmra.mrb[72].mxu1 %vm1208_vm1, %v6268_v25 }
0x17fd   : > { %5329 = vmatprep.mubr.msk.bf16.mxu1 %vm5685_vm2, %v5684_v12 }
0x18bf   : > { %v3242_v8 = vpop.f32.mrb[64].mxu1 }
0x18c0   : > { %v3248_v10 = vpack.c.bf16 %v3242_v8, %v3242_v8  ;;  %v5289_v13 = vpop.f32.mrb[65].mxu1 }
0x18c1   : > { %v3245_v14 = vpop.f32.mrb[66].mxu1 }
0x18c2   : > { %v5290_v15 = vpop.f32.mrb[67].mxu1  ;;  %5294 = vmatmul.mubr.msk.bf16.vlgmr.msra.gmra.mrb[68].mxu0 %vm1423_vm3, %v3248_v10 }
0x18c3   : > { %5304 = vmatpush3.bf16.msra.mxu0 %v5528_v9  ;;  %5307 = vmatprep.mubr.msk.bf16.mxu0 %vm5685_vm2, %v5684_v12  ;;  %v5534_v9 = vld [vmem:[%s5964_s6 + $0x30] sm:$0xff]  }
0x18c4   : > { %5305 = vmatprep.subr.bf16.mxu0 %v5684_v12 }
0x18c7   : > { %v3337_v17 = vpop.f32.mrb[68].mxu1  ;;  %5306 = vmatpush3.bf16.msra.mxu0 %v5529_v16  ;;  %v5535_v16 = vld [vmem:[%s5964_s6 + $0x38] sm:$0xff]   ;;  %s6701_s6 = sld [smem:[#allocation44_spill]] }
0x18c8   : > { %v5301_v18 = vpop.f32.mrb[69].mxu1  ;;  %5319 = vmatprep.subr.bf16.mxu0 %v5684_v12 }
0x18c9   : > { %v3340_v21 = vpop.f32.mrb[70].mxu1 }
0x18ca   : > { %v5302_v3 = vpop.f32.mrb[71].mxu1  ;;  %5308 = vmatmul.mubr.msk.bf16.vlgmr.msra.gmra.mrb[72].mxu0 %vm1208_vm1, %v6286_v39 }
0x18cb   : > { %5323 = vmatprep.mubr.msk.bf16.mxu0 %vm5685_vm2, %v5684_v12  ;;  %5320 = vmatpush3.bf16.msra.mxu0 %v5530_v45 }
0x18cc   : > { %5321 = vmatprep.subr.bf16.mxu0 %v5684_v12 }
0x18cf   : > { %v3460_v23 = vpop.f32.mrb[72].mxu1  ;;  %5322 = vmatpush3.bf16.msra.mxu0 %v5531_v46 }
0x18d0   : > { %v5317_v24 = vpop.f32.mrb[73].mxu1  ;;  %5333 = vmatprep.subr.bf16.mxu0 %v5684_v12 }
0x18d1   : > { %v3463_v26 = vpop.f32.mrb[74].mxu1 }
0x18d2   : > { %v3534_v27 = vpack.c.bf16 %v3463_v26, %v3460_v23  ;;  %v5318_v29 = vpop.f32.mrb[75].mxu1  ;;  %5324 = vmatmul.mubr.msk.bf16.vlgmr.msra.gmra.mrb[76].mxu0 %vm1208_vm1, %v6268_v25 }
0x18d3   : > { %5335 = vmatprep.mubr.msk.bf16.mxu0 %vm5685_vm2, %v5684_v12  ;;  %v4866_v29 = vld [vmem:[%s5959_s25 + $0x3] ss:$0 sm:$0xff] }
0x18d4   : > { %v3539_v31 = vsel %vm1423_vm3, %v3534_v27, 0 }
0x18d5   : > { %5328 = vmatpush3.bf16.xpose.msra.mxu1 %v3539_v31 }
0x18d6   : > { %5339 = vmatprep.subr.bf16.mxu1 %v5684_v12 }
0x1995   : > { %v3291_v32 = vpop.f32.mrb[68].mxu0 }
0x1996   : > { %v6384_v33 = vadd.f32 %v3337_v17, %v3291_v32  ;;  %v5295_v34 = vpop.f32.mrb[69].mxu0 }
0x1997   : > { %v3294_v30 = vpop.f32.mrb[70].mxu0 }
0x1998   : > { %v5296_v35 = vpop.f32.mrb[71].mxu0 }
0x199d   : > { %v3402_v37 = vpop.f32.mrb[72].mxu0 }
0x199e   : > { %v3403_v38 = vadd.f32 %v4837_v36, %v3402_v37  ;;  %v5309_v40 = vpop.f32.mrb[73].mxu0 }
0x199f   : > { %v3405_v41 = vpop.f32.mrb[74].mxu0  ;;  %v5536_v40 = vld [vmem:[%s5969_s5 + $0x30] sm:$0xff]  }
0x19a0   : > { %v3408_v42 = vmul.f32 0.35355338, %v3403_v38  ;;  %v5310_v43 = vpop.f32.mrb[75].mxu0  ;;  %v5537_v41 = vld [vmem:[%s5969_s5 + $0x38] sm:$0xff]   ;;  %s6702_s5 = scalar_lea.vmem %s6701_s6, %s5902_s27 }
0x19a2   : > { %v3533_v44 = vpack.c.bf16 %v3408_v42, %v3408_v42 }
0x19a4   : > { %5330 = vmatmul.mubr.msk.bf16.vlgmr.msra.gmra.mrb[76].mxu1 %vm1423_vm3, %v3533_v44 }
0x19a5   : > { %5341 = vmatprep.mubr.msk.bf16.mxu1 %vm5685_vm2, %v5684_v12  ;;  %v3526_v51 = vpop.f32.mrb[76].mxu0  ;;  %5340 = vmatpush3.bf16.msra.mxu1 %v3644_v0 }
0x19a6   : > { %v5325_v52 = vpop.f32.mrb[77].mxu0  ;;  %v3527_v19 = vadd.f32 %v4853_v59, %v3526_v51  ;;  %5353 = vmatprep.subr.bf16.mxu1 %v5684_v12 }
0x19a7   : > { %v3529_v58 = vpop.f32.mrb[78].mxu0  ;;  %v4882_v52 = vld [vmem:[%s6699_s16 + $0x3] ss:$0 sm:$0xff] }
0x19a8   : > { %v5326_v60 = vpop.f32.mrb[79].mxu0  ;;  %v3530_v61 = vadd.f32 %v4853_v59, %v3529_v58  ;;  %v4888_v59 = vld [vmem:[%s6700_s12 + $0xc] sm:$0xf] }
0x19aa   : > { %v3593_v62 = vpack.c.bf16 %v3530_v61, %v3527_v19  ;;  %v3988_v19 = vsel %vm1492_vm4, %v4888_v59, 0 }
0x19ac   : > { %5334 = vmatpush3.bf16.msra.mxu0 %v3593_v62 }
0x19ad   : > { %5345 = vmatprep.subr.bf16.mxu0 %v5684_v12 }
0x1a77   : > { %v3575_v28 = vpop.f32.mrb[76].mxu1 }
0x1a78   : > { %v5331_v47 = vpop.f32.mrb[77].mxu1  ;;  %v3581_v48 = vsel %vm2895_vm6, %v3575_v28, -inf }
0x1a79   : > { %3582 = vmax.xlane.f32.xlu0 %v3581_v48  ;;  %v3578_v49 = vpop.f32.mrb[78].mxu1 }
0x1a7a   : > { %v5332_v50 = vpop.f32.mrb[79].mxu1 }
0x1b06   : > { %v3583_v53 = vpop.xlane.xlu0 %3582 }
0x1b07   : > { %v3584_v54 = vsub.f32 %v3575_v28, %v3583_v53 }
0x1b09   : > { %v3585_v55 = vmul.f32 1.442695, %v3584_v54 }
0x1b0b   : > { %5572 = vpow2.f32 %v3585_v55 }
0x1b15   : > { %v5573_v56 = vpop.eup %5572 }
0x1b16   : > { %v3587_v57 = vsel %vm2895_vm6, %v5573_v56, 0.0 }
0x1b17   : > { %3588 = vadd.xlane.f32.xlu1 %v3587_v57 }
0x1ba4   : > { %v3589_v1 = vpop.xlane.xlu1 %3588 }
0x1ba5   : > { %5574 = vrcp.f32 %v3589_v1 }
0x1baf   : > { %v5575_v2 = vpop.eup %5574 }
0x1bb0   : > { %v3591_v4 = vmul.f32 %v5575_v2, %v5573_v56 }
0x1bb2   : > { %v3592_v6 = vpack.c.bf16 %v3591_v4, %v3591_v4 }
0x1bb4   : > { %5336 = vmatmul.mubr.msk.bf16.vlgmr.msra.gmra.mrb[80].mxu0 %vm2895_vm6, %v3592_v6 }
0x1bb5   : > { %5346 = vmatpush3.bf16.msra.mxu0 %v5532_v5  ;;  %5349 = vmatprep.mubr.msk.bf16.mxu0 %vm5685_vm2, %v5684_v12  ;;  %v4890_v5 = vld [vmem:[%s6702_s5] ss:$0 sm:$0xff] }
0x1bb6   : > { %5347 = vmatprep.subr.bf16.mxu0 %v5684_v12 }
0x1bb9   : > { %5348 = vmatpush3.bf16.msra.mxu0 %v5533_v7 }
0x1bba   : > { %5361 = vmatprep.subr.bf16.mxu0 %v5684_v12 }
0x1bbc   : > { %5350 = vmatmul.mubr.msk.bf16.vlgmr.msra.gmra.mrb[84].mxu0 %vm1208_vm1, %v6286_v39 }
0x1bbd   : > { %5365 = vmatprep.mubr.msk.bf16.mxu0 %vm5685_vm2, %v5684_v12  ;;  %5362 = vmatpush3.bf16.msra.mxu0 %v5536_v40  ;;  %v5543_v40 = vld [vmem:[%s6013_s10 + $0x18] sm:$0xff]  }
0x1bbe   : > { %5363 = vmatprep.subr.bf16.mxu0 %v5684_v12 }
0x1bc1   : > { %5364 = vmatpush3.bf16.msra.mxu0 %v5537_v41  ;;  %v4891_v41 = vld [vmem:[%s1185_s29] ss:$0 sm:$0xff] }
0x1bc2   : > { %5375 = vmatprep.subr.bf16.mxu0 %v5684_v12 }
0x1bc4   : > { %5366 = vmatmul.mubr.msk.bf16.vlgmr.msra.gmra.mrb[88].mxu0 %vm1208_vm1, %v6268_v25 }
0x1bc5   : > { %5377 = vmatprep.mubr.msk.bf16.mxu0 %vm5685_vm2, %v5684_v12 }
0x1c87   : > { %v3631_v8 = vpop.f32.mrb[80].mxu0 }
0x1c88   : > { %v3637_v10 = vpack.c.bf16 %v3631_v8, %v3631_v8  ;;  %v5337_v13 = vpop.f32.mrb[81].mxu0 }
0x1c89   : > { %v3634_v14 = vpop.f32.mrb[82].mxu0 }
0x1c8a   : > { %v5338_v15 = vpop.f32.mrb[83].mxu0  ;;  %5342 = vmatmul.mubr.msk.bf16.vlgmr.msra.gmra.mrb[80].mxu1 %vm1423_vm3, %v3637_v10 }
0x1c8b   : > { %5354 = vmatpush3.bf16.msra.mxu1 %v5534_v9  ;;  %5357 = vmatprep.mubr.msk.bf16.mxu1 %vm5685_vm2, %v5684_v12 }
0x1c8c   : > { %5355 = vmatprep.subr.bf16.mxu1 %v5684_v12 }
0x1c8f   : > { %v3746_v39 = vpop.f32.mrb[84].mxu0  ;;  %5356 = vmatpush3.bf16.msra.mxu1 %v5535_v16 }
0x1c90   : > { %v5351_v17 = vpop.f32.mrb[85].mxu0  ;;  %5369 = vmatprep.subr.bf16.mxu1 %v5684_v12  ;;  %v3747_v30 = vadd.f32 %v4866_v29, %v3746_v39 }
0x1c91   : > { %v3749_v18 = vpop.f32.mrb[86].mxu0 }
0x1c92   : > { %v5352_v21 = vpop.f32.mrb[87].mxu0  ;;  %5358 = vmatmul.mubr.msk.bf16.vlgmr.msra.gmra.mrb[84].mxu1 %vm1208_vm1, %v6268_v25  ;;  %v3752_v38 = vmul.f32 0.35355338, %v3747_v30 }
0x1c93   : > { %5371 = vmatprep.mubr.msk.bf16.mxu1 %vm5685_vm2, %v5684_v12 }
0x1c97   : > { %v3870_v28 = vpop.f32.mrb[88].mxu0 }
0x1c98   : > { %v5367_v47 = vpop.f32.mrb[89].mxu0  ;;  %v3871_v53 = vadd.f32 %v4882_v52, %v3870_v28 }
0x1c99   : > { %v3873_v54 = vpop.f32.mrb[90].mxu0 }
0x1c9a   : > { %v5368_v55 = vpop.f32.mrb[91].mxu0  ;;  %v3874_v56 = vadd.f32 %v4882_v52, %v3873_v54  ;;  %v4895_v54 = vld [vmem:[%s1193_s9] ss:$0 sm:$0xff] }
0x1c9c   : > { %v3937_v57 = vpack.c.bf16 %v3874_v56, %v3871_v53 }
0x1c9e   : > { %5376 = vmatpush3.bf16.msra.mxu0 %v3937_v57 }
0x1c9f   : > { %5387 = vmatprep.subr.bf16.mxu0 %v5684_v12 }
0x1d5d   : > { %v3680_v3 = vpop.f32.mrb[80].mxu1 }
0x1d5e   : > { %v6428_v23 = vadd.f32 %v3680_v3, %v6384_v33  ;;  %v5343_v24 = vpop.f32.mrb[81].mxu1  ;;  %v3877_v33 = vpack.c.bf16 %v3752_v38, %v3752_v38  ;;  %v5538_v3 = vld [vmem:[%s6003_s26] sm:$0xff]   ;;  %v5541_v38 = vld [vmem:[%s6013_s10 + $0x8] sm:$0xff]  }
0x1d5f   : > { %v3683_v26 = vpop.f32.mrb[82].mxu1 }
0x1d60   : > { %v5344_v27 = vpop.f32.mrb[83].mxu1 }
0x1d61   : > { %v4039_v27 = vld [vmem:[%s6703_s2] sm:$0x3] }
0x1d62   : > { %v4056_v29 = vrot.slane %v4039_v27, %v6049_v20 }
0x1d65   : > { %v3804_v31 = vpop.f32.mrb[84].mxu1 }
0x1d66   : > { %v5359_v32 = vpop.f32.mrb[85].mxu1 }
0x1d67   : > { %v3807_v34 = vpop.f32.mrb[86].mxu1 }
0x1d68   : > { %v3878_v35 = vpack.c.bf16 %v3807_v34, %v3804_v31  ;;  %v5360_v36 = vpop.f32.mrb[87].mxu1  ;;  %v4061_v34 = vrot.slane %v4039_v27, %v6057_v22 }
0x1d6a   : > { %v3883_v37 = vsel %vm1423_vm3, %v3878_v35, 0 }
0x1d6b   : > { %5370 = vmatpush3.bf16.xpose.msra.mxu1 %v3883_v37  ;;  %v5540_v37 = vld [vmem:[%s6013_s10] sm:$0xff]  }
0x1d6c   : > { %5381 = vmatprep.subr.bf16.mxu1 %v5684_v12 }
0x1d72   : > { %5372 = vmatmul.mubr.msk.bf16.vlgmr.msra.gmra.mrb[88].mxu1 %vm1423_vm3, %v3877_v33  ;;  %v5542_v33 = vld [vmem:[%s6013_s10 + $0x10] sm:$0xff]  }
0x1d73   : > { %5383 = vmatprep.mubr.msk.bf16.mxu1 %vm5685_vm2, %v5684_v12  ;;  %5382 = vmatpush3.bf16.msra.mxu1 %v3988_v19 }
0x1d74   : > { %5395 = vmatprep.subr.bf16.mxu1 %v5684_v12 }
0x1e45   : > { %v3919_v42 = vpop.f32.mrb[88].mxu1 }
0x1e46   : > { %v5373_v43 = vpop.f32.mrb[89].mxu1  ;;  %v3925_v44 = vsel %vm2895_vm6, %v3919_v42, -inf }
0x1e47   : > { %3926 = vmax.xlane.f32.xlu0 %v3925_v44  ;;  %v3922_v45 = vpop.f32.mrb[90].mxu1 }
0x1e48   : > { %v5374_v46 = vpop.f32.mrb[91].mxu1 }
0x1ed4   : > { %v3927_v48 = vpop.xlane.xlu0 %3926 }
0x1ed5   : > { %v3928_v49 = vsub.f32 %v3919_v42, %v3927_v48 }
0x1ed7   : > { %v3929_v50 = vmul.f32 1.442695, %v3928_v49 }
0x1ed9   : > { %5576 = vpow2.f32 %v3929_v50 }
0x1ee3   : > { %v5577_v51 = vpop.eup %5576 }
0x1ee4   : > { %v3931_v25 = vsel %vm2895_vm6, %v5577_v51, 0.0 }
0x1ee5   : > { %3932 = vadd.xlane.f32.xlu1 %v3931_v25 }
0x1f72   : > { %v3933_v58 = vpop.xlane.xlu1 %3932 }
0x1f73   : > { %5578 = vrcp.f32 %v3933_v58 }
0x1f7d   : > { %v5579_v60 = vpop.eup %5578 }
0x1f7e   : > { %v3935_v61 = vmul.f32 %v5579_v60, %v5577_v51 }
0x1f80   : > { %v3936_v62 = vpack.c.bf16 %v3935_v61, %v3935_v61 }
0x1f82   : > { %5378 = vmatmul.mubr.msk.bf16.vlgmr.msra.gmra.mrb[92].mxu0 %vm2895_vm6, %v3936_v62 }
0x1f83   : > { %5391 = vmatprep.mubr.msk.bf16.mxu0 %vm5685_vm2, %v5684_v12  ;;  %5388 = vmatpush3.bf16.msra.mxu0 %v5538_v3 }
0x1f84   : > { %5389 = vmatprep.subr.bf16.mxu0 %v5684_v12 }
0x2055   : > { %v3975_v63 = vpop.f32.mrb[92].mxu0 }
0x2056   : > { %v3981_v0 = vpack.c.bf16 %v3975_v63, %v3975_v63  ;;  %v5379_v1 = vpop.f32.mrb[93].mxu0 }
0x2057   : > { %v3978_v2 = vpop.f32.mrb[94].mxu0 }
0x2058   : > { %v5380_v4 = vpop.f32.mrb[95].mxu0  ;;  %5384 = vmatmul.mubr.msk.bf16.vlgmr.msra.gmra.mrb[92].mxu1 %vm1423_vm3, %v3981_v0  ;;  %v5584_v2 = vld [vmem:[%s6707_s8] sm:$0xff] (!%p4901_p1)  }
0x2059   : > { %5403 = vmatprep.mubr.msk.bf16.mxu1 %vm5685_vm2, %v5684_v12  ;;  %5396 = vmatpush3.bf16.msra.mxu1 %v5540_v37  ;;  %v5686_v4 = vmov (!%p4901_p1), 0.0  }
0x205a   : > { %5397 = vmatprep.subr.bf16.mxu1 %v5684_v12 }
0x205d   : > { %5398 = vmatpush3.bf16.msra.mxu1 %v5541_v38 }
0x205e   : > { %5399 = vmatprep.subr.bf16.mxu1 %v5684_v12 }
0x2061   : > { %5400 = vmatpush3.bf16.msra.mxu1 %v5542_v33 }
0x2062   : > { %5401 = vmatprep.subr.bf16.mxu1 %v5684_v12 }
0x2065   : > { %5402 = vmatpush3.bf16.msra.mxu1 %v5543_v40 }
0x212b   : > { %v4024_v6 = vpop.f32.mrb[92].mxu1 }
0x212c   : > { %v4030_v7 = vadd.f32 %v4024_v6, %v6428_v23  ;;  %v5385_v8 = vpop.f32.mrb[93].mxu1  ;;  %v5539_v23 = vld [vmem:[%s6003_s26 + $0x8] sm:$0xff]  }
0x212d   : > { %v4027_v9 = vpop.f32.mrb[94].mxu1  ;;  %5390 = vmatpush3.bf16.msra.mxu0 %v5539_v23 }
0x212e   : > { %v4037_v10 = vadd.f32 %v4890_v5, %v4030_v7  ;;  %v5386_v13 = vpop.f32.mrb[95].mxu1  ;;  %5407 = vmatprep.subr.bf16.mxu0 (!%p4901_p1), %v5686_v4  ;;  %v5585_v5 = vld [vmem:[%s6708_s1 + $0x8] sm:$0xff] (!%p4901_p1)   ;;  %v4229_v9 = vld [vmem:[%s6709_s15] sm:$0x3] (!%p4901_p1) }
0x2130   : > { %v4038_v14 = vadd.f32 %v4037_v10, %v6257_v11  ;;  %v4246_v10 = vrot.slane (!%p4901_p1), %v4229_v9, %v6049_v20 }
0x2132   : > { %v4040_v15 = vsel %vm1208_vm1, %v4038_v14, 0.0 }
0x2133   : > { %4041 = vadd.xlane.f32.xlu0 %v4040_v15  ;;  %v4251_v15 = vrot.slane (!%p4901_p1), %v4229_v9, %v6057_v22 }
0x21c0   : > { %v4042_v16 = vpop.xlane.xlu0 %4041 }
0x21c1   : > { %v4043_v39 = vmul.f32 0.03125, %v4042_v16 }
0x21c3   : > { %v4044_v17 = vsub.f32 %v4038_v14, %v4043_v39 }
0x21c5   : > { %v4045_v18 = vmul.f32 %v4044_v17, %v4044_v17 }
0x21c7   : > { %v4046_v21 = vsel %vm1208_vm1, %v4045_v18, 0.0 }
0x21c8   : > { %4047 = vadd.xlane.f32.xlu1 %v4046_v21 }
0x2255   : > { %v4048_v11 = vpop.xlane.xlu1 %4047 }
0x2256   : > { %v4049_v24 = vmul.f32 0.03125, %v4048_v11 }
0x2258   : > { %v4050_v26 = vadd.f32 1e-05, %v4049_v24 }
0x225a   : > { %5580 = vrsqrt.f32 %v4050_v26 }
0x2264   : > { %v5581_v31 = vpop.eup %5580 }
0x2265   : > { %v4052_v32 = vmul.f32 %v5581_v31, %v4044_v17 }
0x2267   : > { %v4057_v30 = vmul.f32 %v4056_v29, %v4052_v32 }
0x2269   : > { %v4062_v35 = vadd.f32 %v4061_v34, %v4057_v30 }
0x226b   : > { %v4077_v36 = vpack.c.bf16 %v4062_v35, %v4062_v35 }
0x226d   : > { %5392 = vmatmul.mubr.msk.bf16.vlgmr.msra.gmra.mrb[96].mxu0 %vm1208_vm1, %v4077_v36 }
0x226e   : > { %5411 = vmatprep.mubr.msk.bf16.mxu0 (!%p4901_p1), %vm5687_vm8, %v5686_v4  ;;  %5408 = vmatpush3.bf16.msra.mxu0 (!%p4901_p1), %v5584_v2 }
0x226f   : > { %5409 = vmatprep.subr.bf16.mxu0 (!%p4901_p1), %v5686_v4 }
0x2272   : > { %5410 = vmatpush3.bf16.msra.mxu0 (!%p4901_p1), %v5585_v5 }
0x2340   : > { %v4133_v42 = vpop.f32.mrb[96].mxu0 }
0x2341   : > { %v4134_v43 = vadd.f32 %v4891_v41, %v4133_v42  ;;  %v5393_v44 = vpop.f32.mrb[97].mxu0 }
0x2342   : > { %v4136_v45 = vpop.f32.mrb[98].mxu0 }
0x2343   : > { %v4140_v46 = vmul.f32 0.044715, %v4134_v43  ;;  %v5394_v28 = vpop.f32.mrb[99].mxu0  ;;  %v4139_v12 = vmul.f32 0.5, %v4134_v43 }
0x2345   : > { %v4141_v47 = vmul.f32 %v4140_v46, %v4134_v43 }
0x2347   : > { %v4142_v48 = vmul.f32 %v4141_v47, %v4134_v43 }
0x2349   : > { %v4143_v49 = vadd.f32 %v4142_v48, %v4134_v43 }
0x234b   : > { %v4144_v50 = vmul.f32 0.7978846, %v4143_v49 }
0x234d   : > { %5582 = vtanh.f32 %v4144_v50 }
0x2357   : > { %v5583_v51 = vpop.eup %5582 }
0x2358   : > { %v4146_v25 = vadd.f32 1.0, %v5583_v51 }
0x235a   : > { %v4147_v52 = vmul.f32 %v4146_v25, %v4139_v12 }
0x235c   : > { %v4148_v53 = vpack.c.bf16 %v4147_v52, %v4147_v52 }
0x235e   : > { %5404 = vmatmul.mubr.msk.bf16.vlgmr.msra.gmra.mrb[96].mxu1 %vm4179_vm7, %v4148_v53 }
0x2430   : > { %4228 = sbr.rel (%p4901_p1) target bundleno = 9800 (0x2648), region = 132 }
0x2431   : > { %v4217_v55 = vpop.f32.mrb[96].mxu1 }
0x2432   : > { %v4218_v56 = vadd.f32 %v4895_v54, %v4217_v55  ;;  %v5405_v57 = vpop.f32.mrb[97].mxu1 }
0x2433   : > { %v4220_v59 = vpop.f32.mrb[98].mxu1 }
0x2434   : > { %v4223_v19 = vadd.f32 %v4218_v56, %v4038_v14  ;;  %v5406_v58 = vpop.f32.mrb[99].mxu1 }
0x2436   : > { %4224 = vst.msk [vmem:[#allocation2] sm:$0xff] %vm1208_vm1, %v4223_v19  ;;  %v4230_v60 = vsel (!%p4901_p1), %vm1208_vm1, %v4223_v19, 0.0 }
0x2437   : > { %4231 = vadd.xlane.f32.xlu0 %v4230_v60 }
0x24c4   : > { %v4232_v61 = vpop.xlane.xlu0 %4231 }
0x24c5   : > { %v4233_v62 = vmul.f32 0.03125, %v4232_v61 }
0x24c7   : > { %v4234_v63 = vsub.f32 %v4223_v19, %v4233_v62 }
0x24c9   : > { %v4235_v0 = vmul.f32 %v4234_v63, %v4234_v63 }
0x24cb   : > { %v4236_v1 = vsel %vm1208_vm1, %v4235_v0, 0.0 }
0x24cc   : > { %4237 = vadd.xlane.f32.xlu0 %v4236_v1 }
0x2559   : > { %v4238_v6 = vpop.xlane.xlu0 %4237 }
0x255a   : > { %v4239_v7 = vmul.f32 0.03125, %v4238_v6 }
0x255c   : > { %v4240_v8 = vadd.f32 1e-05, %v4239_v7 }
0x255e   : > { %5586 = vrsqrt.f32 %v4240_v8 }
0x2568   : > { %v5587_v13 = vpop.eup %5586 }
0x2569   : > { %v4242_v14 = vmul.f32 %v5587_v13, %v4234_v63 }
0x256b   : > { %v4247_v16 = vmul.f32 %v4246_v10, %v4242_v14 }
0x256d   : > { %v4252_v39 = vadd.f32 %v4251_v15, %v4247_v16 }
0x256f   : > { %v4253_v17 = vpack.c.bf16 %v4252_v39, %v4252_v39 }
0x2571   : > { %5412 = vmatmul.mubr.msk.bf16.vlgmr.msra.gmra.mrb[0].mxu0 %vm1208_vm1, %v4253_v17 }
0x2644   : > { %v4307_v18 = vpop.f32.mrb[0].mxu0 }
0x2645   : > { %4313 = vst.msk [vmem:[%s1094_s7] sm:$0xff] %vm4179_vm7, %v4307_v18  ;;  %v5413_v21 = vpop.f32.mrb[1].mxu0 }
0x2646   : > { %v4310_v3 = vpop.f32.mrb[2].mxu0 }
0x2647   : > { %v5414_v23 = vpop.f32.mrb[3].mxu0 }
0x2648 PF: > { %s6710_s16 = sld [smem:[#allocation10_spill]]  ;;  %s6711_s12 = sld [smem:[#allocation7_spill]] }
0x2649   : > { %s6713_s24 = sld [smem:[#allocation50_spill]]  ;;  %s4328_s2 = sshll.u32 %s1094_s7, 4  ;;  %s4329_s2 = int_to_ptr.vmem [resolvable:$true] %s4328_s2 }
0x264a   : > { %s5588_s0 = scalar_lea.vmem %s4329_s2, 128  ;;  %s5688_s10 = smov [#allocation3]  }
0x264b   : > { %p5589_p2 = scmp.ne.s32.totalorder %s4329_s2, %s5588_s0  ;;  %s5592_s29 = sshll.u32 %s5688_s10, 4  ;;  %s5593_s29 = int_to_ptr.vmem [resolvable:$false] %s5592_s29 }
0x264c   : > { %s5594_s3 = scalar_lea.vmem %s5593_s29, 256  ;;  %p5595_p6 = scmp.lt.s32.totalorder %s4329_s2, %s5593_s29 }
0x264d   : > { %p5590_p4 = pnand %p5589_p2, %p5873_p3  ;;  %p5596_p7 = scmp.lt.s32.totalorder %s5594_s3, %s5588_s0 }
0x264e   : > { %s4906_s25 = sshll.u32 %s6710_s16, 7  ;;  %s6714_s21 = sand.u32 1, %s6711_s12  }
0x264f   : > { %s6518_s22 = scalar_lea.hbm %s6713_s24, %s4906_s25  ;;  %s4315_s26 = scalar_lea.sflag [#allocation4], %s6714_s21 }
0x2650   : > { %p5591_p5 = pneg %p5590_p4  ;;  %p5597_p8 = por %p5596_p7, %p5595_p6 }
0x2652   : > { %p5598_p10 = pnand %p5597_p8, %p5591_p5 }
0x2654   : > { %5601 = shalt.err (!%p5598_p10)
}
0x2655   : > { %s5602_s4 = scalar_lea.hbm %s6518_s22, 128  ;;  %s5606_s27 = scalar_lea.hbm %s6713_s24, 256 }
0x2656   : > { %p5603_p11 = scmp.ne.s32.totalorder %s6518_s22, %s5602_s4  ;;  %p5607_p0 = scmp.lt.u32.totalorder %s6518_s22, %s6713_s24 }
0x2657   : > { %p5608_p1 = scmp.lt.u32.totalorder %s5606_s27, %s5602_s4  ;;  %p5610_p4 = scmp.lt.u32.totalorder %s5602_s4, %s6518_s22 }
0x2658   : > { %p5604_p12 = pnand %p5603_p11, %p5873_p3 }
0x2659   : > { %p5609_p2 = por %p5608_p1, %p5607_p0 }
0x265a   : > { %p5605_p13 = pneg %p5604_p12 }
0x265b   : > { %p5611_p5 = por %p5610_p4, %p5609_p2 }
0x265d   : > { %p5612_p6 = pnand %p5611_p5, %p5605_p13 }
0x265f   : > { %5615 = shalt.err (!%p5612_p6)
}
0x2660   : > { %5415 = dma.vmem_to_hbm [thread:$0]  (%p5873_p3), %s4329_s2, 128, %s6518_s22, %s4315_s26  }
0x2661 PF: > { %s6715_s13 = sld [smem:[#allocation13_spill]]  ;;  %s6716_s23 = sld [smem:[#allocation6_spill]] }
0x2667   : > { %p5421_p7 = scmp.ge.s32.totalorder %s6715_s13, 2  ;;  %s4340_s14 = sand.u32 1, %s6716_s23  }
0x2668   : > { %s4341_s15 = scalar_lea.sflag [#allocation4], %s4340_s14 }
0x2669   : > { %p5418_p8 = pnand %p5421_p7, %p5883_p9 }
0x266b   : > { %5649 = dma.done.wait (!%p5418_p8), %s4341_s15, 128  }
0x266c   : > { %5651 = vsyncadd (!%p5418_p8), %s4341_s15, 4294967168  ;;  %s39_s0 = sadd.s32 1, %s6715_s13   ;;  %s6718_s27 = sld [smem:[#allocation7_spill]] }
0x266d   : > { %p36_p10 = scmp.ge.s32.totalorder %s39_s0, 6   ;;  %s6719_s3 = sld [smem:[#allocation8_spill]] }
0x266e   : > { %s6720_s7 = sld [smem:[#allocation18_spill]]  ;;  %s6721_s28 = sld [smem:[#allocation11_spill]] }
0x266f   : > { %s6722_s8 = sld [smem:[#allocation12_spill]]  ;;  %s6723_s4 = sld [smem:[#allocation14_spill]] }
0x2670   : > { %s6724_s29 = sld [smem:[#allocation16_spill]]  ;;  %38 = sbr.rel (!%p36_p10) target bundleno = 29 (0x1d), region = 269 }
0x2677   :  { %4346 = vsyncpa [#allocation4], 1 }
0x2678   :  { %4348 = vsyncpa [#allocation4 + $0x1], 1 }

</bundles_post_ra>
